<compile_context>
chip_gen: v7x
topology: tpu7x:2x2x1
jax: 0.10.0
libtpu: 0.0.40
codegen_flags: <defaults>
</compile_context>

<pallas_src>
import functools

import jax
import jax.numpy as jnp
from jax import lax
from jax.experimental import pallas as pl
from jax.experimental.pallas import tpu as pltpu

ACT_DTYPE = jnp.bfloat16        # HBM storage dtype for inter-kernel activations
MXU_DTYPE = jnp.bfloat16        # matmul operand dtype
BN_EPS = 1e-5
_VMEM_LIMIT = 32 * 1024 * 1024  # explicit scoped-VMEM limit (safe on v5e/v6e/v7x)


def _round_up(x, m):
    return ((x + m - 1) // m) * m


# ---------------------------------------------------------------------------
# upconv: ConvTranspose2d(kernel=2, stride=2) == one (H*W, Cin)@(Cin, 4*Cout) matmul.
# The kernel writes its output already sub-pixel interleaved as (h, 2, w, 2*Cout), so the
# wrapper-side conversion to the (2h, 2w, Cout) image is a *pure* (free) reshape.
# ---------------------------------------------------------------------------

def _upconv_kernel(x_ref, w_ref, b_ref, o_ref):
    h, _, w, c2 = o_ref.shape                       # c2 == 2 * c_up
    y = jnp.dot(x_ref[...], w_ref[...], preferred_element_type=jnp.float32)
    y = (y + b_ref[...]).reshape(h, w, 2 * c2)      # (h, w, 4*c_up), tile-aligned split
    o_ref[:, 0, :, :] = y[:, :, :c2].astype(o_ref.dtype)   # output image rows 2i
    o_ref[:, 1, :, :] = y[:, :, c2:].astype(o_ref.dtype)   # output image rows 2i + 1


def upconv_2x2_s2(x_flat, w_mat, bias4, *, h, w, c_up):
    n, hw, c_in = x_flat.shape
    return pl.pallas_call(
        _upconv_kernel,
        out_shape=jax.ShapeDtypeStruct((n, h, 2, w, 2 * c_up), ACT_DTYPE),
        grid=(n,),
        in_specs=[
            pl.BlockSpec((None, hw, c_in), lambda i: (i, 0, 0)),
            pl.BlockSpec(w_mat.shape, lambda i: (0, 0)),
            pl.BlockSpec(bias4.shape, lambda i: (0, 0)),
        ],
        out_specs=pl.BlockSpec((None, h, 2, w, 2 * c_up), lambda i: (i, 0, 0, 0, 0)),
        compiler_params=pltpu.CompilerParams(
            dimension_semantics=("parallel",), vmem_limit_bytes=_VMEM_LIMIT),
    )(x_flat, w_mat, bias4)


# ---------------------------------------------------------------------------
# conv1: 3x3/pad=1 conv over [upsampled ++ skip] channels (concat never materialized)
#        + fused per-channel batch statistics of its own output.
# Inputs are in the "junk-column" flat layout: each image row padded from W to wp = W+2
# columns with zeros and the rows flattened (row stride wp), so the zero junk columns act
# as the left/right padding once the whole block is row-shifted into the padded scratch.
# ---------------------------------------------------------------------------

def _conv1_kernel(up_ref, sk_ref, mask_ref, w_ref, b_ref,
                  y_ref, s_ref, q_ref, up_s, sk_s, *, wp, m_out, start):
    f32 = jnp.float32
    pad = wp + 1
    c_up = up_s.shape[-1]
    c_sk = sk_s.shape[-1]
    r_flat = up_s.shape[0]

    # Zero the padding regions every step: the batch grid axis is "parallel" (megacore),
    # so an only-on-first-iteration init would be unsafe.  This is a few KiB of stores.
    up_s[0:start, :] = jnp.zeros((start, c_up), f32)
    up_s[start + m_out:r_flat, :] = jnp.zeros((r_flat - start - m_out, c_up), f32)
    sk_s[0:start, :] = jnp.zeros((start, c_sk), f32)
    sk_s[start + m_out:r_flat, :] = jnp.zeros((r_flat - start - m_out, c_sk), f32)

    # Interior: a single row-shifted, sublane-aligned store per input (start % 8 == 0).
    up_s[start:start + m_out, :] = up_ref[...].astype(f32)
    sk_s[start:start + m_out, :] = sk_ref[...].astype(f32)

    # Fold the 9 taps x (up ++ skip) channel split into ONE bf16 contraction: K = 9*(cu+cs)
    base = start - pad
    pieces = []
    for ky in range(3):
        for kx in range(3):
            off = base + ky * wp + kx
            pieces.append(up_s[off:off + m_out, :].astype(MXU_DTYPE))
            pieces.append(sk_s[off:off + m_out, :].astype(MXU_DTYPE))
    patches = jnp.concatenate(pieces, axis=-1)              # (m_out, 9*(cu+cs)) bf16
    y = jnp.dot(patches, w_ref[...], preferred_element_type=f32) + b_ref[...]

    y_store = y.astype(y_ref.dtype)
    y_ref[...] = y_store

    # BN batch statistics of the bf16-rounded activations actually consumed downstream,
    # junk columns masked out (mask is 0/1, so mask*y*mask*y == mask*y*y).
    yr = y_store.astype(f32) * mask_ref[...]
    s_ref[...] = jnp.sum(yr, axis=0, keepdims=True)
    q_ref[...] = jnp.sum(yr * yr, axis=0, keepdims=True)


def conv3x3_dual_fused(up_jc, sk_jc, mask, w_mat, bias, *, wp, m_out):
    n, _, c_up = up_jc.shape
    c_sk = sk_jc.shape[-1]
    c_out = w_mat.shape[-1]
    pad = wp + 1
    start = _round_up(pad, 8)
    r_flat = start + m_out + pad
    kernel = functools.partial(_conv1_kernel, wp=wp, m_out=m_out, start=start)
    flops = 2 * n * m_out * 9 * (c_up + c_sk) * c_out
    bytes_accessed = int(up_jc.size * up_jc.dtype.itemsize
                         + sk_jc.size * sk_jc.dtype.itemsize
                         + n * m_out * c_out * 2 + w_mat.size * 2)
    return pl.pallas_call(
        kernel,
        out_shape=(
            jax.ShapeDtypeStruct((n, m_out, c_out), ACT_DTYPE),
            jax.ShapeDtypeStruct((n, 1, c_out), jnp.float32),
            jax.ShapeDtypeStruct((n, 1, c_out), jnp.float32),
        ),
        grid=(n,),
        in_specs=[
            pl.BlockSpec((None, m_out, c_up), lambda i: (i, 0, 0)),
            pl.BlockSpec((None, m_out, c_sk), lambda i: (i, 0, 0)),
            pl.BlockSpec((m_out, c_out), lambda i: (0, 0)),
            pl.BlockSpec(w_mat.shape, lambda i: (0, 0)),
            pl.BlockSpec((1, c_out), lambda i: (0, 0)),
        ],
        out_specs=(
            pl.BlockSpec((None, m_out, c_out), lambda i: (i, 0, 0)),
            pl.BlockSpec((None, 1, c_out), lambda i: (i, 0, 0)),
            pl.BlockSpec((None, 1, c_out), lambda i: (i, 0, 0)),
        ),
        scratch_shapes=[
            pltpu.VMEM((r_flat, c_up), jnp.float32),
            pltpu.VMEM((r_flat, c_sk), jnp.float32),
        ],
        compiler_params=pltpu.CompilerParams(
            dimension_semantics=("parallel",), vmem_limit_bytes=_VMEM_LIMIT),
        cost_estimate=pl.CostEstimate(flops=flops, transcendentals=0,
                                      bytes_accessed=bytes_accessed),
    )(up_jc, sk_jc, mask, w_mat, bias)


# ---------------------------------------------------------------------------
# conv2: applies bn1 + ReLU to conv1's raw output inside the kernel, rebuilds the padded
# flat layout in a f32 VMEM scratch (single row-shifted store), then runs one folded
# K = 9*Cmid bf16 contraction and emits conv2 output + its batch stats.
# ---------------------------------------------------------------------------

def _conv2_kernel(y1_ref, scale_ref, shift_ref, mask_ref, w_ref, b_ref,
                  y_ref, s_ref, q_ref, zp_s, *, wp, m_out, start):
    f32 = jnp.float32
    pad = wp + 1
    c_in = zp_s.shape[-1]
    r_flat = zp_s.shape[0]

    # bn1 + ReLU on the previous conv output; junk columns forced to zero so they act as
    # the left/right zero padding after the row shift below.
    z = jnp.maximum(y1_ref[...].astype(f32) * scale_ref[...] + shift_ref[...], 0.0)
    z = z * mask_ref[...]

    zp_s[0:start, :] = jnp.zeros((start, c_in), f32)
    zp_s[start + m_out:r_flat, :] = jnp.zeros((r_flat - start - m_out, c_in), f32)
    zp_s[start:start + m_out, :] = z

    base = start - pad
    pieces = [zp_s[base + ky * wp + kx: base + ky * wp + kx + m_out, :].astype(MXU_DTYPE)
              for ky in range(3) for kx in range(3)]
    patches = jnp.concatenate(pieces, axis=-1)               # (m_out, 9*c_in) bf16
    y = jnp.dot(patches, w_ref[...], preferred_element_type=f32) + b_ref[...]

    y_store = y.astype(y_ref.dtype)
    y_ref[...] = y_store
    yr = y_store.astype(f32) * mask_ref[...]
    s_ref[...] = jnp.sum(yr, axis=0, keepdims=True)
    q_ref[...] = jnp.sum(yr * yr, axis=0, keepdims=True)


def conv3x3_bn_fused(y1, scale, shift, mask, w_mat, bias, *, wp, m_out):
    n, _, c_in = y1.shape
    c_out = w_mat.shape[-1]
    pad = wp + 1
    start = _round_up(pad, 8)
    r_flat = start + m_out + pad
    kernel = functools.partial(_conv2_kernel, wp=wp, m_out=m_out, start=start)
    flops = 2 * n * m_out * 9 * c_in * c_out
    bytes_accessed = int(y1.size * y1.dtype.itemsize + n * m_out * c_out * 2
                         + w_mat.size * 2)
    return pl.pallas_call(
        kernel,
        out_shape=(
            jax.ShapeDtypeStruct((n, m_out, c_out), ACT_DTYPE),
            jax.ShapeDtypeStruct((n, 1, c_out), jnp.float32),
            jax.ShapeDtypeStruct((n, 1, c_out), jnp.float32),
        ),
        grid=(n,),
        in_specs=[
            pl.BlockSpec((None, m_out, c_in), lambda i: (i, 0, 0)),
            pl.BlockSpec((1, c_in), lambda i: (0, 0)),
            pl.BlockSpec((1, c_in), lambda i: (0, 0)),
            pl.BlockSpec((m_out, c_in), lambda i: (0, 0)),
            pl.BlockSpec(w_mat.shape, lambda i: (0, 0)),
            pl.BlockSpec((1, c_out), lambda i: (0, 0)),
        ],
        out_specs=(
            pl.BlockSpec((None, m_out, c_out), lambda i: (i, 0, 0)),
            pl.BlockSpec((None, 1, c_out), lambda i: (i, 0, 0)),
            pl.BlockSpec((None, 1, c_out), lambda i: (i, 0, 0)),
        ),
        scratch_shapes=[pltpu.VMEM((r_flat, c_in), jnp.float32)],
        compiler_params=pltpu.CompilerParams(
            dimension_semantics=("parallel",), vmem_limit_bytes=_VMEM_LIMIT),
        cost_estimate=pl.CostEstimate(flops=flops, transcendentals=0,
                                      bytes_accessed=bytes_accessed),
    )(y1, scale, shift, mask, w_mat, bias)


# ---------------------------------------------------------------------------
# final bn2 + ReLU (the only standalone elementwise pass left)
# ---------------------------------------------------------------------------

def _bn_relu_kernel(x_ref, scale_ref, shift_ref, o_ref):
    o_ref[...] = jnp.maximum(
        x_ref[...].astype(jnp.float32) * scale_ref[...] + shift_ref[...], 0.0)


def bn_relu(x_flat, scale, shift):
    n, m, c = x_flat.shape
    return pl.pallas_call(
        _bn_relu_kernel,
        out_shape=jax.ShapeDtypeStruct((n, m, c), jnp.float32),
        grid=(n,),
        in_specs=[
            pl.BlockSpec((None, m, c), lambda i: (i, 0, 0)),
            pl.BlockSpec((1, c), lambda i: (0, 0)),
            pl.BlockSpec((1, c), lambda i: (0, 0)),
        ],
        out_specs=pl.BlockSpec((None, m, c), lambda i: (i, 0, 0)),
        compiler_params=pltpu.CompilerParams(
            dimension_semantics=("parallel",), vmem_limit_bytes=_VMEM_LIMIT),
    )(x_flat, scale, shift)


# ---------------------------------------------------------------------------
# glue helpers
# ---------------------------------------------------------------------------

def _bn_scale_shift(s, q, count, gamma, beta, eps=BN_EPS):
    mean = s / count
    var = jnp.maximum(q / count - mean * mean, 0.0)      # clamp fp cancellation
    scale = gamma * lax.rsqrt(var + eps)
    shift = beta - mean * scale
    return (scale.reshape(1, -1).astype(jnp.float32),
            shift.reshape(1, -1).astype(jnp.float32))


# ---------------------------------------------------------------------------
# DecoderBlock
# ---------------------------------------------------------------------------

def init_decoder_block_params(key, in_channels, concat_channels, out_channels):
    ks = jax.random.split(key, 6)
    cc = out_channels + concat_channels
    return {
        # ConvTranspose2d(in, out, 2, 2): weight (Cin, Cout, 2, 2)
        "up_w": 0.1 * jax.random.normal(ks[0], (in_channels, out_channels, 2, 2), jnp.float32),
        "up_b": 0.1 * jax.random.normal(ks[1], (out_channels,), jnp.float32),
        # Conv2d(cc, out, 3, padding=1): weight (Cout, Cin, 3, 3)
        "c1_w": 0.1 * jax.random.normal(ks[2], (out_channels, cc, 3, 3), jnp.float32),
        "c1_b": 0.1 * jax.random.normal(ks[3], (out_channels,), jnp.float32),
        "bn1_g": jnp.ones((out_channels,), jnp.float32),
        "bn1_b": jnp.zeros((out_channels,), jnp.float32),
        # Conv2d(out, out, 3, padding=1)
        "c2_w": 0.1 * jax.random.normal(ks[4], (out_channels, out_channels, 3, 3), jnp.float32),
        "c2_b": 0.1 * jax.random.normal(ks[5], (out_channels,), jnp.float32),
        "bn2_g": jnp.ones((out_channels,), jnp.float32),
        "bn2_b": jnp.zeros((out_channels,), jnp.float32),
    }


def decoder_block_forward(params, x_nchw, concat_nchw):
    """x_nchw: (N, Cin, H, W); concat_nchw: (N, Ccat, 2H, 2W) -> (N, Cout, 2H, 2W)."""
    n, c_in, h, w = x_nchw.shape
    c_up = params["up_w"].shape[1]
    c_mid = params["c1_w"].shape[0]
    c_cat = concat_nchw.shape[1]
    assert params["c1_w"].shape[1] == c_up + c_cat
    h2, w2 = 2 * h, 2 * w
    wp = w2 + 2                      # row stride of the junk-column / padded flat layouts
    m_out = h2 * wp                  # conv rows per sample (incl. 2 junk columns per row)

    f32 = jnp.float32

    # --- upconv: one fused bf16 matmul per sample, sub-pixel-interleaved output ---
    x_flat = jnp.transpose(x_nchw, (0, 2, 3, 1)).reshape(n, h * w, c_in).astype(MXU_DTYPE)
    w_up = jnp.transpose(params["up_w"], (0, 2, 3, 1)).reshape(c_in, 4 * c_up).astype(MXU_DTYPE)
    b_up4 = jnp.tile(params["up_b"], 4).reshape(1, 4 * c_up).astype(f32)
    up4 = upconv_2x2_s2(x_flat, w_up, b_up4, h=h, w=w, c_up=c_up)   # (n,h,2,w,2*c_up) bf16
    up_img = up4.reshape(n, h2, w2, c_up)                            # pure reshape (free)

    # junk-column flat layout: pad each image row from w2 to wp columns with zeros
    pad_w = ((0, 0), (0, 0), (0, wp - w2), (0, 0))
    up_jc = jnp.pad(up_img, pad_w).reshape(n, m_out, c_up)
    skip = jnp.transpose(concat_nchw, (0, 2, 3, 1)).astype(MXU_DTYPE)
    sk_jc = jnp.pad(skip, pad_w).reshape(n, m_out, c_cat)

    # lane-dense 0/1 mask of the valid (non-junk) output columns
    valid = ((jnp.arange(m_out, dtype=jnp.int32) % wp) < w2).astype(f32)
    mask = jnp.tile(valid[:, None], (1, c_mid))

    # --- conv1 (+ fused batch stats); channel concat folded into the single K dimension ---
    cc = c_up + c_cat
    w1_mat = jnp.transpose(params["c1_w"], (2, 3, 1, 0)).reshape(9 * cc, c_mid).astype(MXU_DTYPE)
    b1 = params["c1_b"].reshape(1, c_mid).astype(f32)
    y1, s1, q1 = conv3x3_dual_fused(up_jc, sk_jc, mask, w1_mat, b1, wp=wp, m_out=m_out)

    count = n * h2 * w2
    scale1, shift1 = _bn_scale_shift(s1.sum(axis=(0, 1)), q1.sum(axis=(0, 1)), count,
                                     params["bn1_g"], params["bn1_b"])

    # --- conv2 with bn1 + ReLU fused onto its input (+ fused batch stats) ---
    w2_mat = jnp.transpose(params["c2_w"], (2, 3, 1, 0)).reshape(9 * c_mid, c_mid).astype(MXU_DTYPE)
    b2 = params["c2_b"].reshape(1, c_mid).astype(f32)
    y2, s2, q2 = conv3x3_bn_fused(y1, scale1, shift1, mask, w2_mat, b2, wp=wp, m_out=m_out)

    scale2, shift2 = _bn_scale_shift(s2.sum(axis=(0, 1)), q2.sum(axis=(0, 1)), count,
                                     params["bn2_g"], params["bn2_b"])

    # --- final bn2 + ReLU, then strip the junk columns and return NCHW ---
    out_flat = bn_relu(y2, scale2, shift2)                   # (n, m_out, c_mid) f32
    out = out_flat.reshape(n, h2, wp, c_mid)[:, :, :w2, :]
    return jnp.transpose(out, (0, 3, 1, 2))


# ---------------------------------------------------------------------------
# pure-JAX f32 reference (mirrors the PyTorch module) for a sanity check
# ---------------------------------------------------------------------------

def _reference_forward(params, x_nchw, concat_nchw):
    f32 = jnp.float32
    hp = lax.Precision.HIGHEST
    x = jnp.transpose(x_nchw, (0, 2, 3, 1)).astype(f32)
    skip = jnp.transpose(concat_nchw, (0, 2, 3, 1)).astype(f32)
    n, h, w, _ = x.shape
    c_up = params["up_w"].shape[1]

    up = jnp.einsum("nhwc,coij->nhiwjo", x, params["up_w"], precision=hp)
    up = up.reshape(n, 2 * h, 2 * w, c_up) + params["up_b"]
    y = jnp.concatenate([up, skip], axis=-1)

    def conv3x3(z, wt, b):
        hi, wi = z.shape[1], z.shape[2]
        zp = jnp.pad(z, ((0, 0), (1, 1), (1, 1), (0, 0)))
        acc = 0.0
        for ky in range(3):
            for kx in range(3):
                acc = acc + jnp.einsum("nhwc,oc->nhwo",
                                       zp[:, ky:ky + hi, kx:kx + wi, :],
                                       wt[:, :, ky, kx], precision=hp)
        return acc + b

    def bnr(z, g, bb):
        mean = z.mean(axis=(0, 1, 2))
        var = z.var(axis=(0, 1, 2))
        return jnp.maximum((z - mean) * lax.rsqrt(var + BN_EPS) * g + bb, 0.0)

    y = bnr(conv3x3(y, params["c1_w"], params["c1_b"]), params["bn1_g"], params["bn1_b"])
    y = bnr(conv3x3(y, params["c2_w"], params["c2_b"]), params["bn2_g"], params["bn2_b"])
    return jnp.transpose(y, (0, 3, 1, 2))


if __name__ == "__main__":
    in_channels, concat_channels, out_channels = 8, 4, 8
    N, H, W = 2, 8, 8  # upconv output spatial = 16x16

    key = jax.random.PRNGKey(0)
    kx, kc, kp = jax.random.split(key, 3)
    x = jax.random.normal(kx, (N, in_channels, H, W), jnp.float32)
    concat_tensor = jax.random.normal(kc, (N, concat_channels, 2 * H, 2 * W), jnp.float32)
    params = init_decoder_block_params(kp, in_channels, concat_channels, out_channels)

    fwd = jax.jit(decoder_block_forward)
    out = jax.block_until_ready(fwd(params, x, concat_tensor))
    assert out.shape == (N, out_channels, 2 * H, 2 * W), out.shape
    assert bool(jnp.all(jnp.isfinite(out)))

    ref = _reference_forward(params, x, concat_tensor)
    max_err = float(jnp.max(jnp.abs(out - ref)))
    assert max_err < 0.3, f"max abs error vs f32 reference: {max_err}"

    print("KERNEL_OK")
</pallas_src>

<mosaic_0001>
module attributes {stable_mosaic.version = 11 : i64} {
  func.func @_upconv_kernel(%arg0: i32, %arg1: memref<1x64x8xbf16, #tpu.memory_space<vmem>>, %arg2: memref<8x32xbf16, #tpu.memory_space<vmem>>, %arg3: memref<1x32xf32, #tpu.memory_space<vmem>>, %arg4: memref<1x8x2x8x16xbf16, #tpu.memory_space<vmem>>) attributes {dimension_semantics = [#tpu.dimension_semantics<parallel>], iteration_bounds = array<i64: 2>, scalar_prefetch = 0 : i64, scratch_operands = 0 : i64, tpu.core_type = #tpu.core_type<tc>, window_params = [{transform_indices = @transform_0, window_bounds = array<i64: 1, 64, 8>}, {pipeline_mode = #tpu.pipeline_mode<synchronous>, transform_indices = @transform_1, window_bounds = array<i64: 8, 32>}, {pipeline_mode = #tpu.pipeline_mode<synchronous>, transform_indices = @transform_2, window_bounds = array<i64: 1, 32>}, {transform_indices = @transform_3, window_bounds = array<i64: 1, 8, 2, 8, 16>}]} {
    %c0 = arith.constant 0 : index
    %c0_0 = arith.constant 0 : index
    %c0_1 = arith.constant 0 : index
    %0 = vector.load %arg1[%c0, %c0_0, %c0_1] : memref<1x64x8xbf16, #tpu.memory_space<vmem>>, vector<1x64x8xbf16>
    %1 = vector.shape_cast %0 : vector<1x64x8xbf16> to vector<64x8xbf16>
    %c0_2 = arith.constant 0 : index
    %c0_3 = arith.constant 0 : index
    %2 = vector.load %arg2[%c0_2, %c0_3] : memref<8x32xbf16, #tpu.memory_space<vmem>>, vector<8x32xbf16>
    %cst = arith.constant dense<0.000000e+00> : vector<64x32xf32>
    %3 = tpu.matmul %1, %2, %cst {dimension_numbers = #tpu.dot_dimension_numbers<[1], [0], [0], [1], [0, 0, 1, 1], [], []>} : vector<64x8xbf16>, vector<8x32xbf16>, vector<64x32xf32> -> vector<64x32xf32>
    %c0_4 = arith.constant 0 : index
    %c0_5 = arith.constant 0 : index
    %4 = vector.load %arg3[%c0_4, %c0_5] : memref<1x32xf32, #tpu.memory_space<vmem>>, vector<1x32xf32>
    %5 = vector.broadcast %4 : vector<1x32xf32> to vector<64x32xf32>
    %6 = arith.addf %3, %5 : vector<64x32xf32>
    %7 = vector.shape_cast %6 : vector<64x32xf32> to vector<8x8x32xf32>
    %8 = vector.extract_strided_slice %7 {offsets = [0, 0, 0], sizes = [8, 8, 16], strides = [1, 1, 1]} : vector<8x8x32xf32> to vector<8x8x16xf32>
    %9 = arith.truncf %8 : vector<8x8x16xf32> to vector<8x8x16xbf16>
    %c0_6 = arith.constant 0 : index
    %c0_7 = arith.constant 0 : index
    %c0_8 = arith.constant 0 : index
    %c0_9 = arith.constant 0 : index
    %c0_10 = arith.constant 0 : index
    %10 = vector.load %arg4[%c0_6, %c0_7, %c0_8, %c0_9, %c0_10] : memref<1x8x2x8x16xbf16, #tpu.memory_space<vmem>>, vector<1x8x1x8x16xbf16>
    %11 = vector.shape_cast %10 : vector<1x8x1x8x16xbf16> to vector<8x8x16xbf16>
    %12 = vector.shape_cast %9 : vector<8x8x16xbf16> to vector<1x8x1x8x16xbf16>
    tpu.vector_store %arg4[%c0_6, %c0_7, %c0_8, %c0_9, %c0_10], %12 {strides = array<i32>} : memref<1x8x2x8x16xbf16, #tpu.memory_space<vmem>>, vector<1x8x1x8x16xbf16>,
    %13 = vector.extract_strided_slice %7 {offsets = [0, 0, 16], sizes = [8, 8, 16], strides = [1, 1, 1]} : vector<8x8x32xf32> to vector<8x8x16xf32>
    %14 = arith.truncf %13 : vector<8x8x16xf32> to vector<8x8x16xbf16>
    %c0_11 = arith.constant 0 : index
    %c0_12 = arith.constant 0 : index
    %c1 = arith.constant 1 : index
    %c0_13 = arith.constant 0 : index
    %c0_14 = arith.constant 0 : index
    %15 = vector.load %arg4[%c0_11, %c0_12, %c1, %c0_13, %c0_14] : memref<1x8x2x8x16xbf16, #tpu.memory_space<vmem>>, vector<1x8x1x8x16xbf16>
    %16 = vector.shape_cast %15 : vector<1x8x1x8x16xbf16> to vector<8x8x16xbf16>
    %17 = vector.shape_cast %14 : vector<8x8x16xbf16> to vector<1x8x1x8x16xbf16>
    tpu.vector_store %arg4[%c0_11, %c0_12, %c1, %c0_13, %c0_14], %17 {strides = array<i32>} : memref<1x8x2x8x16xbf16, #tpu.memory_space<vmem>>, vector<1x8x1x8x16xbf16>,
    return
  }
  func.func @transform_0(%arg0: i32) -> (i32, i32, i32) {
    %c0_i32 = arith.constant 0 : i32
    %c0_i32_0 = arith.constant 0 : i32
    %c0_i32_1 = arith.constant 0 : i32
    return %arg0, %c0_i32, %c0_i32_0 : i32, i32, i32
  }
  func.func @transform_1(%arg0: i32) -> (i32, i32) {
    %c0_i32 = arith.constant 0 : i32
    %c0_i32_0 = arith.constant 0 : i32
    %c0_i32_1 = arith.constant 0 : i32
    return %c0_i32, %c0_i32_0 : i32, i32
  }
  func.func @transform_2(%arg0: i32) -> (i32, i32) {
    %c0_i32 = arith.constant 0 : i32
    %c0_i32_0 = arith.constant 0 : i32
    %c0_i32_1 = arith.constant 0 : i32
    return %c0_i32, %c0_i32_0 : i32, i32
  }
  func.func @transform_3(%arg0: i32) -> (i32, i32, i32, i32, i32) {
    %c0_i32 = arith.constant 0 : i32
    %c0_i32_0 = arith.constant 0 : i32
    %c0_i32_1 = arith.constant 0 : i32
    %c0_i32_2 = arith.constant 0 : i32
    %c0_i32_3 = arith.constant 0 : i32
    return %arg0, %c0_i32, %c0_i32_0, %c0_i32_1, %c0_i32_2 : i32, i32, i32, i32, i32
  }
}

module attributes {stable_mosaic.version = 11 : i64} {
  func.func @_conv1_kernel(%arg0: i32, %arg1: memref<1x288x8xbf16, #tpu.memory_space<vmem>>, %arg2: memref<1x288x4xbf16, #tpu.memory_space<vmem>>, %arg3: memref<288x8xf32, #tpu.memory_space<vmem>>, %arg4: memref<108x8xbf16, #tpu.memory_space<vmem>>, %arg5: memref<1x8xf32, #tpu.memory_space<vmem>>, %arg6: memref<1x288x8xbf16, #tpu.memory_space<vmem>>, %arg7: memref<1x1x8xf32, #tpu.memory_space<vmem>>, %arg8: memref<1x1x8xf32, #tpu.memory_space<vmem>>, %arg9: memref<331x8xf32, #tpu.memory_space<vmem>>, %arg10: memref<331x4xf32, #tpu.memory_space<vmem>>) attributes {dimension_semantics = [#tpu.dimension_semantics<parallel>], iteration_bounds = array<i64: 2>, scalar_prefetch = 0 : i64, scratch_operands = 2 : i64, tpu.core_type = #tpu.core_type<tc>, window_params = [{transform_indices = @transform_0, window_bounds = array<i64: 1, 288, 8>}, {transform_indices = @transform_1, window_bounds = array<i64: 1, 288, 4>}, {pipeline_mode = #tpu.pipeline_mode<synchronous>, transform_indices = @transform_2, window_bounds = array<i64: 288, 8>}, {pipeline_mode = #tpu.pipeline_mode<synchronous>, transform_indices = @transform_3, window_bounds = array<i64: 108, 8>}, {pipeline_mode = #tpu.pipeline_mode<synchronous>, transform_indices = @transform_4, window_bounds = array<i64: 1, 8>}, {transform_indices = @transform_5, window_bounds = array<i64: 1, 288, 8>}, {transform_indices = @transform_6, window_bounds = array<i64: 1, 1, 8>}, {transform_indices = @transform_7, window_bounds = array<i64: 1, 1, 8>}]} {
    %cst = arith.constant 0.000000e+00 : f32
    %0 = vector.broadcast %cst : f32 to vector<24x8xf32>
    %c0 = arith.constant 0 : index
    %c0_0 = arith.constant 0 : index
    %1 = vector.load %arg9[%c0, %c0_0] : memref<331x8xf32, #tpu.memory_space<vmem>>, vector<24x8xf32>
    tpu.vector_store %arg9[%c0, %c0_0], %0 {strides = array<i32>} : memref<331x8xf32, #tpu.memory_space<vmem>>, vector<24x8xf32>,
    %cst_1 = arith.constant 0.000000e+00 : f32
    %2 = vector.broadcast %cst_1 : f32 to vector<19x8xf32>
    %c312 = arith.constant 312 : index
    %c0_2 = arith.constant 0 : index
    %3 = vector.load %arg9[%c312, %c0_2] : memref<331x8xf32, #tpu.memory_space<vmem>>, vector<19x8xf32>
    tpu.vector_store %arg9[%c312, %c0_2], %2 {strides = array<i32>} : memref<331x8xf32, #tpu.memory_space<vmem>>, vector<19x8xf32>,
    %cst_3 = arith.constant 0.000000e+00 : f32
    %4 = vector.broadcast %cst_3 : f32 to vector<24x4xf32>
    %c0_4 = arith.constant 0 : index
    %c0_5 = arith.constant 0 : index
    %5 = vector.load %arg10[%c0_4, %c0_5] : memref<331x4xf32, #tpu.memory_space<vmem>>, vector<24x4xf32>
    tpu.vector_store %arg10[%c0_4, %c0_5], %4 {strides = array<i32>} : memref<331x4xf32, #tpu.memory_space<vmem>>, vector<24x4xf32>,
    %cst_6 = arith.constant 0.000000e+00 : f32
    %6 = vector.broadcast %cst_6 : f32 to vector<19x4xf32>
    %c312_7 = arith.constant 312 : index
    %c0_8 = arith.constant 0 : index
    %7 = vector.load %arg10[%c312_7, %c0_8] : memref<331x4xf32, #tpu.memory_space<vmem>>, vector<19x4xf32>
    tpu.vector_store %arg10[%c312_7, %c0_8], %6 {strides = array<i32>} : memref<331x4xf32, #tpu.memory_space<vmem>>, vector<19x4xf32>,
    %c0_9 = arith.constant 0 : index
    %c0_10 = arith.constant 0 : index
    %c0_11 = arith.constant 0 : index
    %8 = vector.load %arg1[%c0_9, %c0_10, %c0_11] : memref<1x288x8xbf16, #tpu.memory_space<vmem>>, vector<1x288x8xbf16>
    %9 = vector.shape_cast %8 : vector<1x288x8xbf16> to vector<288x8xbf16>
    %10 = arith.extf %9 : vector<288x8xbf16> to vector<288x8xf32>
    %c24 = arith.constant 24 : index
    %c0_12 = arith.constant 0 : index
    %11 = vector.load %arg9[%c24, %c0_12] : memref<331x8xf32, #tpu.memory_space<vmem>>, vector<288x8xf32>
    tpu.vector_store %arg9[%c24, %c0_12], %10 {strides = array<i32>} : memref<331x8xf32, #tpu.memory_space<vmem>>, vector<288x8xf32>,
    %c0_13 = arith.constant 0 : index
    %c0_14 = arith.constant 0 : index
    %c0_15 = arith.constant 0 : index
    %12 = vector.load %arg2[%c0_13, %c0_14, %c0_15] : memref<1x288x4xbf16, #tpu.memory_space<vmem>>, vector<1x288x4xbf16>
    %13 = vector.shape_cast %12 : vector<1x288x4xbf16> to vector<288x4xbf16>
    %14 = arith.extf %13 : vector<288x4xbf16> to vector<288x4xf32>
    %c24_16 = arith.constant 24 : index
    %c0_17 = arith.constant 0 : index
    %15 = vector.load %arg10[%c24_16, %c0_17] : memref<331x4xf32, #tpu.memory_space<vmem>>, vector<288x4xf32>
    tpu.vector_store %arg10[%c24_16, %c0_17], %14 {strides = array<i32>} : memref<331x4xf32, #tpu.memory_space<vmem>>, vector<288x4xf32>,
    %c5 = arith.constant 5 : index
    %c0_18 = arith.constant 0 : index
    %16 = vector.load %arg9[%c5, %c0_18] : memref<331x8xf32, #tpu.memory_space<vmem>>, vector<288x8xf32>
    %17 = arith.truncf %16 : vector<288x8xf32> to vector<288x8xbf16>
    %c5_19 = arith.constant 5 : index
    %c0_20 = arith.constant 0 : index
    %18 = vector.load %arg10[%c5_19, %c0_20] : memref<331x4xf32, #tpu.memory_space<vmem>>, vector<288x4xf32>
    %19 = arith.truncf %18 : vector<288x4xf32> to vector<288x4xbf16>
    %c6 = arith.constant 6 : index
    %c0_21 = arith.constant 0 : index
    %20 = vector.load %arg9[%c6, %c0_21] : memref<331x8xf32, #tpu.memory_space<vmem>>, vector<288x8xf32>
    %21 = arith.truncf %20 : vector<288x8xf32> to vector<288x8xbf16>
    %c6_22 = arith.constant 6 : index
    %c0_23 = arith.constant 0 : index
    %22 = vector.load %arg10[%c6_22, %c0_23] : memref<331x4xf32, #tpu.memory_space<vmem>>, vector<288x4xf32>
    %23 = arith.truncf %22 : vector<288x4xf32> to vector<288x4xbf16>
    %c7 = arith.constant 7 : index
    %c0_24 = arith.constant 0 : index
    %24 = vector.load %arg9[%c7, %c0_24] : memref<331x8xf32, #tpu.memory_space<vmem>>, vector<288x8xf32>
    %25 = arith.truncf %24 : vector<288x8xf32> to vector<288x8xbf16>
    %c7_25 = arith.constant 7 : index
    %c0_26 = arith.constant 0 : index
    %26 = vector.load %arg10[%c7_25, %c0_26] : memref<331x4xf32, #tpu.memory_space<vmem>>, vector<288x4xf32>
    %27 = arith.truncf %26 : vector<288x4xf32> to vector<288x4xbf16>
    %c23 = arith.constant 23 : index
    %c0_27 = arith.constant 0 : index
    %28 = vector.load %arg9[%c23, %c0_27] : memref<331x8xf32, #tpu.memory_space<vmem>>, vector<288x8xf32>
    %29 = arith.truncf %28 : vector<288x8xf32> to vector<288x8xbf16>
    %c23_28 = arith.constant 23 : index
    %c0_29 = arith.constant 0 : index
    %30 = vector.load %arg10[%c23_28, %c0_29] : memref<331x4xf32, #tpu.memory_space<vmem>>, vector<288x4xf32>
    %31 = arith.truncf %30 : vector<288x4xf32> to vector<288x4xbf16>
    %c24_30 = arith.constant 24 : index
    %c0_31 = arith.constant 0 : index
    %32 = vector.load %arg9[%c24_30, %c0_31] : memref<331x8xf32, #tpu.memory_space<vmem>>, vector<288x8xf32>
    %33 = arith.truncf %32 : vector<288x8xf32> to vector<288x8xbf16>
    %c24_32 = arith.constant 24 : index
    %c0_33 = arith.constant 0 : index
    %34 = vector.load %arg10[%c24_32, %c0_33] : memref<331x4xf32, #tpu.memory_space<vmem>>, vector<288x4xf32>
    %35 = arith.truncf %34 : vector<288x4xf32> to vector<288x4xbf16>
    %c25 = arith.constant 25 : index
    %c0_34 = arith.constant 0 : index
    %36 = vector.load %arg9[%c25, %c0_34] : memref<331x8xf32, #tpu.memory_space<vmem>>, vector<288x8xf32>
    %37 = arith.truncf %36 : vector<288x8xf32> to vector<288x8xbf16>
    %c25_35 = arith.constant 25 : index
    %c0_36 = arith.constant 0 : index
    %38 = vector.load %arg10[%c25_35, %c0_36] : memref<331x4xf32, #tpu.memory_space<vmem>>, vector<288x4xf32>
    %39 = arith.truncf %38 : vector<288x4xf32> to vector<288x4xbf16>
    %c41 = arith.constant 41 : index
    %c0_37 = arith.constant 0 : index
    %40 = vector.load %arg9[%c41, %c0_37] : memref<331x8xf32, #tpu.memory_space<vmem>>, vector<288x8xf32>
    %41 = arith.truncf %40 : vector<288x8xf32> to vector<288x8xbf16>
    %c41_38 = arith.constant 41 : index
    %c0_39 = arith.constant 0 : index
    %42 = vector.load %arg10[%c41_38, %c0_39] : memref<331x4xf32, #tpu.memory_space<vmem>>, vector<288x4xf32>
    %43 = arith.truncf %42 : vector<288x4xf32> to vector<288x4xbf16>
    %c42 = arith.constant 42 : index
    %c0_40 = arith.constant 0 : index
    %44 = vector.load %arg9[%c42, %c0_40] : memref<331x8xf32, #tpu.memory_space<vmem>>, vector<288x8xf32>
    %45 = arith.truncf %44 : vector<288x8xf32> to vector<288x8xbf16>
    %c42_41 = arith.constant 42 : index
    %c0_42 = arith.constant 0 : index
    %46 = vector.load %arg10[%c42_41, %c0_42] : memref<331x4xf32, #tpu.memory_space<vmem>>, vector<288x4xf32>
    %47 = arith.truncf %46 : vector<288x4xf32> to vector<288x4xbf16>
    %c43 = arith.constant 43 : index
    %c0_43 = arith.constant 0 : index
    %48 = vector.load %arg9[%c43, %c0_43] : memref<331x8xf32, #tpu.memory_space<vmem>>, vector<288x8xf32>
    %49 = arith.truncf %48 : vector<288x8xf32> to vector<288x8xbf16>
    %c43_44 = arith.constant 43 : index
    %c0_45 = arith.constant 0 : index
    %50 = vector.load %arg10[%c43_44, %c0_45] : memref<331x4xf32, #tpu.memory_space<vmem>>, vector<288x4xf32>
    %51 = arith.truncf %50 : vector<288x4xf32> to vector<288x4xbf16>
    %52 = tpu.concatenate %17, %19, %21, %23, %25, %27, %29, %31, %33, %35, %37, %39, %41, %43, %45, %47 in 1 : vector<288x8xbf16>, vector<288x4xbf16>, vector<288x8xbf16>, vector<288x4xbf16>, vector<288x8xbf16>, vector<288x4xbf16>, vector<288x8xbf16>, vector<288x4xbf16>, vector<288x8xbf16>, vector<288x4xbf16>, vector<288x8xbf16>, vector<288x4xbf16>, vector<288x8xbf16>, vector<288x4xbf16>, vector<288x8xbf16>, vector<288x4xbf16> -> vector<288x96xbf16>
    %53 = tpu.concatenate %49, %51 in 1 : vector<288x8xbf16>, vector<288x4xbf16> -> vector<288x12xbf16>
    %54 = tpu.concatenate %52, %53 in 1 : vector<288x96xbf16>, vector<288x12xbf16> -> vector<288x108xbf16>
    %c0_46 = arith.constant 0 : index
    %c0_47 = arith.constant 0 : index
    %55 = vector.load %arg4[%c0_46, %c0_47] : memref<108x8xbf16, #tpu.memory_space<vmem>>, vector<108x8xbf16>
    %cst_48 = arith.constant dense<0.000000e+00> : vector<288x8xf32>
    %56 = tpu.matmul %54, %55, %cst_48 {dimension_numbers = #tpu.dot_dimension_numbers<[1], [0], [0], [1], [0, 0, 1, 1], [], []>} : vector<288x108xbf16>, vector<108x8xbf16>, vector<288x8xf32> -> vector<288x8xf32>
    %c0_49 = arith.constant 0 : index
    %c0_50 = arith.constant 0 : index
    %57 = vector.load %arg5[%c0_49, %c0_50] : memref<1x8xf32, #tpu.memory_space<vmem>>, vector<1x8xf32>
    %58 = vector.broadcast %57 : vector<1x8xf32> to vector<288x8xf32>
    %59 = arith.addf %56, %58 : vector<288x8xf32>
    %60 = arith.truncf %59 : vector<288x8xf32> to vector<288x8xbf16>
    %c0_51 = arith.constant 0 : index
    %c0_52 = arith.constant 0 : index
    %c0_53 = arith.constant 0 : index
    %61 = vector.load %arg6[%c0_51, %c0_52, %c0_53] : memref<1x288x8xbf16, #tpu.memory_space<vmem>>, vector<1x288x8xbf16>
    %62 = vector.shape_cast %61 : vector<1x288x8xbf16> to vector<288x8xbf16>
    %63 = vector.shape_cast %60 : vector<288x8xbf16> to vector<1x288x8xbf16>
    tpu.vector_store %arg6[%c0_51, %c0_52, %c0_53], %63 {strides = array<i32>} : memref<1x288x8xbf16, #tpu.memory_space<vmem>>, vector<1x288x8xbf16>,
    %64 = arith.extf %60 : vector<288x8xbf16> to vector<288x8xf32>
    %c0_54 = arith.constant 0 : index
    %c0_55 = arith.constant 0 : index
    %65 = vector.load %arg3[%c0_54, %c0_55] : memref<288x8xf32, #tpu.memory_space<vmem>>, vector<288x8xf32>
    %66 = arith.mulf %64, %65 : vector<288x8xf32>
    %cst_56 = arith.constant dense<0.000000e+00> : vector<8xf32>
    %67 = vector.multi_reduction <add>, %66, %cst_56 [0] : vector<288x8xf32> to vector<8xf32>
    %68 = vector.shape_cast %67 : vector<8xf32> to vector<1x8xf32>
    %c0_57 = arith.constant 0 : index
    %c0_58 = arith.constant 0 : index
    %c0_59 = arith.constant 0 : index
    %69 = vector.load %arg7[%c0_57, %c0_58, %c0_59] : memref<1x1x8xf32, #tpu.memory_space<vmem>>, vector<1x1x8xf32>
    %70 = vector.shape_cast %69 : vector<1x1x8xf32> to vector<1x8xf32>
    %71 = vector.shape_cast %68 : vector<1x8xf32> to vector<1x1x8xf32>
    tpu.vector_store %arg7[%c0_57, %c0_58, %c0_59], %71 {strides = array<i32>} : memref<1x1x8xf32, #tpu.memory_space<vmem>>, vector<1x1x8xf32>,
    %72 = arith.mulf %66, %66 : vector<288x8xf32>
    %cst_60 = arith.constant dense<0.000000e+00> : vector<8xf32>
    %73 = vector.multi_reduction <add>, %72, %cst_60 [0] : vector<288x8xf32> to vector<8xf32>
    %74 = vector.shape_cast %73 : vector<8xf32> to vector<1x8xf32>
    %c0_61 = arith.constant 0 : index
    %c0_62 = arith.constant 0 : index
    %c0_63 = arith.constant 0 : index
    %75 = vector.load %arg8[%c0_61, %c0_62, %c0_63] : memref<1x1x8xf32, #tpu.memory_space<vmem>>, vector<1x1x8xf32>
    %76 = vector.shape_cast %75 : vector<1x1x8xf32> to vector<1x8xf32>
    %77 = vector.shape_cast %74 : vector<1x8xf32> to vector<1x1x8xf32>
    tpu.vector_store %arg8[%c0_61, %c0_62, %c0_63], %77 {strides = array<i32>} : memref<1x1x8xf32, #tpu.memory_space<vmem>>, vector<1x1x8xf32>,
    return
  }
  func.func @transform_0(%arg0: i32) -> (i32, i32, i32) {
    %c0_i32 = arith.constant 0 : i32
    %c0_i32_0 = arith.constant 0 : i32
    %c0_i32_1 = arith.constant 0 : i32
    return %arg0, %c0_i32, %c0_i32_0 : i32, i32, i32
  }
  func.func @transform_1(%arg0: i32) -> (i32, i32, i32) {
    %c0_i32 = arith.constant 0 : i32
    %c0_i32_0 = arith.constant 0 : i32
    %c0_i32_1 = arith.constant 0 : i32
    return %arg0, %c0_i32, %c0_i32_0 : i32, i32, i32
  }
  func.func @transform_2(%arg0: i32) -> (i32, i32) {
    %c0_i32 = arith.constant 0 : i32
    %c0_i32_0 = arith.constant 0 : i32
    %c0_i32_1 = arith.constant 0 : i32
    return %c0_i32, %c0_i32_0 : i32, i32
  }
  func.func @transform_3(%arg0: i32) -> (i32, i32) {
    %c0_i32 = arith.constant 0 : i32
    %c0_i32_0 = arith.constant 0 : i32
    %c0_i32_1 = arith.constant 0 : i32
    return %c0_i32, %c0_i32_0 : i32, i32
  }
  func.func @transform_4(%arg0: i32) -> (i32, i32) {
    %c0_i32 = arith.constant 0 : i32
    %c0_i32_0 = arith.constant 0 : i32
    %c0_i32_1 = arith.constant 0 : i32
    return %c0_i32, %c0_i32_0 : i32, i32
  }
  func.func @transform_5(%arg0: i32) -> (i32, i32, i32) {
    %c0_i32 = arith.constant 0 : i32
    %c0_i32_0 = arith.constant 0 : i32
    %c0_i32_1 = arith.constant 0 : i32
    return %arg0, %c0_i32, %c0_i32_0 : i32, i32, i32
  }
  func.func @transform_6(%arg0: i32) -> (i32, i32, i32) {
    %c0_i32 = arith.constant 0 : i32
    %c0_i32_0 = arith.constant 0 : i32
    %c0_i32_1 = arith.constant 0 : i32
    return %arg0, %c0_i32, %c0_i32_0 : i32, i32, i32
  }
  func.func @transform_7(%arg0: i32) -> (i32, i32, i32) {
    %c0_i32 = arith.constant 0 : i32
    %c0_i32_0 = arith.constant 0 : i32
    %c0_i32_1 = arith.constant 0 : i32
    return %arg0, %c0_i32, %c0_i32_0 : i32, i32, i32
  }
}

module attributes {stable_mosaic.version = 11 : i64} {
  func.func @_bn_relu_kernel(%arg0: i32, %arg1: memref<1x288x8xbf16, #tpu.memory_space<vmem>>, %arg2: memref<1x8xf32, #tpu.memory_space<vmem>>, %arg3: memref<1x8xf32, #tpu.memory_space<vmem>>, %arg4: memref<1x288x8xf32, #tpu.memory_space<vmem>>) attributes {dimension_semantics = [#tpu.dimension_semantics<parallel>], iteration_bounds = array<i64: 2>, scalar_prefetch = 0 : i64, scratch_operands = 0 : i64, tpu.core_type = #tpu.core_type<tc>, window_params = [{transform_indices = @transform_0, window_bounds = array<i64: 1, 288, 8>}, {pipeline_mode = #tpu.pipeline_mode<synchronous>, transform_indices = @transform_1, window_bounds = array<i64: 1, 8>}, {pipeline_mode = #tpu.pipeline_mode<synchronous>, transform_indices = @transform_2, window_bounds = array<i64: 1, 8>}, {transform_indices = @transform_3, window_bounds = array<i64: 1, 288, 8>}]} {
    %c0 = arith.constant 0 : index
    %c0_0 = arith.constant 0 : index
    %c0_1 = arith.constant 0 : index
    %0 = vector.load %arg1[%c0, %c0_0, %c0_1] : memref<1x288x8xbf16, #tpu.memory_space<vmem>>, vector<1x288x8xbf16>
    %1 = vector.shape_cast %0 : vector<1x288x8xbf16> to vector<288x8xbf16>
    %2 = arith.extf %1 : vector<288x8xbf16> to vector<288x8xf32>
    %c0_2 = arith.constant 0 : index
    %c0_3 = arith.constant 0 : index
    %3 = vector.load %arg2[%c0_2, %c0_3] : memref<1x8xf32, #tpu.memory_space<vmem>>, vector<1x8xf32>
    %4 = vector.broadcast %3 : vector<1x8xf32> to vector<288x8xf32>
    %5 = arith.mulf %2, %4 : vector<288x8xf32>
    %c0_4 = arith.constant 0 : index
    %c0_5 = arith.constant 0 : index
    %6 = vector.load %arg3[%c0_4, %c0_5] : memref<1x8xf32, #tpu.memory_space<vmem>>, vector<1x8xf32>
    %7 = vector.broadcast %6 : vector<1x8xf32> to vector<288x8xf32>
    %8 = arith.addf %5, %7 : vector<288x8xf32>
    %cst = arith.constant 0.000000e+00 : f32
    %9 = vector.broadcast %cst : f32 to vector<288x8xf32>
    %10 = arith.maximumf %8, %9 : vector<288x8xf32>
    %c0_6 = arith.constant 0 : index
    %c0_7 = arith.constant 0 : index
    %c0_8 = arith.constant 0 : index
    %11 = vector.load %arg4[%c0_6, %c0_7, %c0_8] : memref<1x288x8xf32, #tpu.memory_space<vmem>>, vector<1x288x8xf32>
    %12 = vector.shape_cast %11 : vector<1x288x8xf32> to vector<288x8xf32>
    %13 = vector.shape_cast %10 : vector<288x8xf32> to vector<1x288x8xf32>
    tpu.vector_store %arg4[%c0_6, %c0_7, %c0_8], %13 {strides = array<i32>} : memref<1x288x8xf32, #tpu.memory_space<vmem>>, vector<1x288x8xf32>,
    return
  }
  func.func @transform_0(%arg0: i32) -> (i32, i32, i32) {
    %c0_i32 = arith.constant 0 : i32
    %c0_i32_0 = arith.constant 0 : i32
    %c0_i32_1 = arith.constant 0 : i32
    return %arg0, %c0_i32, %c0_i32_0 : i32, i32, i32
  }
  func.func @transform_1(%arg0: i32) -> (i32, i32) {
    %c0_i32 = arith.constant 0 : i32
    %c0_i32_0 = arith.constant 0 : i32
    %c0_i32_1 = arith.constant 0 : i32
    return %c0_i32, %c0_i32_0 : i32, i32
  }
  func.func @transform_2(%arg0: i32) -> (i32, i32) {
    %c0_i32 = arith.constant 0 : i32
    %c0_i32_0 = arith.constant 0 : i32
    %c0_i32_1 = arith.constant 0 : i32
    return %c0_i32, %c0_i32_0 : i32, i32
  }
  func.func @transform_3(%arg0: i32) -> (i32, i32, i32) {
    %c0_i32 = arith.constant 0 : i32
    %c0_i32_0 = arith.constant 0 : i32
    %c0_i32_1 = arith.constant 0 : i32
    return %arg0, %c0_i32, %c0_i32_0 : i32, i32, i32
  }
}

module attributes {stable_mosaic.version = 11 : i64} {
  func.func @_conv2_kernel(%arg0: i32, %arg1: memref<1x288x8xbf16, #tpu.memory_space<vmem>>, %arg2: memref<1x8xf32, #tpu.memory_space<vmem>>, %arg3: memref<1x8xf32, #tpu.memory_space<vmem>>, %arg4: memref<288x8xf32, #tpu.memory_space<vmem>>, %arg5: memref<72x8xbf16, #tpu.memory_space<vmem>>, %arg6: memref<1x8xf32, #tpu.memory_space<vmem>>, %arg7: memref<1x288x8xbf16, #tpu.memory_space<vmem>>, %arg8: memref<1x1x8xf32, #tpu.memory_space<vmem>>, %arg9: memref<1x1x8xf32, #tpu.memory_space<vmem>>, %arg10: memref<331x8xf32, #tpu.memory_space<vmem>>) attributes {dimension_semantics = [#tpu.dimension_semantics<parallel>], iteration_bounds = array<i64: 2>, scalar_prefetch = 0 : i64, scratch_operands = 1 : i64, tpu.core_type = #tpu.core_type<tc>, window_params = [{transform_indices = @transform_0, window_bounds = array<i64: 1, 288, 8>}, {pipeline_mode = #tpu.pipeline_mode<synchronous>, transform_indices = @transform_1, window_bounds = array<i64: 1, 8>}, {pipeline_mode = #tpu.pipeline_mode<synchronous>, transform_indices = @transform_2, window_bounds = array<i64: 1, 8>}, {pipeline_mode = #tpu.pipeline_mode<synchronous>, transform_indices = @transform_3, window_bounds = array<i64: 288, 8>}, {pipeline_mode = #tpu.pipeline_mode<synchronous>, transform_indices = @transform_4, window_bounds = array<i64: 72, 8>}, {pipeline_mode = #tpu.pipeline_mode<synchronous>, transform_indices = @transform_5, window_bounds = array<i64: 1, 8>}, {transform_indices = @transform_6, window_bounds = array<i64: 1, 288, 8>}, {transform_indices = @transform_7, window_bounds = array<i64: 1, 1, 8>}, {transform_indices = @transform_8, window_bounds = array<i64: 1, 1, 8>}]} {
    %c0 = arith.constant 0 : index
    %c0_0 = arith.constant 0 : index
    %c0_1 = arith.constant 0 : index
    %0 = vector.load %arg1[%c0, %c0_0, %c0_1] : memref<1x288x8xbf16, #tpu.memory_space<vmem>>, vector<1x288x8xbf16>
    %1 = vector.shape_cast %0 : vector<1x288x8xbf16> to vector<288x8xbf16>
    %2 = arith.extf %1 : vector<288x8xbf16> to vector<288x8xf32>
    %c0_2 = arith.constant 0 : index
    %c0_3 = arith.constant 0 : index
    %3 = vector.load %arg2[%c0_2, %c0_3] : memref<1x8xf32, #tpu.memory_space<vmem>>, vector<1x8xf32>
    %4 = vector.broadcast %3 : vector<1x8xf32> to vector<288x8xf32>
    %5 = arith.mulf %2, %4 : vector<288x8xf32>
    %c0_4 = arith.constant 0 : index
    %c0_5 = arith.constant 0 : index
    %6 = vector.load %arg3[%c0_4, %c0_5] : memref<1x8xf32, #tpu.memory_space<vmem>>, vector<1x8xf32>
    %7 = vector.broadcast %6 : vector<1x8xf32> to vector<288x8xf32>
    %8 = arith.addf %5, %7 : vector<288x8xf32>
    %cst = arith.constant 0.000000e+00 : f32
    %9 = vector.broadcast %cst : f32 to vector<288x8xf32>
    %10 = arith.maximumf %8, %9 : vector<288x8xf32>
    %c0_6 = arith.constant 0 : index
    %c0_7 = arith.constant 0 : index
    %11 = vector.load %arg4[%c0_6, %c0_7] : memref<288x8xf32, #tpu.memory_space<vmem>>, vector<288x8xf32>
    %12 = arith.mulf %10, %11 : vector<288x8xf32>
    %cst_8 = arith.constant 0.000000e+00 : f32
    %13 = vector.broadcast %cst_8 : f32 to vector<24x8xf32>
    %c0_9 = arith.constant 0 : index
    %c0_10 = arith.constant 0 : index
    %14 = vector.load %arg10[%c0_9, %c0_10] : memref<331x8xf32, #tpu.memory_space<vmem>>, vector<24x8xf32>
    tpu.vector_store %arg10[%c0_9, %c0_10], %13 {strides = array<i32>} : memref<331x8xf32, #tpu.memory_space<vmem>>, vector<24x8xf32>,
    %cst_11 = arith.constant 0.000000e+00 : f32
    %15 = vector.broadcast %cst_11 : f32 to vector<19x8xf32>
    %c312 = arith.constant 312 : index
    %c0_12 = arith.constant 0 : index
    %16 = vector.load %arg10[%c312, %c0_12] : memref<331x8xf32, #tpu.memory_space<vmem>>, vector<19x8xf32>
    tpu.vector_store %arg10[%c312, %c0_12], %15 {strides = array<i32>} : memref<331x8xf32, #tpu.memory_space<vmem>>, vector<19x8xf32>,
    %c24 = arith.constant 24 : index
    %c0_13 = arith.constant 0 : index
    %17 = vector.load %arg10[%c24, %c0_13] : memref<331x8xf32, #tpu.memory_space<vmem>>, vector<288x8xf32>
    tpu.vector_store %arg10[%c24, %c0_13], %12 {strides = array<i32>} : memref<331x8xf32, #tpu.memory_space<vmem>>, vector<288x8xf32>,
    %c5 = arith.constant 5 : index
    %c0_14 = arith.constant 0 : index
    %18 = vector.load %arg10[%c5, %c0_14] : memref<331x8xf32, #tpu.memory_space<vmem>>, vector<288x8xf32>
    %19 = arith.truncf %18 : vector<288x8xf32> to vector<288x8xbf16>
    %c6 = arith.constant 6 : index
    %c0_15 = arith.constant 0 : index
    %20 = vector.load %arg10[%c6, %c0_15] : memref<331x8xf32, #tpu.memory_space<vmem>>, vector<288x8xf32>
    %21 = arith.truncf %20 : vector<288x8xf32> to vector<288x8xbf16>
    %c7 = arith.constant 7 : index
    %c0_16 = arith.constant 0 : index
    %22 = vector.load %arg10[%c7, %c0_16] : memref<331x8xf32, #tpu.memory_space<vmem>>, vector<288x8xf32>
    %23 = arith.truncf %22 : vector<288x8xf32> to vector<288x8xbf16>
    %c23 = arith.constant 23 : index
    %c0_17 = arith.constant 0 : index
    %24 = vector.load %arg10[%c23, %c0_17] : memref<331x8xf32, #tpu.memory_space<vmem>>, vector<288x8xf32>
    %25 = arith.truncf %24 : vector<288x8xf32> to vector<288x8xbf16>
    %c24_18 = arith.constant 24 : index
    %c0_19 = arith.constant 0 : index
    %26 = vector.load %arg10[%c24_18, %c0_19] : memref<331x8xf32, #tpu.memory_space<vmem>>, vector<288x8xf32>
    %27 = arith.truncf %26 : vector<288x8xf32> to vector<288x8xbf16>
    %c25 = arith.constant 25 : index
    %c0_20 = arith.constant 0 : index
    %28 = vector.load %arg10[%c25, %c0_20] : memref<331x8xf32, #tpu.memory_space<vmem>>, vector<288x8xf32>
    %29 = arith.truncf %28 : vector<288x8xf32> to vector<288x8xbf16>
    %c41 = arith.constant 41 : index
    %c0_21 = arith.constant 0 : index
    %30 = vector.load %arg10[%c41, %c0_21] : memref<331x8xf32, #tpu.memory_space<vmem>>, vector<288x8xf32>
    %31 = arith.truncf %30 : vector<288x8xf32> to vector<288x8xbf16>
    %c42 = arith.constant 42 : index
    %c0_22 = arith.constant 0 : index
    %32 = vector.load %arg10[%c42, %c0_22] : memref<331x8xf32, #tpu.memory_space<vmem>>, vector<288x8xf32>
    %33 = arith.truncf %32 : vector<288x8xf32> to vector<288x8xbf16>
    %c43 = arith.constant 43 : index
    %c0_23 = arith.constant 0 : index
    %34 = vector.load %arg10[%c43, %c0_23] : memref<331x8xf32, #tpu.memory_space<vmem>>, vector<288x8xf32>
    %35 = arith.truncf %34 : vector<288x8xf32> to vector<288x8xbf16>
    %36 = tpu.concatenate %19, %21, %23, %25, %27, %29, %31, %33, %35 in 1 : vector<288x8xbf16>, vector<288x8xbf16>, vector<288x8xbf16>, vector<288x8xbf16>, vector<288x8xbf16>, vector<288x8xbf16>, vector<288x8xbf16>, vector<288x8xbf16>, vector<288x8xbf16> -> vector<288x72xbf16>
    %c0_24 = arith.constant 0 : index
    %c0_25 = arith.constant 0 : index
    %37 = vector.load %arg5[%c0_24, %c0_25] : memref<72x8xbf16, #tpu.memory_space<vmem>>, vector<72x8xbf16>
    %cst_26 = arith.constant dense<0.000000e+00> : vector<288x8xf32>
    %38 = tpu.matmul %36, %37, %cst_26 {dimension_numbers = #tpu.dot_dimension_numbers<[1], [0], [0], [1], [0, 0, 1, 1], [], []>} : vector<288x72xbf16>, vector<72x8xbf16>, vector<288x8xf32> -> vector<288x8xf32>
    %c0_27 = arith.constant 0 : index
    %c0_28 = arith.constant 0 : index
    %39 = vector.load %arg6[%c0_27, %c0_28] : memref<1x8xf32, #tpu.memory_space<vmem>>, vector<1x8xf32>
    %40 = vector.broadcast %39 : vector<1x8xf32> to vector<288x8xf32>
    %41 = arith.addf %38, %40 : vector<288x8xf32>
    %42 = arith.truncf %41 : vector<288x8xf32> to vector<288x8xbf16>
    %c0_29 = arith.constant 0 : index
    %c0_30 = arith.constant 0 : index
    %c0_31 = arith.constant 0 : index
    %43 = vector.load %arg7[%c0_29, %c0_30, %c0_31] : memref<1x288x8xbf16, #tpu.memory_space<vmem>>, vector<1x288x8xbf16>
    %44 = vector.shape_cast %43 : vector<1x288x8xbf16> to vector<288x8xbf16>
    %45 = vector.shape_cast %42 : vector<288x8xbf16> to vector<1x288x8xbf16>
    tpu.vector_store %arg7[%c0_29, %c0_30, %c0_31], %45 {strides = array<i32>} : memref<1x288x8xbf16, #tpu.memory_space<vmem>>, vector<1x288x8xbf16>,
    %46 = arith.extf %42 : vector<288x8xbf16> to vector<288x8xf32>
    %c0_32 = arith.constant 0 : index
    %c0_33 = arith.constant 0 : index
    %47 = vector.load %arg4[%c0_32, %c0_33] : memref<288x8xf32, #tpu.memory_space<vmem>>, vector<288x8xf32>
    %48 = arith.mulf %46, %47 : vector<288x8xf32>
    %cst_34 = arith.constant dense<0.000000e+00> : vector<8xf32>
    %49 = vector.multi_reduction <add>, %48, %cst_34 [0] : vector<288x8xf32> to vector<8xf32>
    %50 = vector.shape_cast %49 : vector<8xf32> to vector<1x8xf32>
    %c0_35 = arith.constant 0 : index
    %c0_36 = arith.constant 0 : index
    %c0_37 = arith.constant 0 : index
    %51 = vector.load %arg8[%c0_35, %c0_36, %c0_37] : memref<1x1x8xf32, #tpu.memory_space<vmem>>, vector<1x1x8xf32>
    %52 = vector.shape_cast %51 : vector<1x1x8xf32> to vector<1x8xf32>
    %53 = vector.shape_cast %50 : vector<1x8xf32> to vector<1x1x8xf32>
    tpu.vector_store %arg8[%c0_35, %c0_36, %c0_37], %53 {strides = array<i32>} : memref<1x1x8xf32, #tpu.memory_space<vmem>>, vector<1x1x8xf32>,
    %54 = arith.mulf %48, %48 : vector<288x8xf32>
    %cst_38 = arith.constant dense<0.000000e+00> : vector<8xf32>
    %55 = vector.multi_reduction <add>, %54, %cst_38 [0] : vector<288x8xf32> to vector<8xf32>
    %56 = vector.shape_cast %55 : vector<8xf32> to vector<1x8xf32>
    %c0_39 = arith.constant 0 : index
    %c0_40 = arith.constant 0 : index
    %c0_41 = arith.constant 0 : index
    %57 = vector.load %arg9[%c0_39, %c0_40, %c0_41] : memref<1x1x8xf32, #tpu.memory_space<vmem>>, vector<1x1x8xf32>
    %58 = vector.shape_cast %57 : vector<1x1x8xf32> to vector<1x8xf32>
    %59 = vector.shape_cast %56 : vector<1x8xf32> to vector<1x1x8xf32>
    tpu.vector_store %arg9[%c0_39, %c0_40, %c0_41], %59 {strides = array<i32>} : memref<1x1x8xf32, #tpu.memory_space<vmem>>, vector<1x1x8xf32>,
    return
  }
  func.func @transform_0(%arg0: i32) -> (i32, i32, i32) {
    %c0_i32 = arith.constant 0 : i32
    %c0_i32_0 = arith.constant 0 : i32
    %c0_i32_1 = arith.constant 0 : i32
    return %arg0, %c0_i32, %c0_i32_0 : i32, i32, i32
  }
  func.func @transform_1(%arg0: i32) -> (i32, i32) {
    %c0_i32 = arith.constant 0 : i32
    %c0_i32_0 = arith.constant 0 : i32
    %c0_i32_1 = arith.constant 0 : i32
    return %c0_i32, %c0_i32_0 : i32, i32
  }
  func.func @transform_2(%arg0: i32) -> (i32, i32) {
    %c0_i32 = arith.constant 0 : i32
    %c0_i32_0 = arith.constant 0 : i32
    %c0_i32_1 = arith.constant 0 : i32
    return %c0_i32, %c0_i32_0 : i32, i32
  }
  func.func @transform_3(%arg0: i32) -> (i32, i32) {
    %c0_i32 = arith.constant 0 : i32
    %c0_i32_0 = arith.constant 0 : i32
    %c0_i32_1 = arith.constant 0 : i32
    return %c0_i32, %c0_i32_0 : i32, i32
  }
  func.func @transform_4(%arg0: i32) -> (i32, i32) {
    %c0_i32 = arith.constant 0 : i32
    %c0_i32_0 = arith.constant 0 : i32
    %c0_i32_1 = arith.constant 0 : i32
    return %c0_i32, %c0_i32_0 : i32, i32
  }
  func.func @transform_5(%arg0: i32) -> (i32, i32) {
    %c0_i32 = arith.constant 0 : i32
    %c0_i32_0 = arith.constant 0 : i32
    %c0_i32_1 = arith.constant 0 : i32
    return %c0_i32, %c0_i32_0 : i32, i32
  }
  func.func @transform_6(%arg0: i32) -> (i32, i32, i32) {
    %c0_i32 = arith.constant 0 : i32
    %c0_i32_0 = arith.constant 0 : i32
    %c0_i32_1 = arith.constant 0 : i32
    return %arg0, %c0_i32, %c0_i32_0 : i32, i32, i32
  }
  func.func @transform_7(%arg0: i32) -> (i32, i32, i32) {
    %c0_i32 = arith.constant 0 : i32
    %c0_i32_0 = arith.constant 0 : i32
    %c0_i32_1 = arith.constant 0 : i32
    return %arg0, %c0_i32, %c0_i32_0 : i32, i32, i32
  }
  func.func @transform_8(%arg0: i32) -> (i32, i32, i32) {
    %c0_i32 = arith.constant 0 : i32
    %c0_i32_0 = arith.constant 0 : i32
    %c0_i32_1 = arith.constant 0 : i32
    return %arg0, %c0_i32, %c0_i32_0 : i32, i32, i32
  }
}

</mosaic_0001>

<bundles_post_ra>
// kernel: tile.12
= control target key start
LH: loop header
LB: loop body
LE: loop exit
PB: predicated region body
PF: predicated region fallthrough
CT: control target
= control target key end

     0   :  { %s22_s0 = inlined_call_operand.vmem [shape: f32[8], index: 0, kind: input, shape index: {}]   ;;  %s23_s1 = inlined_call_operand.vmem [shape: f32[4,8], index: 1, kind: output, shape index: {}]  }
   0x1   :  { %v4_v0 = vld [vmem:[%s22_s0] ss:$0 sm:$0xff] }
   0x2   :  { %5 = vst [vmem:[%s23_s1] sm:$0xf] %v4_v0 }

// kernel: tile.13
= control target key start
LH: loop header
LB: loop body
LE: loop exit
PB: predicated region body
PF: predicated region fallthrough
CT: control target
= control target key end

     0   :  { %vm7_vm0 = vcmask 64512   ;;  %s37_s8 = smov 8   ;;  %s38_s9 = smov 16   ;;  %vm13_vm1 = vcmask 261312   ;;  %vm19_vm2 = vcmask 195712   ;;  %vm25_vm3 = vcmask 130112   ;;  %s55_s0 = inlined_call_operand.vmem [shape: f32[4,8], index: 0, kind: input, shape index: {}]   ;;  %s56_s1 = inlined_call_operand.vmem [shape: f32[1,32], index: 1, kind: output, shape index: {}]  }
   0x1   :  { %v4_v0 = vld [vmem:[%s55_s0] sm:$0xf]  ;;  %s36_s0 = smov 24  }
   0x2   :  { %5 = vst [vmem:[#allocation1] sm:$0xf] %v4_v0 }
   0x9   :  { %v10_v1 = vld [vmem:[#allocation1 + $0x3] sm:$0x1]   ;;  %v22_v2 = vld [vmem:[#allocation1 + $0x1] sm:$0x1]   ;;  %v6_v3 = vld [vmem:[#allocation1] sm:$0x1]  }
   0xa   :  { %11 = vrot.lane.b32.xlu0 %v10_v1, %s36_s0  ;;  %23 = vrot.lane.b32.xlu1 %v22_v2, %s37_s8  ;;  %v16_v4 = vld [vmem:[#allocation1 + $0x2] sm:$0x1]   ;;  %8 = vst.msk [vmem:[#allocation0] sm:$0x1] %vm7_vm0, %v6_v3  }
   0xe   :  { %17 = vrot.lane.b32.xlu0 %v16_v4, %s38_s9 }
  0x7c   :  { %v12_v5 = vpop.permute.xlu0 %11   ;;  %v24_v6 = vpop.permute.xlu1 %23  }
  0x7d   :  { %14 = vst.msk [vmem:[#allocation0] sm:$0x1] %vm13_vm1, %v12_v5  }
  0x80   :  { %v18_v7 = vpop.permute.xlu0 %17  }
  0x81   :  { %20 = vst.msk [vmem:[#allocation0] sm:$0x1] %vm19_vm2, %v18_v7  }
  0x82   :  { %26 = vst.msk [vmem:[#allocation0] sm:$0x1] %vm25_vm3, %v24_v6  }
  0x89   :  { %v30_v8 = vld [vmem:[#allocation0] sm:$0x1] }
  0x8a   :  { %32 = vst [vmem:[%s56_s1] sm:$0x1] %v30_v8 }

// kernel: decoder_block_forward.4
= control target key start
LH: loop header
LB: loop body
LE: loop exit
PB: predicated region body
PF: predicated region fallthrough
CT: control target
= control target key end

     0   :  { %s526_s12 = smov 0   ;;  %s583_s0 = inlined_call_operand.vmem [shape: bf16[2,64,8], index: 0, kind: input, shape index: {}]   ;;  %s584_s1 = inlined_call_operand.vmem [shape: bf16[8,32], index: 1, kind: input, shape index: {}]   ;;  %s585_s2 = inlined_call_operand.vmem [shape: f32[1,32], index: 2, kind: input, shape index: {}]   ;;  %s586_s3 = inlined_call_operand.vmem [shape: bf16[2,8,2,8,16], index: 3, kind: output, shape index: {}]  }
   0x1 LB: > { %s419_s13 = sadd.s32 4294967295, %s503_s12   ;;  %p423_p0 = scmp.ge.s32.totalorder %s503_s12, 1  ;;  %s503_s12 = sphi %s526_s12, %s13_s12  }
   0x2   : > { %p137_p1 = scmp.lt.s32.totalorder %s503_s12, 3 }
   0x4   : > { %p138_p2 = pnand %p423_p0, %p137_p1 }
   0x5   : > { %v180_v0 = vld [vmem:[%s584_s1] sm:$0xf] (!%p138_p2)  ;;  %vm221_vm0 = vcmask (!%p138_p2), 1043456   ;;  %p161_p3 = scmp.lt.s32.totalorder (!%p138_p2), %s419_s13, 1  ;;  %vm208_vm1 = vcmask (!%p138_p2), 64512   ;;  %vm298_vm2 = vcmask (!%p138_p2), 125952  }
   0x6   : > { %141 = sbr.rel (%p138_p2) target bundleno = 363 (0x16b), region = 32  ;;  %482 = vmatprep.subr.msk.bf16.mxu0 (!%p138_p2), %vm221_vm0, %v180_v0  ;;  %483 = vmatprep.subr.msk.bf16.mxu1 (!%p138_p2), %vm221_vm0, %v180_v0  ;;  %v223_v1 = vsel (!%p138_p2), %vm221_vm0, %v180_v0, 0  ;;  %v428_v6 = vld [vmem:[%s585_s2] ss:$0 sm:$0xff] (!%p138_p2)  ;;  %s505_s26 = smov (!%p138_p2), 112  }
   0x7   : > { %471 = vmatpush3.bf16.msra.mxu0 (!%p138_p2), %v223_v1  ;;  %481 = vmatpush3.bf16.msra.mxu1 (!%p138_p2), %v223_v1 }
   0xd   : > { %s588_s13 = smov (!%p161_p3, %s419_s13), 1 }
   0xe   : > { %s455_s16 = sshll.u32 %s588_s13, 5  ;;  %s456_s22 = sshll.u32 %s588_s13, 6 }
   0xf   : > { %s165_s19 = scalar_lea.vmem %s583_s0, %s455_s16  ;;  %s546_s25 = scalar_lea.vmem %s586_s3, %s456_s22 }
  0x10   : > { %v493_v2 = vld [vmem:[%s165_s19] sm:$0xff]   ;;  %v494_v3 = vld [vmem:[%s165_s19 + $0x8] sm:$0xff]   ;;  %v495_v4 = vld [vmem:[%s165_s19 + $0x10] sm:$0xff]  }
  0x11   : > { %472 = vmatprep.mubr.msk.bf16.mxu0 %vm208_vm1, %v493_v2  ;;  %v496_v5 = vld [vmem:[%s165_s19 + $0x18] sm:$0xff]   ;;  %476 = vmatprep.mubr.msk.bf16.mxu1 %vm208_vm1, %v495_v4 }
  0x12   : > { %473 = vmatmul.mubr.msk.bf16.vlgmr.msra.gmra.mrb[0].mxu0 %vm208_vm1, %v494_v3  ;;  %477 = vmatmul.mubr.msk.bf16.vlgmr.msra.gmra.mrb[0].mxu1 %vm208_vm1, %v496_v5 }
  0xe5   : > { %v474_v7 = vpop.f32.mrb[0].mxu0  ;;  %v478_v11 = vpop.f32.mrb[0].mxu1 }
  0xe6   : > { %v268_v8 = vadd.f32 %v474_v7, %v428_v6  ;;  %v259_v9 = vpop.f32.mrb[1].mxu0  ;;  %v284_v14 = vadd.f32 %v478_v11, %v428_v6  ;;  %v275_v16 = vpop.f32.mrb[1].mxu1 }
  0xe7   : > { %v260_v10 = vadd.f32 %v428_v6, %v259_v9  ;;  %v475_v12 = vpop.f32.mrb[2].mxu0  ;;  %v276_v19 = vadd.f32 %v428_v6, %v275_v16  ;;  %v479_v21 = vpop.f32.mrb[2].mxu1 }
  0xe8   : > { %v292_v13 = vpack.c.bf16 %v268_v8, %v268_v8  ;;  %v271_v15 = vadd.f32 %v475_v12, %v428_v6  ;;  %v262_v17 = vpop.f32.mrb[3].mxu0  ;;  %v296_v22 = vpack.c.bf16 %v284_v14, %v284_v14  ;;  %v287_v24 = vadd.f32 %v479_v21, %v428_v6  ;;  %v278_v25 = vpop.f32.mrb[3].mxu1 }
  0xe9   : > { %v290_v18 = vpack.c.bf16 %v260_v10, %v260_v10  ;;  %v263_v20 = vadd.f32 %v428_v6, %v262_v17  ;;  %v294_v26 = vpack.c.bf16 %v276_v19, %v276_v19  ;;  %v279_v28 = vadd.f32 %v428_v6, %v278_v25 }
  0xea   : > { %301 = vst.msk [vmem:[%s546_s25 + $0x10] sm:$0xf] %vm298_vm2, %v292_v13  ;;  %v293_v23 = vpack.c.bf16 %v271_v15, %v271_v15  ;;  %335 = vrot.lane.b32.xlu1 %v292_v13, %s505_s26  ;;  %305 = vst.msk [vmem:[%s546_s25 + $0x30] sm:$0xf] %vm298_vm2, %v296_v22  ;;  %v297_v29 = vpack.c.bf16 %v287_v24, %v287_v24 }
  0xeb   : > { %299 = vst.msk [vmem:[%s546_s25] sm:$0xf] %vm298_vm2, %v290_v18  ;;  %v291_v27 = vpack.c.bf16 %v263_v20, %v263_v20  ;;  %331 = vrot.lane.b32.xlu0 %v290_v18, %s505_s26  ;;  %303 = vst.msk [vmem:[%s546_s25 + $0x20] sm:$0xf] %vm298_vm2, %v294_v26  ;;  %v295_v30 = vpack.c.bf16 %v279_v28, %v279_v28 }
  0xec   : > { %302 = vst.msk [vmem:[%s546_s25 + $0x18] sm:$0xf] %vm298_vm2, %v293_v23  ;;  %306 = vst.msk [vmem:[%s546_s25 + $0x38] sm:$0xf] %vm298_vm2, %v297_v29 }
  0xed   : > { %300 = vst.msk [vmem:[%s546_s25 + $0x8] sm:$0xf] %vm298_vm2, %v291_v27  ;;  %304 = vst.msk [vmem:[%s546_s25 + $0x28] sm:$0xf] %vm298_vm2, %v295_v30 }
  0xee   : > { %337 = vrot.lane.b32.xlu1 %v293_v23, %s505_s26 }
  0xef   : > { %339 = vrot.lane.b32.xlu0 %v294_v26, %s505_s26 }
  0xf2   : > { %341 = vrot.lane.b32.xlu1 %v295_v30, %s505_s26 }
  0xf3   : > { %333 = vrot.lane.b32.xlu0 %v291_v27, %s505_s26 }
  0xf6   : > { %345 = vrot.lane.b32.xlu1 %v297_v29, %s505_s26 }
  0xf7   : > { %343 = vrot.lane.b32.xlu0 %v296_v22, %s505_s26 }
 0x15c   : > { %v336_v31 = vpop.permute.xlu1 %335 }
 0x15d   : > { %447 = vst.msk [vmem:[%s546_s25 + $0x14] sm:$0xf] %vm298_vm2, %v336_v31  ;;  %v332_v32 = vpop.permute.xlu0 %331 }
 0x15e   : > { %445 = vst.msk [vmem:[%s546_s25 + $0x4] sm:$0xf] %vm298_vm2, %v332_v32 }
 0x160   : > { %v338_v33 = vpop.permute.xlu1 %337 }
 0x161   : > { %448 = vst.msk [vmem:[%s546_s25 + $0x1c] sm:$0xf] %vm298_vm2, %v338_v33  ;;  %v340_v34 = vpop.permute.xlu0 %339 }
 0x162   : > { %449 = vst.msk [vmem:[%s546_s25 + $0x24] sm:$0xf] %vm298_vm2, %v340_v34 }
 0x164   : > { %v342_v35 = vpop.permute.xlu1 %341 }
 0x165   : > { %450 = vst.msk [vmem:[%s546_s25 + $0x2c] sm:$0xf] %vm298_vm2, %v342_v35  ;;  %v334_v36 = vpop.permute.xlu0 %333 }
 0x166   : > { %446 = vst.msk [vmem:[%s546_s25 + $0xc] sm:$0xf] %vm298_vm2, %v334_v36 }
 0x168   : > { %v346_v37 = vpop.permute.xlu1 %345 }
 0x169   : > { %452 = vst.msk [vmem:[%s546_s25 + $0x3c] sm:$0xf] %vm298_vm2, %v346_v37  ;;  %v344_v38 = vpop.permute.xlu0 %343 }
 0x16a   : > { %451 = vst.msk [vmem:[%s546_s25 + $0x34] sm:$0xf] %vm298_vm2, %v344_v38 }
 0x16b PF: > { %s13_s12 = sadd.s32 1, %s503_s12  }
 0x16c   : > { %p10_p4 = scmp.ge.s32.totalorder %s13_s12, 4  }
 0x16e   :  { %12 = sbr.rel (!%p10_p4) target bundleno = 1 (0x1), region = 63 }

// kernel: decoder_block_forward.7
= control target key start
LH: loop header
LB: loop body
LE: loop exit
PB: predicated region body
PF: predicated region fallthrough
CT: control target
= control target key end

     0   :  { %s595_s12 = smov 0   ;;  %s792_s0 = inlined_call_operand.vmem [shape: bf16[2,288,8], index: 0, kind: input, shape index: {}]   ;;  %s793_s1 = inlined_call_operand.vmem [shape: f32[1,8], index: 1, kind: input, shape index: {}]   ;;  %s794_s2 = inlined_call_operand.vmem [shape: f32[1,8], index: 2, kind: input, shape index: {}]   ;;  %s795_s3 = inlined_call_operand.vmem [shape: f32[2,288,8], index: 3, kind: output, shape index: {}]  }
   0x1 LB: > { %s457_s13 = sadd.s32 4294967295, %s573_s12   ;;  %p461_p0 = scmp.ge.s32.totalorder %s573_s12, 1  ;;  %s573_s12 = sphi %s595_s12, %s13_s12  }
   0x2   : > { %p137_p1 = scmp.lt.s32.totalorder %s573_s12, 3 }
   0x4   : > { %p138_p2 = pnand %p461_p0, %p137_p1 }
   0x5   : > { %p161_p3 = scmp.lt.s32.totalorder (!%p138_p2), %s457_s13, 1  ;;  %v614_v0 = vld [vmem:[%s793_s1] ss:$0 sm:$0xff] (!%p138_p2)  ;;  %vm365_vm0 = vcmask (!%p138_p2), 64512  }
   0x6   : > { %141 = sbr.rel (%p138_p2) target bundleno = 59 (0x3b), region = 32  ;;  %v624_v9 = vld [vmem:[%s794_s2] ss:$0 sm:$0xff] (!%p138_p2) }
   0xd   : > { %s797_s13 = smov (!%p161_p3, %s457_s13), 1 }
   0xe   : > { %s557_s14 = smul.u32 144, %s797_s13 }
   0xf   : > { %s558_s20 = smul.u32 288, %s797_s13 }
  0x10   : > { %s609_s17 = scalar_lea.vmem %s792_s0, %s557_s14 }
  0x11   : > { %v469_v1 = vld [vmem:[%s609_s17] sm:$0xff]   ;;  %v540_v2 = vld [vmem:[%s609_s17 + $0x8] sm:$0xff]   ;;  %v541_v3 = vld [vmem:[%s609_s17 + $0x10] sm:$0xff]   ;;  %s641_s25 = scalar_lea.vmem %s795_s3, %s558_s20 }
  0x12   : > { %v470_v4 = vunpack.c.l.bf16 %v469_v1  ;;  %v471_v5 = vunpack.c.h.bf16 %v469_v1  ;;  %v474_v6 = vunpack.c.l.bf16 %v540_v2  ;;  %v475_v7 = vunpack.c.h.bf16 %v540_v2  ;;  %v542_v8 = vld [vmem:[%s609_s17 + $0x18] sm:$0xff]   ;;  %v543_v30 = vld [vmem:[%s609_s17 + $0x20] sm:$0xff]   ;;  %v544_v31 = vld [vmem:[%s609_s17 + $0x28] sm:$0xff]  }
  0x13   : > { %v478_v10 = vunpack.c.l.bf16 %v541_v3  ;;  %v479_v11 = vunpack.c.h.bf16 %v541_v3  ;;  %v482_v12 = vunpack.c.l.bf16 %v542_v8  ;;  %v483_v13 = vunpack.c.h.bf16 %v542_v8  ;;  %v545_v36 = vld [vmem:[%s609_s17 + $0x30] sm:$0xff]   ;;  %v546_v37 = vld [vmem:[%s609_s17 + $0x38] sm:$0xff]   ;;  %v547_v3 = vld [vmem:[%s609_s17 + $0x40] sm:$0xff]  }
  0x14   : > { %v250_v14 = vmul.f32 %v470_v4, %v614_v0  ;;  %v251_v15 = vmul.f32 %v471_v5, %v614_v0  ;;  %v252_v16 = vmul.f32 %v474_v6, %v614_v0  ;;  %v253_v17 = vmul.f32 %v475_v7, %v614_v0  ;;  %v548_v4 = vld [vmem:[%s609_s17 + $0x48] sm:$0xff]  }
  0x15   : > { %v254_v18 = vmul.f32 %v478_v10, %v614_v0  ;;  %v255_v19 = vmul.f32 %v479_v11, %v614_v0  ;;  %v256_v20 = vmul.f32 %v482_v12, %v614_v0  ;;  %v257_v21 = vmul.f32 %v483_v13, %v614_v0  ;;  %v549_v10 = vld [vmem:[%s609_s17 + $0x50] sm:$0xff]   ;;  %v550_v11 = vld [vmem:[%s609_s17 + $0x58] sm:$0xff]  }
  0x16   : > { %v293_v22 = vadd.f32 %v624_v9, %v250_v14  ;;  %v294_v23 = vadd.f32 %v624_v9, %v251_v15  ;;  %v295_v24 = vadd.f32 %v624_v9, %v252_v16  ;;  %v296_v25 = vadd.f32 %v624_v9, %v253_v17 }
  0x17   : > { %v297_v26 = vadd.f32 %v624_v9, %v254_v18  ;;  %v298_v27 = vadd.f32 %v624_v9, %v255_v19  ;;  %v299_v28 = vadd.f32 %v624_v9, %v256_v20  ;;  %v300_v29 = vadd.f32 %v624_v9, %v257_v21 }
  0x18   : > { %v329_v32 = vmax.f32 %v293_v22, 0.0  ;;  %v330_v33 = vmax.f32 %v294_v23, 0.0  ;;  %v331_v34 = vmax.f32 %v295_v24, 0.0  ;;  %v332_v35 = vmax.f32 %v296_v25, 0.0 }
  0x19   : > { %v333_v38 = vmax.f32 %v297_v26, 0.0  ;;  %v334_v39 = vmax.f32 %v298_v27, 0.0  ;;  %v335_v40 = vmax.f32 %v299_v28, 0.0  ;;  %v336_v41 = vmax.f32 %v300_v29, 0.0 }
  0x1a   : > { %366 = vst.msk [vmem:[%s641_s25] sm:$0xff] %vm365_vm0, %v329_v32  ;;  %367 = vst.msk [vmem:[%s641_s25 + $0x8] sm:$0xff] %vm365_vm0, %v330_v33  ;;  %v486_v42 = vunpack.c.l.bf16 %v543_v30  ;;  %v487_v43 = vunpack.c.h.bf16 %v543_v30  ;;  %v490_v44 = vunpack.c.l.bf16 %v544_v31  ;;  %v491_v45 = vunpack.c.h.bf16 %v544_v31 }
  0x1b   : > { %368 = vst.msk [vmem:[%s641_s25 + $0x10] sm:$0xff] %vm365_vm0, %v331_v34  ;;  %369 = vst.msk [vmem:[%s641_s25 + $0x18] sm:$0xff] %vm365_vm0, %v332_v35  ;;  %v494_v46 = vunpack.c.l.bf16 %v545_v36  ;;  %v495_v47 = vunpack.c.h.bf16 %v545_v36  ;;  %v498_v48 = vunpack.c.l.bf16 %v546_v37  ;;  %v499_v49 = vunpack.c.h.bf16 %v546_v37 }
  0x1c   : > { %370 = vst.msk [vmem:[%s641_s25 + $0x20] sm:$0xff] %vm365_vm0, %v333_v38  ;;  %371 = vst.msk [vmem:[%s641_s25 + $0x28] sm:$0xff] %vm365_vm0, %v334_v39  ;;  %v258_v50 = vmul.f32 %v486_v42, %v614_v0  ;;  %v259_v51 = vmul.f32 %v487_v43, %v614_v0  ;;  %v260_v52 = vmul.f32 %v490_v44, %v614_v0  ;;  %v502_v16 = vunpack.c.l.bf16 %v547_v3 }
  0x1d   : > { %372 = vst.msk [vmem:[%s641_s25 + $0x30] sm:$0xff] %vm365_vm0, %v335_v40  ;;  %373 = vst.msk [vmem:[%s641_s25 + $0x38] sm:$0xff] %vm365_vm0, %v336_v41  ;;  %v261_v53 = vmul.f32 %v491_v45, %v614_v0  ;;  %v262_v54 = vmul.f32 %v494_v46, %v614_v0  ;;  %v263_v55 = vmul.f32 %v495_v47, %v614_v0  ;;  %v503_v17 = vunpack.c.h.bf16 %v547_v3  ;;  %v551_v40 = vld [vmem:[%s609_s17 + $0x60] sm:$0xff]   ;;  %v552_v41 = vld [vmem:[%s609_s17 + $0x68] sm:$0xff]  }
  0x1e   : > { %v264_v56 = vmul.f32 %v498_v48, %v614_v0  ;;  %v265_v57 = vmul.f32 %v499_v49, %v614_v0  ;;  %v301_v58 = vadd.f32 %v624_v9, %v258_v50  ;;  %v302_v59 = vadd.f32 %v624_v9, %v259_v51  ;;  %v553_v46 = vld [vmem:[%s609_s17 + $0x70] sm:$0xff]   ;;  %v554_v47 = vld [vmem:[%s609_s17 + $0x78] sm:$0xff]  }
  0x1f   : > { %v303_v60 = vadd.f32 %v624_v9, %v260_v52  ;;  %v304_v61 = vadd.f32 %v624_v9, %v261_v53  ;;  %v305_v62 = vadd.f32 %v624_v9, %v262_v54  ;;  %v306_v63 = vadd.f32 %v624_v9, %v263_v55 }
  0x20   : > { %v307_v1 = vadd.f32 %v624_v9, %v264_v56  ;;  %v308_v2 = vadd.f32 %v624_v9, %v265_v57  ;;  %v337_v5 = vmax.f32 %v301_v58, 0.0  ;;  %v338_v6 = vmax.f32 %v302_v59, 0.0 }
  0x21   : > { %v339_v7 = vmax.f32 %v303_v60, 0.0  ;;  %v340_v8 = vmax.f32 %v304_v61, 0.0  ;;  %v341_v12 = vmax.f32 %v305_v62, 0.0  ;;  %v342_v13 = vmax.f32 %v306_v63, 0.0 }
  0x22   : > { %v343_v14 = vmax.f32 %v307_v1, 0.0  ;;  %v344_v15 = vmax.f32 %v308_v2, 0.0  ;;  %374 = vst.msk [vmem:[%s641_s25 + $0x40] sm:$0xff] %vm365_vm0, %v337_v5  ;;  %375 = vst.msk [vmem:[%s641_s25 + $0x48] sm:$0xff] %vm365_vm0, %v338_v6  ;;  %v506_v18 = vunpack.c.l.bf16 %v548_v4  ;;  %v507_v19 = vunpack.c.h.bf16 %v548_v4 }
  0x23   : > { %376 = vst.msk [vmem:[%s641_s25 + $0x50] sm:$0xff] %vm365_vm0, %v339_v7  ;;  %377 = vst.msk [vmem:[%s641_s25 + $0x58] sm:$0xff] %vm365_vm0, %v340_v8  ;;  %v510_v20 = vunpack.c.l.bf16 %v549_v10  ;;  %v511_v21 = vunpack.c.h.bf16 %v549_v10  ;;  %v514_v22 = vunpack.c.l.bf16 %v550_v11  ;;  %v515_v23 = vunpack.c.h.bf16 %v550_v11 }
  0x24   : > { %378 = vst.msk [vmem:[%s641_s25 + $0x60] sm:$0xff] %vm365_vm0, %v341_v12  ;;  %379 = vst.msk [vmem:[%s641_s25 + $0x68] sm:$0xff] %vm365_vm0, %v342_v13  ;;  %v266_v24 = vmul.f32 %v502_v16, %v614_v0  ;;  %v267_v25 = vmul.f32 %v503_v17, %v614_v0  ;;  %v268_v26 = vmul.f32 %v506_v18, %v614_v0  ;;  %v518_v52 = vunpack.c.l.bf16 %v551_v40 }
  0x25   : > { %380 = vst.msk [vmem:[%s641_s25 + $0x70] sm:$0xff] %vm365_vm0, %v343_v14  ;;  %381 = vst.msk [vmem:[%s641_s25 + $0x78] sm:$0xff] %vm365_vm0, %v344_v15  ;;  %v269_v27 = vmul.f32 %v507_v19, %v614_v0  ;;  %v270_v28 = vmul.f32 %v510_v20, %v614_v0  ;;  %v271_v29 = vmul.f32 %v511_v21, %v614_v0  ;;  %v519_v53 = vunpack.c.h.bf16 %v551_v40  ;;  %v555_v14 = vld [vmem:[%s609_s17 + $0x80] sm:$0xff]   ;;  %v556_v15 = vld [vmem:[%s609_s17 + $0x88] sm:$0xff]  }
  0x26   : > { %v272_v30 = vmul.f32 %v514_v22, %v614_v0  ;;  %v273_v31 = vmul.f32 %v515_v23, %v614_v0  ;;  %v309_v32 = vadd.f32 %v624_v9, %v266_v24  ;;  %v310_v33 = vadd.f32 %v624_v9, %v267_v25 }
  0x27   : > { %v311_v34 = vadd.f32 %v624_v9, %v268_v26  ;;  %v312_v35 = vadd.f32 %v624_v9, %v269_v27  ;;  %v313_v36 = vadd.f32 %v624_v9, %v270_v28  ;;  %v314_v37 = vadd.f32 %v624_v9, %v271_v29 }
  0x28   : > { %v315_v38 = vadd.f32 %v624_v9, %v272_v30  ;;  %v316_v39 = vadd.f32 %v624_v9, %v273_v31  ;;  %v345_v42 = vmax.f32 %v309_v32, 0.0  ;;  %v346_v43 = vmax.f32 %v310_v33, 0.0 }
  0x29   : > { %v347_v44 = vmax.f32 %v311_v34, 0.0  ;;  %v348_v45 = vmax.f32 %v312_v35, 0.0  ;;  %v349_v48 = vmax.f32 %v313_v36, 0.0  ;;  %v350_v49 = vmax.f32 %v314_v37, 0.0 }
  0x2a   : > { %v351_v50 = vmax.f32 %v315_v38, 0.0  ;;  %v352_v51 = vmax.f32 %v316_v39, 0.0  ;;  %382 = vst.msk [vmem:[%s641_s25 + $0x80] sm:$0xff] %vm365_vm0, %v345_v42  ;;  %383 = vst.msk [vmem:[%s641_s25 + $0x88] sm:$0xff] %vm365_vm0, %v346_v43  ;;  %v522_v54 = vunpack.c.l.bf16 %v552_v41  ;;  %v523_v55 = vunpack.c.h.bf16 %v552_v41 }
  0x2b   : > { %384 = vst.msk [vmem:[%s641_s25 + $0x90] sm:$0xff] %vm365_vm0, %v347_v44  ;;  %385 = vst.msk [vmem:[%s641_s25 + $0x98] sm:$0xff] %vm365_vm0, %v348_v45  ;;  %v526_v56 = vunpack.c.l.bf16 %v553_v46  ;;  %v527_v57 = vunpack.c.h.bf16 %v553_v46  ;;  %v530_v58 = vunpack.c.l.bf16 %v554_v47  ;;  %v531_v59 = vunpack.c.h.bf16 %v554_v47 }
  0x2c   : > { %386 = vst.msk [vmem:[%s641_s25 + $0xa0] sm:$0xff] %vm365_vm0, %v349_v48  ;;  %387 = vst.msk [vmem:[%s641_s25 + $0xa8] sm:$0xff] %vm365_vm0, %v350_v49  ;;  %v274_v60 = vmul.f32 %v518_v52, %v614_v0  ;;  %v275_v61 = vmul.f32 %v519_v53, %v614_v0  ;;  %v276_v62 = vmul.f32 %v522_v54, %v614_v0  ;;  %v534_v24 = vunpack.c.l.bf16 %v555_v14 }
  0x2d   : > { %388 = vst.msk [vmem:[%s641_s25 + $0xb0] sm:$0xff] %vm365_vm0, %v351_v50  ;;  %389 = vst.msk [vmem:[%s641_s25 + $0xb8] sm:$0xff] %vm365_vm0, %v352_v51  ;;  %v277_v63 = vmul.f32 %v523_v55, %v614_v0  ;;  %v278_v1 = vmul.f32 %v526_v56, %v614_v0  ;;  %v279_v2 = vmul.f32 %v527_v57, %v614_v0  ;;  %v535_v25 = vunpack.c.h.bf16 %v555_v14 }
  0x2e   : > { %v280_v3 = vmul.f32 %v530_v58, %v614_v0  ;;  %v281_v4 = vmul.f32 %v531_v59, %v614_v0  ;;  %v317_v5 = vadd.f32 %v624_v9, %v274_v60  ;;  %v318_v6 = vadd.f32 %v624_v9, %v275_v61 }
  0x2f   : > { %v319_v7 = vadd.f32 %v624_v9, %v276_v62  ;;  %v320_v8 = vadd.f32 %v624_v9, %v277_v63  ;;  %v321_v10 = vadd.f32 %v624_v9, %v278_v1  ;;  %v322_v11 = vadd.f32 %v624_v9, %v279_v2 }
  0x30   : > { %v323_v12 = vadd.f32 %v624_v9, %v280_v3  ;;  %v324_v13 = vadd.f32 %v624_v9, %v281_v4  ;;  %v353_v16 = vmax.f32 %v317_v5, 0.0  ;;  %v354_v17 = vmax.f32 %v318_v6, 0.0 }
  0x31   : > { %v355_v18 = vmax.f32 %v319_v7, 0.0  ;;  %v356_v19 = vmax.f32 %v320_v8, 0.0  ;;  %v357_v20 = vmax.f32 %v321_v10, 0.0  ;;  %v358_v21 = vmax.f32 %v322_v11, 0.0 }
  0x32   : > { %v359_v22 = vmax.f32 %v323_v12, 0.0  ;;  %v360_v23 = vmax.f32 %v324_v13, 0.0  ;;  %390 = vst.msk [vmem:[%s641_s25 + $0xc0] sm:$0xff] %vm365_vm0, %v353_v16  ;;  %391 = vst.msk [vmem:[%s641_s25 + $0xc8] sm:$0xff] %vm365_vm0, %v354_v17  ;;  %v538_v26 = vunpack.c.l.bf16 %v556_v15  ;;  %v539_v27 = vunpack.c.h.bf16 %v556_v15 }
  0x33   : > { %392 = vst.msk [vmem:[%s641_s25 + $0xd0] sm:$0xff] %vm365_vm0, %v355_v18  ;;  %393 = vst.msk [vmem:[%s641_s25 + $0xd8] sm:$0xff] %vm365_vm0, %v356_v19  ;;  %v282_v28 = vmul.f32 %v534_v24, %v614_v0  ;;  %v283_v29 = vmul.f32 %v535_v25, %v614_v0 }
  0x34   : > { %394 = vst.msk [vmem:[%s641_s25 + $0xe0] sm:$0xff] %vm365_vm0, %v357_v20  ;;  %395 = vst.msk [vmem:[%s641_s25 + $0xe8] sm:$0xff] %vm365_vm0, %v358_v21  ;;  %v284_v30 = vmul.f32 %v538_v26, %v614_v0  ;;  %v285_v31 = vmul.f32 %v539_v27, %v614_v0 }
  0x35   : > { %396 = vst.msk [vmem:[%s641_s25 + $0xf0] sm:$0xff] %vm365_vm0, %v359_v22  ;;  %397 = vst.msk [vmem:[%s641_s25 + $0xf8] sm:$0xff] %vm365_vm0, %v360_v23  ;;  %v325_v32 = vadd.f32 %v624_v9, %v282_v28  ;;  %v326_v33 = vadd.f32 %v624_v9, %v283_v29 }
  0x36   : > { %v327_v34 = vadd.f32 %v624_v9, %v284_v30  ;;  %v328_v35 = vadd.f32 %v624_v9, %v285_v31 }
  0x37   : > { %v361_v36 = vmax.f32 %v325_v32, 0.0  ;;  %v362_v37 = vmax.f32 %v326_v33, 0.0 }
  0x38   : > { %v363_v38 = vmax.f32 %v327_v34, 0.0  ;;  %v364_v39 = vmax.f32 %v328_v35, 0.0 }
  0x39   : > { %398 = vst.msk [vmem:[%s641_s25 + $0x100] sm:$0xff] %vm365_vm0, %v361_v36  ;;  %399 = vst.msk [vmem:[%s641_s25 + $0x108] sm:$0xff] %vm365_vm0, %v362_v37 }
  0x3a   : > { %400 = vst.msk [vmem:[%s641_s25 + $0x110] sm:$0xff] %vm365_vm0, %v363_v38  ;;  %401 = vst.msk [vmem:[%s641_s25 + $0x118] sm:$0xff] %vm365_vm0, %v364_v39 }
  0x3b PF: > { %s13_s12 = sadd.s32 1, %s573_s12  }
  0x3c   : > { %p10_p4 = scmp.ge.s32.totalorder %s13_s12, 4  }
  0x3e   :  { %12 = sbr.rel (!%p10_p4) target bundleno = 1 (0x1), region = 62 }

// kernel: decoder_block_forward.6
= control target key start
LH: loop header
LB: loop body
LE: loop exit
PB: predicated region body
PF: predicated region fallthrough
CT: control target
= control target key end

     0   :  { %s2940_s27 = smov 0   ;;  %s3979_s0 = inlined_call_operand.vmem [shape: bf16[2,288,8], index: 0, kind: input, shape index: {}]   ;;  %s3980_s1 = inlined_call_operand.vmem [shape: f32[1,8], index: 1, kind: input, shape index: {}]   ;;  %s3981_s2 = inlined_call_operand.vmem [shape: f32[1,8], index: 2, kind: input, shape index: {}]   ;;  %s3982_s3 = inlined_call_operand.vmem [shape: f32[288,8], index: 3, kind: input, shape index: {}]   ;;  %s3983_s4 = inlined_call_operand.vmem [shape: bf16[72,8], index: 4, kind: input, shape index: {}]   ;;  %s3984_s5 = inlined_call_operand.vmem [shape: f32[1,8], index: 5, kind: input, shape index: {}]   ;;  %s3985_s6 = inlined_call_operand.vmem [shape: bf16[2,288,8], index: 6, kind: output, shape index: {0}]   ;;  %s3986_s7 = inlined_call_operand.vmem [shape: f32[2,1,8], index: 7, kind: output, shape index: {1}]   ;;  %s3987_s8 = inlined_call_operand.vmem [shape: f32[2,1,8], index: 8, kind: output, shape index: {2}]  }
   0x1 LB: > { %s2577_s28 = sadd.s32 4294967295, %s2884_s27   ;;  %p2581_p0 = scmp.ge.s32.totalorder %s2884_s27, 1  ;;  %s2884_s27 = sphi %s2940_s27, %s19_s27  }
   0x2   : > { %p267_p1 = scmp.lt.s32.totalorder %s2884_s27, 3 }
   0x4   : > { %p268_p2 = pnand %p2581_p0, %p267_p1 }
   0x5   : > { %vm590_vm0 = vcmask (!%p268_p2), 64512   ;;  %v2886_v0 = vmov (!%p268_p2), 0.0   ;;  %p307_p3 = scmp.lt.s32.totalorder (!%p268_p2), %s2577_s28, 1  ;;  %v2971_v1 = vld [vmem:[%s3980_s1] ss:$0 sm:$0xff] (!%p268_p2)  ;;  %s2887_s13 = smov (!%p268_p2), 16  }
   0x6   : > { %271 = sbr.rel (%p268_p2) target bundleno = 683 (0x2ab), region = 44  ;;  %591 = vst.msk [vmem:[#allocation2] sm:$0xff] (!%p268_p2), %vm590_vm0, %v2886_v0  ;;  %592 = vst.msk [vmem:[#allocation2 + $0x8] sm:$0xff] (!%p268_p2), %vm590_vm0, %v2886_v0  ;;  %v2981_v15 = vld [vmem:[%s3981_s2] ss:$0 sm:$0xff] (!%p268_p2)  ;;  %s2888_s16 = smov (!%p268_p2), 8  }
   0x7   : > { %593 = vst.msk [vmem:[#allocation2 + $0x10] sm:$0xff] (!%p268_p2), %vm590_vm0, %v2886_v0  ;;  %594 = vst.msk [vmem:[#allocation2 + $0x138] sm:$0xff] (!%p268_p2), %vm590_vm0, %v2886_v0  ;;  %v518_v24 = vld [vmem:[%s3982_s3] sm:$0xff] (!%p268_p2)  ;;  %v519_v25 = vld [vmem:[%s3982_s3 + $0x8] sm:$0xff] (!%p268_p2)  ;;  %s2889_s19 = smov (!%p268_p2), 24   ;;  %s2890_s24 = smov (!%p268_p2), 32  }
   0x8   : > { %595 = vst.msk [vmem:[#allocation2 + $0x140] sm:$0xff] (!%p268_p2), %vm590_vm0, %v2886_v0  ;;  %v520_v27 = vld [vmem:[%s3982_s3 + $0x10] sm:$0xff] (!%p268_p2)  ;;  %v521_v34 = vld [vmem:[%s3982_s3 + $0x18] sm:$0xff] (!%p268_p2)  ;;  %v522_v35 = vld [vmem:[%s3982_s3 + $0x20] sm:$0xff] (!%p268_p2)  ;;  %s2891_s30 = smov (!%p268_p2), 40   ;;  %s2892_s12 = smov (!%p268_p2), 48  }
   0x9   : > { %v523_v44 = vld [vmem:[%s3982_s3 + $0x28] sm:$0xff] (!%p268_p2)  ;;  %v524_v45 = vld [vmem:[%s3982_s3 + $0x30] sm:$0xff] (!%p268_p2)  ;;  %v525_v47 = vld [vmem:[%s3982_s3 + $0x38] sm:$0xff] (!%p268_p2)  ;;  %s2893_s14 = smov (!%p268_p2), 56   ;;  %s2894_s15 = smov (!%p268_p2), 64   ;;  %vm1809_vm1 = vcmask (!%p268_p2), 1043456  }
   0xa   : > { %vm1470_vm2 = vcmask (!%p268_p2), 130048   ;;  %vm1507_vm3 = vcmask (!%p268_p2), 195584   ;;  %vm1544_vm4 = vcmask (!%p268_p2), 261120   ;;  %vm1581_vm5 = vcmask (!%p268_p2), 326656  }
   0xb   : > { %vm596_vm6 = vcmask (!%p268_p2), 59392   ;;  %vm1618_vm7 = vcmask (!%p268_p2), 392192   ;;  %vm1655_vm8 = vcmask (!%p268_p2), 457728   ;;  %vm1692_vm9 = vcmask (!%p268_p2), 523264  }
   0xc   : > { %597 = vst.msk [vmem:[#allocation2 + $0x148] sm:$0x7] (!%p268_p2), %vm596_vm6, %v2886_v0  ;;  %vm1772_vm10 = vcmask (!%p268_p2), 588800   ;;  %vm2134_vm11 = vcmask (!%p268_p2), 60416   ;;  %vm2356_vm12 = vcmask (!%p268_p2), 57344  }
   0xd   : > { %s3989_s28 = smov (!%p307_p3, %s2577_s28), 1  ;;  %v742_v2 = vld [vmem:[#allocation2 + $0x7] sm:$0xff] }
   0xe   : > { %s2854_s29 = smul.u32 144, %s3989_s28  ;;  %v743_v3 = vld [vmem:[#allocation2 + $0xf] sm:$0xff]  ;;  %v688_v4 = vld [vmem:[#allocation2 + $0x6] sm:$0xff] }
   0xf   : > { %v778_v5 = vpack.c.bf16 %v743_v3, %v742_v2  ;;  %v689_v6 = vld [vmem:[#allocation2 + $0xe] sm:$0xff] }
  0x10   : > { %s2966_s10 = scalar_lea.vmem %s3979_s0, %s2854_s29  ;;  %v724_v9 = vpack.c.bf16 %v689_v6, %v688_v4 }
  0x11   : > { %v2685_v7 = vld [vmem:[%s2966_s10] sm:$0xff]   ;;  %v2756_v8 = vld [vmem:[%s2966_s10 + $0x8] sm:$0xff]   ;;  %v2757_v13 = vld [vmem:[%s2966_s10 + $0x10] sm:$0xff]   ;;  %1090 = vrot.lane.b32.xlu1 %v778_v5, %s2887_s13 }
  0x12   : > { %v2686_v10 = vunpack.c.l.bf16 %v2685_v7  ;;  %v2687_v11 = vunpack.c.h.bf16 %v2685_v7  ;;  %v2690_v12 = vunpack.c.l.bf16 %v2756_v8  ;;  %v2758_v14 = vld [vmem:[%s2966_s10 + $0x18] sm:$0xff]   ;;  %v2691_v16 = vunpack.c.h.bf16 %v2756_v8  ;;  %1036 = vrot.lane.b32.xlu0 %v724_v9, %s2888_s16  ;;  %v2759_v52 = vld [vmem:[%s2966_s10 + $0x20] sm:$0xff]   ;;  %v2760_v53 = vld [vmem:[%s2966_s10 + $0x28] sm:$0xff]  }
  0x13   : > { %v2694_v17 = vunpack.c.l.bf16 %v2757_v13  ;;  %v2695_v18 = vunpack.c.h.bf16 %v2757_v13  ;;  %v2698_v19 = vunpack.c.l.bf16 %v2758_v14  ;;  %v2699_v23 = vunpack.c.h.bf16 %v2758_v14  ;;  %v2761_v58 = vld [vmem:[%s2966_s10 + $0x30] sm:$0xff]   ;;  %v2762_v59 = vld [vmem:[%s2966_s10 + $0x38] sm:$0xff]  }
  0x14   : > { %v403_v20 = vmul.f32 %v2686_v10, %v2971_v1  ;;  %v404_v21 = vmul.f32 %v2687_v11, %v2971_v1  ;;  %v405_v22 = vmul.f32 %v2690_v12, %v2971_v1  ;;  %v406_v26 = vmul.f32 %v2691_v16, %v2971_v1 }
  0x15   : > { %v407_v28 = vmul.f32 %v2694_v17, %v2971_v1  ;;  %v408_v29 = vmul.f32 %v2695_v18, %v2971_v1  ;;  %v409_v30 = vmul.f32 %v2698_v19, %v2971_v1  ;;  %v410_v36 = vmul.f32 %v2699_v23, %v2971_v1 }
  0x16   : > { %v446_v31 = vadd.f32 %v2981_v15, %v403_v20  ;;  %v447_v32 = vadd.f32 %v2981_v15, %v404_v21  ;;  %v448_v33 = vadd.f32 %v2981_v15, %v405_v22  ;;  %v449_v37 = vadd.f32 %v2981_v15, %v406_v26  ;;  %v526_v20 = vld [vmem:[%s3982_s3 + $0x40] sm:$0xff]  ;;  %v528_v26 = vld [vmem:[%s3982_s3 + $0x50] sm:$0xff] }
  0x17   : > { %v450_v38 = vadd.f32 %v2981_v15, %v407_v28  ;;  %v451_v39 = vadd.f32 %v2981_v15, %v408_v29  ;;  %v452_v40 = vadd.f32 %v2981_v15, %v409_v30  ;;  %v453_v46 = vadd.f32 %v2981_v15, %v410_v36  ;;  %v530_v36 = vld [vmem:[%s3982_s3 + $0x60] sm:$0xff] }
  0x18   : > { %v482_v41 = vmax.f32 %v446_v31, 0.0  ;;  %v483_v42 = vmax.f32 %v447_v32, 0.0  ;;  %v484_v43 = vmax.f32 %v448_v33, 0.0  ;;  %v485_v48 = vmax.f32 %v449_v37, 0.0  ;;  %v2872_v31 = vld [vmem:[%s3983_s4] sm:$0xff]   ;;  %v531_v37 = vld [vmem:[%s3982_s3 + $0x68] sm:$0xff] }
  0x19   : > { %v486_v49 = vmax.f32 %v450_v38, 0.0  ;;  %v487_v50 = vmax.f32 %v451_v39, 0.0  ;;  %v488_v51 = vmax.f32 %v452_v40, 0.0  ;;  %v489_v57 = vmax.f32 %v453_v46, 0.0  ;;  %2796 = vmatprep.subr.bf16.mxu0 %v2872_v31  ;;  %2842 = vmatprep.subr.bf16.mxu1 %v2872_v31 }
  0x1a   : > { %v554_v54 = vmul.f32 %v518_v24, %v482_v41  ;;  %v555_v55 = vmul.f32 %v519_v25, %v483_v42  ;;  %v556_v56 = vmul.f32 %v520_v27, %v484_v43  ;;  %v557_v60 = vmul.f32 %v521_v34, %v485_v48  ;;  %v3051_v24 = vld [vmem:[%s2966_s10 + $0x40] sm:$0xff]   ;;  %v527_v25 = vld [vmem:[%s3982_s3 + $0x48] sm:$0xff]  ;;  %2797 = vmatpush3.bf16.msra.mxu0 %v2872_v31 }
  0x1b   : > { %v558_v61 = vmul.f32 %v522_v35, %v486_v49  ;;  %v559_v62 = vmul.f32 %v523_v44, %v487_v50  ;;  %v560_v63 = vmul.f32 %v524_v45, %v488_v51  ;;  %v561_v2 = vmul.f32 %v525_v47, %v489_v57  ;;  %v529_v35 = vld [vmem:[%s3982_s3 + $0x58] sm:$0xff]  ;;  %2847 = vmatpush3.bf16.msra.mxu1 %v2872_v31 }
  0x1c   : > { %598 = vst.msk [vmem:[#allocation2 + $0x18] sm:$0xff] %vm590_vm0, %v554_v54  ;;  %599 = vst.msk [vmem:[#allocation2 + $0x20] sm:$0xff] %vm590_vm0, %v555_v55  ;;  %v2702_v3 = vunpack.c.l.bf16 %v2759_v52  ;;  %v2703_v4 = vunpack.c.h.bf16 %v2759_v52  ;;  %v2706_v5 = vunpack.c.l.bf16 %v2760_v53  ;;  %v2707_v6 = vunpack.c.h.bf16 %v2760_v53  ;;  %v533_v57 = vld [vmem:[%s3982_s3 + $0x78] sm:$0xff] }
  0x1d   : > { %600 = vst.msk [vmem:[#allocation2 + $0x28] sm:$0xff] %vm590_vm0, %v556_v56  ;;  %601 = vst.msk [vmem:[#allocation2 + $0x30] sm:$0xff] %vm590_vm0, %v557_v60  ;;  %v2710_v7 = vunpack.c.l.bf16 %v2761_v58  ;;  %v2711_v8 = vunpack.c.h.bf16 %v2761_v58  ;;  %v2714_v9 = vunpack.c.l.bf16 %v2762_v59  ;;  %v2715_v13 = vunpack.c.h.bf16 %v2762_v59  ;;  %v532_v56 = vld [vmem:[%s3982_s3 + $0x70] sm:$0xff] }
  0x1e   : > { %602 = vst.msk [vmem:[#allocation2 + $0x38] sm:$0xff] %vm590_vm0, %v558_v61  ;;  %603 = vst.msk [vmem:[#allocation2 + $0x40] sm:$0xff] %vm590_vm0, %v559_v62  ;;  %v411_v10 = vmul.f32 %v2702_v3, %v2971_v1  ;;  %v412_v11 = vmul.f32 %v2703_v4, %v2971_v1  ;;  %v413_v12 = vmul.f32 %v2706_v5, %v2971_v1  ;;  %v2718_v45 = vunpack.c.l.bf16 %v3051_v24  ;;  %v2764_v62 = vld [vmem:[%s2966_s10 + $0x48] sm:$0xff]  }
  0x1f   : > { %604 = vst.msk [vmem:[#allocation2 + $0x48] sm:$0xff] %vm590_vm0, %v560_v63  ;;  %605 = vst.msk [vmem:[#allocation2 + $0x50] sm:$0xff] %vm590_vm0, %v561_v2  ;;  %v414_v14 = vmul.f32 %v2707_v6, %v2971_v1  ;;  %v415_v16 = vmul.f32 %v2710_v7, %v2971_v1  ;;  %v416_v17 = vmul.f32 %v2711_v8, %v2971_v1  ;;  %v2719_v8 = vunpack.c.h.bf16 %v3051_v24 }
  0x20   : > { %v417_v18 = vmul.f32 %v2714_v9, %v2971_v1  ;;  %v454_v19 = vadd.f32 %v2981_v15, %v411_v10  ;;  %v455_v21 = vadd.f32 %v2981_v15, %v412_v11  ;;  %v456_v22 = vadd.f32 %v2981_v15, %v413_v12  ;;  %v534_v12 = vld [vmem:[%s3982_s3 + $0x80] sm:$0xff] }
  0x21   : > { %v418_v23 = vmul.f32 %v2715_v13, %v2971_v1  ;;  %v457_v27 = vadd.f32 %v2981_v15, %v414_v14  ;;  %v458_v28 = vadd.f32 %v2981_v15, %v415_v16  ;;  %v459_v29 = vadd.f32 %v2981_v15, %v416_v17 }
  0x22   : > { %v460_v30 = vadd.f32 %v2981_v15, %v417_v18  ;;  %v490_v32 = vmax.f32 %v454_v19, 0.0  ;;  %v491_v33 = vmax.f32 %v455_v21, 0.0  ;;  %v492_v34 = vmax.f32 %v456_v22, 0.0 }
  0x23   : > { %v461_v38 = vadd.f32 %v2981_v15, %v418_v23  ;;  %v744_v39 = vld [vmem:[#allocation2 + $0x17] sm:$0xff]  ;;  %v745_v40 = vld [vmem:[#allocation2 + $0x1f] sm:$0xff]  ;;  %v493_v42 = vmax.f32 %v457_v27, 0.0  ;;  %v494_v43 = vmax.f32 %v458_v28, 0.0  ;;  %v495_v44 = vmax.f32 %v459_v29, 0.0 }
  0x24   : > { %v690_v41 = vld [vmem:[#allocation2 + $0x16] sm:$0xff]  ;;  %v779_v46 = vpack.c.bf16 %v745_v40, %v744_v39  ;;  %v691_v47 = vld [vmem:[#allocation2 + $0x1e] sm:$0xff]  ;;  %v746_v48 = vld [vmem:[#allocation2 + $0x27] sm:$0xff]  ;;  %v562_v50 = vmul.f32 %v526_v20, %v490_v32  ;;  %v563_v51 = vmul.f32 %v527_v25, %v491_v33  ;;  %v564_v52 = vmul.f32 %v528_v26, %v492_v34 }
  0x25   : > { %v747_v49 = vld [vmem:[#allocation2 + $0x2f] sm:$0xff]  ;;  %v725_v53 = vpack.c.bf16 %v691_v47, %v690_v41  ;;  %v565_v54 = vmul.f32 %v529_v35, %v493_v42  ;;  %v566_v55 = vmul.f32 %v530_v36, %v494_v43  ;;  %v496_v59 = vmax.f32 %v460_v30, 0.0  ;;  %v799_v4 = vld [vmem:[#allocation2 + $0x18] sm:$0xff]  ;;  %v800_v5 = vld [vmem:[#allocation2 + $0x20] sm:$0xff] }
  0x26   : > { %1092 = vrot.lane.b32.xlu1 %v779_v46, %s2887_s13  ;;  %v3084_v58 = vpack.c.bf16 %v747_v49, %v746_v48  ;;  %606 = vst.msk [vmem:[#allocation2 + $0x58] sm:$0xff] %vm590_vm0, %v562_v50  ;;  %607 = vst.msk [vmem:[#allocation2 + $0x60] sm:$0xff] %vm590_vm0, %v563_v51  ;;  %v567_v60 = vmul.f32 %v531_v37, %v495_v44  ;;  %v497_v61 = vmax.f32 %v461_v38, 0.0  ;;  %v801_v63 = vld [vmem:[#allocation2 + $0x28] sm:$0xff]  ;;  %v802_v2 = vld [vmem:[#allocation2 + $0x30] sm:$0xff]  ;;  %v2722_v10 = vunpack.c.l.bf16 %v2764_v62 }
  0x27   : > { %608 = vst.msk [vmem:[#allocation2 + $0x68] sm:$0xff] %vm590_vm0, %v564_v52  ;;  %1038 = vrot.lane.b32.xlu0 %v725_v53, %s2888_s16  ;;  %609 = vst.msk [vmem:[#allocation2 + $0x70] sm:$0xff] %vm590_vm0, %v565_v54  ;;  %v419_v3 = vmul.f32 %v2718_v45, %v2971_v1  ;;  %v568_v6 = vmul.f32 %v532_v56, %v496_v59  ;;  %v836_v11 = vpack.c.bf16 %v802_v2, %v801_v63  ;;  %v855_v16 = vld [vmem:[#allocation2 + $0x29] sm:$0xff]  ;;  %v856_v17 = vld [vmem:[#allocation2 + $0x31] sm:$0xff] }
  0x28   : > { %610 = vst.msk [vmem:[#allocation2 + $0x78] sm:$0xff] %vm590_vm0, %v566_v55  ;;  %611 = vst.msk [vmem:[#allocation2 + $0x80] sm:$0xff] %vm590_vm0, %v567_v60  ;;  %v569_v7 = vmul.f32 %v533_v57, %v497_v61  ;;  %v420_v13 = vmul.f32 %v2719_v8, %v2971_v1  ;;  %v835_v14 = vpack.c.bf16 %v800_v5, %v799_v4  ;;  %v853_v20 = vld [vmem:[#allocation2 + $0x19] sm:$0xff]  ;;  %v854_v21 = vld [vmem:[#allocation2 + $0x21] sm:$0xff]  ;;  %v2723_v29 = vunpack.c.h.bf16 %v2764_v62 }
  0x29   : > { %v462_v9 = vadd.f32 %v2981_v15, %v419_v3  ;;  %612 = vst.msk [vmem:[#allocation2 + $0x88] sm:$0xff] %vm590_vm0, %v568_v6  ;;  %v421_v19 = vmul.f32 %v2722_v10, %v2971_v1  ;;  %v535_v25 = vld [vmem:[%s3982_s3 + $0x88] sm:$0xff]  ;;  %v890_v26 = vpack.c.bf16 %v856_v17, %v855_v16  ;;  %v536_v28 = vld [vmem:[%s3982_s3 + $0x90] sm:$0xff]  ;;  %v889_v30 = vpack.c.bf16 %v854_v21, %v853_v20  ;;  %v857_v31 = vld [vmem:[#allocation2 + $0x39] sm:$0xff] }
  0x2a   : > { %1129 = vrot.lane.b32.xlu1 %v3084_v58, %s2889_s19  ;;  %613 = vst.msk [vmem:[#allocation2 + $0x90] sm:$0xff] %vm590_vm0, %v569_v7  ;;  %v463_v22 = vadd.f32 %v2981_v15, %v420_v13  ;;  %v858_v32 = vld [vmem:[#allocation2 + $0x41] sm:$0xff]  ;;  %v422_v35 = vmul.f32 %v2723_v29, %v2971_v1  ;;  %v537_v41 = vld [vmem:[%s3982_s3 + $0x98] sm:$0xff]  ;;  %v910_v42 = vld [vmem:[#allocation2 + $0x2a] sm:$0xff] }
  0x2b   : > { %1127 = vrot.lane.b32.xlu0 %v779_v46, %s2889_s19  ;;  %v498_v18 = vmax.f32 %v462_v9, 0.0  ;;  %v464_v24 = vadd.f32 %v2981_v15, %v421_v19  ;;  %v3120_v37 = vpack.c.bf16 %v858_v32, %v857_v31  ;;  %v912_v39 = vld [vmem:[#allocation2 + $0x3a] sm:$0xff]  ;;  %v913_v40 = vld [vmem:[#allocation2 + $0x42] sm:$0xff]  ;;  %v911_v43 = vld [vmem:[#allocation2 + $0x32] sm:$0xff] }
  0x2c   : > { %v499_v27 = vmax.f32 %v463_v22, 0.0  ;;  %v465_v38 = vadd.f32 %v2981_v15, %v422_v35  ;;  %v947_v45 = vpack.c.bf16 %v913_v40, %v912_v39  ;;  %v946_v47 = vpack.c.bf16 %v911_v43, %v910_v42  ;;  %v692_v48 = vld [vmem:[#allocation2 + $0x26] sm:$0xff]  ;;  %v693_v49 = vld [vmem:[#allocation2 + $0x2e] sm:$0xff]  ;;  %v2766_v53 = vld [vmem:[%s2966_s10 + $0x58] sm:$0xff]  }
  0x2d   : > { %v570_v23 = vmul.f32 %v534_v12, %v498_v18  ;;  %v500_v33 = vmax.f32 %v464_v24, 0.0  ;;  %v2765_v50 = vld [vmem:[%s2966_s10 + $0x50] sm:$0xff]   ;;  %v726_v54 = vpack.c.bf16 %v693_v49, %v692_v48  ;;  %v695_v59 = vld [vmem:[#allocation2 + $0x3e] sm:$0xff]  ;;  %v2730_v63 = vunpack.c.l.bf16 %v2766_v53  ;;  %v750_v13 = vld [vmem:[#allocation2 + $0x47] sm:$0xff] }
  0x2e   : > { %1183 = vrot.lane.b32.xlu1 %v836_v11, %s2890_s24  ;;  %v571_v34 = vmul.f32 %v535_v25, %v499_v27  ;;  %v501_v44 = vmax.f32 %v465_v38, 0.0  ;;  %v964_v51 = vld [vmem:[#allocation2 + $0x2b] sm:$0xff]  ;;  %v965_v52 = vld [vmem:[#allocation2 + $0x33] sm:$0xff]  ;;  %v2726_v55 = vunpack.c.l.bf16 %v2765_v50  ;;  %v966_v60 = vld [vmem:[#allocation2 + $0x3b] sm:$0xff]  ;;  %v2727_v62 = vunpack.c.h.bf16 %v2765_v50 }
  0x2f   : > { %1181 = vrot.lane.b32.xlu0 %v835_v14, %s2890_s24  ;;  %614 = vst.msk [vmem:[#allocation2 + $0x98] sm:$0xff] %vm590_vm0, %v570_v23  ;;  %v572_v36 = vmul.f32 %v536_v28, %v500_v33  ;;  %v1000_v56 = vpack.c.bf16 %v965_v52, %v964_v51  ;;  %v694_v57 = vld [vmem:[#allocation2 + $0x36] sm:$0xff]  ;;  %v967_v61 = vld [vmem:[#allocation2 + $0x43] sm:$0xff]  ;;  %v2731_v4 = vunpack.c.h.bf16 %v2766_v53  ;;  %v425_v9 = vmul.f32 %v2730_v63, %v2971_v1  ;;  %v2876_v42 = vld [vmem:[%s3983_s4 + $0x20] ss:$0 sps:$4 sm:$0xff]  }
  0x30   : > { %615 = vst.msk [vmem:[#allocation2 + $0xa0] sm:$0xff] %vm590_vm0, %v571_v34  ;;  %v573_v46 = vmul.f32 %v537_v41, %v501_v44  ;;  %v727_v2 = vpack.c.bf16 %v695_v59, %v694_v57  ;;  %v423_v3 = vmul.f32 %v2726_v55, %v2971_v1  ;;  %v1001_v5 = vpack.c.bf16 %v967_v61, %v966_v60  ;;  %v748_v6 = vld [vmem:[#allocation2 + $0x37] sm:$0xff]  ;;  %v749_v7 = vld [vmem:[#allocation2 + $0x3f] sm:$0xff]  ;;  %v751_v14 = vld [vmem:[#allocation2 + $0x4f] sm:$0xff] }
  0x31   : > { %616 = vst.msk [vmem:[#allocation2 + $0xa8] sm:$0xff] %vm590_vm0, %v572_v36  ;;  %v424_v8 = vmul.f32 %v2727_v62, %v2971_v1  ;;  %v781_v10 = vpack.c.bf16 %v749_v7, %v748_v6  ;;  %v426_v12 = vmul.f32 %v2731_v4, %v2971_v1  ;;  %v468_v17 = vadd.f32 %v2981_v15, %v425_v9  ;;  %v2873_v18 = vld [vmem:[%s3983_s4 + $0x8] sm:$0xff]   ;;  %v2874_v20 = vld [vmem:[%s3983_s4 + $0x10] sm:$0xff]   ;;  %v803_v25 = vld [vmem:[#allocation2 + $0x38] sm:$0xff] }
  0x32   : > { %1237 = vrot.lane.b32.xlu1 %v890_v26, %s2891_s30  ;;  %617 = vst.msk [vmem:[#allocation2 + $0xb0] sm:$0xff] %vm590_vm0, %v573_v46  ;;  %v466_v11 = vadd.f32 %v2981_v15, %v423_v3  ;;  %v3152_v19 = vpack.c.bf16 %v751_v14, %v750_v13  ;;  %v805_v23 = vld [vmem:[#allocation2 + $0x48] sm:$0xff]  ;;  %v806_v24 = vld [vmem:[#allocation2 + $0x50] sm:$0xff]  ;;  %2798 = vmatprep.subr.bf16.mxu0 %v2873_v18  ;;  %v2875_v29 = vld [vmem:[%s3983_s4 + $0x18] sm:$0xff]  }
  0x33   : > { %1235 = vrot.lane.b32.xlu0 %v889_v30, %s2891_s30  ;;  %v467_v16 = vadd.f32 %v2981_v15, %v424_v8  ;;  %v469_v22 = vadd.f32 %v2981_v15, %v426_v12  ;;  %2799 = vmatpush3.bf16.msra.mxu0 %v2873_v18  ;;  %v504_v28 = vmax.f32 %v468_v17, 0.0  ;;  %v538_v30 = vld [vmem:[%s3982_s3 + $0xa0] sm:$0xff]  ;;  %v859_v31 = vld [vmem:[#allocation2 + $0x49] sm:$0xff]  ;;  %v860_v32 = vld [vmem:[#allocation2 + $0x51] sm:$0xff] }
  0x34   : > { %v502_v21 = vmax.f32 %v466_v11, 0.0  ;;  %2843 = vmatprep.subr.bf16.mxu1 %v2873_v18  ;;  %2800 = vmatprep.subr.bf16.mxu0 %v2874_v20  ;;  %v539_v36 = vld [vmem:[%s3982_s3 + $0xa8] sm:$0xff]  ;;  %v540_v38 = vld [vmem:[%s3982_s3 + $0xb0] sm:$0xff]  ;;  %v892_v41 = vpack.c.bf16 %v860_v32, %v859_v31  ;;  %v541_v43 = vld [vmem:[%s3982_s3 + $0xb8] sm:$0xff] }
  0x35   : > { %v503_v27 = vmax.f32 %v467_v16, 0.0  ;;  %2848 = vmatpush3.bf16.msra.mxu1 %v2873_v18  ;;  %v505_v34 = vmax.f32 %v469_v22, 0.0  ;;  %v576_v40 = vmul.f32 %v540_v38, %v504_v28  ;;  %v2767_v44 = vld [vmem:[%s2966_s10 + $0x60] sm:$0xff]   ;;  %v2768_v48 = vld [vmem:[%s2966_s10 + $0x68] sm:$0xff]   ;;  %v915_v3 = vld [vmem:[#allocation2 + $0x52] sm:$0xff] }
  0x36   : > { %1274 = vrot.lane.b32.xlu1 %v3120_v37, %s2892_s12  ;;  %v574_v33 = vmul.f32 %v538_v30, %v502_v21  ;;  %2844 = vmatprep.subr.bf16.mxu1 %v2874_v20  ;;  %v2734_v46 = vunpack.c.l.bf16 %v2767_v44  ;;  %v861_v49 = vld [vmem:[#allocation2 + $0x59] sm:$0xff]  ;;  %v862_v50 = vld [vmem:[#allocation2 + $0x61] sm:$0xff]  ;;  %v2738_v51 = vunpack.c.l.bf16 %v2768_v48  ;;  %v914_v62 = vld [vmem:[#allocation2 + $0x4a] sm:$0xff] }
  0x37   : > { %1272 = vrot.lane.b32.xlu0 %v890_v26, %s2892_s12  ;;  %v804_v26 = vld [vmem:[#allocation2 + $0x40] sm:$0xff]  ;;  %2801 = vmatpush3.bf16.msra.mxu0 %v2874_v20  ;;  %v575_v39 = vmul.f32 %v539_v36, %v503_v27  ;;  %620 = vst.msk [vmem:[#allocation2 + $0xc8] sm:$0xff] %vm590_vm0, %v576_v40  ;;  %v544_v6 = vld [vmem:[%s3982_s3 + $0xd0] sm:$0xff]  ;;  %v948_v11 = vpack.c.bf16 %v915_v3, %v914_v62  ;;  %v545_v30 = vld [vmem:[%s3982_s3 + $0xd8] sm:$0xff] }
  0x38   : > { %v837_v35 = vpack.c.bf16 %v804_v26, %v803_v25  ;;  %618 = vst.msk [vmem:[#allocation2 + $0xb8] sm:$0xff] %vm590_vm0, %v574_v33  ;;  %2802 = vmatprep.subr.bf16.mxu0 %v2875_v29  ;;  %v427_v52 = vmul.f32 %v2734_v46, %v2971_v1  ;;  %v429_v55 = vmul.f32 %v2738_v51, %v2971_v1  ;;  %v916_v57 = vld [vmem:[#allocation2 + $0x5a] sm:$0xff]  ;;  %v917_v61 = vld [vmem:[#allocation2 + $0x62] sm:$0xff]  ;;  %v697_v13 = vld [vmem:[#allocation2 + $0x4e] sm:$0xff] }
  0x39   : > { %2849 = vmatpush3.bf16.msra.mxu1 %v2874_v20  ;;  %619 = vst.msk [vmem:[#allocation2 + $0xc0] sm:$0xff] %vm590_vm0, %v575_v39  ;;  %v542_v63 = vld [vmem:[%s3982_s3 + $0xc0] sm:$0xff]  ;;  %v949_v8 = vpack.c.bf16 %v917_v61, %v916_v57  ;;  %v968_v17 = vld [vmem:[#allocation2 + $0x4b] sm:$0xff]  ;;  %v969_v18 = vld [vmem:[#allocation2 + $0x53] sm:$0xff] }
  0x3a   : > { %1328 = vrot.lane.b32.xlu1 %v947_v45, %s2893_s14  ;;  %v577_v45 = vmul.f32 %v541_v43, %v505_v34  ;;  %2845 = vmatprep.subr.bf16.mxu1 %v2875_v29  ;;  %v470_v59 = vadd.f32 %v2981_v15, %v427_v52  ;;  %v696_v12 = vld [vmem:[#allocation2 + $0x46] sm:$0xff]  ;;  %v1002_v22 = vpack.c.bf16 %v969_v18, %v968_v17  ;;  %v970_v26 = vld [vmem:[#allocation2 + $0x5b] sm:$0xff]  ;;  %v810_v51 = vld [vmem:[#allocation2 + $0x70] sm:$0xff] }
  0x3b   : > { %1326 = vrot.lane.b32.xlu0 %v946_v47, %s2893_s14  ;;  %v2735_v47 = vunpack.c.h.bf16 %v2767_v44  ;;  %2803 = vmatpush3.bf16.msra.mxu0 %v2875_v29  ;;  %v728_v21 = vpack.c.bf16 %v697_v13, %v696_v12  ;;  %v971_v27 = vld [vmem:[#allocation2 + $0x63] sm:$0xff]  ;;  %v752_v32 = vld [vmem:[#allocation2 + $0x57] sm:$0xff]  ;;  %v701_v17 = vld [vmem:[#allocation2 + $0x6e] sm:$0xff] }
  0x3c   : > { %621 = vst.msk [vmem:[#allocation2 + $0xd0] sm:$0xff] %vm590_vm0, %v577_v45  ;;  %2852 = vmatprep.subr.msk.bf16.mxu0 %vm1809_vm1, %v2876_v42  ;;  %v506_v4 = vmax.f32 %v470_v59, 0.0  ;;  %v1003_v31 = vpack.c.bf16 %v971_v27, %v970_v26  ;;  %v753_v33 = vld [vmem:[#allocation2 + $0x5f] sm:$0xff]  ;;  %v754_v40 = vld [vmem:[#allocation2 + $0x67] sm:$0xff]  ;;  %v548_v62 = vld [vmem:[%s3982_s3 + $0xf0] sm:$0xff] }
  0x3d   : > { %v428_v53 = vmul.f32 %v2735_v47, %v2971_v1  ;;  %2850 = vmatpush3.bf16.msra.mxu1 %v2875_v29  ;;  %v783_v38 = vpack.c.bf16 %v753_v33, %v752_v32  ;;  %v2770_v39 = vld [vmem:[%s2966_s10 + $0x78] sm:$0xff]   ;;  %v808_v57 = vld [vmem:[#allocation2 + $0x60] sm:$0xff] }
  0x3e   : > { %1040 = vrot.lane.b32.xlu1 %v726_v54, %s2888_s16  ;;  %v1811_v54 = vsel %vm1809_vm1, %v2876_v42, 0  ;;  %2853 = vmatprep.subr.msk.bf16.mxu1 %vm1809_vm1, %v2876_v42  ;;  %v578_v9 = vmul.f32 %v542_v63, %v506_v4  ;;  %v2746_v44 = vunpack.c.l.bf16 %v2770_v39  ;;  %v864_v3 = vld [vmem:[#allocation2 + $0x71] sm:$0xff]  ;;  %v2747_v18 = vunpack.c.h.bf16 %v2770_v39  ;;  %v974_v27 = vld [vmem:[#allocation2 + $0x7b] sm:$0xff] }
  0x3f   : > { %1380 = vrot.lane.b32.xlu0 %v1000_v56, %s2894_s15  ;;  %v3195_v56 = vpack.c.bf16 %v862_v50, %v861_v49  ;;  %v471_v60 = vadd.f32 %v2981_v15, %v428_v53  ;;  %2805 = vmatpush3.bf16.msra.mxu0 %v1811_v54  ;;  %v546_v49 = vld [vmem:[%s3982_s3 + $0xe0] sm:$0xff]  ;;  %v809_v50 = vld [vmem:[#allocation2 + $0x68] sm:$0xff]  ;;  %v919_v12 = vld [vmem:[#allocation2 + $0x72] sm:$0xff] }
  0x40   : > { %622 = vst.msk [vmem:[#allocation2 + $0xd8] sm:$0xff] %vm590_vm0, %v578_v9  ;;  %v433_v47 = vmul.f32 %v2746_v44, %v2971_v1  ;;  %v840_v61 = vpack.c.bf16 %v810_v51, %v809_v50  ;;  %v920_v9 = vld [vmem:[#allocation2 + $0x7a] sm:$0xff] }
  0x41   : > { %2851 = vmatpush3.bf16.msra.mxu1 %v1811_v54  ;;  %v756_v33 = vld [vmem:[#allocation2 + $0x77] sm:$0xff]  ;;  %v550_v51 = vld [vmem:[%s3982_s3 + $0x100] sm:$0xff] }
  0x42   : > { %1042 = vrot.lane.b32.xlu1 %v727_v2, %s2888_s16  ;;  %v472_v2 = vadd.f32 %v2981_v15, %v429_v55  ;;  %v476_v54 = vadd.f32 %v2981_v15, %v433_v47  ;;  %v807_v55 = vld [vmem:[#allocation2 + $0x58] sm:$0xff] }
  0x43   : > { %1382 = vrot.lane.b32.xlu0 %v1001_v5, %s2894_s15  ;;  %v543_v5 = vld [vmem:[%s3982_s3 + $0xc8] sm:$0xff]  ;;  %v839_v63 = vpack.c.bf16 %v808_v57, %v807_v55 }
  0x44   : > { %v508_v7 = vmax.f32 %v472_v2, 0.0  ;;  %v863_v2 = vld [vmem:[#allocation2 + $0x69] sm:$0xff] }
  0x46   : > { %1096 = vrot.lane.b32.xlu1 %v781_v10, %s2887_s13  ;;  %v580_v16 = vmul.f32 %v544_v6, %v508_v7  ;;  %v894_v6 = vpack.c.bf16 %v864_v3, %v863_v2  ;;  %v866_v7 = vld [vmem:[#allocation2 + $0x81] sm:$0xff]  ;;  %v867_v2 = vld [vmem:[#allocation2 + $0x89] sm:$0xff]  ;;  %v868_v3 = vld [vmem:[#allocation2 + $0x91] sm:$0xff] }
  0x47   : > { %1094 = vrot.lane.b32.xlu0 %v3084_v58, %s2887_s13  ;;  %v838_v58 = vpack.c.bf16 %v806_v24, %v805_v23  ;;  %v698_v23 = vld [vmem:[#allocation2 + $0x56] sm:$0xff]  ;;  %v699_v24 = vld [vmem:[#allocation2 + $0x5e] sm:$0xff] }
  0x48   : > { %624 = vst.msk [vmem:[#allocation2 + $0xe8] sm:$0xff] %vm590_vm0, %v580_v16  ;;  %v729_v29 = vpack.c.bf16 %v699_v24, %v698_v23  ;;  %v700_v16 = vld [vmem:[#allocation2 + $0x66] sm:$0xff]  ;;  %v702_v24 = vld [vmem:[#allocation2 + $0x76] sm:$0xff] }
  0x4a   : > { %1133 = vrot.lane.b32.xlu1 %v3152_v19, %s2889_s19 }
  0x4b   : > { %1131 = vrot.lane.b32.xlu0 %v781_v10, %s2889_s19  ;;  %v2739_v10 = vunpack.c.h.bf16 %v2768_v48 }
  0x4d   : > { %v430_v20 = vmul.f32 %v2739_v10, %v2971_v1  ;;  %v921_v10 = vld [vmem:[#allocation2 + $0x82] sm:$0xff] }
  0x4e   : > { %1187 = vrot.lane.b32.xlu1 %v838_v58, %s2890_s24  ;;  %v2769_v58 = vld [vmem:[%s2966_s10 + $0x70] sm:$0xff]   ;;  %v951_v13 = vpack.c.bf16 %v921_v10, %v920_v9 }
  0x4f   : > { %1185 = vrot.lane.b32.xlu0 %v837_v35, %s2890_s24  ;;  %v473_v25 = vadd.f32 %v2981_v15, %v430_v20  ;;  %v2742_v35 = vunpack.c.l.bf16 %v2769_v58  ;;  %v2743_v43 = vunpack.c.h.bf16 %v2769_v58  ;;  %v972_v20 = vld [vmem:[#allocation2 + $0x6b] sm:$0xff]  ;;  %v549_v58 = vld [vmem:[%s3982_s3 + $0xf8] sm:$0xff] }
  0x51   : > { %v509_v28 = vmax.f32 %v473_v25, 0.0  ;;  %v431_v36 = vmul.f32 %v2742_v35, %v2971_v1  ;;  %v432_v46 = vmul.f32 %v2743_v43, %v2971_v1  ;;  %v703_v25 = vld [vmem:[#allocation2 + $0x7e] sm:$0xff] }
  0x52   : > { %1241 = vrot.lane.b32.xlu1 %v892_v41, %s2891_s30 }
  0x53   : > { %1239 = vrot.lane.b32.xlu0 %v3120_v37, %s2891_s30  ;;  %v507_v37 = vmax.f32 %v471_v60, 0.0  ;;  %v581_v34 = vmul.f32 %v545_v30, %v509_v28  ;;  %v474_v42 = vadd.f32 %v2981_v15, %v431_v36  ;;  %v475_v53 = vadd.f32 %v2981_v15, %v432_v46  ;;  %v975_v28 = vld [vmem:[#allocation2 + $0x83] sm:$0xff] }
  0x54   : > { %v512_v60 = vmax.f32 %v476_v54, 0.0  ;;  %v731_v30 = vpack.c.bf16 %v703_v25, %v702_v24  ;;  %v1005_v32 = vpack.c.bf16 %v975_v28, %v974_v27  ;;  %v2877_v25 = vld [vmem:[%s3980_s1] ss:$0 sm:$0xff] }
  0x55   : > { %v579_v14 = vmul.f32 %v543_v5, %v507_v37  ;;  %625 = vst.msk [vmem:[#allocation2 + $0xf0] sm:$0xff] %vm590_vm0, %v581_v34  ;;  %v510_v45 = vmax.f32 %v474_v42, 0.0  ;;  %v511_v59 = vmax.f32 %v475_v53, 0.0  ;;  %v865_v37 = vld [vmem:[#allocation2 + $0x79] sm:$0xff]  ;;  %v759_v42 = vld [vmem:[#allocation2 + $0x8f] sm:$0xff] }
  0x56   : > { %1278 = vrot.lane.b32.xlu1 %v3195_v56, %s2892_s12  ;;  %v584_v5 = vmul.f32 %v548_v62, %v512_v60  ;;  %v757_v34 = vld [vmem:[#allocation2 + $0x7f] sm:$0xff]  ;;  %v814_v53 = vld [vmem:[#allocation2 + $0x90] sm:$0xff] }
  0x57   : > { %1276 = vrot.lane.b32.xlu0 %v892_v41, %s2892_s12  ;;  %623 = vst.msk [vmem:[#allocation2 + $0xe0] sm:$0xff] %vm590_vm0, %v579_v14  ;;  %v755_v41 = vld [vmem:[#allocation2 + $0x6f] sm:$0xff]  ;;  %v582_v52 = vmul.f32 %v546_v49, %v510_v45  ;;  %v785_v39 = vpack.c.bf16 %v757_v34, %v756_v33  ;;  %v979_v33 = vld [vmem:[#allocation2 + $0xa3] sm:$0xff] }
  0x58   : > { %v3237_v48 = vpack.c.bf16 %v755_v41, %v754_v40  ;;  %628 = vst.msk [vmem:[#allocation2 + $0x108] sm:$0xff] %vm590_vm0, %v584_v5  ;;  %v3282_v40 = vld [vmem:[%s2966_s10 + $0x88] sm:$0xff]   ;;  %v552_v62 = vld [vmem:[%s3982_s3 + $0x110] sm:$0xff] }
  0x59   : > { %626 = vst.msk [vmem:[#allocation2 + $0xf8] sm:$0xff] %vm590_vm0, %v582_v52  ;;  %v758_v41 = vld [vmem:[#allocation2 + $0x87] sm:$0xff]  ;;  %v2754_v45 = vunpack.c.l.bf16 %v3282_v40 }
  0x5a   : > { %1332 = vrot.lane.b32.xlu1 %v949_v8, %s2893_s14  ;;  %v3261_v8 = vpack.c.bf16 %v866_v7, %v865_v37  ;;  %v3290_v50 = vpack.c.bf16 %v759_v42, %v758_v41  ;;  %v813_v52 = vld [vmem:[#allocation2 + $0x88] sm:$0xff]  ;;  %v869_v37 = vld [vmem:[#allocation2 + $0x99] sm:$0xff] }
  0x5b   : > { %1330 = vrot.lane.b32.xlu0 %v948_v11, %s2893_s14  ;;  %v918_v11 = vld [vmem:[#allocation2 + $0x6a] sm:$0xff]  ;;  %v437_v49 = vmul.f32 %v2754_v45, %v2971_v1  ;;  %v870_v7 = vld [vmem:[#allocation2 + $0xa1] sm:$0xff] }
  0x5c   : > { %v950_v14 = vpack.c.bf16 %v919_v12, %v918_v11  ;;  %v3316_v10 = vpack.c.bf16 %v870_v7, %v869_v37  ;;  %v924_v12 = vld [vmem:[#allocation2 + $0x9a] sm:$0xff]  ;;  %v634_v45 = vld [vmem:[#allocation2 + $0x5] sm:$0xff] }
  0x5d   : > { %v480_v57 = vadd.f32 %v2981_v15, %v437_v49  ;;  %v761_v41 = vld [vmem:[#allocation2 + $0x9f] sm:$0xff]  ;;  %v763_v49 = vld [vmem:[#allocation2 + $0xaf] sm:$0xff] }
  0x5e   : > { %1044 = vrot.lane.b32.xlu1 %v728_v21, %s2888_s16  ;;  %v973_v21 = vld [vmem:[#allocation2 + $0x73] sm:$0xff] }
  0x5f   : > { %1384 = vrot.lane.b32.xlu0 %v1002_v22, %s2894_s15  ;;  %v434_v22 = vmul.f32 %v2747_v18, %v2971_v1  ;;  %v1004_v23 = vpack.c.bf16 %v973_v21, %v972_v20  ;;  %v704_v20 = vld [vmem:[#allocation2 + $0x86] sm:$0xff]  ;;  %v705_v21 = vld [vmem:[#allocation2 + $0x8e] sm:$0xff] }
  0x60   : > { %v732_v27 = vpack.c.bf16 %v705_v21, %v704_v20 }
  0x61   : > { %v477_v26 = vadd.f32 %v2981_v15, %v434_v22  ;;  %v2755_v22 = vunpack.c.h.bf16 %v3282_v40  ;;  %v760_v40 = vld [vmem:[#allocation2 + $0x97] sm:$0xff] }
  0x62   : > { %1046 = vrot.lane.b32.xlu1 %v729_v29, %s2888_s16 }
  0x63   : > { %1386 = vrot.lane.b32.xlu0 %v1003_v31, %s2894_s15  ;;  %v513_v29 = vmax.f32 %v477_v26, 0.0  ;;  %v2771_v31 = vld [vmem:[%s2966_s10 + $0x80] sm:$0xff]   ;;  %v438_v26 = vmul.f32 %v2877_v25, %v2755_v22 }
  0x64   : > { %v2750_v36 = vunpack.c.l.bf16 %v2771_v31  ;;  %v2751_v44 = vunpack.c.h.bf16 %v2771_v31  ;;  %v928_v25 = vld [vmem:[#allocation2 + $0xba] sm:$0xff] }
  0x65   : > { %v585_v35 = vmul.f32 %v549_v58, %v513_v29  ;;  %v706_v29 = vld [vmem:[#allocation2 + $0x96] sm:$0xff]  ;;  %v481_v58 = vadd.f32 %v2981_v15, %v438_v26  ;;  %v929_v26 = vld [vmem:[#allocation2 + $0xc2] sm:$0xff] }
  0x66   : > { %1100 = vrot.lane.b32.xlu1 %v783_v38, %s2887_s13  ;;  %v436_v47 = vmul.f32 %v2751_v44, %v2971_v1  ;;  %v635_v44 = vld [vmem:[#allocation2 + $0xd] sm:$0xff] }
  0x67   : > { %1098 = vrot.lane.b32.xlu0 %v3152_v19, %s2887_s13  ;;  %v547_v19 = vld [vmem:[%s3982_s3 + $0xe8] sm:$0xff]  ;;  %629 = vst.msk [vmem:[#allocation2 + $0x110] sm:$0xff] %vm590_vm0, %v585_v35  ;;  %v517_v35 = vmax.f32 %v481_v58, 0.0 }
  0x68   : > { %v583_v4 = vmul.f32 %v547_v19, %v511_v59  ;;  %v479_v55 = vadd.f32 %v2981_v15, %v436_v47  ;;  %v811_v59 = vld [vmem:[#allocation2 + $0x78] sm:$0xff]  ;;  %v842_v19 = vpack.c.bf16 %v814_v53, %v813_v52  ;;  %v762_v47 = vld [vmem:[#allocation2 + $0xa7] sm:$0xff]  ;;  %v670_v52 = vpack.c.bf16 %v635_v44, %v634_v45 }
  0x69   : > { %v982_v45 = vld [vmem:[#allocation2 + $0xbb] sm:$0xff] }
  0x6a   : > { %1137 = vrot.lane.b32.xlu1 %v3237_v48, %s2889_s19  ;;  %627 = vst.msk [vmem:[#allocation2 + $0x100] sm:$0xff] %vm590_vm0, %v583_v4  ;;  %v515_v60 = vmax.f32 %v479_v55, 0.0  ;;  %v637_v55 = vld [vmem:[#allocation2 + $0x1d] sm:$0xff] }
  0x6b   : > { %1135 = vrot.lane.b32.xlu0 %v783_v38, %s2889_s19  ;;  %v435_v38 = vmul.f32 %v2750_v36, %v2971_v1  ;;  %v812_v1 = vld [vmem:[#allocation2 + $0x80] sm:$0xff] }
  0x6d   : > { %v478_v43 = vadd.f32 %v2981_v15, %v435_v38  ;;  %v553_v38 = vld [vmem:[%s3982_s3 + $0x118] sm:$0xff] }
  0x6e   : > { %1191 = vrot.lane.b32.xlu1 %v840_v61, %s2890_s24  ;;  %v516_v61 = vmax.f32 %v480_v57, 0.0  ;;  %v589_v42 = vmul.f32 %v553_v38, %v517_v35  ;;  %v3345_v57 = vpack.c.bf16 %v763_v49, %v762_v47  ;;  %v709_v35 = vld [vmem:[#allocation2 + $0xae] sm:$0xff] }
  0x6f   : > { %1189 = vrot.lane.b32.xlu0 %v839_v63, %s2890_s24  ;;  %v514_v46 = vmax.f32 %v478_v43, 0.0  ;;  %v841_v63 = vpack.c.bf16 %v812_v1, %v811_v59  ;;  %v817_v59 = vld [vmem:[#allocation2 + $0xa8] sm:$0xff]  ;;  %v818_v1 = vld [vmem:[#allocation2 + $0xb0] sm:$0xff] }
  0x70   : > { %v588_v5 = vmul.f32 %v552_v62, %v516_v61  ;;  %633 = vst.msk [vmem:[#allocation2 + $0x130] sm:$0xff] %vm590_vm0, %v589_v42  ;;  %v815_v61 = vld [vmem:[#allocation2 + $0x98] sm:$0xff]  ;;  %v980_v38 = vld [vmem:[#allocation2 + $0xab] sm:$0xff] }
  0x71   : > { %v586_v54 = vmul.f32 %v550_v51, %v514_v46  ;;  %v787_v46 = vpack.c.bf16 %v761_v41, %v760_v40 }
  0x72   : > { %1245 = vrot.lane.b32.xlu1 %v894_v6, %s2891_s30  ;;  %632 = vst.msk [vmem:[#allocation2 + $0x128] sm:$0xff] %vm590_vm0, %v588_v5 }
  0x73   : > { %1243 = vrot.lane.b32.xlu0 %v3195_v56, %s2891_s30  ;;  %v730_v56 = vpack.c.bf16 %v701_v17, %v700_v16  ;;  %630 = vst.msk [vmem:[#allocation2 + $0x118] sm:$0xff] %vm590_vm0, %v586_v54  ;;  %v923_v16 = vld [vmem:[#allocation2 + $0x92] sm:$0xff] }
  0x74   : > { %v636_v54 = vld [vmem:[#allocation2 + $0x15] sm:$0xff] }
  0x75   : > { %v671_v62 = vpack.c.bf16 %v637_v55, %v636_v54 }
  0x76   : > { %1282 = vrot.lane.b32.xlu1 %v3261_v8, %s2892_s12 }
  0x77   : > { %1280 = vrot.lane.b32.xlu0 %v894_v6, %s2892_s12  ;;  %v896_v6 = vpack.c.bf16 %v868_v3, %v867_v2  ;;  %v844_v2 = vpack.c.bf16 %v818_v1, %v817_v59  ;;  %v766_v1 = vld [vmem:[#allocation2 + $0xc7] sm:$0xff] }
  0x7a   : > { %1336 = vrot.lane.b32.xlu1 %v951_v13, %s2893_s14  ;;  %v925_v13 = vld [vmem:[#allocation2 + $0xa2] sm:$0xff] }
  0x7b   : > { %1334 = vrot.lane.b32.xlu0 %v950_v14, %s2893_s14  ;;  %v922_v14 = vld [vmem:[#allocation2 + $0x8a] sm:$0xff]  ;;  %v953_v17 = vpack.c.bf16 %v925_v13, %v924_v12 }
  0x7c   : > { %v952_v18 = vpack.c.bf16 %v923_v16, %v922_v14  ;;  %v873_v14 = vld [vmem:[#allocation2 + $0xb9] sm:$0xff]  ;;  %v874_v16 = vld [vmem:[#allocation2 + $0xc1] sm:$0xff] }
  0x7e   : > { %1048 = vrot.lane.b32.xlu1 %v730_v56, %s2888_s16 }
  0x7f   : > { %1388 = vrot.lane.b32.xlu0 %v1004_v23, %s2894_s15  ;;  %v976_v23 = vld [vmem:[#allocation2 + $0x8b] sm:$0xff] }
  0x82   : > { %1050 = vrot.lane.b32.xlu1 %v731_v30, %s2888_s16  ;;  %v707_v30 = vld [vmem:[#allocation2 + $0x9e] sm:$0xff] }
  0x83   : > { %1390 = vrot.lane.b32.xlu0 %v1005_v32, %s2894_s15  ;;  %v3314_v9 = vpop.permute.xlu1 %1090  ;;  %v978_v32 = vld [vmem:[#allocation2 + $0x9b] sm:$0xff]  ;;  %v733_v36 = vpack.c.bf16 %v707_v30, %v706_v29  ;;  %v926_v29 = vld [vmem:[#allocation2 + $0xaa] sm:$0xff]  ;;  %v927_v30 = vld [vmem:[#allocation2 + $0xb2] sm:$0xff] }
  0x84   : > { %v1037_v11 = vpop.permute.xlu0 %1036 }
  0x86   : > { %1104 = vrot.lane.b32.xlu1 %v785_v39, %s2887_s13 }
  0x87   : > { %1102 = vrot.lane.b32.xlu0 %v3237_v48, %s2887_s13  ;;  %v551_v48 = vld [vmem:[%s3982_s3 + $0x108] sm:$0xff] }
  0x88   : > { %v587_v4 = vmul.f32 %v551_v48, %v515_v60  ;;  %v1418_v48 = vsel %vm590_vm0, %v670_v52, %v1037_v11  ;;  %v764_v52 = vld [vmem:[#allocation2 + $0xb7] sm:$0xff] }
  0x89   : > { %v1472_v5 = vsel %vm1470_vm2, %v1418_v48, %v3314_v9 }
  0x8a   : > { %1141 = vrot.lane.b32.xlu1 %v3290_v50, %s2889_s19  ;;  %631 = vst.msk [vmem:[#allocation2 + $0x120] sm:$0xff] %vm590_vm0, %v587_v4  ;;  %v872_v4 = vld [vmem:[#allocation2 + $0xb1] sm:$0xff] }
  0x8b   : > { %1139 = vrot.lane.b32.xlu0 %v785_v39, %s2889_s19  ;;  %v1007_v39 = vpack.c.bf16 %v979_v33, %v978_v32  ;;  %v955_v33 = vpack.c.bf16 %v929_v26, %v928_v25  ;;  %v878_v25 = vld [vmem:[#allocation2 + $0xe1] sm:$0xff] }
  0x8e   : > { %1195 = vrot.lane.b32.xlu1 %v842_v19, %s2890_s24  ;;  %v816_v19 = vld [vmem:[#allocation2 + $0xa0] sm:$0xff] }
  0x8f   : > { %1193 = vrot.lane.b32.xlu0 %v841_v63, %s2890_s24  ;;  %v843_v3 = vpack.c.bf16 %v816_v19, %v815_v61  ;;  %v638_v61 = vld [vmem:[#allocation2 + $0x25] sm:$0xff]  ;;  %v639_v19 = vld [vmem:[#allocation2 + $0x2d] sm:$0xff] }
  0x92   : > { %1249 = vrot.lane.b32.xlu1 %v896_v6, %s2891_s30 }
  0x93   : > { %1247 = vrot.lane.b32.xlu0 %v3261_v8, %s2891_s30  ;;  %v977_v8 = vld [vmem:[#allocation2 + $0x93] sm:$0xff] }
  0x94   : > { %v1006_v28 = vpack.c.bf16 %v977_v8, %v976_v23 }
  0x96   : > { %1286 = vrot.lane.b32.xlu1 %v3316_v10, %s2892_s12 }
  0x97   : > { %1284 = vrot.lane.b32.xlu0 %v896_v6, %s2892_s12 }
  0x98   : > { %v3324_v56 = vpop.permute.xlu1 %1092 }
  0x99   : > { %v3326_v24 = vpop.permute.xlu0 %1038 }
  0x9a   : > { %1340 = vrot.lane.b32.xlu1 %v953_v17, %s2893_s14  ;;  %v1421_v37 = vsel %vm590_vm0, %v671_v62, %v3326_v24  ;;  %v3374_v24 = vpack.c.bf16 %v874_v16, %v873_v14  ;;  %v875_v16 = vld [vmem:[#allocation2 + $0xc9] sm:$0xff] }
  0x9b   : > { %1338 = vrot.lane.b32.xlu0 %v952_v18, %s2893_s14  ;;  %v1474_v17 = vsel %vm1470_vm2, %v1421_v37, %v3324_v56  ;;  %v819_v37 = vld [vmem:[#allocation2 + $0xb8] sm:$0xff] }
  0x9c   : > { %v3334_v31 = vpop.permute.xlu1 %1129 }
  0x9d   : > { %v1128_v34 = vpop.permute.xlu0 %1127  ;;  %v1511_v0 = vsel %vm1507_vm3, %v1474_v17, %v3334_v31 }
  0x9e   : > { %1052 = vrot.lane.b32.xlu1 %v732_v27, %s2888_s16  ;;  %v1509_v7 = vsel %vm1507_vm3, %v1472_v5, %v1128_v34  ;;  %v708_v34 = vld [vmem:[#allocation2 + $0xa6] sm:$0xff]  ;;  %v641_v5 = vld [vmem:[#allocation2 + $0x3d] sm:$0xff] }
  0x9f   : > { %1392 = vrot.lane.b32.xlu0 %v1006_v28, %s2894_s15  ;;  %v734_v41 = vpack.c.bf16 %v709_v35, %v708_v34  ;;  %v932_v34 = vld [vmem:[#allocation2 + $0xda] sm:$0xff]  ;;  %v933_v35 = vld [vmem:[#allocation2 + $0xe2] sm:$0xff] }
  0xa0   : > { %v1184_v15 = vpop.permute.xlu1 %1183 }
  0xa1   : > { %v1182_v43 = vpop.permute.xlu0 %1181  ;;  %v1548_v23 = vsel %vm1544_vm4, %v1511_v0, %v1184_v15  ;;  %v710_v15 = vld [vmem:[#allocation2 + $0xb6] sm:$0xff] }
  0xa2   : > { %1054 = vrot.lane.b32.xlu1 %v733_v36, %s2888_s16  ;;  %v1546_v12 = vsel %vm1544_vm4, %v1509_v7, %v1182_v43  ;;  %v711_v43 = vld [vmem:[#allocation2 + $0xbe] sm:$0xff] }
  0xa3   : > { %1394 = vrot.lane.b32.xlu0 %v1007_v39, %s2894_s15  ;;  %v981_v39 = vld [vmem:[#allocation2 + $0xb3] sm:$0xff]  ;;  %v735_v49 = vpack.c.bf16 %v711_v43, %v710_v15  ;;  %v820_v7 = vld [vmem:[#allocation2 + $0xc0] sm:$0xff]  ;;  %v957_v43 = vpack.c.bf16 %v933_v35, %v932_v34 }
  0xa4   : > { %v1238_v51 = vpop.permute.xlu1 %1237  ;;  %v1008_v42 = vpack.c.bf16 %v981_v39, %v980_v38  ;;  %v845_v14 = vpack.c.bf16 %v820_v7, %v819_v37  ;;  %v930_v39 = vld [vmem:[#allocation2 + $0xca] sm:$0xff]  ;;  %v882_v34 = vld [vmem:[#allocation2 + $0x101] sm:$0xff] }
  0xa5   : > { %v1236_v53 = vpop.permute.xlu0 %1235  ;;  %v1585_v56 = vsel %vm1581_vm5, %v1548_v23, %v1238_v51  ;;  %v642_v37 = vld [vmem:[#allocation2 + $0x45] sm:$0xff]  ;;  %v643_v7 = vld [vmem:[#allocation2 + $0x4d] sm:$0xff] }
  0xa6   : > { %1108 = vrot.lane.b32.xlu1 %v787_v46, %s2887_s13  ;;  %v1583_v9 = vsel %vm1581_vm5, %v1546_v12, %v1236_v53  ;;  %v765_v53 = vld [vmem:[#allocation2 + $0xbf] sm:$0xff] }
  0xa7   : > { %1106 = vrot.lane.b32.xlu0 %v3290_v50, %s2887_s13  ;;  %v871_v50 = vld [vmem:[#allocation2 + $0xa9] sm:$0xff]  ;;  %v789_v59 = vpack.c.bf16 %v765_v53, %v764_v52 }
  0xa8   : > { %v1275_v60 = vpop.permute.xlu1 %1274  ;;  %v898_v13 = vpack.c.bf16 %v872_v4, %v871_v50  ;;  %v821_v50 = vld [vmem:[#allocation2 + $0xc8] sm:$0xff]  ;;  %v822_v4 = vld [vmem:[#allocation2 + $0xd0] sm:$0xff] }
  0xa9   : > { %v1273_v63 = vpop.permute.xlu0 %1272  ;;  %v1622_v27 = vsel %vm1618_vm7, %v1585_v56, %v1275_v60  ;;  %v767_v60 = vld [vmem:[#allocation2 + $0xcf] sm:$0xff]  ;;  %v846_v12 = vpack.c.bf16 %v822_v4, %v821_v50  ;;  %v877_v56 = vld [vmem:[#allocation2 + $0xd9] sm:$0xff] }
  0xaa   : > { %1145 = vrot.lane.b32.xlu1 %v3345_v57, %s2889_s19  ;;  %v1620_v18 = vsel %vm1618_vm7, %v1583_v9, %v1273_v63  ;;  %v3398_v63 = vpack.c.bf16 %v767_v60, %v766_v1  ;;  %v986_v1 = vld [vmem:[#allocation2 + $0xdb] sm:$0xff]  ;;  %v987_v60 = vld [vmem:[#allocation2 + $0xe3] sm:$0xff] }
  0xab   : > { %1143 = vrot.lane.b32.xlu0 %v787_v46, %s2889_s19  ;;  %v983_v46 = vld [vmem:[#allocation2 + $0xc3] sm:$0xff] }
  0xac   : > { %v1329_v6 = vpop.permute.xlu1 %1328  ;;  %v1009_v51 = vpack.c.bf16 %v983_v46, %v982_v45  ;;  %v713_v45 = vld [vmem:[#allocation2 + $0xce] sm:$0xff] }
  0xad   : > { %v1327_v11 = vpop.permute.xlu0 %1326  ;;  %v1659_v58 = vsel %vm1655_vm8, %v1622_v27, %v1329_v6 }
  0xae   : > { %1199 = vrot.lane.b32.xlu1 %v844_v2, %s2890_s24  ;;  %v1657_v21 = vsel %vm1655_vm8, %v1620_v18, %v1327_v11  ;;  %v672_v2 = vpack.c.bf16 %v639_v19, %v638_v61 }
  0xaf   : > { %1197 = vrot.lane.b32.xlu0 %v843_v3, %s2890_s24  ;;  %v640_v3 = vld [vmem:[#allocation2 + $0x35] sm:$0xff] }
  0xb0   : > { %v3366_v20 = vpop.permute.xlu1 %1040  ;;  %v673_v9 = vpack.c.bf16 %v641_v5, %v640_v3  ;;  %v770_v5 = vld [vmem:[#allocation2 + $0xe7] sm:$0xff] }
  0xb1   : > { %v1381_v22 = vpop.permute.xlu0 %1380 }
  0xb2   : > { %1253 = vrot.lane.b32.xlu1 %v898_v13, %s2891_s30  ;;  %v1694_v8 = vsel %vm1692_vm9, %v1657_v21, %v1381_v22 }
  0xb3   : > { %1251 = vrot.lane.b32.xlu0 %v3316_v10, %s2891_s30  ;;  %2806 = vmatprep.mubr.msk.bf16.mxu0 %vm1772_vm10, %v1694_v8  ;;  %v954_v10 = vpack.c.bf16 %v927_v30, %v926_v29 }
  0xb4   : > { %v3381_v28 = vpop.permute.xlu1 %1042 }
  0xb5   : > { %v1383_v31 = vpop.permute.xlu0 %1382 }
  0xb6   : > { %v1696_v32 = vsel %vm1692_vm9, %v1659_v58, %v1383_v31  ;;  %1290 = vrot.lane.b32.xlu1 %v3374_v24, %s2892_s12 }
  0xb7   : > { %1288 = vrot.lane.b32.xlu0 %v898_v13, %s2892_s12  ;;  %2807 = vmatmul.mubr.msk.bf16.vlgmr.msra.gmra.mrb[0].mxu0 %vm1772_vm10, %v1696_v32  ;;  %v1424_v13 = vsel %vm590_vm0, %v672_v2, %v3366_v20  ;;  %v1427_v20 = vsel %vm590_vm0, %v673_v9, %v3381_v28  ;;  %v769_v2 = vld [vmem:[#allocation2 + $0xdf] sm:$0xff]  ;;  %v674_v9 = vpack.c.bf16 %v643_v7, %v642_v37 }
  0xb8   : > { %v3389_v36 = vpop.permute.xlu1 %1096 }
  0xb9   : > { %v1095_v40 = vpop.permute.xlu0 %1094  ;;  %v1478_v26 = vsel %vm1470_vm2, %v1427_v20, %v3389_v36 }
  0xba   : > { %1344 = vrot.lane.b32.xlu1 %v955_v33, %s2893_s14  ;;  %v1476_v17 = vsel %vm1470_vm2, %v1424_v13, %v1095_v40  ;;  %v3425_v33 = vpack.c.bf16 %v878_v25, %v877_v56  ;;  %v931_v40 = vld [vmem:[#allocation2 + $0xd2] sm:$0xff]  ;;  %v879_v25 = vld [vmem:[#allocation2 + $0xe9] sm:$0xff] }
  0xbb   : > { %1342 = vrot.lane.b32.xlu0 %v954_v10, %s2893_s14 }
  0xbc   : > { %v1134_v44 = vpop.permute.xlu1 %1133 }
  0xbd   : > { %v1132_v47 = vpop.permute.xlu0 %1131  ;;  %v1515_v30 = vsel %vm1507_vm3, %v1478_v26, %v1134_v44  ;;  %v712_v44 = vld [vmem:[#allocation2 + $0xc6] sm:$0xff] }
  0xbe   : > { %1056 = vrot.lane.b32.xlu1 %v734_v41, %s2888_s16  ;;  %v1513_v0 = vsel %vm1507_vm3, %v1476_v17, %v1132_v47  ;;  %v984_v47 = vld [vmem:[#allocation2 + $0xcb] sm:$0xff]  ;;  %v736_v52 = vpack.c.bf16 %v713_v45, %v712_v44  ;;  %v645_v17 = vld [vmem:[#allocation2 + $0x5d] sm:$0xff] }
  0xbf   : > { %1396 = vrot.lane.b32.xlu0 %v1008_v42, %s2894_s15  ;;  %v936_v44 = vld [vmem:[#allocation2 + $0xfa] sm:$0xff]  ;;  %v937_v45 = vld [vmem:[#allocation2 + $0x102] sm:$0xff] }
  0xc0   : > { %v1188_v54 = vpop.permute.xlu1 %1187 }
  0xc1   : > { %v1186_v55 = vpop.permute.xlu0 %1185  ;;  %v1552_v28 = vsel %vm1544_vm4, %v1515_v30, %v1188_v54  ;;  %v714_v54 = vld [vmem:[#allocation2 + $0xd6] sm:$0xff] }
  0xc2   : > { %1058 = vrot.lane.b32.xlu1 %v735_v49, %s2888_s16  ;;  %v1550_v22 = vsel %vm1544_vm4, %v1513_v0, %v1186_v55  ;;  %v985_v49 = vld [vmem:[#allocation2 + $0xd3] sm:$0xff]  ;;  %v715_v55 = vld [vmem:[#allocation2 + $0xde] sm:$0xff] }
  0xc3   : > { %1398 = vrot.lane.b32.xlu0 %v1009_v51, %s2894_s15  ;;  %v1010_v53 = vpack.c.bf16 %v985_v49, %v984_v47  ;;  %v737_v19 = vpack.c.bf16 %v715_v55, %v714_v54  ;;  %v823_v0 = vld [vmem:[#allocation2 + $0xd8] sm:$0xff]  ;;  %v934_v49 = vld [vmem:[#allocation2 + $0xea] sm:$0xff]  ;;  %v959_v55 = vpack.c.bf16 %v937_v45, %v936_v44  ;;  %v886_v44 = vld [vmem:[#allocation2 + $0x121] sm:$0xff] }
  0xc4   : > { %v1242_v48 = vpop.permute.xlu1 %1241 }
  0xc5   : > { %v1240_v62 = vpop.permute.xlu0 %1239  ;;  %v1589_v10 = vsel %vm1581_vm5, %v1552_v28, %v1242_v48  ;;  %v1011_v48 = vpack.c.bf16 %v987_v60, %v986_v1  ;;  %v717_v1 = vld [vmem:[#allocation2 + $0xee] sm:$0xff] }
  0xc6   : > { %1112 = vrot.lane.b32.xlu1 %v789_v59, %s2887_s13  ;;  %v1587_v8 = vsel %vm1581_vm5, %v1550_v22, %v1240_v62  ;;  %v768_v62 = vld [vmem:[#allocation2 + $0xd7] sm:$0xff] }
  0xc7   : > { %1110 = vrot.lane.b32.xlu0 %v3345_v57, %s2887_s13  ;;  %v876_v57 = vld [vmem:[#allocation2 + $0xd1] sm:$0xff]  ;;  %v791_v4 = vpack.c.bf16 %v769_v2, %v768_v62 }
  0xc8   : > { %v1279_v6 = vpop.permute.xlu1 %1278  ;;  %v900_v23 = vpack.c.bf16 %v876_v57, %v875_v16  ;;  %v825_v16 = vld [vmem:[#allocation2 + $0xe8] sm:$0xff]  ;;  %v826_v57 = vld [vmem:[#allocation2 + $0xf0] sm:$0xff] }
  0xc9   : > { %v1277_v11 = vpop.permute.xlu0 %1276  ;;  %v1626_v36 = vsel %vm1618_vm7, %v1589_v10, %v1279_v6  ;;  %v771_v6 = vld [vmem:[#allocation2 + $0xef] sm:$0xff]  ;;  %v881_v10 = vld [vmem:[#allocation2 + $0xf9] sm:$0xff] }
  0xca   : > { %1149 = vrot.lane.b32.xlu1 %v3398_v63, %s2889_s19  ;;  %v1624_v27 = vsel %vm1618_vm7, %v1587_v8, %v1277_v11  ;;  %v3449_v13 = vpack.c.bf16 %v771_v6, %v770_v5  ;;  %v990_v5 = vld [vmem:[#allocation2 + $0xfb] sm:$0xff]  ;;  %v991_v6 = vld [vmem:[#allocation2 + $0x103] sm:$0xff] }
  0xcb   : > { %1147 = vrot.lane.b32.xlu0 %v789_v59, %s2889_s19 }
  0xcc   : > { %v1333_v18 = vpop.permute.xlu1 %1332 }
  0xcd   : > { %v1331_v21 = vpop.permute.xlu0 %1330  ;;  %v1663_v41 = vsel %vm1655_vm8, %v1626_v36, %v1333_v18 }
  0xce   : > { %1203 = vrot.lane.b32.xlu1 %v846_v12, %s2890_s24  ;;  %v1661_v58 = vsel %vm1655_vm8, %v1624_v27, %v1331_v21  ;;  %v824_v21 = vld [vmem:[#allocation2 + $0xe0] sm:$0xff] }
  0xcf   : > { %1201 = vrot.lane.b32.xlu0 %v845_v14, %s2890_s24  ;;  %v644_v14 = vld [vmem:[#allocation2 + $0x55] sm:$0xff]  ;;  %v847_v56 = vpack.c.bf16 %v824_v21, %v823_v0  ;;  %v646_v0 = vld [vmem:[#allocation2 + $0x65] sm:$0xff]  ;;  %v647_v21 = vld [vmem:[#allocation2 + $0x6d] sm:$0xff] }
  0xd0   : > { %v3418_v29 = vpop.permute.xlu1 %1044  ;;  %v675_v8 = vpack.c.bf16 %v645_v17, %v644_v14  ;;  %v774_v17 = vld [vmem:[#allocation2 + $0x107] sm:$0xff] }
  0xd1   : > { %v1385_v31 = vpop.permute.xlu0 %1384  ;;  %v1430_v20 = vsel %vm590_vm0, %v674_v9, %v3418_v29  ;;  %v773_v9 = vld [vmem:[#allocation2 + $0xff] sm:$0xff] }
  0xd2   : > { %v1698_v32 = vsel %vm1692_vm9, %v1661_v58, %v1385_v31  ;;  %1257 = vrot.lane.b32.xlu1 %v900_v23, %s2891_s30 }
  0xd3   : > { %1255 = vrot.lane.b32.xlu0 %v3374_v24, %s2891_s30  ;;  %2810 = vmatprep.mubr.msk.bf16.mxu0 %vm1772_vm10, %v1698_v32  ;;  %v956_v24 = vpack.c.bf16 %v931_v40, %v930_v39 }
  0xd4   : > { %v3432_v38 = vpop.permute.xlu1 %1046 }
  0xd5   : > { %v1387_v42 = vpop.permute.xlu0 %1386  ;;  %v1433_v29 = vsel %vm590_vm0, %v675_v8, %v3432_v38  ;;  %v676_v8 = vpack.c.bf16 %v647_v21, %v646_v0 }
  0xd6   : > { %v1700_v15 = vsel %vm1692_vm9, %v1663_v41, %v1387_v42  ;;  %1294 = vrot.lane.b32.xlu1 %v3425_v33, %s2892_s12 }
  0xd7   : > { %1292 = vrot.lane.b32.xlu0 %v900_v23, %s2892_s12  ;;  %2811 = vmatmul.mubr.msk.bf16.gmra.mrb[4].mxu0 %vm1772_vm10, %v1700_v15  ;;  %v848_v23 = vpack.c.bf16 %v826_v57, %v825_v16 }
  0xd8   : > { %v3440_v46 = vpop.permute.xlu1 %1100 }
  0xd9   : > { %v1099_v51 = vpop.permute.xlu0 %1098  ;;  %v1482_v35 = vsel %vm1470_vm2, %v1433_v29, %v3440_v46 }
  0xda   : > { %1348 = vrot.lane.b32.xlu1 %v957_v43, %s2893_s14  ;;  %v1480_v26 = vsel %vm1470_vm2, %v1430_v20, %v1099_v51  ;;  %v3476_v43 = vpack.c.bf16 %v882_v34, %v881_v10  ;;  %v935_v51 = vld [vmem:[#allocation2 + $0xf2] sm:$0xff]  ;;  %v883_v34 = vld [vmem:[#allocation2 + $0x109] sm:$0xff] }
  0xdb   : > { %1346 = vrot.lane.b32.xlu0 %v956_v24, %s2893_s14 }
  0xdc   : > { %v1138_v59 = vpop.permute.xlu1 %1137 }
  0xdd   : > { %v1136_v61 = vpop.permute.xlu0 %1135  ;;  %v1519_v40 = vsel %vm1507_vm3, %v1482_v35, %v1138_v59  ;;  %v716_v59 = vld [vmem:[#allocation2 + $0xe6] sm:$0xff] }
  0xde   : > { %1060 = vrot.lane.b32.xlu1 %v736_v52, %s2888_s16  ;;  %v1517_v30 = vsel %vm1507_vm3, %v1480_v26, %v1136_v61  ;;  %v988_v61 = vld [vmem:[#allocation2 + $0xeb] sm:$0xff]  ;;  %v738_v62 = vpack.c.bf16 %v717_v1, %v716_v59  ;;  %v649_v26 = vld [vmem:[#allocation2 + $0x7d] sm:$0xff] }
  0xdf   : > { %1400 = vrot.lane.b32.xlu0 %v1010_v53, %s2894_s15  ;;  %v940_v59 = vld [vmem:[#allocation2 + $0x11a] sm:$0xff]  ;;  %v941_v1 = vld [vmem:[#allocation2 + $0x122] sm:$0xff] }
  0xe0   : > { %v1192_v3 = vpop.permute.xlu1 %1191 }
  0xe1   : > { %v1190_v50 = vpop.permute.xlu0 %1189  ;;  %v1556_v38 = vsel %vm1544_vm4, %v1519_v40, %v1192_v3  ;;  %v718_v3 = vld [vmem:[#allocation2 + $0xf6] sm:$0xff] }
  0xe2   : > { %1062 = vrot.lane.b32.xlu1 %v737_v19, %s2888_s16  ;;  %v1554_v31 = vsel %vm1544_vm4, %v1517_v30, %v1190_v50  ;;  %v989_v19 = vld [vmem:[#allocation2 + $0xf3] sm:$0xff]  ;;  %v719_v50 = vld [vmem:[#allocation2 + $0xfe] sm:$0xff] }
  0xe3   : > { %1402 = vrot.lane.b32.xlu0 %v1011_v48, %s2894_s15  ;;  %v1012_v2 = vpack.c.bf16 %v989_v19, %v988_v61  ;;  %v739_v7 = vpack.c.bf16 %v719_v50, %v718_v3  ;;  %v827_v30 = vld [vmem:[#allocation2 + $0xf8] sm:$0xff]  ;;  %v938_v19 = vld [vmem:[#allocation2 + $0x10a] sm:$0xff]  ;;  %v961_v50 = vpack.c.bf16 %v941_v1, %v940_v59  ;;  %v908_v59 = vld [vmem:[#allocation2 + $0x141] sm:$0xff] }
  0xe4   : > { %v1246_v11 = vpop.permute.xlu1 %1245 }
  0xe5   : > { %v1244_v12 = vpop.permute.xlu0 %1243  ;;  %v1593_v24 = vsel %vm1581_vm5, %v1556_v38, %v1246_v11  ;;  %v1013_v11 = vpack.c.bf16 %v991_v6, %v990_v5  ;;  %v721_v5 = vld [vmem:[#allocation2 + $0x10e] sm:$0xff] }
  0xe6   : > { %1116 = vrot.lane.b32.xlu1 %v791_v4, %s2887_s13  ;;  %v1591_v32 = vsel %vm1581_vm5, %v1554_v31, %v1244_v12  ;;  %v772_v12 = vld [vmem:[#allocation2 + $0xf7] sm:$0xff] }
  0xe7   : > { %1114 = vrot.lane.b32.xlu0 %v3398_v63, %s2887_s13  ;;  %v880_v63 = vld [vmem:[#allocation2 + $0xf1] sm:$0xff]  ;;  %v793_v57 = vpack.c.bf16 %v773_v9, %v772_v12 }
  0xe8   : > { %v1283_v18 = vpop.permute.xlu1 %1282  ;;  %v902_v28 = vpack.c.bf16 %v880_v63, %v879_v25  ;;  %v829_v25 = vld [vmem:[#allocation2 + $0x108] sm:$0xff]  ;;  %v830_v63 = vld [vmem:[#allocation2 + $0x110] sm:$0xff] }
  0xe9   : > { %v1281_v22 = vpop.permute.xlu0 %1280  ;;  %v1630_v46 = vsel %vm1618_vm7, %v1593_v24, %v1283_v18  ;;  %v775_v18 = vld [vmem:[#allocation2 + $0x10f] sm:$0xff]  ;;  %v885_v24 = vld [vmem:[#allocation2 + $0x119] sm:$0xff] }
  0xea   : > { %1153 = vrot.lane.b32.xlu1 %v3449_v13, %s2889_s19  ;;  %v1628_v36 = vsel %vm1618_vm7, %v1591_v32, %v1281_v22  ;;  %v3500_v20 = vpack.c.bf16 %v775_v18, %v774_v17  ;;  %v994_v17 = vld [vmem:[#allocation2 + $0x11b] sm:$0xff]  ;;  %v995_v18 = vld [vmem:[#allocation2 + $0x123] sm:$0xff] }
  0xeb   : > { %1151 = vrot.lane.b32.xlu0 %v791_v4, %s2889_s19 }
  0xec   : > { %v1337_v27 = vpop.permute.xlu1 %1336 }
  0xed   : > { %v1335_v58 = vpop.permute.xlu0 %1334  ;;  %v1667_v52 = vsel %vm1655_vm8, %v1630_v46, %v1337_v27 }
  0xee   : > { %1207 = vrot.lane.b32.xlu1 %v848_v23, %s2890_s24  ;;  %v1665_v41 = vsel %vm1655_vm8, %v1628_v36, %v1335_v58  ;;  %v828_v58 = vld [vmem:[#allocation2 + $0x100] sm:$0xff] }
  0xef   : > { %1205 = vrot.lane.b32.xlu0 %v847_v56, %s2890_s24  ;;  %v648_v56 = vld [vmem:[#allocation2 + $0x75] sm:$0xff]  ;;  %v849_v10 = vpack.c.bf16 %v828_v58, %v827_v30  ;;  %v650_v30 = vld [vmem:[#allocation2 + $0x85] sm:$0xff]  ;;  %v651_v58 = vld [vmem:[#allocation2 + $0x8d] sm:$0xff] }
  0xf0   : > { %v3469_v39 = vpop.permute.xlu1 %1048  ;;  %v677_v32 = vpack.c.bf16 %v649_v26, %v648_v56  ;;  %v796_v26 = vld [vmem:[#allocation2 + $0x127] sm:$0xff] }
  0xf1   : > { %v1389_v42 = vpop.permute.xlu0 %1388  ;;  %v1436_v29 = vsel %vm590_vm0, %v676_v8, %v3469_v39  ;;  %v777_v8 = vld [vmem:[#allocation2 + $0x11f] sm:$0xff] }
  0xf2   : > { %v1702_v15 = vsel %vm1692_vm9, %v1665_v41, %v1389_v42  ;;  %1261 = vrot.lane.b32.xlu1 %v902_v28, %s2891_s30 }
  0xf3   : > { %1259 = vrot.lane.b32.xlu0 %v3425_v33, %s2891_s30  ;;  %2814 = vmatprep.mubr.msk.bf16.mxu0 %vm1772_vm10, %v1702_v15  ;;  %v958_v33 = vpack.c.bf16 %v935_v51, %v934_v49 }
  0xf4   : > { %v3483_v47 = vpop.permute.xlu1 %1050 }
  0xf5   : > { %v1391_v53 = vpop.permute.xlu0 %1390  ;;  %v1439_v39 = vsel %vm590_vm0, %v677_v32, %v3483_v47  ;;  %v678_v32 = vpack.c.bf16 %v651_v58, %v650_v30  ;;  %v655_v30 = vld [vmem:[#allocation2 + $0xad] sm:$0xff] }
  0xf6   : > { %v1704_v54 = vsel %vm1692_vm9, %v1667_v52, %v1391_v53  ;;  %1298 = vrot.lane.b32.xlu1 %v3476_v43, %s2892_s12 }
  0xf7   : > { %1296 = vrot.lane.b32.xlu0 %v902_v28, %s2892_s12  ;;  %2815 = vmatmul.mubr.msk.bf16.gmra.mrb[8].mxu0 %vm1772_vm10, %v1704_v54  ;;  %v850_v28 = vpack.c.bf16 %v830_v63, %v829_v25 }
  0xf8   : > { %v3491_v60 = vpop.permute.xlu1 %1104 }
  0xf9   : > { %v1103_v48 = vpop.permute.xlu0 %1102  ;;  %v1486_v45 = vsel %vm1470_vm2, %v1439_v39, %v3491_v60 }
  0xfa   : > { %1352 = vrot.lane.b32.xlu1 %v959_v55, %s2893_s14  ;;  %v1484_v35 = vsel %vm1470_vm2, %v1436_v29, %v1103_v48  ;;  %v3527_v55 = vpack.c.bf16 %v886_v44, %v885_v24  ;;  %v939_v48 = vld [vmem:[#allocation2 + $0x112] sm:$0xff]  ;;  %v887_v44 = vld [vmem:[#allocation2 + $0x129] sm:$0xff] }
  0xfb   : > { %1350 = vrot.lane.b32.xlu0 %v958_v33, %s2893_s14 }
  0xfc   : > { %v1142_v4 = vpop.permute.xlu1 %1141 }
  0xfd   : > { %v1140_v37 = vpop.permute.xlu0 %1139  ;;  %v1523_v51 = vsel %vm1507_vm3, %v1486_v45, %v1142_v4  ;;  %v720_v4 = vld [vmem:[#allocation2 + $0x106] sm:$0xff]  ;;  %v888_v45 = vld [vmem:[#allocation2 + $0x131] sm:$0xff] }
  0xfe   : > { %1064 = vrot.lane.b32.xlu1 %v738_v62, %s2888_s16  ;;  %v1521_v40 = vsel %vm1507_vm3, %v1484_v35, %v1140_v37  ;;  %v992_v37 = vld [vmem:[#allocation2 + $0x10b] sm:$0xff]  ;;  %v740_v12 = vpack.c.bf16 %v721_v5, %v720_v4  ;;  %v653_v35 = vld [vmem:[#allocation2 + $0x9d] sm:$0xff] }
  0xff   : > { %1404 = vrot.lane.b32.xlu0 %v1012_v2, %s2894_s15  ;;  %v944_v4 = vld [vmem:[#allocation2 + $0x13a] sm:$0xff]  ;;  %v945_v5 = vld [vmem:[#allocation2 + $0x142] sm:$0xff] }
 0x100   : > { %v1196_v14 = vpop.permute.xlu1 %1195 }
 0x101   : > { %v1194_v16 = vpop.permute.xlu0 %1193  ;;  %v1560_v47 = vsel %vm1544_vm4, %v1523_v51, %v1196_v14  ;;  %v722_v14 = vld [vmem:[#allocation2 + $0x116] sm:$0xff] }
 0x102   : > { %1066 = vrot.lane.b32.xlu1 %v739_v7, %s2888_s16  ;;  %v1558_v42 = vsel %vm1544_vm4, %v1521_v40, %v1194_v16  ;;  %v993_v7 = vld [vmem:[#allocation2 + $0x113] sm:$0xff]  ;;  %v723_v16 = vld [vmem:[#allocation2 + $0x11e] sm:$0xff] }
 0x103   : > { %1406 = vrot.lane.b32.xlu0 %v1013_v11, %s2894_s15  ;;  %v1014_v9 = vpack.c.bf16 %v993_v7, %v992_v37  ;;  %v741_v21 = vpack.c.bf16 %v723_v16, %v722_v14  ;;  %v831_v40 = vld [vmem:[#allocation2 + $0x118] sm:$0xff]  ;;  %v942_v7 = vld [vmem:[#allocation2 + $0x12a] sm:$0xff]  ;;  %v963_v16 = vpack.c.bf16 %v945_v5, %v944_v4 }
 0x104   : > { %v1250_v22 = vpop.permute.xlu1 %1249 }
 0x105   : > { %v1248_v23 = vpop.permute.xlu0 %1247  ;;  %v1597_v33 = vsel %vm1581_vm5, %v1560_v47, %v1250_v22  ;;  %v1015_v22 = vpack.c.bf16 %v995_v18, %v994_v17  ;;  %v906_v47 = vpack.c.bf16 %v888_v45, %v887_v44  ;;  %v999_v17 = vld [vmem:[#allocation2 + $0x143] sm:$0xff] }
 0x106   : > { %1120 = vrot.lane.b32.xlu1 %v793_v57, %s2887_s13  ;;  %v1595_v15 = vsel %vm1581_vm5, %v1558_v42, %v1248_v23  ;;  %v776_v23 = vld [vmem:[#allocation2 + $0x117] sm:$0xff] }
 0x107   : > { %1118 = vrot.lane.b32.xlu0 %v3449_v13, %s2887_s13  ;;  %v884_v13 = vld [vmem:[#allocation2 + $0x111] sm:$0xff]  ;;  %v795_v63 = vpack.c.bf16 %v777_v8, %v776_v23 }
 0x108   : > { %v1287_v27 = vpop.permute.xlu1 %1286  ;;  %v904_v38 = vpack.c.bf16 %v884_v13, %v883_v34  ;;  %v833_v34 = vld [vmem:[#allocation2 + $0x128] sm:$0xff]  ;;  %v834_v13 = vld [vmem:[#allocation2 + $0x130] sm:$0xff] }
 0x109   : > { %v1285_v31 = vpop.permute.xlu0 %1284  ;;  %v1634_v60 = vsel %vm1618_vm7, %v1597_v33, %v1287_v27  ;;  %v797_v27 = vld [vmem:[#allocation2 + $0x12f] sm:$0xff]  ;;  %v907_v33 = vld [vmem:[#allocation2 + $0x139] sm:$0xff] }
 0x10a   : > { %1157 = vrot.lane.b32.xlu1 %v3500_v20, %s2889_s19  ;;  %v1632_v46 = vsel %vm1618_vm7, %v1595_v15, %v1285_v31  ;;  %v798_v29 = vpack.c.bf16 %v797_v27, %v796_v26  ;;  %v654_v27 = vld [vmem:[#allocation2 + $0xa5] sm:$0xff] }
 0x10b   : > { %1155 = vrot.lane.b32.xlu0 %v793_v57, %s2889_s19 }
 0x10c   : > { %v1341_v36 = vpop.permute.xlu1 %1340 }
 0x10d   : > { %v1339_v41 = vpop.permute.xlu0 %1338  ;;  %v1671_v62 = vsel %vm1655_vm8, %v1634_v60, %v1341_v36 }
 0x10e   : > { %1211 = vrot.lane.b32.xlu1 %v850_v28, %s2890_s24  ;;  %v1669_v52 = vsel %vm1655_vm8, %v1632_v46, %v1339_v41  ;;  %v832_v41 = vld [vmem:[#allocation2 + $0x120] sm:$0xff] }
 0x10f   : > { %1209 = vrot.lane.b32.xlu0 %v849_v10, %s2890_s24  ;;  %v652_v10 = vld [vmem:[#allocation2 + $0x95] sm:$0xff]  ;;  %v851_v24 = vpack.c.bf16 %v832_v41, %v831_v40 }
 0x110   : > { %v3520_v49 = vpop.permute.xlu1 %1052  ;;  %v679_v15 = vpack.c.bf16 %v653_v35, %v652_v10 }
 0x111   : > { %v1393_v53 = vpop.permute.xlu0 %1392  ;;  %v1442_v39 = vsel %vm590_vm0, %v678_v32, %v3520_v49  ;;  %v657_v32 = vld [vmem:[#allocation2 + $0xbd] sm:$0xff] }
 0x112   : > { %v1706_v54 = vsel %vm1692_vm9, %v1669_v52, %v1393_v53  ;;  %1265 = vrot.lane.b32.xlu1 %v904_v38, %s2891_s30 }
 0x113   : > { %1263 = vrot.lane.b32.xlu0 %v3476_v43, %s2891_s30  ;;  %2818 = vmatprep.mubr.msk.bf16.mxu0 %vm1772_vm10, %v1706_v54  ;;  %v960_v43 = vpack.c.bf16 %v939_v48, %v938_v19 }
 0x114   : > { %v3534_v61 = vpop.permute.xlu1 %1054 }
 0x115   : > { %v1395_v2 = vpop.permute.xlu0 %1394  ;;  %v1445_v49 = vsel %vm590_vm0, %v679_v15, %v3534_v61 }
 0x116   : > { %v1708_v3 = vsel %vm1692_vm9, %v1671_v62, %v1395_v2  ;;  %1302 = vrot.lane.b32.xlu1 %v3527_v55, %s2892_s12 }
 0x117   : > { %1300 = vrot.lane.b32.xlu0 %v904_v38, %s2892_s12  ;;  %2819 = vmatmul.mubr.msk.bf16.gmra.mrb[12].mxu0 %vm1772_vm10, %v1708_v3  ;;  %v852_v38 = vpack.c.bf16 %v834_v13, %v833_v34 }
 0x118   : > { %v3542_v6 = vpop.permute.xlu1 %1108 }
 0x119   : > { %v1107_v11 = vpop.permute.xlu0 %1106  ;;  %v1490_v1 = vsel %vm1470_vm2, %v1445_v49, %v3542_v6 }
 0x11a   : > { %1356 = vrot.lane.b32.xlu1 %v961_v50, %s2893_s14  ;;  %v909_v50 = vpack.c.bf16 %v908_v59, %v907_v33 }
 0x11b   : > { %1354 = vrot.lane.b32.xlu0 %v960_v43, %s2893_s14 }
 0x11c   : > { %v1146_v57 = vpop.permute.xlu1 %1145 }
 0x11d   : > { %v1144_v0 = vpop.permute.xlu0 %1143  ;;  %v1527_v48 = vsel %vm1507_vm3, %v1490_v1, %v1146_v57  ;;  %v998_v57 = vld [vmem:[#allocation2 + $0x13b] sm:$0xff] }
 0x11e   : > { %1068 = vrot.lane.b32.xlu1 %v740_v12, %s2888_s16  ;;  %v1017_v23 = vpack.c.bf16 %v999_v17, %v998_v57 }
 0x11f   : > { %1408 = vrot.lane.b32.xlu0 %v1014_v9, %s2894_s15 }
 0x120   : > { %v1200_v56 = vpop.permute.xlu1 %1199 }
 0x121   : > { %v1198_v25 = vpop.permute.xlu0 %1197  ;;  %v1564_v3 = vsel %vm1544_vm4, %v1527_v48, %v1200_v56 }
 0x122   : > { %1070 = vrot.lane.b32.xlu1 %v741_v21, %s2888_s16  ;;  %v997_v21 = vld [vmem:[#allocation2 + $0x133] sm:$0xff]  ;;  %s319_s16 = scalar_lea.vmem %s3986_s7, %s3989_s28 }
 0x123   : > { %1410 = vrot.lane.b32.xlu0 %v1015_v22, %s2894_s15 }
 0x124   : > { %v1254_v31 = vpop.permute.xlu1 %1253 }
 0x125   : > { %v1252_v28 = vpop.permute.xlu0 %1251  ;;  %v1601_v43 = vsel %vm1581_vm5, %v1564_v3, %v1254_v31 }
 0x126   : > { %1124 = vrot.lane.b32.xlu1 %v795_v63, %s2887_s13 }
 0x127   : > { %1122 = vrot.lane.b32.xlu0 %v3500_v20, %s2887_s13  ;;  %v1488_v20 = vsel %vm1470_vm2, %v1442_v39, %v1107_v11  ;;  %v943_v11 = vld [vmem:[#allocation2 + $0x132] sm:$0xff] }
 0x128   : > { %v1291_v36 = vpop.permute.xlu1 %1290  ;;  %v1525_v51 = vsel %vm1507_vm3, %v1488_v20, %v1144_v0  ;;  %v996_v0 = vld [vmem:[#allocation2 + $0x12b] sm:$0xff] }
 0x129   : > { %v1289_v42 = vpop.permute.xlu0 %1288  ;;  %v1562_v53 = vsel %vm1544_vm4, %v1525_v51, %v1198_v25  ;;  %v1638_v6 = vsel %vm1618_vm7, %v1601_v43, %v1291_v36  ;;  %v1016_v8 = vpack.c.bf16 %v997_v21, %v996_v0 }
 0x12a   : > { %1161 = vrot.lane.b32.xlu1 %v798_v29, %s2889_s19  ;;  %v1599_v54 = vsel %vm1581_vm5, %v1562_v53, %v1252_v28  ;;  %v680_v28 = vpack.c.bf16 %v655_v30, %v654_v27  ;;  %v656_v29 = vld [vmem:[#allocation2 + $0xb5] sm:$0xff] }
 0x12b   : > { %1159 = vrot.lane.b32.xlu0 %v795_v63, %s2889_s19  ;;  %v1636_v60 = vsel %vm1618_vm7, %v1599_v54, %v1289_v42  ;;  %v681_v35 = vpack.c.bf16 %v657_v32, %v656_v29 }
 0x12c   : > { %v1345_v46 = vpop.permute.xlu1 %1344 }
 0x12d   : > { %v1343_v52 = vpop.permute.xlu0 %1342  ;;  %v1675_v12 = vsel %vm1655_vm8, %v1638_v6, %v1345_v46  ;;  %v660_v6 = vld [vmem:[#allocation2 + $0xd5] sm:$0xff] }
 0x12e   : > { %1215 = vrot.lane.b32.xlu1 %v852_v38, %s2890_s24  ;;  %v1673_v62 = vsel %vm1655_vm8, %v1636_v60, %v1343_v52 }
 0x12f   : > { %1213 = vrot.lane.b32.xlu0 %v851_v24, %s2890_s24 }
 0x130   : > { %v1057_v19 = vpop.permute.xlu1 %1056 }
 0x131   : > { %v1397_v2 = vpop.permute.xlu0 %1396  ;;  %v1448_v13 = vsel %vm590_vm0, %v680_v28, %v1057_v19 }
 0x132   : > { %v1710_v61 = vsel %vm1692_vm9, %v1673_v62, %v1397_v2  ;;  %1269 = vrot.lane.b32.xlu1 %v906_v47, %s2891_s30 }
 0x133   : > { %1267 = vrot.lane.b32.xlu0 %v3527_v55, %s2891_s30  ;;  %2822 = vmatprep.mubr.msk.bf16.mxu0 %vm1772_vm10, %v1710_v61  ;;  %v962_v55 = vpack.c.bf16 %v943_v11, %v942_v7  ;;  %v658_v61 = vld [vmem:[#allocation2 + $0xc5] sm:$0xff]  ;;  %s3635_s30 = scalar_lea.vmem %s3985_s6, %s2854_s29  ;;  %s322_s29 = scalar_lea.vmem %s3987_s8, %s3989_s28 }
 0x134   : > { %v1059_v37 = vpop.permute.xlu1 %1058 }
 0x135   : > { %v1399_v9 = vpop.permute.xlu0 %1398  ;;  %v1451_v39 = vsel %vm590_vm0, %v681_v35, %v1059_v37  ;;  %v661_v37 = vld [vmem:[#allocation2 + $0xdd] sm:$0xff] }
 0x136   : > { %v1712_v14 = vsel %vm1692_vm9, %v1675_v12, %v1399_v9  ;;  %1306 = vrot.lane.b32.xlu1 %v909_v50, %s2892_s12  ;;  %v659_v50 = vld [vmem:[#allocation2 + $0xcd] sm:$0xff]  ;;  %v683_v9 = vpack.c.bf16 %v661_v37, %v660_v6 }
 0x137   : > { %1304 = vrot.lane.b32.xlu0 %v906_v47, %s2892_s12  ;;  %2823 = vmatmul.mubr.msk.bf16.gmra.mrb[16].mxu0 %vm1772_vm10, %v1712_v14  ;;  %v682_v5 = vpack.c.bf16 %v659_v50, %v658_v61  ;;  %v2209_v37 = vld [vmem:[%s3982_s3 + $0x10] sm:$0xff] }
 0x138   : > { %v1113_v18 = vpop.permute.xlu1 %1112 }
 0x139   : > { %v1111_v22 = vpop.permute.xlu0 %1110  ;;  %v1494_v24 = vsel %vm1470_vm2, %v1451_v39, %v1113_v18 }
 0x13a   : > { %1360 = vrot.lane.b32.xlu1 %v963_v16, %s2893_s14  ;;  %v1492_v36 = vsel %vm1470_vm2, %v1448_v13, %v1111_v22 }
 0x13b   : > { %1358 = vrot.lane.b32.xlu0 %v962_v55, %s2893_s14 }
 0x13c   : > { %v1150_v56 = vpop.permute.xlu1 %1149 }
 0x13d   : > { %v1148_v25 = vpop.permute.xlu0 %1147  ;;  %v1531_v20 = vsel %vm1507_vm3, %v1494_v24, %v1150_v56  ;;  %v3626_v24 = vld [vmem:[%s3984_s5] ss:$0 sm:$0xff] }
 0x13e   : > { %1414 = vrot.lane.b32.xlu1 %v1017_v23, %s2894_s15  ;;  %v1529_v41 = vsel %vm1507_vm3, %v1492_v36, %v1148_v25 }
 0x13f   : > { %1412 = vrot.lane.b32.xlu0 %v1016_v8, %s2894_s15 }
 0x140   : > { %v1204_v63 = vpop.permute.xlu1 %1203 }
 0x141   : > { %v1202_v26 = vpop.permute.xlu0 %1201  ;;  %v1568_v52 = vsel %vm1544_vm4, %v1531_v20, %v1204_v63 }
 0x142   : > { %v1566_v38 = vsel %vm1544_vm4, %v1529_v41, %v1202_v26  ;;  %v663_v41 = vld [vmem:[#allocation2 + $0xed] sm:$0xff] }
 0x144   : > { %v1258_v58 = vpop.permute.xlu1 %1257 }
 0x145   : > { %v1256_v31 = vpop.permute.xlu0 %1255  ;;  %v1605_v47 = vsel %vm1581_vm5, %v1568_v52, %v1258_v58 }
 0x146   : > { %v1603_v15 = vsel %vm1581_vm5, %v1566_v38, %v1256_v31 }
 0x148   : > { %v1295_v10 = vpop.permute.xlu1 %1294 }
 0x149   : > { %v1293_v34 = vpop.permute.xlu0 %1292  ;;  %v1642_v49 = vsel %vm1618_vm7, %v1605_v47, %v1295_v10 }
 0x14a   : > { %v1640_v44 = vsel %vm1618_vm7, %v1603_v15, %v1293_v34 }
 0x14c   : > { %v1349_v40 = vpop.permute.xlu1 %1348 }
 0x14d   : > { %v1347_v42 = vpop.permute.xlu0 %1346  ;;  %v1679_v33 = vsel %vm1655_vm8, %v1642_v49, %v1349_v40  ;;  %v662_v40 = vld [vmem:[#allocation2 + $0xe5] sm:$0xff] }
 0x14e   : > { %v1677_v46 = vsel %vm1655_vm8, %v1640_v44, %v1347_v42  ;;  %v684_v39 = vpack.c.bf16 %v663_v41, %v662_v40  ;;  %v664_v44 = vld [vmem:[#allocation2 + $0xf5] sm:$0xff] }
 0x150   : > { %v1061_v45 = vpop.permute.xlu1 %1060 }
 0x151   : > { %v1401_v51 = vpop.permute.xlu0 %1400  ;;  %v1454_v12 = vsel %vm590_vm0, %v682_v5, %v1061_v45  ;;  %v665_v45 = vld [vmem:[#allocation2 + $0xfd] sm:$0xff] }
 0x152   : > { %v1714_v53 = vsel %vm1692_vm9, %v1677_v46, %v1401_v51  ;;  %v685_v47 = vpack.c.bf16 %v665_v45, %v664_v44 }
 0x153   : > { %2826 = vmatprep.mubr.msk.bf16.mxu1 %vm1772_vm10, %v1714_v53 }
 0x154   : > { %v1063_v54 = vpop.permute.xlu1 %1062 }
 0x155   : > { %v1403_v59 = vpop.permute.xlu0 %1402  ;;  %v1457_v18 = vsel %vm590_vm0, %v683_v9, %v1063_v54 }
 0x156   : > { %v1716_v1 = vsel %vm1692_vm9, %v1679_v33, %v1403_v59 }
 0x157   : > { %2827 = vmatmul.mubr.msk.bf16.vlgmr.msra.gmra.mrb[0].mxu1 %vm1772_vm10, %v1716_v1 }
 0x158   : > { %v1117_v60 = vpop.permute.xlu1 %1116 }
 0x159   : > { %v1115_v19 = vpop.permute.xlu0 %1114  ;;  %v1498_v21 = vsel %vm1470_vm2, %v1457_v18, %v1117_v60  ;;  %v2208_v18 = vld [vmem:[%s3982_s3 + $0x8] sm:$0xff] }
 0x15a   : > { %v1496_v14 = vsel %vm1470_vm2, %v1454_v12, %v1115_v19 }
 0x15c   : > { %v1154_v48 = vpop.permute.xlu1 %1153 }
 0x15d   : > { %v1152_v62 = vpop.permute.xlu0 %1151  ;;  %v1535_v8 = vsel %vm1507_vm3, %v1498_v21, %v1154_v48 }
 0x15e   : > { %v1533_v55 = vsel %vm1507_vm3, %v1496_v14, %v1152_v62 }
 0x160   : > { %v1208_v2 = vpop.permute.xlu1 %1207 }
 0x161   : > { %v1206_v3 = vpop.permute.xlu0 %1205  ;;  %v1572_v63 = vsel %vm1544_vm4, %v1535_v8, %v1208_v2 }
 0x162   : > { %v1570_v17 = vsel %vm1544_vm4, %v1533_v55, %v1206_v3  ;;  %v2210_v55 = vld [vmem:[%s3982_s3 + $0x18] sm:$0xff] }
 0x164   : > { %v1262_v43 = vpop.permute.xlu1 %1261 }
 0x165   : > { %v1260_v4 = vpop.permute.xlu0 %1259  ;;  %v1609_v27 = vsel %vm1581_vm5, %v1572_v63, %v1262_v43 }
 0x166   : > { %v1607_v0 = vsel %vm1581_vm5, %v1570_v17, %v1260_v4  ;;  %v2207_v17 = vld [vmem:[%s3982_s3] sm:$0xff] }
 0x168   : > { %v1299_v7 = vpop.permute.xlu1 %1298 }
 0x169   : > { %v1297_v11 = vpop.permute.xlu0 %1296  ;;  %v1646_v30 = vsel %vm1618_vm7, %v1609_v27, %v1299_v7 }
 0x16a   : > { %v1644_v22 = vsel %vm1618_vm7, %v1607_v0, %v1297_v11 }
 0x16c   : > { %v1353_v16 = vpop.permute.xlu1 %1352 }
 0x16d   : > { %v1351_v57 = vpop.permute.xlu0 %1350  ;;  %v1683_v31 = vsel %vm1655_vm8, %v1646_v30, %v1353_v16 }
 0x16e   : > { %v1681_v56 = vsel %vm1655_vm8, %v1644_v22, %v1351_v57 }
 0x170   : > { %v1065_v23 = vpop.permute.xlu1 %1064 }
 0x171   : > { %v1405_v25 = vpop.permute.xlu0 %1404  ;;  %v1460_v51 = vsel %vm590_vm0, %v684_v39, %v1065_v23 }
 0x172   : > { %v1718_v26 = vsel %vm1692_vm9, %v1681_v56, %v1405_v25 }
 0x173   : > { %2830 = vmatprep.mubr.msk.bf16.mxu1 %vm1772_vm10, %v1718_v26 }
 0x174   : > { %v1067_v58 = vpop.permute.xlu1 %1066 }
 0x175   : > { %v1407_v28 = vpop.permute.xlu0 %1406  ;;  %v1463_v5 = vsel %vm590_vm0, %v685_v47, %v1067_v58 }
 0x176   : > { %v1720_v29 = vsel %vm1692_vm9, %v1683_v31, %v1407_v28 }
 0x177   : > { %2831 = vmatmul.mubr.msk.bf16.gmra.mrb[4].mxu1 %vm1772_vm10, %v1720_v29 }
 0x178   : > { %v1121_v32 = vpop.permute.xlu1 %1120 }
 0x179   : > { %v1119_v10 = vpop.permute.xlu0 %1118  ;;  %v1502_v9 = vsel %vm1470_vm2, %v1463_v5, %v1121_v32 }
 0x17a   : > { %v1500_v49 = vsel %vm1470_vm2, %v1460_v51, %v1119_v10 }
 0x17c   : > { %v1158_v34 = vpop.permute.xlu1 %1157 }
 0x17d   : > { %v1156_v13 = vpop.permute.xlu0 %1155  ;;  %v1539_v21 = vsel %vm1507_vm3, %v1502_v9, %v1158_v34 }
 0x17e   : > { %v1537_v1 = vsel %vm1507_vm3, %v1500_v49, %v1156_v13 }
 0x180   : > { %v1212_v35 = vpop.permute.xlu1 %1211 }
 0x181   : > { %v1210_v36 = vpop.permute.xlu0 %1209  ;;  %v1576_v56 = vsel %vm1544_vm4, %v1539_v21, %v1212_v35 }
 0x182   : > { %v1574_v2 = vsel %vm1544_vm4, %v1537_v1, %v1210_v36 }
 0x184   : > { %v1266_v42 = vpop.permute.xlu1 %1265 }
 0x185   : > { %v1264_v38 = vpop.permute.xlu0 %1263  ;;  %v1613_v63 = vsel %vm1581_vm5, %v1576_v56, %v1266_v42 }
 0x186   : > { %v1611_v50 = vsel %vm1581_vm5, %v1574_v2, %v1264_v38 }
 0x188   : > { %v1303_v15 = vpop.permute.xlu1 %1302 }
 0x189   : > { %v1301_v20 = vpop.permute.xlu0 %1300  ;;  %v1650_v31 = vsel %vm1618_vm7, %v1613_v63, %v1303_v15 }
 0x18a   : > { %v2808_v46 = vpop.f32.mrb[0].mxu0  ;;  %v1648_v6 = vsel %vm1618_vm7, %v1611_v50, %v1301_v20 }
 0x18b   : > { %v1856_v52 = vadd.f32 %v2808_v46, %v3626_v24  ;;  %v1847_v53 = vpop.f32.mrb[1].mxu0 }
 0x18c   : > { %v1848_v54 = vadd.f32 %v3626_v24, %v1847_v53  ;;  %v2809_v33 = vpop.f32.mrb[2].mxu0  ;;  %v1357_v59 = vpop.permute.xlu1 %1356 }
 0x18d   : > { %v2650_v60 = vpack.c.bf16 %v1856_v52, %v1856_v52  ;;  %v1859_v19 = vadd.f32 %v2809_v33, %v3626_v24  ;;  %v1355_v48 = vpop.permute.xlu0 %1354  ;;  %v1850_v62 = vpop.f32.mrb[3].mxu0  ;;  %v1687_v36 = vsel %vm1655_vm8, %v1650_v31, %v1357_v59 }
 0x18e   : > { %v2648_v3 = vpack.c.bf16 %v1848_v54, %v1848_v54  ;;  %v1851_v61 = vadd.f32 %v3626_v24, %v1850_v62  ;;  %v1685_v57 = vsel %vm1655_vm8, %v1648_v6, %v1355_v48  ;;  %v666_v48 = vld [vmem:[#allocation2 + $0x105] sm:$0xff]  ;;  %v667_v62 = vld [vmem:[#allocation2 + $0x10d] sm:$0xff] }
 0x18f   : > { %2137 = vst.msk [vmem:[%s3635_s30 + $0x8] sm:$0xf] %vm2134_vm11, %v2650_v60  ;;  %v1991_v43 = vpack.c.bf16 %v1859_v19, %v1856_v52  ;;  %v2651_v4 = vpack.c.bf16 %v1859_v19, %v1859_v19  ;;  %v668_v60 = vld [vmem:[#allocation2 + $0x115] sm:$0xff]  ;;  %v669_v19 = vld [vmem:[#allocation2 + $0x11d] sm:$0xff]  ;;  %v686_v50 = vpack.c.bf16 %v667_v62, %v666_v48 }
 0x190   : > { %2135 = vst.msk [vmem:[%s3635_s30] sm:$0xf] %vm2134_vm11, %v2648_v3  ;;  %v1990_v7 = vpack.c.bf16 %v1851_v61, %v1848_v54  ;;  %v2649_v11 = vpack.c.bf16 %v1851_v61, %v1851_v61  ;;  %v3653_v12 = vpop.permute.xlu1 %1068  ;;  %v687_v61 = vpack.c.bf16 %v669_v19, %v668_v60 }
 0x191   : > { %2138 = vst.msk [vmem:[%s3635_s30 + $0xc] sm:$0xf] %vm2134_vm11, %v2651_v4  ;;  %v2173_v14 = vunpack.c.l.bf16 %v1991_v43  ;;  %v2174_v16 = vunpack.c.h.bf16 %v1991_v43  ;;  %v1409_v0 = vpop.permute.xlu0 %1408 }
 0x192   : > { %2136 = vst.msk [vmem:[%s3635_s30 + $0x4] sm:$0xf] %vm2134_vm11, %v2649_v11  ;;  %v2171_v22 = vunpack.c.l.bf16 %v1990_v7  ;;  %v2172_v23 = vunpack.c.h.bf16 %v1990_v7  ;;  %v1722_v8 = vsel %vm1692_vm9, %v1685_v57, %v1409_v0 }
 0x193   : > { %v2245_v25 = vmul.f32 %v2209_v37, %v2173_v14  ;;  %2834 = vmatprep.mubr.msk.bf16.mxu1 %vm1772_vm10, %v1722_v8  ;;  %v2246_v26 = vmul.f32 %v2210_v55, %v2174_v16  ;;  %v1466_v37 = vsel %vm590_vm0, %v686_v50, %v3653_v12 }
 0x194   : > { %v2243_v27 = vmul.f32 %v2207_v17, %v2171_v22  ;;  %v2244_v30 = vmul.f32 %v2208_v18, %v2172_v23  ;;  %v1071_v58 = vpop.permute.xlu1 %1070 }
 0x195   : > { %v2360_v28 = vmul.f32 %v2245_v25, %v2245_v25  ;;  %v1411_v29 = vpop.permute.xlu0 %1410  ;;  %v2282_v35 = vsel %vm590_vm0, %v2245_v25, 0.0  ;;  %v2361_v41 = vmul.f32 %v2246_v26, %v2246_v26  ;;  %v2284_v46 = vsel %vm590_vm0, %v2246_v26, 0.0 }
 0x196   : > { %v2279_v32 = vsel %vm590_vm0, %v2243_v27, 0.0  ;;  %v2280_v10 = vsel %vm590_vm0, %v2244_v30, 0.0  ;;  %v2358_v34 = vmul.f32 %v2243_v27, %v2243_v27  ;;  %v2359_v13 = vmul.f32 %v2244_v30, %v2244_v30 }
 0x197   : > { %v2281_v40 = vadd.f32 %v2280_v10, %v2279_v32  ;;  %v1724_v39 = vsel %vm1692_vm9, %v1687_v36, %v1411_v29  ;;  %v2397_v51 = vsel %vm590_vm0, %v2360_v28, 0.0  ;;  %v2399_v47 = vsel %vm590_vm0, %v2361_v41, 0.0  ;;  %v2211_v36 = vld [vmem:[%s3982_s3 + $0x20] sm:$0xff] }
 0x198   : > { %v2394_v42 = vsel %vm590_vm0, %v2358_v34, 0.0  ;;  %v2395_v38 = vsel %vm590_vm0, %v2359_v13, 0.0  ;;  %v1125_v15 = vpop.permute.xlu1 %1124  ;;  %2835 = vmatmul.mubr.msk.bf16.gmra.mrb[8].mxu1 %vm1772_vm10, %v1724_v39  ;;  %v1469_v5 = vsel %vm590_vm0, %v687_v61, %v1071_v58  ;;  %v2213_v13 = vld [vmem:[%s3982_s3 + $0x30] sm:$0xff] }
 0x199   : > { %v2283_v44 = vadd.f32 %v2282_v35, %v2281_v40  ;;  %v2396_v45 = vadd.f32 %v2395_v38, %v2394_v42  ;;  %v1123_v20 = vpop.permute.xlu0 %1122  ;;  %v1506_v7 = vsel %vm1470_vm2, %v1469_v5, %v1125_v15  ;;  %v2212_v40 = vld [vmem:[%s3982_s3 + $0x28] sm:$0xff] }
 0x19a   : > { %v1504_v14 = vsel %vm1470_vm2, %v1466_v37, %v1123_v20 }
 0x19b   : > { %v2398_v52 = vadd.f32 %v2397_v51, %v2396_v45  ;;  %v3686_v53 = vadd.f32 %v2284_v46, %v2283_v44  ;;  %v2214_v45 = vld [vmem:[%s3982_s3 + $0x38] sm:$0xff] }
 0x19c   : > { %v1162_v49 = vpop.permute.xlu1 %1161 }
 0x19d   : > { %v1160_v54 = vpop.permute.xlu0 %1159  ;;  %v3689_v33 = vadd.f32 %v2399_v47, %v2398_v52  ;;  %v1543_v16 = vsel %vm1507_vm3, %v1506_v7, %v1162_v49 }
 0x19e   : > { %v1541_v18 = vsel %vm1507_vm3, %v1504_v14, %v1160_v54 }
 0x1a0   : > { %v1216_v59 = vpop.permute.xlu1 %1215 }
 0x1a1   : > { %v1214_v1 = vpop.permute.xlu0 %1213  ;;  %v1580_v0 = vsel %vm1544_vm4, %v1543_v16, %v1216_v59 }
 0x1a2   : > { %v1578_v8 = vsel %vm1544_vm4, %v1541_v18, %v1214_v1 }
 0x1a4   : > { %v1270_v2 = vpop.permute.xlu1 %1269 }
 0x1a5   : > { %v1268_v3 = vpop.permute.xlu0 %1267  ;;  %v1617_v56 = vsel %vm1581_vm5, %v1580_v0, %v1270_v2 }
 0x1a6   : > { %v1615_v26 = vsel %vm1581_vm5, %v1578_v8, %v1268_v3 }
 0x1a8   : > { %v1307_v43 = vpop.permute.xlu1 %1306 }
 0x1a9   : > { %v1305_v4 = vpop.permute.xlu0 %1304  ;;  %v1654_v27 = vsel %vm1618_vm7, %v1617_v56, %v1307_v43  ;;  %v2217_v56 = vld [vmem:[%s3982_s3 + $0x50] sm:$0xff] }
 0x1aa   : > { %v2812_v6 = vpop.f32.mrb[4].mxu0  ;;  %v1652_v31 = vsel %vm1618_vm7, %v1615_v26, %v1305_v4 }
 0x1ab   : > { %v1872_v11 = vadd.f32 %v2812_v6, %v3626_v24  ;;  %v1863_v9 = vpop.f32.mrb[5].mxu0 }
 0x1ac   : > { %v1864_v55 = vadd.f32 %v3626_v24, %v1863_v9  ;;  %v2813_v57 = vpop.f32.mrb[6].mxu0  ;;  %v1361_v17 = vpop.permute.xlu1 %1360 }
 0x1ad   : > { %v2654_v12 = vpack.c.bf16 %v1872_v11, %v1872_v11  ;;  %v1875_v21 = vadd.f32 %v2813_v57, %v3626_v24  ;;  %v1359_v22 = vpop.permute.xlu0 %1358  ;;  %v1866_v23 = vpop.f32.mrb[7].mxu0  ;;  %v1691_v28 = vsel %vm1655_vm8, %v1654_v27, %v1361_v17 }
 0x1ae   : > { %v2652_v25 = vpack.c.bf16 %v1864_v55, %v1864_v55  ;;  %v1867_v63 = vadd.f32 %v3626_v24, %v1866_v23  ;;  %v1689_v35 = vsel %vm1655_vm8, %v1652_v31, %v1359_v22 }
 0x1af   : > { %2141 = vst.msk [vmem:[%s3635_s30 + $0x18] sm:$0xf] %vm2134_vm11, %v2654_v12  ;;  %v1993_v30 = vpack.c.bf16 %v1875_v21, %v1872_v11  ;;  %v2655_v58 = vpack.c.bf16 %v1875_v21, %v1875_v21 }
 0x1b0   : > { %2139 = vst.msk [vmem:[%s3635_s30 + $0x10] sm:$0xf] %vm2134_vm11, %v2652_v25  ;;  %v1992_v29 = vpack.c.bf16 %v1867_v63, %v1864_v55  ;;  %v2653_v32 = vpack.c.bf16 %v1867_v63, %v1867_v63  ;;  %v1415_v10 = vpop.permute.xlu1 %1414  ;;  %v2215_v25 = vld [vmem:[%s3982_s3 + $0x40] sm:$0xff]  ;;  %v2216_v63 = vld [vmem:[%s3982_s3 + $0x48] sm:$0xff] }
 0x1b1   : > { %2142 = vst.msk [vmem:[%s3635_s30 + $0x1c] sm:$0xf] %vm2134_vm11, %v2655_v58  ;;  %v2177_v34 = vunpack.c.l.bf16 %v1993_v30  ;;  %v1728_v41 = vsel %vm1692_vm9, %v1691_v28, %v1415_v10  ;;  %v1413_v42 = vpop.permute.xlu0 %1412  ;;  %v2178_v38 = vunpack.c.h.bf16 %v1993_v30  ;;  %v2218_v58 = vld [vmem:[%s3982_s3 + $0x58] sm:$0xff] }
 0x1b2   : > { %2140 = vst.msk [vmem:[%s3635_s30 + $0x14] sm:$0xf] %vm2134_vm11, %v2653_v32  ;;  %v2175_v39 = vunpack.c.l.bf16 %v1992_v29  ;;  %v2176_v15 = vunpack.c.h.bf16 %v1992_v29  ;;  %v1726_v44 = vsel %vm1692_vm9, %v1689_v35, %v1413_v42 }
 0x1b3   : > { %2838 = vmatprep.mubr.msk.bf16.mxu1 %vm1772_vm10, %v1726_v44  ;;  %v2249_v20 = vmul.f32 %v2213_v13, %v2177_v34  ;;  %v2250_v52 = vmul.f32 %v2214_v45, %v2178_v38 }
 0x1b4   : > { %v2247_v46 = vmul.f32 %v2211_v36, %v2175_v39  ;;  %v2248_v51 = vmul.f32 %v2212_v40, %v2176_v15  ;;  %2839 = vmatmul.mubr.msk.bf16.gmra.mrb[12].mxu1 %vm1772_vm10, %v1728_v41 }
 0x1b5   : > { %v2364_v1 = vmul.f32 %v2249_v20, %v2249_v20  ;;  %v2290_v2 = vsel %vm590_vm0, %v2249_v20, 0.0  ;;  %v2365_v3 = vmul.f32 %v2250_v52, %v2250_v52  ;;  %v2292_v4 = vsel %vm590_vm0, %v2250_v52, 0.0 }
 0x1b6   : > { %v2286_v47 = vsel %vm590_vm0, %v2247_v46, 0.0  ;;  %v2362_v49 = vmul.f32 %v2247_v46, %v2247_v46  ;;  %v2363_v54 = vmul.f32 %v2248_v51, %v2248_v51  ;;  %v2288_v60 = vsel %vm590_vm0, %v2248_v51, 0.0 }
 0x1b7   : > { %v2287_v59 = vadd.f32 %v2286_v47, %v3686_v53  ;;  %v2405_v53 = vsel %vm590_vm0, %v2364_v1, 0.0  ;;  %v2407_v37 = vsel %vm590_vm0, %v2365_v3, 0.0 }
 0x1b8   : > { %v2401_v19 = vsel %vm590_vm0, %v2362_v49, 0.0  ;;  %v2403_v61 = vsel %vm590_vm0, %v2363_v54, 0.0 }
 0x1b9   : > { %v2289_v48 = vadd.f32 %v2288_v60, %v2287_v59  ;;  %v2402_v62 = vadd.f32 %v2401_v19, %v3689_v33 }
 0x1bb   : > { %v2291_v50 = vadd.f32 %v2290_v2, %v2289_v48  ;;  %v2404_v43 = vadd.f32 %v2403_v61, %v2402_v62 }
 0x1bd   : > { %v2406_v5 = vadd.f32 %v2405_v53, %v2404_v43  ;;  %v2293_v6 = vadd.f32 %v2292_v4, %v2291_v50 }
 0x1bf   : > { %v2408_v7 = vadd.f32 %v2407_v37, %v2406_v5  ;;  %v2221_v37 = vld [vmem:[%s3982_s3 + $0x70] sm:$0xff] }
 0x1ca   : > { %v2816_v11 = vpop.f32.mrb[8].mxu0 }
 0x1cb   : > { %v1888_v33 = vadd.f32 %v2816_v11, %v3626_v24  ;;  %v1879_v9 = vpop.f32.mrb[9].mxu0  ;;  %v2220_v11 = vld [vmem:[%s3982_s3 + $0x68] sm:$0xff] }
 0x1cc   : > { %v1880_v14 = vadd.f32 %v3626_v24, %v1879_v9  ;;  %v2817_v16 = vpop.f32.mrb[10].mxu0 }
 0x1cd   : > { %v2658_v55 = vpack.c.bf16 %v1888_v33, %v1888_v33  ;;  %v1891_v57 = vadd.f32 %v2817_v16, %v3626_v24  ;;  %v1882_v17 = vpop.f32.mrb[11].mxu0  ;;  %v2222_v16 = vld [vmem:[%s3982_s3 + $0x78] sm:$0xff] }
 0x1ce   : > { %v2656_v18 = vpack.c.bf16 %v1880_v14, %v1880_v14  ;;  %v1883_v0 = vadd.f32 %v3626_v24, %v1882_v17 }
 0x1cf   : > { %2145 = vst.msk [vmem:[%s3635_s30 + $0x28] sm:$0xf] %vm2134_vm11, %v2658_v55  ;;  %v1995_v12 = vpack.c.bf16 %v1891_v57, %v1888_v33  ;;  %v2659_v21 = vpack.c.bf16 %v1891_v57, %v1891_v57 }
 0x1d0   : > { %2143 = vst.msk [vmem:[%s3635_s30 + $0x20] sm:$0xf] %vm2134_vm11, %v2656_v18  ;;  %v1994_v22 = vpack.c.bf16 %v1883_v0, %v1880_v14  ;;  %v2657_v23 = vpack.c.bf16 %v1883_v0, %v1883_v0 }
 0x1d1   : > { %2146 = vst.msk [vmem:[%s3635_s30 + $0x2c] sm:$0xf] %vm2134_vm11, %v2659_v21  ;;  %v2181_v8 = vunpack.c.l.bf16 %v1995_v12  ;;  %v2182_v26 = vunpack.c.h.bf16 %v1995_v12 }
 0x1d2   : > { %2144 = vst.msk [vmem:[%s3635_s30 + $0x24] sm:$0xf] %vm2134_vm11, %v2657_v23  ;;  %v2179_v27 = vunpack.c.l.bf16 %v1994_v22  ;;  %v2180_v30 = vunpack.c.h.bf16 %v1994_v22 }
 0x1d3   : > { %v2253_v31 = vmul.f32 %v2217_v56, %v2181_v8  ;;  %v2254_v32 = vmul.f32 %v2218_v58, %v2182_v26 }
 0x1d4   : > { %v2251_v28 = vmul.f32 %v2215_v25, %v2179_v27  ;;  %v2252_v29 = vmul.f32 %v2216_v63, %v2180_v30 }
 0x1d5   : > { %v2368_v36 = vmul.f32 %v2253_v31, %v2253_v31  ;;  %v2298_v39 = vsel %vm590_vm0, %v2253_v31, 0.0  ;;  %v2369_v15 = vmul.f32 %v2254_v32, %v2254_v32  ;;  %v2300_v46 = vsel %vm590_vm0, %v2254_v32, 0.0 }
 0x1d6   : > { %v2294_v10 = vsel %vm590_vm0, %v2251_v28, 0.0  ;;  %v2366_v34 = vmul.f32 %v2251_v28, %v2251_v28  ;;  %v2367_v13 = vmul.f32 %v2252_v29, %v2252_v29  ;;  %v2296_v40 = vsel %vm590_vm0, %v2252_v29, 0.0 }
 0x1d7   : > { %v2295_v35 = vadd.f32 %v2294_v10, %v2293_v6  ;;  %v2413_v51 = vsel %vm590_vm0, %v2368_v36, 0.0  ;;  %v2415_v49 = vsel %vm590_vm0, %v2369_v15, 0.0 }
 0x1d8   : > { %v2409_v41 = vsel %vm590_vm0, %v2366_v34, 0.0  ;;  %v2411_v44 = vsel %vm590_vm0, %v2367_v13, 0.0 }
 0x1d9   : > { %v2297_v42 = vadd.f32 %v2296_v40, %v2295_v35  ;;  %v2410_v38 = vadd.f32 %v2409_v41, %v2408_v7  ;;  %v2219_v7 = vld [vmem:[%s3982_s3 + $0x60] sm:$0xff] }
 0x1db   : > { %v2299_v45 = vadd.f32 %v2298_v39, %v2297_v42  ;;  %v2412_v20 = vadd.f32 %v2411_v44, %v2410_v38 }
 0x1dd   : > { %v2414_v52 = vadd.f32 %v2413_v51, %v2412_v20  ;;  %v2301_v47 = vadd.f32 %v2300_v46, %v2299_v45 }
 0x1df   : > { %v2416_v54 = vadd.f32 %v2415_v49, %v2414_v52  ;;  %v2225_v49 = vld [vmem:[%s3982_s3 + $0x90] sm:$0xff] }
 0x1ea   : > { %v2820_v59 = vpop.f32.mrb[12].mxu0 }
 0x1eb   : > { %v1904_v1 = vadd.f32 %v2820_v59, %v3626_v24  ;;  %v1895_v60 = vpop.f32.mrb[13].mxu0  ;;  %v2224_v59 = vld [vmem:[%s3982_s3 + $0x88] sm:$0xff] }
 0x1ec   : > { %v1896_v19 = vadd.f32 %v3626_v24, %v1895_v60  ;;  %v2821_v48 = vpop.f32.mrb[14].mxu0 }
 0x1ed   : > { %v2662_v62 = vpack.c.bf16 %v1904_v1, %v1904_v1  ;;  %v1907_v2 = vadd.f32 %v2821_v48, %v3626_v24  ;;  %v1898_v3 = vpop.f32.mrb[15].mxu0  ;;  %v2226_v48 = vld [vmem:[%s3982_s3 + $0x98] sm:$0xff] }
 0x1ee   : > { %v2660_v61 = vpack.c.bf16 %v1896_v19, %v1896_v19  ;;  %v1899_v50 = vadd.f32 %v3626_v24, %v1898_v3 }
 0x1ef   : > { %2149 = vst.msk [vmem:[%s3635_s30 + $0x38] sm:$0xf] %vm2134_vm11, %v2662_v62  ;;  %v1997_v43 = vpack.c.bf16 %v1907_v2, %v1904_v1  ;;  %v2663_v4 = vpack.c.bf16 %v1907_v2, %v1907_v2 }
 0x1f0   : > { %2147 = vst.msk [vmem:[%s3635_s30 + $0x30] sm:$0xf] %vm2134_vm11, %v2660_v61  ;;  %v1996_v53 = vpack.c.bf16 %v1899_v50, %v1896_v19  ;;  %v2661_v5 = vpack.c.bf16 %v1899_v50, %v1899_v50 }
 0x1f1   : > { %2150 = vst.msk [vmem:[%s3635_s30 + $0x3c] sm:$0xf] %vm2134_vm11, %v2663_v4  ;;  %v2185_v6 = vunpack.c.l.bf16 %v1997_v43  ;;  %v2186_v33 = vunpack.c.h.bf16 %v1997_v43 }
 0x1f2   : > { %2148 = vst.msk [vmem:[%s3635_s30 + $0x34] sm:$0xf] %vm2134_vm11, %v2661_v5  ;;  %v2183_v9 = vunpack.c.l.bf16 %v1996_v53  ;;  %v2184_v14 = vunpack.c.h.bf16 %v1996_v53 }
 0x1f3   : > { %v2257_v55 = vmul.f32 %v2221_v37, %v2185_v6  ;;  %v2258_v18 = vmul.f32 %v2222_v16, %v2186_v33 }
 0x1f4   : > { %v2255_v57 = vmul.f32 %v2219_v7, %v2183_v9  ;;  %v2256_v17 = vmul.f32 %v2220_v11, %v2184_v14 }
 0x1f5   : > { %v2372_v23 = vmul.f32 %v2257_v55, %v2257_v55  ;;  %v2306_v26 = vsel %vm590_vm0, %v2257_v55, 0.0  ;;  %v2373_v27 = vmul.f32 %v2258_v18, %v2258_v18  ;;  %v2308_v28 = vsel %vm590_vm0, %v2258_v18, 0.0 }
 0x1f6   : > { %v2302_v0 = vsel %vm590_vm0, %v2255_v57, 0.0  ;;  %v2370_v12 = vmul.f32 %v2255_v57, %v2255_v57  ;;  %v2371_v21 = vmul.f32 %v2256_v17, %v2256_v17  ;;  %v2304_v8 = vsel %vm590_vm0, %v2256_v17, 0.0 }
 0x1f7   : > { %v2303_v22 = vadd.f32 %v2302_v0, %v2301_v47  ;;  %v2421_v29 = vsel %vm590_vm0, %v2372_v23, 0.0  ;;  %v2423_v34 = vsel %vm590_vm0, %v2373_v27, 0.0 }
 0x1f8   : > { %v2417_v56 = vsel %vm590_vm0, %v2370_v12, 0.0  ;;  %v2419_v30 = vsel %vm590_vm0, %v2371_v21, 0.0 }
 0x1f9   : > { %v2305_v25 = vadd.f32 %v2304_v8, %v2303_v22  ;;  %v2418_v63 = vadd.f32 %v2417_v56, %v2416_v54  ;;  %v2223_v54 = vld [vmem:[%s3982_s3 + $0x80] sm:$0xff] }
 0x1fb   : > { %v2307_v58 = vadd.f32 %v2306_v26, %v2305_v25  ;;  %v2420_v31 = vadd.f32 %v2419_v30, %v2418_v63 }
 0x1fd   : > { %v2422_v32 = vadd.f32 %v2421_v29, %v2420_v31  ;;  %v2309_v10 = vadd.f32 %v2308_v28, %v2307_v58 }
 0x1ff   : > { %v2424_v13 = vadd.f32 %v2423_v34, %v2422_v32  ;;  %v2229_v34 = vld [vmem:[%s3982_s3 + $0xb0] sm:$0xff] }
 0x20a   : > { %v2824_v35 = vpop.f32.mrb[16].mxu0 }
 0x20b   : > { %v1920_v36 = vadd.f32 %v2824_v35, %v3626_v24  ;;  %v1911_v40 = vpop.f32.mrb[17].mxu0  ;;  %v2228_v35 = vld [vmem:[%s3982_s3 + $0xa8] sm:$0xff] }
 0x20c   : > { %v1912_v41 = vadd.f32 %v3626_v24, %v1911_v40  ;;  %v2825_v42 = vpop.f32.mrb[18].mxu0 }
 0x20d   : > { %v2666_v38 = vpack.c.bf16 %v1920_v36, %v1920_v36  ;;  %v1923_v39 = vadd.f32 %v2825_v42, %v3626_v24  ;;  %v1914_v15 = vpop.f32.mrb[19].mxu0  ;;  %v2230_v42 = vld [vmem:[%s3982_s3 + $0xb8] sm:$0xff] }
 0x20e   : > { %v2664_v44 = vpack.c.bf16 %v1912_v41, %v1912_v41  ;;  %v1915_v45 = vadd.f32 %v3626_v24, %v1914_v15 }
 0x20f   : > { %2153 = vst.msk [vmem:[%s3635_s30 + $0x48] sm:$0xf] %vm2134_vm11, %v2666_v38  ;;  %v1999_v20 = vpack.c.bf16 %v1923_v39, %v1920_v36  ;;  %v2667_v46 = vpack.c.bf16 %v1923_v39, %v1923_v39 }
 0x210   : > { %2151 = vst.msk [vmem:[%s3635_s30 + $0x40] sm:$0xf] %vm2134_vm11, %v2664_v44  ;;  %v1998_v51 = vpack.c.bf16 %v1915_v45, %v1912_v41  ;;  %v2665_v52 = vpack.c.bf16 %v1915_v45, %v1915_v45 }
 0x211   : > { %2154 = vst.msk [vmem:[%s3635_s30 + $0x4c] sm:$0xf] %vm2134_vm11, %v2667_v46  ;;  %v2189_v47 = vunpack.c.l.bf16 %v1999_v20  ;;  %v2190_v1 = vunpack.c.h.bf16 %v1999_v20 }
 0x212   : > { %2152 = vst.msk [vmem:[%s3635_s30 + $0x44] sm:$0xf] %vm2134_vm11, %v2665_v52  ;;  %v2187_v60 = vunpack.c.l.bf16 %v1998_v51  ;;  %v2188_v19 = vunpack.c.h.bf16 %v1998_v51 }
 0x213   : > { %v2261_v62 = vmul.f32 %v2225_v49, %v2189_v47  ;;  %v2262_v61 = vmul.f32 %v2226_v48, %v2190_v1 }
 0x214   : > { %v2259_v2 = vmul.f32 %v2223_v54, %v2187_v60  ;;  %v2260_v3 = vmul.f32 %v2224_v59, %v2188_v19 }
 0x215   : > { %v2376_v5 = vmul.f32 %v2261_v62, %v2261_v62  ;;  %v2314_v33 = vsel %vm590_vm0, %v2261_v62, 0.0  ;;  %v2377_v9 = vmul.f32 %v2262_v61, %v2262_v61  ;;  %v2316_v57 = vsel %vm590_vm0, %v2262_v61, 0.0 }
 0x216   : > { %v2310_v50 = vsel %vm590_vm0, %v2259_v2, 0.0  ;;  %v2374_v43 = vmul.f32 %v2259_v2, %v2259_v2  ;;  %v2375_v4 = vmul.f32 %v2260_v3, %v2260_v3  ;;  %v2312_v6 = vsel %vm590_vm0, %v2260_v3, 0.0 }
 0x217   : > { %v2311_v53 = vadd.f32 %v2310_v50, %v2309_v10  ;;  %v2429_v17 = vsel %vm590_vm0, %v2376_v5, 0.0  ;;  %v2431_v12 = vsel %vm590_vm0, %v2377_v9, 0.0 }
 0x218   : > { %v2425_v37 = vsel %vm590_vm0, %v2374_v43, 0.0  ;;  %v2427_v14 = vsel %vm590_vm0, %v2375_v4, 0.0 }
 0x219   : > { %v2313_v7 = vadd.f32 %v2312_v6, %v2311_v53  ;;  %v2426_v11 = vadd.f32 %v2425_v37, %v2424_v13  ;;  %v2227_v13 = vld [vmem:[%s3982_s3 + $0xa0] sm:$0xff] }
 0x21b   : > { %v2315_v16 = vadd.f32 %v2314_v33, %v2313_v7  ;;  %v2428_v55 = vadd.f32 %v2427_v14, %v2426_v11 }
 0x21d   : > { %v2430_v18 = vadd.f32 %v2429_v17, %v2428_v55  ;;  %v2317_v0 = vadd.f32 %v2316_v57, %v2315_v16 }
 0x21f   : > { %v2432_v21 = vadd.f32 %v2431_v12, %v2430_v18  ;;  %v2233_v12 = vld [vmem:[%s3982_s3 + $0xd0] sm:$0xff] }
 0x22a   : > { %v2828_v22 = vpop.f32.mrb[0].mxu1 }
 0x22b   : > { %v1936_v23 = vadd.f32 %v2828_v22, %v3626_v24  ;;  %v1927_v8 = vpop.f32.mrb[1].mxu1  ;;  %v2232_v22 = vld [vmem:[%s3982_s3 + $0xc8] sm:$0xff] }
 0x22c   : > { %v1928_v56 = vadd.f32 %v3626_v24, %v1927_v8  ;;  %v2829_v25 = vpop.f32.mrb[2].mxu1 }
 0x22d   : > { %v2670_v63 = vpack.c.bf16 %v1936_v23, %v1936_v23  ;;  %v1939_v26 = vadd.f32 %v2829_v25, %v3626_v24  ;;  %v1930_v27 = vpop.f32.mrb[3].mxu1  ;;  %v2234_v25 = vld [vmem:[%s3982_s3 + $0xd8] sm:$0xff] }
 0x22e   : > { %v2668_v30 = vpack.c.bf16 %v1928_v56, %v1928_v56  ;;  %v1931_v58 = vadd.f32 %v3626_v24, %v1930_v27 }
 0x22f   : > { %2157 = vst.msk [vmem:[%s3635_s30 + $0x58] sm:$0xf] %vm2134_vm11, %v2670_v63  ;;  %v2001_v31 = vpack.c.bf16 %v1939_v26, %v1936_v23  ;;  %v2671_v28 = vpack.c.bf16 %v1939_v26, %v1939_v26 }
 0x230   : > { %2155 = vst.msk [vmem:[%s3635_s30 + $0x50] sm:$0xf] %vm2134_vm11, %v2668_v30  ;;  %v2000_v29 = vpack.c.bf16 %v1931_v58, %v1928_v56  ;;  %v2669_v32 = vpack.c.bf16 %v1931_v58, %v1931_v58 }
 0x231   : > { %2158 = vst.msk [vmem:[%s3635_s30 + $0x5c] sm:$0xf] %vm2134_vm11, %v2671_v28  ;;  %v2193_v10 = vunpack.c.l.bf16 %v2001_v31  ;;  %v2194_v36 = vunpack.c.h.bf16 %v2001_v31 }
 0x232   : > { %2156 = vst.msk [vmem:[%s3635_s30 + $0x54] sm:$0xf] %vm2134_vm11, %v2669_v32  ;;  %v2191_v40 = vunpack.c.l.bf16 %v2000_v29  ;;  %v2192_v41 = vunpack.c.h.bf16 %v2000_v29 }
 0x233   : > { %v2265_v38 = vmul.f32 %v2229_v34, %v2193_v10  ;;  %v2266_v44 = vmul.f32 %v2230_v42, %v2194_v36 }
 0x234   : > { %v2263_v39 = vmul.f32 %v2227_v13, %v2191_v40  ;;  %v2264_v15 = vmul.f32 %v2228_v35, %v2192_v41 }
 0x235   : > { %v2380_v52 = vmul.f32 %v2265_v38, %v2265_v38  ;;  %v2322_v1 = vsel %vm590_vm0, %v2265_v38, 0.0  ;;  %v2381_v60 = vmul.f32 %v2266_v44, %v2266_v44  ;;  %v2324_v2 = vsel %vm590_vm0, %v2266_v44, 0.0 }
 0x236   : > { %v2318_v45 = vsel %vm590_vm0, %v2263_v39, 0.0  ;;  %v2378_v20 = vmul.f32 %v2263_v39, %v2263_v39  ;;  %v2379_v46 = vmul.f32 %v2264_v15, %v2264_v15  ;;  %v2320_v47 = vsel %vm590_vm0, %v2264_v15, 0.0 }
 0x237   : > { %v2319_v51 = vadd.f32 %v2318_v45, %v2317_v0  ;;  %v2437_v3 = vsel %vm590_vm0, %v2380_v52, 0.0  ;;  %v2439_v43 = vsel %vm590_vm0, %v2381_v60, 0.0 }
 0x238   : > { %v2433_v49 = vsel %vm590_vm0, %v2378_v20, 0.0  ;;  %v2435_v19 = vsel %vm590_vm0, %v2379_v46, 0.0 }
 0x239   : > { %v2321_v54 = vadd.f32 %v2320_v47, %v2319_v51  ;;  %v2434_v59 = vadd.f32 %v2433_v49, %v2432_v21  ;;  %v2231_v21 = vld [vmem:[%s3982_s3 + $0xc0] sm:$0xff] }
 0x23b   : > { %v2323_v48 = vadd.f32 %v2322_v1, %v2321_v54  ;;  %v2436_v62 = vadd.f32 %v2435_v19, %v2434_v59 }
 0x23d   : > { %v2438_v61 = vadd.f32 %v2437_v3, %v2436_v62  ;;  %v2325_v50 = vadd.f32 %v2324_v2, %v2323_v48 }
 0x23f   : > { %v2440_v4 = vadd.f32 %v2439_v43, %v2438_v61  ;;  %v2237_v43 = vld [vmem:[%s3982_s3 + $0xf0] sm:$0xff] }
 0x24a   : > { %v2832_v53 = vpop.f32.mrb[4].mxu1 }
 0x24b   : > { %v1952_v5 = vadd.f32 %v2832_v53, %v3626_v24  ;;  %v1943_v6 = vpop.f32.mrb[5].mxu1  ;;  %v2236_v53 = vld [vmem:[%s3982_s3 + $0xe8] sm:$0xff] }
 0x24c   : > { %v1944_v37 = vadd.f32 %v3626_v24, %v1943_v6  ;;  %v2833_v7 = vpop.f32.mrb[6].mxu1 }
 0x24d   : > { %v2674_v11 = vpack.c.bf16 %v1952_v5, %v1952_v5  ;;  %v1955_v33 = vadd.f32 %v2833_v7, %v3626_v24  ;;  %v1946_v9 = vpop.f32.mrb[7].mxu1  ;;  %v2238_v7 = vld [vmem:[%s3982_s3 + $0xf8] sm:$0xff] }
 0x24e   : > { %v2672_v14 = vpack.c.bf16 %v1944_v37, %v1944_v37  ;;  %v1947_v16 = vadd.f32 %v3626_v24, %v1946_v9 }
 0x24f   : > { %2161 = vst.msk [vmem:[%s3635_s30 + $0x68] sm:$0xf] %vm2134_vm11, %v2674_v11  ;;  %v2003_v55 = vpack.c.bf16 %v1955_v33, %v1952_v5  ;;  %v2675_v57 = vpack.c.bf16 %v1955_v33, %v1955_v33 }
 0x250   : > { %2159 = vst.msk [vmem:[%s3635_s30 + $0x60] sm:$0xf] %vm2134_vm11, %v2672_v14  ;;  %v2002_v17 = vpack.c.bf16 %v1947_v16, %v1944_v37  ;;  %v2673_v18 = vpack.c.bf16 %v1947_v16, %v1947_v16 }
 0x251   : > { %2162 = vst.msk [vmem:[%s3635_s30 + $0x6c] sm:$0xf] %vm2134_vm11, %v2675_v57  ;;  %v2197_v0 = vunpack.c.l.bf16 %v2003_v55  ;;  %v2198_v23 = vunpack.c.h.bf16 %v2003_v55 }
 0x252   : > { %2160 = vst.msk [vmem:[%s3635_s30 + $0x64] sm:$0xf] %vm2134_vm11, %v2673_v18  ;;  %v2195_v8 = vunpack.c.l.bf16 %v2002_v17  ;;  %v2196_v56 = vunpack.c.h.bf16 %v2002_v17 }
 0x253   : > { %v2269_v63 = vmul.f32 %v2233_v12, %v2197_v0  ;;  %v2270_v30 = vmul.f32 %v2234_v25, %v2198_v23 }
 0x254   : > { %v2267_v26 = vmul.f32 %v2231_v21, %v2195_v8  ;;  %v2268_v27 = vmul.f32 %v2232_v22, %v2196_v56 }
 0x255   : > { %v2384_v32 = vmul.f32 %v2269_v63, %v2269_v63  ;;  %v2330_v36 = vsel %vm590_vm0, %v2269_v63, 0.0  ;;  %v2385_v40 = vmul.f32 %v2270_v30, %v2270_v30  ;;  %v2332_v39 = vsel %vm590_vm0, %v2270_v30, 0.0 }
 0x256   : > { %v2326_v58 = vsel %vm590_vm0, %v2267_v26, 0.0  ;;  %v2382_v31 = vmul.f32 %v2267_v26, %v2267_v26  ;;  %v2383_v28 = vmul.f32 %v2268_v27, %v2268_v27  ;;  %v2328_v10 = vsel %vm590_vm0, %v2268_v27, 0.0 }
 0x257   : > { %v2327_v29 = vadd.f32 %v2326_v58, %v2325_v50  ;;  %v2445_v15 = vsel %vm590_vm0, %v2384_v32, 0.0  ;;  %v2447_v20 = vsel %vm590_vm0, %v2385_v40, 0.0 }
 0x258   : > { %v2441_v34 = vsel %vm590_vm0, %v2382_v31, 0.0  ;;  %v2443_v41 = vsel %vm590_vm0, %v2383_v28, 0.0 }
 0x259   : > { %v2329_v13 = vadd.f32 %v2328_v10, %v2327_v29  ;;  %v2442_v35 = vadd.f32 %v2441_v34, %v2440_v4  ;;  %v2235_v4 = vld [vmem:[%s3982_s3 + $0xe0] sm:$0xff] }
 0x25b   : > { %v2331_v42 = vadd.f32 %v2330_v36, %v2329_v13  ;;  %v2444_v38 = vadd.f32 %v2443_v41, %v2442_v35 }
 0x25d   : > { %v2446_v44 = vadd.f32 %v2445_v15, %v2444_v38  ;;  %v2333_v45 = vadd.f32 %v2332_v39, %v2331_v42 }
 0x25f   : > { %v2448_v46 = vadd.f32 %v2447_v20, %v2446_v44  ;;  %v2241_v20 = vld [vmem:[%s3982_s3 + $0x110] sm:$0xff] }
 0x26b   : > { %v2836_v51 = vpop.f32.mrb[8].mxu1 }
 0x26c   : > { %v1968_v52 = vadd.f32 %v2836_v51, %v3626_v24  ;;  %v1959_v47 = vpop.f32.mrb[9].mxu1 }
 0x26d   : > { %v1960_v49 = vadd.f32 %v3626_v24, %v1959_v47  ;;  %v2837_v54 = vpop.f32.mrb[10].mxu1 }
 0x26e   : > { %v2678_v59 = vpack.c.bf16 %v1968_v52, %v1968_v52  ;;  %v1971_v1 = vadd.f32 %v2837_v54, %v3626_v24  ;;  %v1962_v60 = vpop.f32.mrb[11].mxu1 }
 0x26f   : > { %v2676_v19 = vpack.c.bf16 %v1960_v49, %v1960_v49  ;;  %v1963_v48 = vadd.f32 %v3626_v24, %v1962_v60 }
 0x270   : > { %2165 = vst.msk [vmem:[%s3635_s30 + $0x78] sm:$0xf] %vm2134_vm11, %v2678_v59  ;;  %v2005_v62 = vpack.c.bf16 %v1971_v1, %v1968_v52  ;;  %v2679_v2 = vpack.c.bf16 %v1971_v1, %v1971_v1 }
 0x271   : > { %2163 = vst.msk [vmem:[%s3635_s30 + $0x70] sm:$0xf] %vm2134_vm11, %v2676_v19  ;;  %v2004_v3 = vpack.c.bf16 %v1963_v48, %v1960_v49  ;;  %v2677_v61 = vpack.c.bf16 %v1963_v48, %v1963_v48  ;;  %v2242_v49 = vld [vmem:[%s3982_s3 + $0x118] sm:$0xff] }
 0x272   : > { %2166 = vst.msk [vmem:[%s3635_s30 + $0x7c] sm:$0xf] %vm2134_vm11, %v2679_v2  ;;  %v2201_v50 = vunpack.c.l.bf16 %v2005_v62  ;;  %v2202_v5 = vunpack.c.h.bf16 %v2005_v62 }
 0x273   : > { %2164 = vst.msk [vmem:[%s3635_s30 + $0x74] sm:$0xf] %vm2134_vm11, %v2677_v61  ;;  %v2199_v6 = vunpack.c.l.bf16 %v2004_v3  ;;  %v2200_v37 = vunpack.c.h.bf16 %v2004_v3 }
 0x274   : > { %v2273_v11 = vmul.f32 %v2237_v43, %v2201_v50  ;;  %v2274_v14 = vmul.f32 %v2238_v7, %v2202_v5 }
 0x275   : > { %v2271_v33 = vmul.f32 %v2235_v4, %v2199_v6  ;;  %v2272_v9 = vmul.f32 %v2236_v53, %v2200_v37 }
 0x276   : > { %v2388_v18 = vmul.f32 %v2273_v11, %v2273_v11  ;;  %v2338_v23 = vsel %vm590_vm0, %v2273_v11, 0.0  ;;  %v2389_v8 = vmul.f32 %v2274_v14, %v2274_v14  ;;  %v2340_v26 = vsel %vm590_vm0, %v2274_v14, 0.0 }
 0x277   : > { %v2334_v16 = vsel %vm590_vm0, %v2271_v33, 0.0  ;;  %v2386_v55 = vmul.f32 %v2271_v33, %v2271_v33  ;;  %v2387_v57 = vmul.f32 %v2272_v9, %v2272_v9  ;;  %v2336_v0 = vsel %vm590_vm0, %v2272_v9, 0.0 }
 0x278   : > { %v2335_v17 = vadd.f32 %v2334_v16, %v2333_v45  ;;  %v2453_v27 = vsel %vm590_vm0, %v2388_v18, 0.0  ;;  %v2455_v31 = vsel %vm590_vm0, %v2389_v8, 0.0 }
 0x279   : > { %v2449_v12 = vsel %vm590_vm0, %v2386_v55, 0.0  ;;  %v2451_v56 = vsel %vm590_vm0, %v2387_v57, 0.0 }
 0x27a   : > { %v2337_v21 = vadd.f32 %v2336_v0, %v2335_v17  ;;  %v2450_v22 = vadd.f32 %v2449_v12, %v2448_v46  ;;  %v2239_v46 = vld [vmem:[%s3982_s3 + $0x100] sm:$0xff] }
 0x27c   : > { %v2339_v25 = vadd.f32 %v2338_v23, %v2337_v21  ;;  %v2452_v63 = vadd.f32 %v2451_v56, %v2450_v22 }
 0x27e   : > { %v2454_v30 = vadd.f32 %v2453_v27, %v2452_v63  ;;  %v2341_v58 = vadd.f32 %v2340_v26, %v2339_v25 }
 0x280   : > { %v2456_v28 = vadd.f32 %v2455_v31, %v2454_v30 }
 0x287   : > { %v2840_v29 = vpop.f32.mrb[12].mxu1 }
 0x288   : > { %v1984_v32 = vadd.f32 %v2840_v29, %v3626_v24  ;;  %v1975_v10 = vpop.f32.mrb[13].mxu1 }
 0x289   : > { %v1976_v34 = vadd.f32 %v3626_v24, %v1975_v10  ;;  %v2841_v13 = vpop.f32.mrb[14].mxu1 }
 0x28a   : > { %v2682_v35 = vpack.c.bf16 %v1984_v32, %v1984_v32  ;;  %v1987_v36 = vadd.f32 %v2841_v13, %v3626_v24  ;;  %v1978_v40 = vpop.f32.mrb[15].mxu1 }
 0x28b   : > { %v2680_v41 = vpack.c.bf16 %v1976_v34, %v1976_v34  ;;  %v1979_v42 = vadd.f32 %v3626_v24, %v1978_v40  ;;  %v2240_v24 = vld [vmem:[%s3982_s3 + $0x108] sm:$0xff] }
 0x28c   : > { %2169 = vst.msk [vmem:[%s3635_s30 + $0x88] sm:$0xf] %vm2134_vm11, %v2682_v35  ;;  %v2007_v38 = vpack.c.bf16 %v1987_v36, %v1984_v32  ;;  %v2683_v39 = vpack.c.bf16 %v1987_v36, %v1987_v36 }
 0x28d   : > { %2167 = vst.msk [vmem:[%s3635_s30 + $0x80] sm:$0xf] %vm2134_vm11, %v2680_v41  ;;  %v2006_v15 = vpack.c.bf16 %v1979_v42, %v1976_v34  ;;  %v2681_v44 = vpack.c.bf16 %v1979_v42, %v1979_v42 }
 0x28e   : > { %2170 = vst.msk [vmem:[%s3635_s30 + $0x8c] sm:$0xf] %vm2134_vm11, %v2683_v39  ;;  %v2205_v45 = vunpack.c.l.bf16 %v2007_v38  ;;  %v2206_v51 = vunpack.c.h.bf16 %v2007_v38 }
 0x28f   : > { %2168 = vst.msk [vmem:[%s3635_s30 + $0x84] sm:$0xf] %vm2134_vm11, %v2681_v44  ;;  %v2203_v52 = vunpack.c.l.bf16 %v2006_v15  ;;  %v2204_v47 = vunpack.c.h.bf16 %v2006_v15 }
 0x290   : > { %v2277_v54 = vmul.f32 %v2241_v20, %v2205_v45  ;;  %v2278_v60 = vmul.f32 %v2242_v49, %v2206_v51 }
 0x291   : > { %v2275_v59 = vmul.f32 %v2239_v46, %v2203_v52  ;;  %v2276_v1 = vmul.f32 %v2240_v24, %v2204_v47 }
 0x292   : > { %v2392_v3 = vmul.f32 %v2277_v54, %v2277_v54  ;;  %v2346_v53 = vsel %vm590_vm0, %v2277_v54, 0.0  ;;  %v2393_v5 = vmul.f32 %v2278_v60, %v2278_v60  ;;  %v2348_v11 = vsel %vm590_vm0, %v2278_v60, 0.0 }
 0x293   : > { %v2342_v19 = vsel %vm590_vm0, %v2275_v59, 0.0  ;;  %v2390_v48 = vmul.f32 %v2275_v59, %v2275_v59  ;;  %v2391_v62 = vmul.f32 %v2276_v1, %v2276_v1  ;;  %v2344_v61 = vsel %vm590_vm0, %v2276_v1, 0.0 }
 0x294   : > { %v2343_v2 = vadd.f32 %v2342_v19, %v2341_v58  ;;  %v2461_v33 = vsel %vm590_vm0, %v2392_v3, 0.0  ;;  %v2463_v16 = vsel %vm590_vm0, %v2393_v5, 0.0 }
 0x295   : > { %v2457_v50 = vsel %vm590_vm0, %v2390_v48, 0.0  ;;  %v2459_v6 = vsel %vm590_vm0, %v2391_v62, 0.0 }
 0x296   : > { %v2345_v43 = vadd.f32 %v2344_v61, %v2343_v2  ;;  %v2458_v4 = vadd.f32 %v2457_v50, %v2456_v28 }
 0x298   : > { %v2347_v37 = vadd.f32 %v2346_v53, %v2345_v43  ;;  %v2460_v7 = vadd.f32 %v2459_v6, %v2458_v4 }
 0x29a   : > { %v2349_v9 = vadd.f32 %v2348_v11, %v2347_v37  ;;  %v2462_v14 = vadd.f32 %v2461_v33, %v2460_v7 }
 0x29c   : > { %v2350_v55 = vrot.slane %v2349_v9, 4  ;;  %v2464_v57 = vadd.f32 %v2463_v16, %v2462_v14 }
 0x29e   : > { %v2351_v17 = vadd.f32 %v2350_v55, %v2349_v9  ;;  %v2465_v18 = vrot.slane %v2464_v57, 4 }
 0x2a0   : > { %v2352_v0 = vrot.slane %v2351_v17, 2  ;;  %v2466_v12 = vadd.f32 %v2465_v18, %v2464_v57 }
 0x2a2   : > { %v2353_v21 = vadd.f32 %v2352_v0, %v2351_v17  ;;  %v2467_v22 = vrot.slane %v2466_v12, 2 }
 0x2a4   : > { %v2354_v23 = vrot.slane %v2353_v21, 1  ;;  %v2468_v8 = vadd.f32 %v2467_v22, %v2466_v12 }
 0x2a6   : > { %v2355_v56 = vadd.f32 %v2354_v23, %v2353_v21  ;;  %v2469_v25 = vrot.slane %v2468_v8, 1 }
 0x2a8   : > { %2357 = vst.msk [vmem:[%s319_s16] sm:$0x1] %vm2356_vm12, %v2355_v56  ;;  %v2470_v63 = vadd.f32 %v2469_v25, %v2468_v8 }
 0x2aa   : > { %2471 = vst.msk [vmem:[%s322_s29] sm:$0x1] %vm2356_vm12, %v2470_v63 }
 0x2ab PF: > { %s19_s27 = sadd.s32 1, %s2884_s27  }
 0x2ac   : > { %p16_p4 = scmp.ge.s32.totalorder %s19_s27, 4  }
 0x2ae   :  { %18 = sbr.rel (!%p16_p4) target bundleno = 1 (0x1), region = 98 }

// kernel: decoder_block_forward.5
= control target key start
LH: loop header
LB: loop body
LE: loop exit
PB: predicated region body
PF: predicated region fallthrough
CT: control target
= control target key end

     0   :  { %s4185_s24 = smov 0   ;;  %s6144_s0 = inlined_call_operand.vmem [shape: bf16[2,288,8], index: 0, kind: input, shape index: {}]   ;;  %s6145_s1 = inlined_call_operand.vmem [shape: bf16[2,288,4], index: 1, kind: input, shape index: {}]   ;;  %s6146_s2 = inlined_call_operand.vmem [shape: f32[288,8], index: 2, kind: input, shape index: {}]   ;;  %s6147_s3 = inlined_call_operand.vmem [shape: bf16[108,8], index: 3, kind: input, shape index: {}]   ;;  %s6148_s4 = inlined_call_operand.vmem [shape: f32[1,8], index: 4, kind: input, shape index: {}]   ;;  %s6149_s5 = inlined_call_operand.vmem [shape: bf16[2,288,8], index: 5, kind: output, shape index: {0}]   ;;  %s6150_s6 = inlined_call_operand.vmem [shape: f32[2,1,8], index: 6, kind: output, shape index: {1}]   ;;  %s6151_s7 = inlined_call_operand.vmem [shape: f32[2,1,8], index: 7, kind: output, shape index: {2}]  }
   0x1 LB: > { %s3709_s25 = sadd.s32 4294967295, %s4126_s24   ;;  %p3713_p0 = scmp.ge.s32.totalorder %s4126_s24, 1  ;;  %s4126_s24 = sphi %s4185_s24, %s18_s24  }
   0x2   : > { %p252_p1 = scmp.lt.s32.totalorder %s4126_s24, 3 }
   0x4   : > { %p253_p2 = pnand %p3713_p0, %p252_p1 }
   0x6   : > { %256 = sbr.rel (%p253_p2) target bundleno = 1022 (0x3fe), region = 40 }
   0xd   : > { %vm325_vm0 = vcmask 31744   ;;  %p295_p3 = scmp.lt.s32.totalorder %s3709_s25, 1  ;;  %vm317_vm1 = vcmask 64512   ;;  %v6152_v0 = vmov 0.0   ;;  %s4129_s30 = smov 8   ;;  %vm331_vm2 = vcmask 26624  }
   0xe   : > { %326 = vst.msk [vmem:[#allocation3] sm:$0xff] %vm325_vm0, %v6152_v0  ;;  %327 = vst.msk [vmem:[#allocation3 + $0x8] sm:$0xff] %vm325_vm0, %v6152_v0  ;;  %s4130_s11 = smov 12   ;;  %s4131_s12 = smov 20   ;;  %vm2113_vm3 = vcmask 97280   ;;  %vm2150_vm4 = vcmask 162816  }
   0xf   : > { %328 = vst.msk [vmem:[#allocation3 + $0x10] sm:$0xff] %vm325_vm0, %v6152_v0  ;;  %329 = vst.msk [vmem:[#allocation3 + $0x138] sm:$0xff] %vm325_vm0, %v6152_v0  ;;  %s6274_s25 = smov (!%p295_p3, %s3709_s25), 1  ;;  %s4132_s13 = smov 24   ;;  %vm2187_vm5 = vcmask 195584   ;;  %vm2224_vm6 = vcmask 261120  }
  0x10   : > { %330 = vst.msk [vmem:[#allocation3 + $0x140] sm:$0xff] %vm325_vm0, %v6152_v0  ;;  %s4216_s26 = smul.u32 144, %s6274_s25  ;;  %s4133_s14 = smov 32   ;;  %vm2929_vm7 = vcmask 1045504   ;;  %vm323_vm8 = vcmask 59392   ;;  %vm2261_vm9 = vcmask 293888  }
  0x11   : > { %318 = vst.msk [vmem:[#allocation2] sm:$0xff] %vm317_vm1, %v6152_v0  ;;  %319 = vst.msk [vmem:[#allocation2 + $0x8] sm:$0xff] %vm317_vm1, %v6152_v0  ;;  %s4134_s15 = smov 36   ;;  %s4135_s16 = smov 44   ;;  %vm2298_vm10 = vcmask 359424   ;;  %vm2335_vm11 = vcmask 392192  }
  0x12   : > { %320 = vst.msk [vmem:[#allocation2 + $0x10] sm:$0xff] %vm317_vm1, %v6152_v0  ;;  %321 = vst.msk [vmem:[#allocation2 + $0x138] sm:$0xff] %vm317_vm1, %v6152_v0  ;;  %s4222_s29 = scalar_lea.vmem %s6145_s1, %s4216_s26  ;;  %s4249_s10 = scalar_lea.vmem %s6144_s0, %s4216_s26  ;;  %vm6169_vm12 = vcmask 457728   ;;  %vm2409_vm13 = vcmask 490496   ;;  %vm2446_vm14 = vcmask 556032   ;;  %vm2483_vm15 = vcmask 588800  }
  0x13   : > { %322 = vst.msk [vmem:[#allocation2 + $0x140] sm:$0xff] %vm317_vm1, %v6152_v0  ;;  %v3890_v1 = vld [vmem:[%s4222_s29] sm:$0xff]   ;;  %v3978_v2 = vld [vmem:[%s4222_s29 + $0x8] sm:$0xff]   ;;  %v3979_v3 = vld [vmem:[%s4222_s29 + $0x10] sm:$0xff]   ;;  %s4136_s17 = smov 48   ;;  %s4137_s18 = smov 56  }
  0x14   : > { %v3892_v6 = vunpack.c.h.bf16 %v3890_v1  ;;  %v3895_v7 = vunpack.c.l.bf16 %v3978_v2  ;;  %v3896_v8 = vunpack.c.h.bf16 %v3978_v2  ;;  %v3891_v9 = vunpack.c.l.bf16 %v3890_v1  ;;  %v3980_v10 = vld [vmem:[%s4222_s29 + $0x18] sm:$0xff]   ;;  %v3981_v15 = vld [vmem:[%s4222_s29 + $0x20] sm:$0xff]   ;;  %v3982_v16 = vld [vmem:[%s4222_s29 + $0x28] sm:$0xff]   ;;  %s4138_s19 = smov 60   ;;  %s4139_s20 = smov 68  }
  0x15   : > { %v603_v4 = vld [vmem:[#allocation3 + $0x5] sm:$0xff]  ;;  %v3899_v12 = vunpack.c.l.bf16 %v3979_v3  ;;  %v3900_v13 = vunpack.c.h.bf16 %v3979_v3  ;;  %v3903_v14 = vunpack.c.l.bf16 %v3980_v10  ;;  %v3904_v18 = vunpack.c.h.bf16 %v3980_v10  ;;  %v3985_v23 = vld [vmem:[%s4222_s29 + $0x40] sm:$0xff]   ;;  %v3986_v24 = vld [vmem:[%s4222_s29 + $0x48] sm:$0xff]   ;;  %s4140_s21 = smov 72   ;;  %s4141_s22 = smov 80  }
  0x16   : > { %v604_v5 = vld [vmem:[#allocation3 + $0xd] sm:$0xff]  ;;  %v3983_v17 = vld [vmem:[%s4222_s29 + $0x30] sm:$0xff]   ;;  %514 = vst.msk [vmem:[#allocation3 + $0x20] sm:$0xff] %vm325_vm0, %v3892_v6  ;;  %515 = vst.msk [vmem:[#allocation3 + $0x28] sm:$0xff] %vm325_vm0, %v3895_v7  ;;  %v3907_v19 = vunpack.c.l.bf16 %v3981_v15  ;;  %v3908_v20 = vunpack.c.h.bf16 %v3981_v15  ;;  %v3911_v21 = vunpack.c.l.bf16 %v3982_v16  ;;  %v3912_v25 = vunpack.c.h.bf16 %v3982_v16  ;;  %s4142_s8 = smov 84  }
  0x17   : > { %v639_v11 = vpack.c.bf16 %v604_v5, %v603_v4  ;;  %516 = vst.msk [vmem:[#allocation3 + $0x30] sm:$0xff] %vm325_vm0, %v3896_v8  ;;  %513 = vst.msk [vmem:[#allocation3 + $0x18] sm:$0xff] %vm325_vm0, %v3891_v9  ;;  %v3984_v22 = vld [vmem:[%s4222_s29 + $0x38] sm:$0xff]   ;;  %v3915_v26 = vunpack.c.l.bf16 %v3983_v17  ;;  %v3916_v27 = vunpack.c.h.bf16 %v3983_v17  ;;  %v3987_v29 = vld [vmem:[%s4222_s29 + $0x50] sm:$0xff]   ;;  %v3923_v33 = vunpack.c.l.bf16 %v3985_v23 }
  0x18   : > { %517 = vst.msk [vmem:[#allocation3 + $0x38] sm:$0xff] %vm325_vm0, %v3899_v12  ;;  %518 = vst.msk [vmem:[#allocation3 + $0x40] sm:$0xff] %vm325_vm0, %v3900_v13  ;;  %v3919_v28 = vunpack.c.l.bf16 %v3984_v22  ;;  %v3988_v30 = vld [vmem:[%s4222_s29 + $0x58] sm:$0xff]   ;;  %v3989_v31 = vld [vmem:[%s4222_s29 + $0x60] sm:$0xff]   ;;  %v3920_v32 = vunpack.c.h.bf16 %v3984_v22  ;;  %v3924_v34 = vunpack.c.h.bf16 %v3985_v23  ;;  %v3927_v35 = vunpack.c.l.bf16 %v3986_v24 }
  0x19   : > { %1335 = vrot.lane.b32.xlu0 %v639_v11, %s4129_s30  ;;  %519 = vst.msk [vmem:[#allocation3 + $0x48] sm:$0xff] %vm325_vm0, %v3903_v14  ;;  %520 = vst.msk [vmem:[#allocation3 + $0x50] sm:$0xff] %vm325_vm0, %v3904_v18  ;;  %v3990_v36 = vld [vmem:[%s4222_s29 + $0x68] sm:$0xff]   ;;  %v3991_v37 = vld [vmem:[%s4222_s29 + $0x70] sm:$0xff]   ;;  %v3928_v39 = vunpack.c.h.bf16 %v3986_v24  ;;  %v3931_v40 = vunpack.c.l.bf16 %v3987_v29  ;;  %v3932_v41 = vunpack.c.h.bf16 %v3987_v29  ;;  %v3935_v42 = vunpack.c.l.bf16 %v3988_v30 }
  0x1a   : > { %521 = vst.msk [vmem:[#allocation3 + $0x58] sm:$0xff] %vm325_vm0, %v3907_v19  ;;  %522 = vst.msk [vmem:[#allocation3 + $0x60] sm:$0xff] %vm325_vm0, %v3908_v20  ;;  %v3992_v38 = vld [vmem:[%s4222_s29 + $0x78] sm:$0xff]   ;;  %v3993_v43 = vld [vmem:[%s4222_s29 + $0x80] sm:$0xff]   ;;  %v3936_v44 = vunpack.c.h.bf16 %v3988_v30  ;;  %v3939_v45 = vunpack.c.l.bf16 %v3989_v31  ;;  %v3940_v46 = vunpack.c.h.bf16 %v3989_v31  ;;  %v3943_v47 = vunpack.c.l.bf16 %v3990_v36 }
  0x1b   : > { %523 = vst.msk [vmem:[#allocation3 + $0x68] sm:$0xff] %vm325_vm0, %v3911_v21  ;;  %524 = vst.msk [vmem:[#allocation3 + $0x70] sm:$0xff] %vm325_vm0, %v3912_v25  ;;  %v3818_v48 = vld [vmem:[%s4249_s10] sm:$0xff]   ;;  %v3961_v49 = vld [vmem:[%s4249_s10 + $0x8] sm:$0xff]   ;;  %v3944_v50 = vunpack.c.h.bf16 %v3990_v36  ;;  %v3947_v51 = vunpack.c.l.bf16 %v3991_v37  ;;  %v3948_v52 = vunpack.c.h.bf16 %v3991_v37  ;;  %v3951_v53 = vunpack.c.l.bf16 %v3992_v38 }
  0x1c   : > { %525 = vst.msk [vmem:[#allocation3 + $0x78] sm:$0xff] %vm325_vm0, %v3915_v26  ;;  %526 = vst.msk [vmem:[#allocation3 + $0x80] sm:$0xff] %vm325_vm0, %v3916_v27  ;;  %v3962_v54 = vld [vmem:[%s4249_s10 + $0x10] sm:$0xff]   ;;  %v3963_v55 = vld [vmem:[%s4249_s10 + $0x18] sm:$0xff]   ;;  %v3952_v57 = vunpack.c.h.bf16 %v3992_v38  ;;  %v3955_v58 = vunpack.c.l.bf16 %v3993_v43  ;;  %v3956_v59 = vunpack.c.h.bf16 %v3993_v43  ;;  %v3820_v3 = vunpack.c.h.bf16 %v3818_v48 }
  0x1d   : > { %527 = vst.msk [vmem:[#allocation3 + $0x88] sm:$0xff] %vm325_vm0, %v3919_v28  ;;  %528 = vst.msk [vmem:[#allocation3 + $0x90] sm:$0xff] %vm325_vm0, %v3920_v32  ;;  %v4276_v56 = vld [vmem:[%s4249_s10 + $0x20] sm:$0xff]   ;;  %v3965_v60 = vld [vmem:[%s4249_s10 + $0x28] sm:$0xff]   ;;  %v3823_v4 = vunpack.c.l.bf16 %v3961_v49  ;;  %v3824_v5 = vunpack.c.h.bf16 %v3961_v49  ;;  %v3819_v6 = vunpack.c.l.bf16 %v3818_v48  ;;  %v3828_v11 = vunpack.c.h.bf16 %v3962_v54 }
  0x1e   : > { %529 = vst.msk [vmem:[#allocation3 + $0x98] sm:$0xff] %vm325_vm0, %v3923_v33  ;;  %530 = vst.msk [vmem:[#allocation3 + $0xa0] sm:$0xff] %vm325_vm0, %v3924_v34  ;;  %v4284_v61 = vld [vmem:[%s4249_s10 + $0x30] sm:$0xff]   ;;  %v3967_v62 = vld [vmem:[%s4249_s10 + $0x38] sm:$0xff]   ;;  %v3831_v12 = vunpack.c.l.bf16 %v3963_v55  ;;  %v3832_v13 = vunpack.c.h.bf16 %v3963_v55  ;;  %v3827_v17 = vunpack.c.l.bf16 %v3962_v54  ;;  %v3836_v18 = vunpack.c.h.bf16 %v4276_v56 }
  0x1f   : > { %531 = vst.msk [vmem:[#allocation3 + $0xa8] sm:$0xff] %vm325_vm0, %v3927_v35  ;;  %532 = vst.msk [vmem:[#allocation3 + $0xb0] sm:$0xff] %vm325_vm0, %v3928_v39  ;;  %v607_v63 = vld [vmem:[#allocation3 + $0x25] sm:$0xff]  ;;  %v608_v1 = vld [vmem:[#allocation3 + $0x2d] sm:$0xff]  ;;  %v3839_v21 = vunpack.c.l.bf16 %v3965_v60  ;;  %v3840_v22 = vunpack.c.h.bf16 %v3965_v60  ;;  %v3835_v23 = vunpack.c.l.bf16 %v4276_v56  ;;  %v3844_v27 = vunpack.c.h.bf16 %v4284_v61 }
  0x20   : > { %533 = vst.msk [vmem:[#allocation3 + $0xb8] sm:$0xff] %vm325_vm0, %v3931_v40  ;;  %534 = vst.msk [vmem:[#allocation3 + $0xc0] sm:$0xff] %vm325_vm0, %v3932_v41  ;;  %v605_v2 = vld [vmem:[#allocation3 + $0x15] sm:$0xff]  ;;  %v641_v7 = vpack.c.bf16 %v608_v1, %v607_v63  ;;  %v606_v8 = vld [vmem:[#allocation3 + $0x1d] sm:$0xff]  ;;  %v3847_v28 = vunpack.c.l.bf16 %v3967_v62  ;;  %v3848_v31 = vunpack.c.h.bf16 %v3967_v62  ;;  %v3843_v32 = vunpack.c.l.bf16 %v4284_v61 }
  0x21   : > { %535 = vst.msk [vmem:[#allocation3 + $0xc8] sm:$0xff] %vm325_vm0, %v3935_v42  ;;  %536 = vst.msk [vmem:[#allocation3 + $0xd0] sm:$0xff] %vm325_vm0, %v3936_v44  ;;  %v609_v9 = vld [vmem:[#allocation3 + $0x35] sm:$0xff]  ;;  %v610_v10 = vld [vmem:[#allocation3 + $0x3d] sm:$0xff]  ;;  %v640_v14 = vpack.c.bf16 %v606_v8, %v605_v2 }
  0x22   : > { %537 = vst.msk [vmem:[#allocation3 + $0xd8] sm:$0xff] %vm325_vm0, %v3939_v45  ;;  %538 = vst.msk [vmem:[#allocation3 + $0xe0] sm:$0xff] %vm325_vm0, %v3940_v46  ;;  %v611_v15 = vld [vmem:[#allocation3 + $0x45] sm:$0xff]  ;;  %v612_v16 = vld [vmem:[#allocation3 + $0x4d] sm:$0xff]  ;;  %1339 = vrot.lane.b32.xlu1 %v641_v7, %s4129_s30  ;;  %v642_v20 = vpack.c.bf16 %v610_v10, %v609_v9 }
  0x23   : > { %539 = vst.msk [vmem:[#allocation3 + $0xe8] sm:$0xff] %vm325_vm0, %v3943_v47  ;;  %540 = vst.msk [vmem:[#allocation3 + $0xf0] sm:$0xff] %vm325_vm0, %v3944_v50  ;;  %v3968_v19 = vld [vmem:[%s4249_s10 + $0x40] sm:$0xff]   ;;  %1337 = vrot.lane.b32.xlu0 %v640_v14, %s4129_s30  ;;  %v643_v24 = vpack.c.bf16 %v612_v16, %v611_v15  ;;  %v614_v26 = vld [vmem:[#allocation3 + $0x5d] sm:$0xff] }
  0x24   : > { %541 = vst.msk [vmem:[#allocation3 + $0xf8] sm:$0xff] %vm325_vm0, %v3947_v51  ;;  %542 = vst.msk [vmem:[#allocation3 + $0x100] sm:$0xff] %vm325_vm0, %v3948_v52  ;;  %v613_v25 = vld [vmem:[#allocation3 + $0x55] sm:$0xff]  ;;  %v615_v29 = vld [vmem:[#allocation3 + $0x65] sm:$0xff]  ;;  %v3852_v33 = vunpack.c.h.bf16 %v3968_v19  ;;  %v3851_v34 = vunpack.c.l.bf16 %v3968_v19 }
  0x25   : > { %543 = vst.msk [vmem:[#allocation3 + $0x108] sm:$0xff] %vm325_vm0, %v3951_v53  ;;  %544 = vst.msk [vmem:[#allocation3 + $0x110] sm:$0xff] %vm325_vm0, %v3952_v57  ;;  %v616_v30 = vld [vmem:[#allocation3 + $0x6d] sm:$0xff]  ;;  %v644_v35 = vpack.c.bf16 %v614_v26, %v613_v25  ;;  %v617_v37 = vld [vmem:[#allocation3 + $0x75] sm:$0xff] }
  0x26   : > { %545 = vst.msk [vmem:[#allocation3 + $0x118] sm:$0xff] %vm325_vm0, %v3955_v58  ;;  %546 = vst.msk [vmem:[#allocation3 + $0x120] sm:$0xff] %vm325_vm0, %v3956_v59  ;;  %1341 = vrot.lane.b32.xlu1 %v642_v20, %s4129_s30  ;;  %v645_v36 = vpack.c.bf16 %v616_v30, %v615_v29  ;;  %v618_v38 = vld [vmem:[#allocation3 + $0x7d] sm:$0xff]  ;;  %v619_v39 = vld [vmem:[#allocation3 + $0x85] sm:$0xff] }
  0x27   : > { %406 = vst.msk [vmem:[#allocation2 + $0x20] sm:$0xff] %vm317_vm1, %v3820_v3  ;;  %407 = vst.msk [vmem:[#allocation2 + $0x28] sm:$0xff] %vm317_vm1, %v3823_v4  ;;  %1343 = vrot.lane.b32.xlu0 %v643_v24, %s4129_s30  ;;  %v620_v40 = vld [vmem:[#allocation3 + $0x8d] sm:$0xff]  ;;  %v646_v41 = vpack.c.bf16 %v618_v38, %v617_v37  ;;  %v621_v43 = vld [vmem:[#allocation3 + $0x95] sm:$0xff] }
  0x28   : > { %408 = vst.msk [vmem:[#allocation2 + $0x30] sm:$0xff] %vm317_vm1, %v3824_v5  ;;  %405 = vst.msk [vmem:[#allocation2 + $0x18] sm:$0xff] %vm317_vm1, %v3819_v6  ;;  %v647_v42 = vpack.c.bf16 %v620_v40, %v619_v39  ;;  %v622_v44 = vld [vmem:[#allocation3 + $0x9d] sm:$0xff]  ;;  %v623_v45 = vld [vmem:[#allocation3 + $0xa5] sm:$0xff] }
  0x29   : > { %410 = vst.msk [vmem:[#allocation2 + $0x40] sm:$0xff] %vm317_vm1, %v3828_v11  ;;  %411 = vst.msk [vmem:[#allocation2 + $0x48] sm:$0xff] %vm317_vm1, %v3831_v12  ;;  %v624_v46 = vld [vmem:[#allocation3 + $0xad] sm:$0xff]  ;;  %v625_v47 = vld [vmem:[#allocation3 + $0xb5] sm:$0xff]  ;;  %v648_v48 = vpack.c.bf16 %v622_v44, %v621_v43 }
  0x2a   : > { %412 = vst.msk [vmem:[#allocation2 + $0x50] sm:$0xff] %vm317_vm1, %v3832_v13  ;;  %409 = vst.msk [vmem:[#allocation2 + $0x38] sm:$0xff] %vm317_vm1, %v3827_v17  ;;  %1345 = vrot.lane.b32.xlu1 %v644_v35, %s4129_s30  ;;  %v626_v49 = vld [vmem:[#allocation3 + $0xbd] sm:$0xff]  ;;  %v627_v50 = vld [vmem:[#allocation3 + $0xc5] sm:$0xff]  ;;  %v649_v52 = vpack.c.bf16 %v624_v46, %v623_v45 }
  0x2b   : > { %414 = vst.msk [vmem:[#allocation2 + $0x60] sm:$0xff] %vm317_vm1, %v3836_v18  ;;  %415 = vst.msk [vmem:[#allocation2 + $0x68] sm:$0xff] %vm317_vm1, %v3839_v21  ;;  %1347 = vrot.lane.b32.xlu0 %v645_v36, %s4129_s30  ;;  %v628_v51 = vld [vmem:[#allocation3 + $0xcd] sm:$0xff]  ;;  %v3969_v53 = vld [vmem:[%s4249_s10 + $0x48] sm:$0xff]   ;;  %v650_v57 = vpack.c.bf16 %v626_v49, %v625_v47 }
  0x2c   : > { %416 = vst.msk [vmem:[#allocation2 + $0x70] sm:$0xff] %vm317_vm1, %v3840_v22  ;;  %413 = vst.msk [vmem:[#allocation2 + $0x58] sm:$0xff] %vm317_vm1, %v3835_v23  ;;  %v3855_v54 = vunpack.c.l.bf16 %v3969_v53  ;;  %v3856_v55 = vunpack.c.h.bf16 %v3969_v53  ;;  %v3970_v56 = vld [vmem:[%s4249_s10 + $0x50] sm:$0xff]   ;;  %v651_v58 = vpack.c.bf16 %v628_v51, %v627_v50  ;;  %v3971_v60 = vld [vmem:[%s4249_s10 + $0x58] sm:$0xff]  }
  0x2d   : > { %418 = vst.msk [vmem:[#allocation2 + $0x80] sm:$0xff] %vm317_vm1, %v3844_v27  ;;  %419 = vst.msk [vmem:[#allocation2 + $0x88] sm:$0xff] %vm317_vm1, %v3847_v28  ;;  %v3860_v59 = vunpack.c.h.bf16 %v3970_v56  ;;  %v3859_v61 = vunpack.c.l.bf16 %v3970_v56  ;;  %v3972_v62 = vld [vmem:[%s4249_s10 + $0x60] sm:$0xff]   ;;  %v3973_v63 = vld [vmem:[%s4249_s10 + $0x68] sm:$0xff]   ;;  %v3863_v1 = vunpack.c.l.bf16 %v3971_v60  ;;  %v3864_v2 = vunpack.c.h.bf16 %v3971_v60 }
  0x2e   : > { %420 = vst.msk [vmem:[#allocation2 + $0x90] sm:$0xff] %vm317_vm1, %v3848_v31  ;;  %417 = vst.msk [vmem:[#allocation2 + $0x78] sm:$0xff] %vm317_vm1, %v3843_v32  ;;  %1349 = vrot.lane.b32.xlu1 %v646_v41, %s4129_s30  ;;  %v3868_v3 = vunpack.c.h.bf16 %v3972_v62  ;;  %v3871_v4 = vunpack.c.l.bf16 %v3973_v63  ;;  %v3974_v5 = vld [vmem:[%s4249_s10 + $0x70] sm:$0xff]   ;;  %v3975_v6 = vld [vmem:[%s4249_s10 + $0x78] sm:$0xff]   ;;  %v3872_v9 = vunpack.c.h.bf16 %v3973_v63  ;;  %v3867_v10 = vunpack.c.l.bf16 %v3972_v62 }
  0x2f   : > { %422 = vst.msk [vmem:[#allocation2 + $0xa0] sm:$0xff] %vm317_vm1, %v3852_v33  ;;  %421 = vst.msk [vmem:[#allocation2 + $0x98] sm:$0xff] %vm317_vm1, %v3851_v34  ;;  %1351 = vrot.lane.b32.xlu0 %v647_v42, %s4129_s30  ;;  %v629_v7 = vld [vmem:[#allocation3 + $0xd5] sm:$0xff]  ;;  %v630_v8 = vld [vmem:[#allocation3 + $0xdd] sm:$0xff]  ;;  %v3876_v11 = vunpack.c.h.bf16 %v3974_v5  ;;  %v3879_v12 = vunpack.c.l.bf16 %v3975_v6  ;;  %v3880_v16 = vunpack.c.h.bf16 %v3975_v6  ;;  %v3875_v17 = vunpack.c.l.bf16 %v3974_v5 }
  0x30   : > { %423 = vst.msk [vmem:[#allocation2 + $0xa8] sm:$0xff] %vm317_vm1, %v3855_v54  ;;  %424 = vst.msk [vmem:[#allocation2 + $0xb0] sm:$0xff] %vm317_vm1, %v3856_v55  ;;  %v3976_v13 = vld [vmem:[%s4249_s10 + $0x80] sm:$0xff]   ;;  %v631_v14 = vld [vmem:[#allocation3 + $0xe5] sm:$0xff]  ;;  %v652_v20 = vpack.c.bf16 %v630_v8, %v629_v7 }
  0x31   : > { %426 = vst.msk [vmem:[#allocation2 + $0xc0] sm:$0xff] %vm317_vm1, %v3860_v59  ;;  %425 = vst.msk [vmem:[#allocation2 + $0xb8] sm:$0xff] %vm317_vm1, %v3859_v61  ;;  %v632_v15 = vld [vmem:[#allocation3 + $0xed] sm:$0xff]  ;;  %v3883_v18 = vunpack.c.l.bf16 %v3976_v13  ;;  %v3884_v19 = vunpack.c.h.bf16 %v3976_v13  ;;  %v633_v22 = vld [vmem:[#allocation3 + $0xf5] sm:$0xff] }
  0x32   : > { %1353 = vrot.lane.b32.xlu1 %v648_v48, %s4129_s30  ;;  %427 = vst.msk [vmem:[#allocation2 + $0xc8] sm:$0xff] %vm317_vm1, %v3863_v1  ;;  %428 = vst.msk [vmem:[#allocation2 + $0xd0] sm:$0xff] %vm317_vm1, %v3864_v2  ;;  %v653_v21 = vpack.c.bf16 %v632_v15, %v631_v14  ;;  %v634_v23 = vld [vmem:[#allocation3 + $0xfd] sm:$0xff]  ;;  %v635_v24 = vld [vmem:[#allocation3 + $0x105] sm:$0xff] }
  0x33   : > { %1355 = vrot.lane.b32.xlu0 %v649_v52, %s4129_s30  ;;  %430 = vst.msk [vmem:[#allocation2 + $0xe0] sm:$0xff] %vm317_vm1, %v3868_v3  ;;  %431 = vst.msk [vmem:[#allocation2 + $0xe8] sm:$0xff] %vm317_vm1, %v3871_v4  ;;  %v636_v25 = vld [vmem:[#allocation3 + $0x10d] sm:$0xff]  ;;  %v654_v26 = vpack.c.bf16 %v634_v23, %v633_v22  ;;  %v637_v28 = vld [vmem:[#allocation3 + $0x115] sm:$0xff] }
  0x34   : > { %432 = vst.msk [vmem:[#allocation2 + $0xf0] sm:$0xff] %vm317_vm1, %v3872_v9  ;;  %429 = vst.msk [vmem:[#allocation2 + $0xd8] sm:$0xff] %vm317_vm1, %v3867_v10  ;;  %v655_v27 = vpack.c.bf16 %v636_v25, %v635_v24  ;;  %v638_v29 = vld [vmem:[#allocation3 + $0x11d] sm:$0xff]  ;;  %v659_v34 = vld [vmem:[#allocation2 + $0x16] sm:$0xff] }
  0x35   : > { %434 = vst.msk [vmem:[#allocation2 + $0x100] sm:$0xff] %vm317_vm1, %v3876_v11  ;;  %435 = vst.msk [vmem:[#allocation2 + $0x108] sm:$0xff] %vm317_vm1, %v3879_v12  ;;  %v657_v30 = vld [vmem:[#allocation2 + $0x6] sm:$0xff]  ;;  %v658_v31 = vld [vmem:[#allocation2 + $0xe] sm:$0xff]  ;;  %v656_v32 = vpack.c.bf16 %v638_v29, %v637_v28 }
  0x36   : > { %1357 = vrot.lane.b32.xlu1 %v650_v57, %s4129_s30  ;;  %436 = vst.msk [vmem:[#allocation2 + $0x110] sm:$0xff] %vm317_vm1, %v3880_v16  ;;  %433 = vst.msk [vmem:[#allocation2 + $0xf8] sm:$0xff] %vm317_vm1, %v3875_v17  ;;  %v693_v33 = vpack.c.bf16 %v658_v31, %v657_v30  ;;  %v660_v35 = vld [vmem:[#allocation2 + $0x1e] sm:$0xff]  ;;  %v661_v36 = vld [vmem:[#allocation2 + $0x26] sm:$0xff] }
  0x37   : > { %437 = vst.msk [vmem:[#allocation2 + $0x118] sm:$0xff] %vm317_vm1, %v3883_v18  ;;  %1359 = vrot.lane.b32.xlu0 %v651_v58, %s4129_s30  ;;  %438 = vst.msk [vmem:[#allocation2 + $0x120] sm:$0xff] %vm317_vm1, %v3884_v19  ;;  %v662_v37 = vld [vmem:[#allocation2 + $0x2e] sm:$0xff]  ;;  %v694_v38 = vpack.c.bf16 %v660_v35, %v659_v34  ;;  %v663_v40 = vld [vmem:[#allocation2 + $0x36] sm:$0xff] }
  0x38   : > { %v695_v39 = vpack.c.bf16 %v662_v37, %v661_v36  ;;  %v664_v41 = vld [vmem:[#allocation2 + $0x3e] sm:$0xff]  ;;  %v665_v42 = vld [vmem:[#allocation2 + $0x46] sm:$0xff]  ;;  %v666_v43 = vld [vmem:[#allocation2 + $0x4e] sm:$0xff] }
  0x39   : > { %v696_v44 = vpack.c.bf16 %v664_v41, %v663_v40  ;;  %v697_v45 = vpack.c.bf16 %v666_v43, %v665_v42  ;;  %v667_v46 = vld [vmem:[#allocation2 + $0x56] sm:$0xff]  ;;  %v668_v47 = vld [vmem:[#allocation2 + $0x5e] sm:$0xff]  ;;  %v669_v48 = vld [vmem:[#allocation2 + $0x66] sm:$0xff] }
  0x3a   : > { %1361 = vrot.lane.b32.xlu1 %v652_v20, %s4129_s30  ;;  %v670_v49 = vld [vmem:[#allocation2 + $0x6e] sm:$0xff]  ;;  %v698_v50 = vpack.c.bf16 %v668_v47, %v667_v46  ;;  %v671_v52 = vld [vmem:[#allocation2 + $0x76] sm:$0xff]  ;;  %v672_v53 = vld [vmem:[#allocation2 + $0x7e] sm:$0xff] }
  0x3b   : > { %1363 = vrot.lane.b32.xlu0 %v653_v21, %s4129_s30  ;;  %v699_v51 = vpack.c.bf16 %v670_v49, %v669_v48  ;;  %v673_v54 = vld [vmem:[#allocation2 + $0x86] sm:$0xff]  ;;  %v674_v55 = vld [vmem:[#allocation2 + $0x8e] sm:$0xff]  ;;  %v700_v56 = vpack.c.bf16 %v672_v53, %v671_v52  ;;  %v675_v58 = vld [vmem:[#allocation2 + $0x96] sm:$0xff] }
  0x3c   : > { %v701_v57 = vpack.c.bf16 %v674_v55, %v673_v54  ;;  %v676_v59 = vld [vmem:[#allocation2 + $0x9e] sm:$0xff]  ;;  %v677_v60 = vld [vmem:[#allocation2 + $0xa6] sm:$0xff]  ;;  %v678_v61 = vld [vmem:[#allocation2 + $0xae] sm:$0xff] }
  0x3d   : > { %v702_v62 = vpack.c.bf16 %v676_v59, %v675_v58  ;;  %v703_v63 = vpack.c.bf16 %v678_v61, %v677_v60  ;;  %v679_v1 = vld [vmem:[#allocation2 + $0xb6] sm:$0xff]  ;;  %v680_v2 = vld [vmem:[#allocation2 + $0xbe] sm:$0xff]  ;;  %v681_v3 = vld [vmem:[#allocation2 + $0xc6] sm:$0xff] }
  0x3e   : > { %1365 = vrot.lane.b32.xlu1 %v654_v26, %s4129_s30  ;;  %v682_v4 = vld [vmem:[#allocation2 + $0xce] sm:$0xff]  ;;  %v704_v5 = vpack.c.bf16 %v680_v2, %v679_v1  ;;  %v683_v7 = vld [vmem:[#allocation2 + $0xd6] sm:$0xff]  ;;  %v684_v8 = vld [vmem:[#allocation2 + $0xde] sm:$0xff] }
  0x3f   : > { %1367 = vrot.lane.b32.xlu0 %v655_v27, %s4129_s30  ;;  %v705_v6 = vpack.c.bf16 %v682_v4, %v681_v3  ;;  %v685_v9 = vld [vmem:[#allocation2 + $0xe6] sm:$0xff]  ;;  %v686_v10 = vld [vmem:[#allocation2 + $0xee] sm:$0xff]  ;;  %v706_v11 = vpack.c.bf16 %v684_v8, %v683_v7  ;;  %v687_v13 = vld [vmem:[#allocation2 + $0xf6] sm:$0xff] }
  0x40   : > { %v707_v12 = vpack.c.bf16 %v686_v10, %v685_v9  ;;  %v688_v14 = vld [vmem:[#allocation2 + $0xfe] sm:$0xff]  ;;  %v689_v15 = vld [vmem:[#allocation2 + $0x106] sm:$0xff]  ;;  %v690_v16 = vld [vmem:[#allocation2 + $0x10e] sm:$0xff] }
  0x41   : > { %v708_v17 = vpack.c.bf16 %v688_v14, %v687_v13  ;;  %v709_v18 = vpack.c.bf16 %v690_v16, %v689_v15  ;;  %v691_v19 = vld [vmem:[#allocation2 + $0x116] sm:$0xff]  ;;  %v692_v20 = vld [vmem:[#allocation2 + $0x11e] sm:$0xff]  ;;  %v713_v25 = vld [vmem:[#allocation3 + $0x16] sm:$0xff] }
  0x42   : > { %1369 = vrot.lane.b32.xlu1 %v656_v32, %s4129_s30  ;;  %v711_v21 = vld [vmem:[#allocation3 + $0x6] sm:$0xff]  ;;  %v712_v22 = vld [vmem:[#allocation3 + $0xe] sm:$0xff]  ;;  %v710_v23 = vpack.c.bf16 %v692_v20, %v691_v19  ;;  %v714_v26 = vld [vmem:[#allocation3 + $0x1e] sm:$0xff] }
  0x43   : > { %1389 = vrot.lane.b32.xlu0 %v693_v33, %s4130_s11  ;;  %v747_v24 = vpack.c.bf16 %v712_v22, %v711_v21  ;;  %v715_v27 = vld [vmem:[#allocation3 + $0x26] sm:$0xff]  ;;  %v716_v28 = vld [vmem:[#allocation3 + $0x2e] sm:$0xff]  ;;  %v748_v29 = vpack.c.bf16 %v714_v26, %v713_v25  ;;  %v717_v31 = vld [vmem:[#allocation3 + $0x36] sm:$0xff] }
  0x44   : > { %v749_v30 = vpack.c.bf16 %v716_v28, %v715_v27  ;;  %v718_v32 = vld [vmem:[#allocation3 + $0x3e] sm:$0xff]  ;;  %v719_v33 = vld [vmem:[#allocation3 + $0x46] sm:$0xff]  ;;  %v720_v34 = vld [vmem:[#allocation3 + $0x4e] sm:$0xff] }
  0x45   : > { %v750_v35 = vpack.c.bf16 %v718_v32, %v717_v31  ;;  %v751_v36 = vpack.c.bf16 %v720_v34, %v719_v33  ;;  %v721_v37 = vld [vmem:[#allocation3 + $0x56] sm:$0xff]  ;;  %v724_v40 = vld [vmem:[#allocation3 + $0x6e] sm:$0xff]  ;;  %v766_v13 = vld [vmem:[#allocation2 + $0xf] sm:$0xff] }
  0x46   : > { %1391 = vrot.lane.b32.xlu1 %v694_v38, %s4130_s11  ;;  %v722_v38 = vld [vmem:[#allocation3 + $0x5e] sm:$0xff]  ;;  %v725_v43 = vld [vmem:[#allocation3 + $0x76] sm:$0xff]  ;;  %v728_v46 = vld [vmem:[#allocation3 + $0x8e] sm:$0xff] }
  0x47   : > { %1393 = vrot.lane.b32.xlu0 %v695_v39, %s4130_s11  ;;  %v723_v39 = vld [vmem:[#allocation3 + $0x66] sm:$0xff]  ;;  %v752_v41 = vpack.c.bf16 %v722_v38, %v721_v37  ;;  %v729_v49 = vld [vmem:[#allocation3 + $0x96] sm:$0xff]  ;;  %v732_v52 = vld [vmem:[#allocation3 + $0xae] sm:$0xff] }
  0x48   : > { %v753_v42 = vpack.c.bf16 %v724_v40, %v723_v39  ;;  %v733_v55 = vld [vmem:[#allocation3 + $0xb6] sm:$0xff]  ;;  %v736_v58 = vld [vmem:[#allocation3 + $0xce] sm:$0xff]  ;;  %v770_v19 = vld [vmem:[#allocation2 + $0x2f] sm:$0xff] }
  0x49   : > { %v737_v61 = vld [vmem:[#allocation3 + $0xd6] sm:$0xff]  ;;  %v740_v1 = vld [vmem:[#allocation3 + $0xee] sm:$0xff]  ;;  %v774_v25 = vld [vmem:[#allocation2 + $0x4f] sm:$0xff] }
  0x4a   : > { %1395 = vrot.lane.b32.xlu1 %v696_v44, %s4130_s11  ;;  %v726_v44 = vld [vmem:[#allocation3 + $0x7e] sm:$0xff]  ;;  %v741_v4 = vld [vmem:[#allocation3 + $0xf6] sm:$0xff]  ;;  %v744_v7 = vld [vmem:[#allocation3 + $0x10e] sm:$0xff] }
  0x4b   : > { %1397 = vrot.lane.b32.xlu0 %v697_v45, %s4130_s11  ;;  %v727_v45 = vld [vmem:[#allocation3 + $0x86] sm:$0xff]  ;;  %v754_v47 = vpack.c.bf16 %v726_v44, %v725_v43  ;;  %v745_v10 = vld [vmem:[#allocation3 + $0x116] sm:$0xff] }
  0x4c   : > { %v755_v48 = vpack.c.bf16 %v728_v46, %v727_v45  ;;  %v767_v16 = vld [vmem:[#allocation2 + $0x17] sm:$0xff]  ;;  %v777_v31 = vld [vmem:[#allocation2 + $0x67] sm:$0xff]  ;;  %v778_v32 = vld [vmem:[#allocation2 + $0x6f] sm:$0xff] }
  0x4d   : > { %v771_v22 = vld [vmem:[#allocation2 + $0x37] sm:$0xff]  ;;  %v4415_v34 = vpack.c.bf16 %v778_v32, %v777_v31  ;;  %v781_v38 = vld [vmem:[#allocation2 + $0x87] sm:$0xff]  ;;  %v782_v39 = vld [vmem:[#allocation2 + $0x8f] sm:$0xff] }
  0x4e   : > { %1399 = vrot.lane.b32.xlu1 %v698_v50, %s4130_s11  ;;  %v730_v50 = vld [vmem:[#allocation3 + $0x9e] sm:$0xff]  ;;  %v783_v43 = vld [vmem:[#allocation2 + $0x97] sm:$0xff]  ;;  %v784_v44 = vld [vmem:[#allocation2 + $0x9f] sm:$0xff] }
  0x4f   : > { %1401 = vrot.lane.b32.xlu0 %v699_v51, %s4130_s11  ;;  %v731_v51 = vld [vmem:[#allocation3 + $0xa6] sm:$0xff]  ;;  %v756_v53 = vpack.c.bf16 %v730_v50, %v729_v49  ;;  %v785_v46 = vld [vmem:[#allocation2 + $0xa7] sm:$0xff]  ;;  %v4435_v49 = vpack.c.bf16 %v784_v44, %v783_v43  ;;  %v824_v31 = vld [vmem:[#allocation3 + $0x2f] sm:$0xff] }
  0x50   : > { %v757_v54 = vpack.c.bf16 %v732_v52, %v731_v51  ;;  %v787_v51 = vld [vmem:[#allocation2 + $0xb7] sm:$0xff]  ;;  %v788_v52 = vld [vmem:[#allocation2 + $0xbf] sm:$0xff] }
  0x51   : > { %v827_v44 = vld [vmem:[#allocation3 + $0x47] sm:$0xff]  ;;  %v848_v0 = vld [vmem:[#allocation3 + $0xef] sm:$0xff] }
  0x52   : > { %1403 = vrot.lane.b32.xlu1 %v700_v56, %s4130_s11  ;;  %v734_v56 = vld [vmem:[#allocation3 + $0xbe] sm:$0xff] }
  0x53   : > { %1405 = vrot.lane.b32.xlu0 %v701_v57, %s4130_s11  ;;  %v735_v57 = vld [vmem:[#allocation3 + $0xc6] sm:$0xff]  ;;  %v758_v59 = vpack.c.bf16 %v734_v56, %v733_v55 }
  0x54   : > { %v759_v60 = vpack.c.bf16 %v736_v58, %v735_v57  ;;  %v790_v55 = vld [vmem:[#allocation2 + $0xcf] sm:$0xff]  ;;  %v4447_v57 = vpack.c.bf16 %v788_v52, %v787_v51 }
  0x55   : > { %v4450_v58 = vld [vmem:[%s4222_s29 + $0x88] sm:$0xff]  }
  0x56   : > { %1407 = vrot.lane.b32.xlu1 %v702_v62, %s4130_s11  ;;  %v738_v62 = vld [vmem:[#allocation3 + $0xde] sm:$0xff] }
  0x57   : > { %1409 = vrot.lane.b32.xlu0 %v703_v63, %s4130_s11  ;;  %v739_v63 = vld [vmem:[#allocation3 + $0xe6] sm:$0xff]  ;;  %v760_v2 = vpack.c.bf16 %v738_v62, %v737_v61  ;;  %v792_v61 = vld [vmem:[#allocation2 + $0xdf] sm:$0xff]  ;;  %v3959_v62 = vunpack.c.l.bf16 %v4450_v58 }
  0x58   : > { %v761_v3 = vpack.c.bf16 %v740_v1, %v739_v63  ;;  %v793_v1 = vld [vmem:[#allocation2 + $0xe7] sm:$0xff] }
  0x59   : > { %547 = vst.msk [vmem:[#allocation3 + $0x128] sm:$0xff] %vm325_vm0, %v3959_v62  ;;  %v832_v62 = vld [vmem:[#allocation3 + $0x6f] sm:$0xff] }
  0x5a   : > { %1411 = vrot.lane.b32.xlu1 %v704_v5, %s4130_s11  ;;  %v742_v5 = vld [vmem:[#allocation3 + $0xfe] sm:$0xff] }
  0x5b   : > { %1413 = vrot.lane.b32.xlu0 %v705_v6, %s4130_s11  ;;  %v743_v6 = vld [vmem:[#allocation3 + $0x106] sm:$0xff]  ;;  %v762_v8 = vpack.c.bf16 %v742_v5, %v741_v4 }
  0x5c   : > { %v763_v9 = vpack.c.bf16 %v744_v7, %v743_v6  ;;  %v795_v6 = vld [vmem:[#allocation2 + $0xf7] sm:$0xff]  ;;  %v796_v7 = vld [vmem:[#allocation2 + $0xff] sm:$0xff] }
  0x5e   : > { %1415 = vrot.lane.b32.xlu1 %v706_v11, %s4130_s11  ;;  %v746_v11 = vld [vmem:[#allocation3 + $0x11e] sm:$0xff] }
  0x5f   : > { %1417 = vrot.lane.b32.xlu0 %v707_v12, %s4130_s11  ;;  %v765_v12 = vld [vmem:[#allocation2 + $0x7] sm:$0xff]  ;;  %v764_v14 = vpack.c.bf16 %v746_v11, %v745_v10  ;;  %v798_v10 = vld [vmem:[#allocation2 + $0x10f] sm:$0xff] }
  0x60   : > { %v801_v15 = vpack.c.bf16 %v766_v13, %v765_v12  ;;  %v4476_v12 = vpack.c.bf16 %v796_v7, %v795_v6  ;;  %v833_v7 = vld [vmem:[#allocation3 + $0x77] sm:$0xff] }
  0x62   : > { %1419 = vrot.lane.b32.xlu1 %v708_v17, %s4130_s11  ;;  %v768_v17 = vld [vmem:[#allocation2 + $0x1f] sm:$0xff]  ;;  %6174 = vst [vmem:[#allocation8_spill] sm:$0xff] %v4476_v12 }
  0x63   : > { %1421 = vrot.lane.b32.xlu0 %v709_v18, %s4130_s11  ;;  %v769_v18 = vld [vmem:[#allocation2 + $0x27] sm:$0xff]  ;;  %v4394_v20 = vpack.c.bf16 %v768_v17, %v767_v16  ;;  %v819_v17 = vld [vmem:[#allocation3 + $0x7] sm:$0xff] }
  0x64   : > { %v4397_v21 = vpack.c.bf16 %v770_v19, %v769_v18  ;;  %v820_v18 = vld [vmem:[#allocation3 + $0xf] sm:$0xff] }
  0x66   : > { %1423 = vrot.lane.b32.xlu1 %v710_v23, %s4130_s11  ;;  %v772_v23 = vld [vmem:[#allocation2 + $0x3f] sm:$0xff] }
  0x67   : > { %1443 = vrot.lane.b32.xlu0 %v747_v24, %s4131_s12  ;;  %v773_v24 = vld [vmem:[#allocation2 + $0x47] sm:$0xff]  ;;  %v4401_v26 = vpack.c.bf16 %v772_v23, %v771_v22  ;;  %v855_v23 = vpack.c.bf16 %v820_v18, %v819_v17 }
  0x68   : > { %v4407_v28 = vpack.c.bf16 %v774_v25, %v773_v24  ;;  %v821_v24 = vld [vmem:[#allocation3 + $0x17] sm:$0xff]  ;;  %v822_v25 = vld [vmem:[#allocation3 + $0x1f] sm:$0xff] }
  0x6a   : > { %1445 = vrot.lane.b32.xlu1 %v748_v29, %s4131_s12  ;;  %v775_v29 = vld [vmem:[#allocation2 + $0x57] sm:$0xff] }
  0x6b   : > { %1447 = vrot.lane.b32.xlu0 %v749_v30, %s4131_s12  ;;  %v776_v30 = vld [vmem:[#allocation2 + $0x5f] sm:$0xff] }
  0x6c   : > { %v4411_v33 = vpack.c.bf16 %v776_v30, %v775_v29  ;;  %v823_v30 = vld [vmem:[#allocation3 + $0x27] sm:$0xff] }
  0x6e   : > { %1449 = vrot.lane.b32.xlu1 %v750_v35, %s4131_s12  ;;  %v779_v35 = vld [vmem:[#allocation2 + $0x77] sm:$0xff] }
  0x6f   : > { %1451 = vrot.lane.b32.xlu0 %v751_v36, %s4131_s12  ;;  %v780_v36 = vld [vmem:[#allocation2 + $0x7f] sm:$0xff] }
  0x72   : > { %1453 = vrot.lane.b32.xlu1 %v752_v41, %s4131_s12  ;;  %v4423_v41 = vpack.c.bf16 %v780_v36, %v779_v35  ;;  %v4498_v35 = vpack.c.bf16 %v822_v25, %v821_v24  ;;  %v4501_v36 = vpack.c.bf16 %v824_v31, %v823_v30  ;;  %v837_v24 = vld [vmem:[#allocation3 + $0x97] sm:$0xff]  ;;  %v838_v25 = vld [vmem:[#allocation3 + $0x9f] sm:$0xff]  ;;  %v839_v31 = vld [vmem:[#allocation3 + $0xa7] sm:$0xff] }
  0x73   : > { %1455 = vrot.lane.b32.xlu0 %v753_v42, %s4131_s12  ;;  %v4427_v42 = vpack.c.bf16 %v782_v39, %v781_v38  ;;  %v825_v38 = vld [vmem:[#allocation3 + $0x37] sm:$0xff]  ;;  %v826_v39 = vld [vmem:[#allocation3 + $0x3f] sm:$0xff] }
  0x74   : > { %v4509_v51 = vpack.c.bf16 %v826_v39, %v825_v38  ;;  %v840_v38 = vld [vmem:[#allocation3 + $0xaf] sm:$0xff] }
  0x76   : > { %1457 = vrot.lane.b32.xlu1 %v754_v47, %s4131_s12  ;;  %v786_v47 = vld [vmem:[#allocation2 + $0xaf] sm:$0xff] }
  0x77   : > { %1459 = vrot.lane.b32.xlu0 %v755_v48, %s4131_s12  ;;  %v4439_v50 = vpack.c.bf16 %v786_v47, %v785_v46  ;;  %v828_v46 = vld [vmem:[#allocation3 + $0x4f] sm:$0xff] }
  0x78   : > { %v4513_v52 = vpack.c.bf16 %v828_v46, %v827_v44  ;;  %v4545_v44 = vpack.c.bf16 %v838_v25, %v837_v24  ;;  %v4549_v46 = vpack.c.bf16 %v840_v38, %v839_v31  ;;  %v845_v24 = vld [vmem:[#allocation3 + $0xd7] sm:$0xff]  ;;  %v846_v25 = vld [vmem:[#allocation3 + $0xdf] sm:$0xff]  ;;  %v847_v38 = vld [vmem:[#allocation3 + $0xe7] sm:$0xff] }
  0x7a   : > { %1461 = vrot.lane.b32.xlu1 %v756_v53, %s4131_s12  ;;  %6184 = vst [vmem:[#allocation18_spill] sm:$0xff] %v4545_v44  ;;  %6185 = vst [vmem:[#allocation19_spill] sm:$0xff] %v4549_v46 }
  0x7b   : > { %1463 = vrot.lane.b32.xlu0 %v757_v54, %s4131_s12  ;;  %v789_v54 = vld [vmem:[#allocation2 + $0xc7] sm:$0xff] }
  0x7e   : > { %1465 = vrot.lane.b32.xlu1 %v758_v59, %s4131_s12  ;;  %v4454_v59 = vpack.c.bf16 %v790_v55, %v789_v54  ;;  %v829_v54 = vld [vmem:[#allocation3 + $0x57] sm:$0xff]  ;;  %v830_v55 = vld [vmem:[#allocation3 + $0x5f] sm:$0xff] }
  0x7f   : > { %1467 = vrot.lane.b32.xlu0 %v759_v60, %s4131_s12  ;;  %v791_v60 = vld [vmem:[#allocation2 + $0xd7] sm:$0xff] }
  0x80   : > { %v4464_v4 = vpack.c.bf16 %v792_v61, %v791_v60  ;;  %v831_v61 = vld [vmem:[#allocation3 + $0x67] sm:$0xff] }
  0x81   : > { %v4525_v6 = vpack.c.bf16 %v832_v62, %v831_v61  ;;  %v843_v62 = vld [vmem:[#allocation3 + $0xc7] sm:$0xff] }
  0x82   : > { %1469 = vrot.lane.b32.xlu1 %v760_v2, %s4131_s12  ;;  %v794_v2 = vld [vmem:[#allocation2 + $0xef] sm:$0xff] }
  0x83   : > { %1471 = vrot.lane.b32.xlu0 %v761_v3, %s4131_s12  ;;  %v4468_v5 = vpack.c.bf16 %v794_v2, %v793_v1  ;;  %v4521_v2 = vpack.c.bf16 %v830_v55, %v829_v54  ;;  %6178 = vst [vmem:[#allocation12_spill] sm:$0xff] %v4525_v6  ;;  %v841_v54 = vld [vmem:[#allocation3 + $0xb7] sm:$0xff]  ;;  %v842_v55 = vld [vmem:[#allocation3 + $0xbf] sm:$0xff] }
  0x86   : > { %1473 = vrot.lane.b32.xlu1 %v762_v8, %s4131_s12 }
  0x87   : > { %1475 = vrot.lane.b32.xlu0 %v763_v9, %s4131_s12  ;;  %v797_v9 = vld [vmem:[#allocation2 + $0x107] sm:$0xff] }
  0x88   : > { %v4480_v13 = vpack.c.bf16 %v798_v10, %v797_v9  ;;  %v834_v9 = vld [vmem:[#allocation3 + $0x7f] sm:$0xff] }
  0x89   : > { %v4533_v18 = vpack.c.bf16 %v834_v9, %v833_v7  ;;  %v844_v7 = vld [vmem:[#allocation3 + $0xcf] sm:$0xff] }
  0x8a   : > { %1477 = vrot.lane.b32.xlu1 %v764_v14, %s4131_s12  ;;  %6175 = vst [vmem:[#allocation9_spill] sm:$0xff] %v4480_v13  ;;  %v799_v14 = vld [vmem:[#allocation2 + $0x117] sm:$0xff] }
  0x8b   : > { %1497 = vrot.lane.b32.xlu0 %v801_v15, %s4132_s13  ;;  %v4405_v27 = vpop.permute.xlu0 %1335  ;;  %v800_v15 = vld [vmem:[#allocation2 + $0x11f] sm:$0xff]  ;;  %6181 = vst [vmem:[#allocation15_spill] sm:$0xff] %v4533_v18 }
  0x8c   : > { %6170 = vst [vmem:[#allocation4_spill] sm:$0xff] %v4405_v27  ;;  %v4488_v22 = vpack.c.bf16 %v800_v15, %v799_v14  ;;  %v835_v14 = vld [vmem:[#allocation3 + $0x87] sm:$0xff]  ;;  %v836_v15 = vld [vmem:[#allocation3 + $0x8f] sm:$0xff]  ;;  %v562_v27 = vld [vmem:[#allocation2 + $0x6d] sm:$0xff] }
  0x8e   : > { %1499 = vrot.lane.b32.xlu1 %v4394_v20, %s4132_s13  ;;  %6176 = vst [vmem:[#allocation10_spill] sm:$0xff] %v4488_v22 }
  0x8f   : > { %1501 = vrot.lane.b32.xlu0 %v4397_v21, %s4132_s13 }
  0x92   : > { %1503 = vrot.lane.b32.xlu1 %v4401_v26, %s4132_s13 }
  0x93   : > { %1505 = vrot.lane.b32.xlu0 %v4407_v28, %s4132_s13 }
  0x94   : > { %v4417_v37 = vpop.permute.xlu1 %1339 }
  0x95   : > { %6171 = vst [vmem:[#allocation5_spill] sm:$0xff] %v4417_v37  ;;  %v4419_v40 = vpop.permute.xlu0 %1337  ;;  %v3960_v37 = vunpack.c.h.bf16 %v4450_v58  ;;  %v559_v58 = vld [vmem:[#allocation2 + $0x55] sm:$0xff] }
  0x96   : > { %6172 = vst [vmem:[#allocation6_spill] sm:$0xff] %v4419_v40  ;;  %1507 = vrot.lane.b32.xlu1 %v4411_v33, %s4132_s13 }
  0x97   : > { %1509 = vrot.lane.b32.xlu0 %v4415_v34, %s4132_s13  ;;  %548 = vst.msk [vmem:[#allocation3 + $0x130] sm:$0xff] %vm325_vm0, %v3960_v37  ;;  %vm2520_vm0 = vcmask 654336  }
  0x98   : > { %v4429_v45 = vpop.permute.xlu1 %1341 }
  0x99   : > { %6173 = vst [vmem:[#allocation7_spill] sm:$0xff] %v4429_v45  ;;  %v4431_v48 = vpop.permute.xlu0 %1343 }
  0x9a   : > { %1511 = vrot.lane.b32.xlu1 %v4423_v41, %s4132_s13 }
  0x9b   : > { %1513 = vrot.lane.b32.xlu0 %v4427_v42, %s4132_s13 }
  0x9c   : > { %v4441_v53 = vpop.permute.xlu1 %1345 }
  0x9d   : > { %v4443_v56 = vpop.permute.xlu0 %1347 }
  0x9e   : > { %1515 = vrot.lane.b32.xlu1 %v4435_v49, %s4132_s13 }
  0x9f   : > { %1517 = vrot.lane.b32.xlu0 %v4439_v50, %s4132_s13 }
  0xa0   : > { %v4457_v63 = vpop.permute.xlu1 %1349 }
  0xa1   : > { %v4459_v3 = vpop.permute.xlu0 %1351 }
  0xa2   : > { %1519 = vrot.lane.b32.xlu1 %v4447_v57, %s4132_s13 }
  0xa3   : > { %1521 = vrot.lane.b32.xlu0 %v4454_v59, %s4132_s13 }
  0xa4   : > { %v4470_v8 = vpop.permute.xlu1 %1353 }
  0xa5   : > { %v4472_v11 = vpop.permute.xlu0 %1355 }
  0xa6   : > { %1523 = vrot.lane.b32.xlu1 %v4464_v4, %s4132_s13 }
  0xa7   : > { %1525 = vrot.lane.b32.xlu0 %v4468_v5, %s4132_s13 }
  0xa8   : > { %v4482_v16 = vpop.permute.xlu1 %1357 }
  0xa9   : > { %v4484_v19 = vpop.permute.xlu0 %1359 }
  0xaa   : > { %1527 = vrot.lane.b32.xlu1 %v4476_v12, %s4132_s13  ;;  %v851_v12 = vld [vmem:[#allocation3 + $0x107] sm:$0xff] }
  0xab   : > { %1529 = vrot.lane.b32.xlu0 %v4480_v13, %s4132_s13  ;;  %v4569_v13 = vpack.c.bf16 %v846_v25, %v845_v24  ;;  %v854_v25 = vld [vmem:[#allocation3 + $0x11f] sm:$0xff] }
  0xac   : > { %v4492_v29 = vpop.permute.xlu1 %1361 }
  0xad   : > { %v4494_v32 = vpop.permute.xlu0 %1363  ;;  %6188 = vst [vmem:[#allocation22_spill] sm:$0xff] %v4569_v13 }
  0xae   : > { %1531 = vrot.lane.b32.xlu1 %v4488_v22, %s4132_s13  ;;  %s4143_s13 = smov 92  }
  0xaf   : > { %1551 = vrot.lane.b32.xlu0 %v855_v23, %s4133_s14  ;;  %v4537_v23 = vpack.c.bf16 %v836_v15, %v835_v14  ;;  %v4557_v14 = vpack.c.bf16 %v842_v55, %v841_v54  ;;  %v4561_v15 = vpack.c.bf16 %v844_v7, %v843_v62  ;;  %v4573_v54 = vpack.c.bf16 %v848_v0, %v847_v38  ;;  %v849_v55 = vld [vmem:[#allocation3 + $0xf7] sm:$0xff]  ;;  %v850_v62 = vld [vmem:[#allocation3 + $0xff] sm:$0xff] }
  0xb0   : > { %v4503_v43 = vpop.permute.xlu1 %1365  ;;  %v853_v0 = vld [vmem:[#allocation3 + $0x117] sm:$0xff] }
  0xb1   : > { %v4505_v47 = vpop.permute.xlu0 %1367  ;;  %6182 = vst [vmem:[#allocation16_spill] sm:$0xff] %v4537_v23  ;;  %6186 = vst [vmem:[#allocation20_spill] sm:$0xff] %v4557_v14 }
  0xb2   : > { %1553 = vrot.lane.b32.xlu1 %v4498_v35, %s4133_s14  ;;  %6187 = vst [vmem:[#allocation21_spill] sm:$0xff] %v4561_v15  ;;  %6189 = vst [vmem:[#allocation23_spill] sm:$0xff] %v4573_v54 }
  0xb3   : > { %1555 = vrot.lane.b32.xlu0 %v4501_v36, %s4133_s14 }
  0xb4   : > { %v4515_v60 = vpop.permute.xlu1 %1369 }
  0xb5   : > { %v4517_v1 = vpop.permute.xlu0 %1389 }
  0xb6   : > { %6177 = vst [vmem:[#allocation11_spill] sm:$0xff] %v4517_v1  ;;  %1557 = vrot.lane.b32.xlu1 %v4509_v51, %s4133_s14  ;;  %v561_v1 = vld [vmem:[#allocation2 + $0x65] sm:$0xff] }
  0xb7   : > { %1559 = vrot.lane.b32.xlu0 %v4513_v52, %s4133_s14 }
  0xb8   : > { %v4527_v10 = vpop.permute.xlu1 %1391 }
  0xb9   : > { %6179 = vst [vmem:[#allocation13_spill] sm:$0xff] %v4527_v10  ;;  %v4529_v17 = vpop.permute.xlu0 %1393  ;;  %v560_v10 = vld [vmem:[#allocation2 + $0x5d] sm:$0xff] }
  0xba   : > { %6180 = vst [vmem:[#allocation14_spill] sm:$0xff] %v4529_v17  ;;  %1561 = vrot.lane.b32.xlu1 %v4521_v2, %s4133_s14  ;;  %v4581_v17 = vpack.c.bf16 %v850_v62, %v849_v55  ;;  %v1263_v62 = vld [vmem:[#allocation3 + $0x2b] sm:$0xff] }
  0xbb   : > { %1563 = vrot.lane.b32.xlu0 %v4525_v6, %s4133_s14  ;;  %v566_v6 = vld [vmem:[#allocation2 + $0x8d] sm:$0xff] }
  0xbc   : > { %v4539_v30 = vpop.permute.xlu1 %1395  ;;  %6190 = vst [vmem:[#allocation24_spill] sm:$0xff] %v4581_v17 }
  0xbd   : > { %6183 = vst [vmem:[#allocation17_spill] sm:$0xff] %v4539_v30  ;;  %v4541_v39 = vpop.permute.xlu0 %1397  ;;  %v852_v30 = vld [vmem:[#allocation3 + $0x10f] sm:$0xff] }
  0xbe   : > { %1565 = vrot.lane.b32.xlu1 %v4533_v18, %s4133_s14  ;;  %v4585_v24 = vpack.c.bf16 %v852_v30, %v851_v12  ;;  %v565_v18 = vld [vmem:[#allocation2 + $0x85] sm:$0xff] }
  0xbf   : > { %1567 = vrot.lane.b32.xlu0 %v4537_v23, %s4133_s14 }
  0xc0   : > { %v4551_v61 = vpop.permute.xlu1 %1399  ;;  %6191 = vst [vmem:[#allocation25_spill] sm:$0xff] %v4585_v24 }
  0xc1   : > { %v4553_v9 = vpop.permute.xlu0 %1401 }
  0xc2   : > { %1569 = vrot.lane.b32.xlu1 %v4545_v44, %s4133_s14  ;;  %v1268_v44 = vld [vmem:[#allocation3 + $0x53] sm:$0xff] }
  0xc3   : > { %1571 = vrot.lane.b32.xlu0 %v4549_v46, %s4133_s14  ;;  %v1267_v46 = vld [vmem:[#allocation3 + $0x4b] sm:$0xff] }
  0xc4   : > { %v4563_v31 = vpop.permute.xlu1 %1403 }
  0xc5   : > { %v4565_v22 = vpop.permute.xlu0 %1405 }
  0xc6   : > { %1573 = vrot.lane.b32.xlu1 %v4557_v14, %s4133_s14  ;;  %v4593_v14 = vpack.c.bf16 %v854_v25, %v853_v0  ;;  %v1266_v0 = vld [vmem:[#allocation3 + $0x43] sm:$0xff] }
  0xc7   : > { %1575 = vrot.lane.b32.xlu0 %v4561_v15, %s4133_s14 }
  0xc8   : > { %v4575_v7 = vpop.permute.xlu1 %1407  ;;  %6192 = vst [vmem:[#allocation26_spill] sm:$0xff] %v4593_v14 }
  0xc9   : > { %v4577_v45 = vpop.permute.xlu0 %1409 }
  0xca   : > { %1577 = vrot.lane.b32.xlu1 %v4569_v13, %s4133_s14 }
  0xcb   : > { %1579 = vrot.lane.b32.xlu0 %v4573_v54, %s4133_s14  ;;  %v1264_v54 = vld [vmem:[#allocation3 + $0x33] sm:$0xff] }
  0xcc   : > { %v4587_v38 = vpop.permute.xlu1 %1411  ;;  %v1299_v30 = vpack.c.bf16 %v1264_v54, %v1263_v62  ;;  %v558_v54 = vld [vmem:[#allocation2 + $0x4d] sm:$0xff] }
  0xcd   : > { %v4589_v15 = vpop.permute.xlu0 %1413 }
  0xce   : > { %1581 = vrot.lane.b32.xlu1 %v4581_v17, %s4133_s14  ;;  %v1265_v17 = vld [vmem:[#allocation3 + $0x3b] sm:$0xff] }
  0xcf   : > { %1583 = vrot.lane.b32.xlu0 %v4585_v24, %s4133_s14  ;;  %v1300_v24 = vpack.c.bf16 %v1266_v0, %v1265_v17  ;;  %v1269_v17 = vld [vmem:[#allocation3 + $0x5b] sm:$0xff] }
  0xd0   : > { %v4597_v55 = vpop.permute.xlu1 %1415 }
  0xd1   : > { %v4599_v12 = vpop.permute.xlu0 %1417 }
  0xd2   : > { %1585 = vrot.lane.b32.xlu1 %v4593_v14, %s4133_s14 }
  0xd3   : > { %1588 = vrot.lane.b32.xlu0 %v4394_v20, %s4134_s15  ;;  %v557_v20 = vld [vmem:[#allocation2 + $0x45] sm:$0xff] }
  0xd4   : > { %v4605_v25 = vpop.permute.xlu1 %1419  ;;  %v589_v0 = vpack.c.bf16 %v558_v54, %v557_v20  ;;  %v564_v20 = vld [vmem:[#allocation2 + $0x7d] sm:$0xff] }
  0xd5   : > { %v4607_v13 = vpop.permute.xlu0 %1421 }
  0xd6   : > { %1590 = vrot.lane.b32.xlu1 %v4397_v21, %s4134_s15  ;;  %v1301_v21 = vpack.c.bf16 %v1268_v44, %v1267_v46  ;;  %v563_v44 = vld [vmem:[#allocation2 + $0x75] sm:$0xff]  ;;  %v2073_v46 = vsel %vm317_vm1, %v589_v0, %v4431_v48  ;;  %v593_v0 = vpack.c.bf16 %v566_v6, %v565_v18 }
  0xd7   : > { %2649 = vrot.lane.b32.xlu0 %v1299_v30, %s4129_s30  ;;  %v1270_v30 = vld [vmem:[#allocation3 + $0x63] sm:$0xff]  ;;  %v592_v48 = vpack.c.bf16 %v564_v20, %v563_v44  ;;  %v572_v44 = vld [vmem:[#allocation2 + $0xbd] sm:$0xff] }
  0xd8   : > { %v4613_v14 = vpop.permute.xlu1 %1423  ;;  %v1302_v37 = vpack.c.bf16 %v1270_v30, %v1269_v17  ;;  %v1274_v30 = vld [vmem:[#allocation3 + $0x83] sm:$0xff] }
  0xd9   : > { %v4615_v62 = vpop.permute.xlu0 %1443  ;;  %v2082_v6 = vsel %vm317_vm1, %v592_v48, %v4457_v63 }
  0xda   : > { %6193 = vst [vmem:[#allocation27_spill] sm:$0xff] %v4615_v62  ;;  %2651 = vrot.lane.b32.xlu1 %v1300_v24, %s4129_s30  ;;  %v6196_v62 = vmov 0.0   ;;  %v591_v24 = vpack.c.bf16 %v562_v27, %v561_v1 }
  0xdb   : > { %1592 = vrot.lane.b32.xlu0 %v4401_v26, %s4134_s15  ;;  %332 = vst.msk [vmem:[#allocation3 + $0x148] sm:$0x7] %vm331_vm2, %v6196_v62  ;;  %v590_v26 = vpack.c.bf16 %v560_v10, %v559_v58  ;;  %v567_v58 = vld [vmem:[#allocation2 + $0x95] sm:$0xff]  ;;  %vm2557_vm2 = vcmask 687104  }
  0xdc   : > { %v4621_v40 = vpop.permute.xlu1 %1445  ;;  %324 = vst.msk [vmem:[#allocation2 + $0x148] sm:$0x7] %vm323_vm8, %v6196_v62  ;;  %vm2793_vm8 = vcmask 785408  }
  0xdd   : > { %6194 = vst [vmem:[#allocation28_spill] sm:$0xff] %v4621_v40  ;;  %v4623_v23 = vpop.permute.xlu0 %1447  ;;  %v1271_v40 = vld [vmem:[#allocation3 + $0x6b] sm:$0xff]  ;;  %v2076_v27 = vsel %vm317_vm1, %v590_v26, %v4441_v53 }
  0xde   : > { %6195 = vst [vmem:[#allocation29_spill] sm:$0xff] %v4623_v23  ;;  %1594 = vrot.lane.b32.xlu1 %v4407_v28, %s4134_s15  ;;  %v1272_v23 = vld [vmem:[#allocation3 + $0x73] sm:$0xff]  ;;  %v2123_v28 = vsel %vm2113_vm3, %v2073_v46, %v4541_v39  ;;  %v2079_v39 = vsel %vm317_vm1, %v591_v24, %v4443_v56  ;;  %v2129_v24 = vsel %vm2113_vm3, %v2082_v6, %v4563_v31 }
  0xdf   : > { %2653 = vrot.lane.b32.xlu0 %v1301_v21, %s4129_s30  ;;  %v1303_v1 = vpack.c.bf16 %v1272_v23, %v1271_v40  ;;  %v1273_v21 = vld [vmem:[#allocation3 + $0x7b] sm:$0xff]  ;;  %v568_v46 = vld [vmem:[#allocation2 + $0x9d] sm:$0xff]  ;;  %v2127_v53 = vsel %vm2113_vm3, %v2079_v39, %v4553_v9  ;;  %v571_v23 = vld [vmem:[#allocation2 + $0xb5] sm:$0xff] }
  0xe0   : > { %v4631_v54 = vpop.permute.xlu1 %1449  ;;  %v1304_v56 = vpack.c.bf16 %v1274_v30, %v1273_v21  ;;  %v594_v18 = vpack.c.bf16 %v568_v46, %v567_v58  ;;  %v1276_v39 = vld [vmem:[#allocation3 + $0x93] sm:$0xff]  ;;  %v574_v21 = vld [vmem:[#allocation2 + $0xcd] sm:$0xff]  ;;  %v596_v31 = vpack.c.bf16 %v572_v44, %v571_v23 }
  0xe1   : > { %6197 = vst [vmem:[#allocation30_spill] sm:$0xff] %v4631_v54  ;;  %v1452_v10 = vpop.permute.xlu0 %1451  ;;  %v570_v54 = vld [vmem:[#allocation2 + $0xad] sm:$0xff]  ;;  %v580_v44 = vld [vmem:[#allocation2 + $0xfd] sm:$0xff] }
  0xe2   : > { %v4636_v17 = vsel %vm2150_vm4, %v2123_v28, %v1452_v10  ;;  %2655 = vrot.lane.b32.xlu1 %v1302_v37, %s4129_s30  ;;  %v2125_v28 = vsel %vm2113_vm3, %v2076_v27, %v4551_v61  ;;  %v569_v10 = vld [vmem:[#allocation2 + $0xa5] sm:$0xff]  ;;  %v2085_v61 = vsel %vm317_vm1, %v593_v0, %v4459_v3  ;;  %v1275_v27 = vld [vmem:[#allocation3 + $0x8b] sm:$0xff]  ;;  %v2088_v3 = vsel %vm317_vm1, %v594_v18, %v4470_v8  ;;  %v1278_v58 = vld [vmem:[#allocation3 + $0xa3] sm:$0xff] }
  0xe3   : > { %1596 = vrot.lane.b32.xlu0 %v4411_v33, %s4134_s15  ;;  %v595_v9 = vpack.c.bf16 %v570_v54, %v569_v10  ;;  %v2131_v63 = vsel %vm2113_vm3, %v2085_v61, %v4565_v22  ;;  %v1305_v54 = vpack.c.bf16 %v1276_v39, %v1275_v27  ;;  %v1277_v0 = vld [vmem:[#allocation3 + $0x9b] sm:$0xff]  ;;  %v2133_v10 = vsel %vm2113_vm3, %v2088_v3, %v4575_v7  ;;  %v579_v61 = vld [vmem:[#allocation2 + $0xf5] sm:$0xff]  ;;  %v1280_v39 = vld [vmem:[#allocation3 + $0xb3] sm:$0xff] }
  0xe4   : > { %v1454_v37 = vpop.permute.xlu1 %1453  ;;  %v2094_v7 = vsel %vm317_vm1, %v596_v31, %v4482_v16  ;;  %v1279_v27 = vld [vmem:[#allocation3 + $0xab] sm:$0xff]  ;;  %v1281_v31 = vld [vmem:[#allocation3 + $0xbb] sm:$0xff] }
  0xe5   : > { %v1456_v26 = vpop.permute.xlu0 %1455  ;;  %v4650_v33 = vsel %vm2150_vm4, %v2125_v28, %v1454_v37  ;;  %v2091_v22 = vsel %vm317_vm1, %v595_v9, %v4472_v11  ;;  %v575_v28 = vld [vmem:[#allocation2 + $0xd5] sm:$0xff]  ;;  %v576_v37 = vld [vmem:[#allocation2 + $0xdd] sm:$0xff]  ;;  %v1306_v11 = vpack.c.bf16 %v1278_v58, %v1277_v0  ;;  %v1307_v3 = vpack.c.bf16 %v1280_v39, %v1279_v27  ;;  %v1289_v39 = vld [vmem:[#allocation3 + $0xfb] sm:$0xff] }
  0xe6   : > { %v4653_v40 = vsel %vm2150_vm4, %v2127_v53, %v1456_v26  ;;  %1598 = vrot.lane.b32.xlu1 %v4415_v34, %s4134_s15  ;;  %v573_v34 = vld [vmem:[#allocation2 + $0xc5] sm:$0xff]  ;;  %v2135_v8 = vsel %vm2113_vm3, %v2091_v22, %v4577_v45  ;;  %v598_v23 = vpack.c.bf16 %v576_v37, %v575_v28  ;;  %v583_v58 = vld [vmem:[#allocation2 + $0x115] sm:$0xff]  ;;  %v584_v22 = vld [vmem:[#allocation2 + $0x11d] sm:$0xff] }
  0xe7   : > { %2657 = vrot.lane.b32.xlu0 %v1303_v1, %s4129_s30  ;;  %v597_v46 = vpack.c.bf16 %v574_v21, %v573_v34  ;;  %v577_v26 = vld [vmem:[#allocation2 + $0xe5] sm:$0xff]  ;;  %v582_v34 = vld [vmem:[#allocation2 + $0x10d] sm:$0xff] }
  0xe8   : > { %v1458_v20 = vpop.permute.xlu1 %1457 }
  0xe9   : > { %v1460_v48 = vpop.permute.xlu0 %1459  ;;  %v4667_v30 = vsel %vm2150_vm4, %v2129_v24, %v1458_v20  ;;  %v2097_v45 = vsel %vm317_vm1, %v597_v46, %v4484_v19  ;;  %v2137_v24 = vsel %vm2113_vm3, %v2094_v7, %v4587_v38  ;;  %v2100_v19 = vsel %vm317_vm1, %v598_v23, %v4492_v29  ;;  %v1285_v23 = vld [vmem:[#allocation3 + $0xdb] sm:$0xff] }
  0xea   : > { %v4670_v1 = vsel %vm2150_vm4, %v2131_v63, %v1460_v48  ;;  %2659 = vrot.lane.b32.xlu1 %v1304_v56, %s4129_s30  ;;  %v578_v56 = vld [vmem:[#allocation2 + $0xed] sm:$0xff]  ;;  %v2139_v16 = vsel %vm2113_vm3, %v2097_v45, %v4589_v15  ;;  %v600_v38 = vpack.c.bf16 %v580_v44, %v579_v61  ;;  %v2141_v46 = vsel %vm2113_vm3, %v2100_v19, %v4597_v55 }
  0xeb   : > { %1600 = vrot.lane.b32.xlu0 %v4423_v41, %s4134_s15  ;;  %v599_v9 = vpack.c.bf16 %v578_v56, %v577_v26  ;;  %v602_v26 = vpack.c.bf16 %v584_v22, %v583_v58  ;;  %v1286_v61 = vld [vmem:[#allocation3 + $0xe3] sm:$0xff]  ;;  %v933_v58 = vld [vmem:[#allocation3 + $0x18] sm:$0xff] }
  0xec   : > { %v1462_v53 = vpop.permute.xlu1 %1461  ;;  %v934_v22 = vld [vmem:[#allocation3 + $0x20] sm:$0xff] }
  0xed   : > { %v1464_v6 = vpop.permute.xlu0 %1463  ;;  %v4684_v41 = vsel %vm2150_vm4, %v2133_v10, %v1462_v53  ;;  %v2103_v15 = vsel %vm317_vm1, %v599_v9, %v4494_v32  ;;  %v2106_v53 = vsel %vm317_vm1, %v600_v38, %v4503_v43  ;;  %v879_v38 = vld [vmem:[#allocation2 + $0x18] sm:$0xff] }
  0xee   : > { %v4687_v18 = vsel %vm2150_vm4, %v2135_v8, %v1464_v6  ;;  %1602 = vrot.lane.b32.xlu1 %v4427_v42, %s4134_s15  ;;  %v581_v42 = vld [vmem:[#allocation2 + $0x105] sm:$0xff]  ;;  %v2143_v29 = vsel %vm2113_vm3, %v2103_v15, %v4599_v12  ;;  %v2145_v12 = vsel %vm2113_vm3, %v2106_v53, %v4605_v25  ;;  %v1283_v8 = vld [vmem:[#allocation3 + $0xcb] sm:$0xff]  ;;  %v882_v15 = vld [vmem:[#allocation2 + $0x30] sm:$0xff] }
  0xef   : > { %2661 = vrot.lane.b32.xlu0 %v1305_v54, %s4129_s30  ;;  %v1282_v54 = vld [vmem:[#allocation3 + $0xc3] sm:$0xff]  ;;  %v601_v0 = vpack.c.bf16 %v582_v34, %v581_v42  ;;  %v1284_v6 = vld [vmem:[#allocation3 + $0xd3] sm:$0xff] }
  0xf0   : > { %v1466_v20 = vpop.permute.xlu1 %1465  ;;  %v1308_v32 = vpack.c.bf16 %v1282_v54, %v1281_v31  ;;  %v1309_v25 = vpack.c.bf16 %v1284_v6, %v1283_v8  ;;  %v1290_v42 = vld [vmem:[#allocation3 + $0x103] sm:$0xff] }
  0xf1   : > { %v1468_v21 = vpop.permute.xlu0 %1467  ;;  %v4701_v63 = vsel %vm2150_vm4, %v2137_v24, %v1466_v20  ;;  %v2109_v55 = vsel %vm317_vm1, %v601_v0, %v4505_v47  ;;  %v2112_v47 = vsel %vm317_vm1, %v602_v26, %v4515_v60  ;;  %v1310_v24 = vpack.c.bf16 %v1286_v61, %v1285_v23  ;;  %v1288_v20 = vld [vmem:[#allocation3 + $0xf3] sm:$0xff]  ;;  %v987_v53 = vld [vmem:[#allocation2 + $0x19] sm:$0xff]  ;;  %v990_v8 = vld [vmem:[#allocation2 + $0x31] sm:$0xff] }
  0xf2   : > { %v4704_v48 = vsel %vm2150_vm4, %v2139_v16, %v1468_v21  ;;  %2663 = vrot.lane.b32.xlu1 %v1306_v11, %s4129_s30  ;;  %v2147_v11 = vsel %vm2113_vm3, %v2109_v55, %v4607_v13  ;;  %v2149_v13 = vsel %vm2113_vm3, %v2112_v47, %v4613_v14  ;;  %v1312_v21 = vpack.c.bf16 %v1290_v42, %v1289_v39  ;;  %v988_v26 = vld [vmem:[#allocation2 + $0x21] sm:$0xff]  ;;  %v1043_v61 = vld [vmem:[#allocation3 + $0x29] sm:$0xff] }
  0xf3   : > { %1604 = vrot.lane.b32.xlu0 %v4435_v49, %s4134_s15  ;;  %v4824_v39 = vld [vmem:[%s4249_s10 + $0x88] sm:$0xff]   ;;  %s4144_s10 = smov 96  }
  0xf4   : > { %v1470_v28 = vpop.permute.xlu1 %1469 }
  0xf5   : > { %v1472_v37 = vpop.permute.xlu0 %1471  ;;  %v4718_v10 = vsel %vm2150_vm4, %v2141_v46, %v1470_v28 }
  0xf6   : > { %v4721_v49 = vsel %vm2150_vm4, %v2143_v29, %v1472_v37  ;;  %1606 = vrot.lane.b32.xlu1 %v4439_v50, %s4134_s15  ;;  %v935_v29 = vld [vmem:[#allocation3 + $0x28] sm:$0xff]  ;;  %v936_v37 = vld [vmem:[#allocation3 + $0x30] sm:$0xff] }
  0xf7   : > { %2665 = vrot.lane.b32.xlu0 %v1307_v3, %s4129_s30 }
  0xf8   : > { %v1474_v56 = vpop.permute.xlu1 %1473 }
  0xf9   : > { %v1476_v50 = vpop.permute.xlu0 %1475  ;;  %v4735_v7 = vsel %vm2150_vm4, %v2145_v12, %v1474_v56  ;;  %v1023_v12 = vpack.c.bf16 %v988_v26, %v987_v53  ;;  %v989_v56 = vld [vmem:[#allocation2 + $0x29] sm:$0xff]  ;;  %v1103_v26 = vld [vmem:[#allocation2 + $0x3a] sm:$0xff] }
  0xfa   : > { %v4738_v43 = vsel %vm2150_vm4, %v2147_v11, %v1476_v50  ;;  %2667 = vrot.lane.b32.xlu1 %v1308_v32, %s4129_s30  ;;  %v1041_v11 = vld [vmem:[#allocation3 + $0x19] sm:$0xff]  ;;  %v1042_v50 = vld [vmem:[#allocation3 + $0x21] sm:$0xff] }
  0xfb   : > { %1608 = vrot.lane.b32.xlu0 %v4447_v57, %s4134_s15  ;;  %v1287_v57 = vld [vmem:[#allocation3 + $0xeb] sm:$0xff]  ;;  %v1077_v23 = vpack.c.bf16 %v1042_v50, %v1041_v11 }
  0xfc   : > { %v1478_v45 = vpop.permute.xlu1 %1477  ;;  %v1311_v14 = vpack.c.bf16 %v1288_v20, %v1287_v57  ;;  %v991_v20 = vld [vmem:[#allocation2 + $0x39] sm:$0xff]  ;;  %v1156_v11 = vld [vmem:[#allocation3 + $0x32] sm:$0xff] }
  0xfd   : > { %v4747_v9 = vpop.permute.xlu0 %1497  ;;  %v4750_v44 = vsel %vm2150_vm4, %v2149_v13, %v1478_v45  ;;  %v1044_v13 = vld [vmem:[#allocation3 + $0x31] sm:$0xff] }
  0xfe   : > { %1610 = vrot.lane.b32.xlu1 %v4454_v59, %s4134_s15  ;;  %v1078_v57 = vpack.c.bf16 %v1044_v13, %v1043_v61  ;;  %v883_v13 = vld [vmem:[#allocation2 + $0x38] sm:$0xff] }
  0xff   : > { %2669 = vrot.lane.b32.xlu0 %v1309_v25, %s4129_s30  ;;  %v1024_v25 = vpack.c.bf16 %v990_v8, %v989_v56 }
 0x100   : > { %v4755_v60 = vpop.permute.xlu1 %1499 }
 0x101   : > { %v4757_v27 = vpop.permute.xlu0 %1501 }
 0x102   : > { %2671 = vrot.lane.b32.xlu1 %v1310_v24, %s4129_s30 }
 0x103   : > { %1612 = vrot.lane.b32.xlu0 %v4464_v4, %s4134_s15  ;;  %v880_v4 = vld [vmem:[#allocation2 + $0x20] sm:$0xff] }
 0x104   : > { %v4762_v34 = vpop.permute.xlu1 %1503 }
 0x105   : > { %v1506_v59 = vpop.permute.xlu0 %1505 }
 0x106   : > { %v4766_v16 = vsel %vm2187_vm5, %v4636_v17, %v1506_v59  ;;  %1614 = vrot.lane.b32.xlu1 %v4468_v5, %s4134_s15  ;;  %v915_v5 = vpack.c.bf16 %v880_v4, %v879_v38  ;;  %v881_v17 = vld [vmem:[#allocation2 + $0x28] sm:$0xff]  ;;  %v3887_v59 = vunpack.c.l.bf16 %v4824_v39  ;;  %v1291_v38 = vld [vmem:[#allocation3 + $0x10b] sm:$0xff] }
 0x107   : > { %2673 = vrot.lane.b32.xlu0 %v1311_v14, %s4129_s30  ;;  %v916_v28 = vpack.c.bf16 %v882_v15, %v881_v17  ;;  %v992_v14 = vld [vmem:[#allocation2 + $0x41] sm:$0xff]  ;;  %v1046_v17 = vld [vmem:[#allocation3 + $0x41] sm:$0xff] }
 0x108   : > { %v1508_v19 = vpop.permute.xlu1 %1507  ;;  %439 = vst.msk [vmem:[#allocation2 + $0x128] sm:$0xff] %vm317_vm1, %v3887_v59  ;;  %v1292_v4 = vld [vmem:[#allocation3 + $0x113] sm:$0xff] }
 0x109   : > { %v1510_v3 = vpop.permute.xlu0 %1509  ;;  %v4773_v31 = vsel %vm2187_vm5, %v4650_v33, %v1508_v19  ;;  %v4836_v19 = vpack.c.bf16 %v992_v14, %v991_v20  ;;  %v1313_v15 = vpack.c.bf16 %v1292_v4, %v1291_v38  ;;  %v1158_v20 = vld [vmem:[#allocation3 + $0x42] sm:$0xff]  ;;  %v885_v38 = vld [vmem:[#allocation2 + $0x48] sm:$0xff] }
 0x10a   : > { %v4777_v54 = vsel %vm2187_vm5, %v4653_v40, %v1510_v3  ;;  %2675 = vrot.lane.b32.xlu1 %v1312_v21, %s4129_s30  ;;  %v886_v4 = vld [vmem:[#allocation2 + $0x50] sm:$0xff] }
 0x10b   : > { %1625 = vrot.lane.b32.xlu0 %v4498_v35, %s4135_s16  ;;  %v969_v35 = vpack.c.bf16 %v934_v22, %v933_v58  ;;  %v1101_v58 = vld [vmem:[#allocation2 + $0x2a] sm:$0xff]  ;;  %v1102_v22 = vld [vmem:[#allocation2 + $0x32] sm:$0xff] }
 0x10c   : > { %v1512_v0 = vpop.permute.xlu1 %1511 }
 0x10d   : > { %v1514_v46 = vpop.permute.xlu0 %1513  ;;  %v4784_v33 = vsel %vm2187_vm5, %v4667_v30, %v1512_v0 }
 0x10e   : > { %v4788_v40 = vsel %vm2187_vm5, %v4670_v1, %v1514_v46  ;;  %1627 = vrot.lane.b32.xlu1 %v4501_v36, %s4135_s16  ;;  %v970_v36 = vpack.c.bf16 %v936_v37, %v935_v29  ;;  %v1137_v37 = vpack.c.bf16 %v1102_v22, %v1101_v58 }
 0x10f   : > { %1679 = vrot.lane.b32.xlu0 %v915_v5, %s4136_s17  ;;  %v1045_v5 = vld [vmem:[#allocation3 + $0x39] sm:$0xff] }
 0x110   : > { %v1516_v32 = vpop.permute.xlu1 %1515  ;;  %v4849_v0 = vpack.c.bf16 %v1046_v17, %v1045_v5  ;;  %v4117_v17 = vld [vmem:[%s6147_s3 + $0x28] sm:$0xff]  }
 0x111   : > { %v1518_v55 = vpop.permute.xlu0 %1517  ;;  %v4795_v30 = vsel %vm2187_vm5, %v4684_v41, %v1516_v32 }
 0x112   : > { %v4799_v1 = vsel %vm2187_vm5, %v4687_v18, %v1518_v55  ;;  %1681 = vrot.lane.b32.xlu1 %v916_v28, %s4136_s17  ;;  %v1293_v28 = vld [vmem:[#allocation3 + $0x11b] sm:$0xff]  ;;  %v1104_v55 = vld [vmem:[#allocation2 + $0x42] sm:$0xff] }
 0x113   : > { %1733 = vrot.lane.b32.xlu0 %v969_v35, %s4137_s18  ;;  %v1294_v35 = vld [vmem:[#allocation3 + $0x123] sm:$0xff]  ;;  %v1138_v8 = vpack.c.bf16 %v1104_v55, %v1103_v26  ;;  %v1209_v55 = vld [vmem:[#allocation2 + $0x2b] sm:$0xff] }
 0x114   : > { %v1520_v6 = vpop.permute.xlu1 %1519  ;;  %v1314_v32 = vpack.c.bf16 %v1294_v35, %v1293_v28 }
 0x115   : > { %v1522_v47 = vpop.permute.xlu0 %1521  ;;  %v4805_v41 = vsel %vm2187_vm5, %v4701_v63, %v1520_v6  ;;  %v1155_v6 = vld [vmem:[#allocation3 + $0x2a] sm:$0xff] }
 0x116   : > { %v4809_v18 = vsel %vm2187_vm5, %v4704_v48, %v1522_v47  ;;  %1735 = vrot.lane.b32.xlu1 %v970_v36, %s4137_s18  ;;  %v1191_v61 = vpack.c.bf16 %v1156_v11, %v1155_v6  ;;  %v1211_v11 = vld [vmem:[#allocation2 + $0x3b] sm:$0xff] }
 0x117   : > { %1787 = vrot.lane.b32.xlu0 %v1023_v12, %s4138_s19  ;;  %v4113_v12 = vld [vmem:[%s6147_s3 + $0x8] sm:$0xff]  }
 0x118   : > { %v1524_v45 = vpop.permute.xlu1 %1523 }
 0x119   : > { %v1526_v24 = vpop.permute.xlu0 %1525  ;;  %v4815_v63 = vsel %vm2187_vm5, %v4718_v10, %v1524_v45  ;;  %v884_v45 = vld [vmem:[#allocation2 + $0x40] sm:$0xff] }
 0x11a   : > { %v4819_v48 = vsel %vm2187_vm5, %v4721_v49, %v1526_v24  ;;  %1789 = vrot.lane.b32.xlu1 %v1024_v25, %s4138_s19 }
 0x11b   : > { %1841 = vrot.lane.b32.xlu0 %v1077_v23, %s4139_s20 }
 0x11c   : > { %v1528_v42 = vpop.permute.xlu1 %1527 }
 0x11d   : > { %v1530_v21 = vpop.permute.xlu0 %1529  ;;  %v4829_v10 = vsel %vm2187_vm5, %v4735_v7, %v1528_v42  ;;  %v917_v42 = vpack.c.bf16 %v884_v45, %v883_v13  ;;  %v3888_v45 = vunpack.c.h.bf16 %v4824_v39  ;;  %v993_v39 = vld [vmem:[#allocation2 + $0x49] sm:$0xff] }
 0x11e   : > { %v4833_v49 = vsel %vm2187_vm5, %v4738_v43, %v1530_v21  ;;  %1843 = vrot.lane.b32.xlu1 %v1078_v57, %s4139_s20 }
 0x11f   : > { %1878 = vrot.lane.b32.xlu0 %v1024_v25, %s4140_s21  ;;  %440 = vst.msk [vmem:[#allocation2 + $0x130] sm:$0xff] %vm317_vm1, %v3888_v45  ;;  %v1107_v45 = vld [vmem:[#allocation2 + $0x5a] sm:$0xff] }
 0x120   : > { %v1532_v3 = vpop.permute.xlu1 %1531 }
 0x121   : > { %v4840_v7 = vpop.permute.xlu0 %1551  ;;  %v4844_v43 = vsel %vm2187_vm5, %v4750_v44, %v1532_v3  ;;  %v4112_v44 = vld [vmem:[%s6147_s3] sm:$0xff]  }
 0x122   : > { %1880 = vrot.lane.b32.xlu1 %v4836_v19, %s4140_s21  ;;  %4020 = vmatprep.subr.bf16.mxu0 %v4112_v44 }
 0x123   : > { %1915 = vrot.lane.b32.xlu0 %v1078_v57, %s4141_s22  ;;  %4021 = vmatpush3.bf16.msra.mxu0 %v4112_v44  ;;  %v1157_v57 = vld [vmem:[#allocation3 + $0x3a] sm:$0xff] }
 0x124   : > { %v4851_v46 = vpop.permute.xlu1 %1553  ;;  %4070 = vmatprep.subr.bf16.mxu1 %v4112_v44  ;;  %4022 = vmatprep.subr.bf16.mxu0 %v4113_v12  ;;  %v1192_v59 = vpack.c.bf16 %v1158_v20, %v1157_v57  ;;  %v940_v57 = vld [vmem:[#allocation3 + $0x50] sm:$0xff] }
 0x125   : > { %v4853_v29 = vpop.permute.xlu0 %1555  ;;  %4077 = vmatpush3.bf16.msra.mxu1 %v4112_v44 }
 0x126   : > { %2677 = vrot.lane.b32.xlu1 %v1313_v15, %s4129_s30  ;;  %4071 = vmatprep.subr.bf16.mxu1 %v4113_v12 }
 0x127   : > { %1917 = vrot.lane.b32.xlu0 %v4849_v0, %s4141_s22  ;;  %4023 = vmatpush3.bf16.msra.mxu0 %v4113_v12 }
 0x128   : > { %v4861_v53 = vpop.permute.xlu1 %1557 }
 0x129   : > { %v1560_v36 = vpop.permute.xlu0 %1559  ;;  %4078 = vmatpush3.bf16.msra.mxu1 %v4113_v12 }
 0x12a   : > { %v4868_v56 = vsel %vm2224_vm6, %v4766_v16, %v1560_v36  ;;  %1969 = vrot.lane.b32.xlu1 %v1137_v37, %s4142_s8  ;;  %v4114_v16 = vld [vmem:[%s6147_s3 + $0x10] sm:$0xff]  }
 0x12b   : > { %2679 = vrot.lane.b32.xlu0 %v1314_v32, %s4129_s30  ;;  %4024 = vmatprep.subr.bf16.mxu0 %v4114_v16  ;;  %v1210_v36 = vld [vmem:[#allocation2 + $0x33] sm:$0xff] }
 0x12c   : > { %v1562_v50 = vpop.permute.xlu1 %1561  ;;  %4025 = vmatpush3.bf16.msra.mxu0 %v4114_v16  ;;  %4072 = vmatprep.subr.bf16.mxu1 %v4114_v16  ;;  %v1245_v6 = vpack.c.bf16 %v1210_v36, %v1209_v55 }
 0x12d   : > { %v1564_v47 = vpop.permute.xlu0 %1563  ;;  %v4874_v25 = vsel %vm2224_vm6, %v4773_v31, %v1562_v50  ;;  %v4115_v31 = vld [vmem:[%s6147_s3 + $0x18] sm:$0xff]   ;;  %4079 = vmatpush3.bf16.msra.mxu1 %v4114_v16  ;;  %v1212_v50 = vld [vmem:[#allocation2 + $0x43] sm:$0xff]  ;;  %v938_v16 = vld [vmem:[#allocation3 + $0x40] sm:$0xff] }
 0x12e   : > { %v4881_v23 = vsel %vm2224_vm6, %v4777_v54, %v1564_v47  ;;  %1629 = vrot.lane.b32.xlu1 %v4509_v51, %s4135_s16  ;;  %4026 = vmatprep.subr.bf16.mxu0 %v4115_v31  ;;  %v1246_v13 = vpack.c.bf16 %v1212_v50, %v1211_v11  ;;  %v1298_v11 = vld [vmem:[#allocation3 + $0x143] sm:$0xff] }
 0x12f   : > { %1971 = vrot.lane.b32.xlu0 %v1138_v8, %s4142_s8  ;;  %4073 = vmatprep.subr.bf16.mxu1 %v4115_v31 }
 0x130   : > { %v1566_v24 = vpop.permute.xlu1 %1565  ;;  %4027 = vmatpush3.bf16.msra.mxu0 %v4115_v31 }
 0x131   : > { %v1568_v54 = vpop.permute.xlu0 %1567  ;;  %v4891_v14 = vsel %vm2224_vm6, %v4784_v33, %v1566_v24  ;;  %v4116_v33 = vld [vmem:[%s6147_s3 + $0x20] sm:$0xff]   ;;  %4080 = vmatpush3.bf16.msra.mxu1 %v4115_v31 }
 0x132   : > { %v4895_v51 = vsel %vm2224_vm6, %v4788_v40, %v1568_v54  ;;  %2023 = vrot.lane.b32.xlu1 %v1191_v61, %s4143_s13  ;;  %4028 = vmatprep.subr.bf16.mxu0 %v4116_v33 }
 0x133   : > { %6198 = vst [vmem:[#allocation31_spill] sm:$0xff] %v4895_v51  ;;  %1631 = vrot.lane.b32.xlu0 %v4513_v52, %s4135_s16  ;;  %4074 = vmatprep.subr.bf16.mxu1 %v4116_v33  ;;  %v918_v52 = vpack.c.bf16 %v886_v4, %v885_v38  ;;  %v1058_v51 = vld [vmem:[#allocation3 + $0xa1] sm:$0xff] }
 0x134   : > { %v1570_v21 = vpop.permute.xlu1 %1569  ;;  %4029 = vmatpush3.bf16.msra.mxu0 %v4116_v33 }
 0x135   : > { %v1572_v3 = vpop.permute.xlu0 %1571  ;;  %v4905_v40 = vsel %vm2224_vm6, %v4795_v30, %v1570_v21  ;;  %4030 = vmatprep.subr.bf16.mxu0 %v4117_v17  ;;  %4081 = vmatpush3.bf16.msra.mxu1 %v4116_v33  ;;  %v994_v33 = vld [vmem:[#allocation2 + $0x51] sm:$0xff] }
 0x136   : > { %6199 = vst [vmem:[#allocation32_spill] sm:$0xff] %v4905_v40  ;;  %v4909_v5 = vsel %vm2224_vm6, %v4799_v1, %v1572_v3  ;;  %1683 = vrot.lane.b32.xlu1 %v917_v42, %s4136_s17  ;;  %4075 = vmatprep.subr.bf16.mxu1 %v4117_v17  ;;  %v1026_v38 = vpack.c.bf16 %v994_v33, %v993_v39  ;;  %v1047_v3 = vld [vmem:[#allocation3 + $0x49] sm:$0xff]  ;;  %v1160_v39 = vld [vmem:[#allocation3 + $0x52] sm:$0xff] }
 0x137   : > { %6200 = vst [vmem:[#allocation33_spill] sm:$0xff] %v4909_v5  ;;  %2025 = vrot.lane.b32.xlu0 %v1192_v59, %s4143_s13 }
 0x138   : > { %v1574_v15 = vpop.permute.xlu1 %1573  ;;  %4031 = vmatpush3.bf16.msra.mxu0 %v4117_v17 }
 0x139   : > { %v1576_v30 = vpop.permute.xlu0 %1575  ;;  %v4918_v58 = vsel %vm2224_vm6, %v4805_v41, %v1574_v15  ;;  %v4118_v41 = vld [vmem:[%s6147_s3 + $0x30] sm:$0x3f]   ;;  %4082 = vmatpush3.bf16.msra.mxu1 %v4117_v17 }
 0x13a   : > { %6201 = vst [vmem:[#allocation34_spill] sm:$0xff] %v4918_v58  ;;  %v4922_v1 = vsel %vm2224_vm6, %v4809_v18, %v1576_v30  ;;  %4084 = vmatprep.subr.msk.bf16.mxu0 %vm2929_vm7, %v4118_v41  ;;  %v2931_v44 = vsel %vm2929_vm7, %v4118_v41, 0  ;;  %4085 = vmatprep.subr.msk.bf16.mxu1 %vm2929_vm7, %v4118_v41  ;;  %v1049_v41 = vld [vmem:[#allocation3 + $0x59] sm:$0xff]  ;;  %vm2594_vm7 = vcmask 752640  }
 0x13b   : > { %6202 = vst [vmem:[#allocation35_spill] sm:$0xff] %v4922_v1  ;;  %1685 = vrot.lane.b32.xlu0 %v918_v52, %s4136_s17  ;;  %v1048_v52 = vld [vmem:[#allocation3 + $0x51] sm:$0xff] }
 0x13c   : > { %v1578_v22 = vpop.permute.xlu1 %1577  ;;  %4033 = vmatpush3.bf16.msra.mxu0 %v2931_v44  ;;  %v1080_v15 = vpack.c.bf16 %v1048_v52, %v1047_v3  ;;  %v1161_v3 = vld [vmem:[#allocation3 + $0x5a] sm:$0xff]  ;;  %v1162_v52 = vld [vmem:[#allocation3 + $0x62] sm:$0xff] }
 0x13d   : > { %v1580_v28 = vpop.permute.xlu0 %1579  ;;  %v4927_v35 = vsel %vm2224_vm6, %v4815_v63, %v1578_v22  ;;  %4083 = vmatpush3.bf16.msra.mxu1 %v2931_v44  ;;  %v996_v22 = vld [vmem:[#allocation2 + $0x61] sm:$0xff]  ;;  %v1050_v44 = vld [vmem:[#allocation3 + $0x61] sm:$0xff] }
 0x13e   : > { %6203 = vst [vmem:[#allocation36_spill] sm:$0xff] %v4927_v35  ;;  %v4934_v18 = vsel %vm2224_vm6, %v4819_v48, %v1580_v28  ;;  %v4989_v36 = vpack.c.bf16 %v1050_v44, %v1049_v41  ;;  %v1213_v44 = vld [vmem:[#allocation2 + $0x4b] sm:$0xff] }
 0x13f   : > { %6204 = vst [vmem:[#allocation37_spill] sm:$0xff] %v4934_v18  ;;  %v1164_v18 = vld [vmem:[#allocation3 + $0x72] sm:$0xff] }
 0x140   : > { %v1582_v37 = vpop.permute.xlu1 %1581 }
 0x141   : > { %v1584_v32 = vpop.permute.xlu0 %1583  ;;  %v4938_v63 = vsel %vm2224_vm6, %v4829_v10, %v1582_v37  ;;  %v937_v10 = vld [vmem:[#allocation3 + $0x38] sm:$0xff] }
 0x142   : > { %6205 = vst [vmem:[#allocation38_spill] sm:$0xff] %v4938_v63  ;;  %v4942_v26 = vsel %vm2224_vm6, %v4833_v49, %v1584_v32  ;;  %v971_v31 = vpack.c.bf16 %v938_v16, %v937_v10  ;;  %v1296_v32 = vld [vmem:[#allocation3 + $0x133] sm:$0xff]  ;;  %v1106_v16 = vld [vmem:[#allocation2 + $0x52] sm:$0xff]  ;;  %v1163_v63 = vld [vmem:[#allocation3 + $0x6a] sm:$0xff] }
 0x143   : > { %6206 = vst [vmem:[#allocation39_spill] sm:$0xff] %v4942_v26  ;;  %v1105_v10 = vld [vmem:[#allocation2 + $0x4a] sm:$0xff]  ;;  %v1112_v26 = vld [vmem:[#allocation2 + $0x82] sm:$0xff] }
 0x144   : > { %v1586_v12 = vpop.permute.xlu1 %1585 }
 0x145   : > { %v4944_v48 = vpop.permute.xlu0 %1588  ;;  %v4948_v8 = vsel %vm2224_vm6, %v4844_v43, %v1586_v12  ;;  %v939_v43 = vld [vmem:[#allocation3 + $0x48] sm:$0xff] }
 0x146   : > { %6207 = vst [vmem:[#allocation40_spill] sm:$0xff] %v4948_v8  ;;  %v972_v42 = vpack.c.bf16 %v940_v57, %v939_v43  ;;  %v1111_v8 = vld [vmem:[#allocation2 + $0x7a] sm:$0xff] }
 0x148   : > { %v4950_v47 = vpop.permute.xlu1 %1590 }
 0x149   : > { %v2650_v61 = vpop.permute.xlu0 %2649 }
 0x14a   : > { %v2687_v49 = vsel %vm317_vm1, %v1245_v6, %v2650_v61  ;;  %v1297_v6 = vld [vmem:[#allocation3 + $0x13b] sm:$0xff] }
 0x14b   : > { %2757 = vrot.lane.b32.xlu1 %v2687_v49, %s4144_s10  ;;  %v1139_v49 = vpack.c.bf16 %v1106_v16, %v1105_v10 }
 0x14c   : > { %v2652_v24 = vpop.permute.xlu1 %2651 }
 0x14d   : > { %v4956_v20 = vpop.permute.xlu0 %1592  ;;  %v2690_v54 = vsel %vm317_vm1, %v1246_v13, %v2652_v24  ;;  %v1316_v13 = vpack.c.bf16 %v1298_v11, %v1297_v6  ;;  %v889_v11 = vld [vmem:[#allocation2 + $0x68] sm:$0xff] }
 0x14e   : > { %2759 = vrot.lane.b32.xlu0 %v2690_v54, %s4144_s10 }
 0x14f   : > { %1737 = vrot.lane.b32.xlu1 %v971_v31, %s4137_s18  ;;  %v1108_v31 = vld [vmem:[#allocation2 + $0x62] sm:$0xff] }
 0x150   : > { %v4961_v59 = vpop.permute.xlu1 %1594  ;;  %v1140_v57 = vpack.c.bf16 %v1108_v31, %v1107_v45  ;;  %v1216_v45 = vld [vmem:[#allocation2 + $0x63] sm:$0xff] }
 0x151   : > { %v4963_v21 = vpop.permute.xlu0 %2653 }
 0x152   : > { %1791 = vrot.lane.b32.xlu0 %v4836_v19, %s4138_s19  ;;  %v995_v19 = vld [vmem:[#allocation2 + $0x59] sm:$0xff] }
 0x153   : > { %1739 = vrot.lane.b32.xlu1 %v972_v42, %s4137_s18  ;;  %v4982_v62 = vpack.c.bf16 %v996_v22, %v995_v19  ;;  %v1159_v42 = vld [vmem:[#allocation3 + $0x4a] sm:$0xff] }
 0x154   : > { %v4969_v4 = vpop.permute.xlu1 %2655  ;;  %v887_v19 = vld [vmem:[#allocation2 + $0x58] sm:$0xff]  ;;  %v888_v22 = vld [vmem:[#allocation2 + $0x60] sm:$0xff] }
 0x155   : > { %v4971_v17 = vpop.permute.xlu0 %1596  ;;  %v919_v6 = vpack.c.bf16 %v888_v22, %v887_v19 }
 0x156   : > { %1845 = vrot.lane.b32.xlu0 %v4849_v0, %s4139_s20  ;;  %v1295_v0 = vld [vmem:[#allocation3 + $0x12b] sm:$0xff] }
 0x157   : > { %1793 = vrot.lane.b32.xlu1 %v1026_v38, %s4138_s19  ;;  %v1315_v12 = vpack.c.bf16 %v1296_v32, %v1295_v0  ;;  %v6211_v0 = vld [vmem:[#allocation12_spill] sm:$0xff]  ;;  %v1194_v32 = vpack.c.bf16 %v1162_v52, %v1161_v3 }
 0x158   : > { %v4976_v30 = vpop.permute.xlu1 %1598 }
 0x159   : > { %v4978_v28 = vpop.permute.xlu0 %2657 }
 0x15a   : > { %1882 = vrot.lane.b32.xlu0 %v1026_v38, %s4140_s21  ;;  %v1193_v38 = vpack.c.bf16 %v1160_v39, %v1159_v42  ;;  %v941_v42 = vld [vmem:[#allocation3 + $0x58] sm:$0xff]  ;;  %v942_v39 = vld [vmem:[#allocation3 + $0x60] sm:$0xff] }
 0x15b   : > { %1847 = vrot.lane.b32.xlu1 %v1080_v15, %s4139_s20  ;;  %v973_v19 = vpack.c.bf16 %v942_v39, %v941_v42 }
 0x15c   : > { %v4984_v37 = vpop.permute.xlu1 %2659 }
 0x15d   : > { %v4986_v55 = vpop.permute.xlu0 %1600 }
 0x15e   : > { %1919 = vrot.lane.b32.xlu0 %v1080_v15, %s4141_s22 }
 0x15f   : > { %1884 = vrot.lane.b32.xlu1 %v4982_v62, %s4140_s21 }
 0x160   : > { %v4993_v50 = vpop.permute.xlu1 %1602 }
 0x161   : > { %v4995_v61 = vpop.permute.xlu0 %2661 }
 0x162   : > { %1921 = vrot.lane.b32.xlu0 %v4989_v36, %s4141_s22 }
 0x163   : > { %2681 = vrot.lane.b32.xlu1 %v1315_v12, %s4129_s30  ;;  %v1214_v12 = vld [vmem:[#allocation2 + $0x53] sm:$0xff] }
 0x164   : > { %v5000_v24 = vpop.permute.xlu1 %2663 }
 0x165   : > { %v5002_v43 = vpop.permute.xlu0 %1604 }
 0x166   : > { %6208 = vst [vmem:[#allocation41_spill] sm:$0xff] %v5002_v43  ;;  %2683 = vrot.lane.b32.xlu0 %v1316_v13, %s4129_s30  ;;  %v1247_v13 = vpack.c.bf16 %v1214_v12, %v1213_v44  ;;  %v943_v44 = vld [vmem:[#allocation3 + $0x68] sm:$0xff] }
 0x167   : > { %1973 = vrot.lane.b32.xlu1 %v1139_v49, %s4142_s8  ;;  %v1215_v49 = vld [vmem:[#allocation2 + $0x5b] sm:$0xff] }
 0x168   : > { %v5006_v54 = vpop.permute.xlu1 %1606  ;;  %v2693_v52 = vsel %vm317_vm1, %v1247_v13, %v4963_v21  ;;  %v6221_v43 = vld [vmem:[#allocation27_spill] sm:$0xff] }
 0x169   : > { %6209 = vst [vmem:[#allocation42_spill] sm:$0xff] %v5006_v54  ;;  %v5008_v33 = vpop.permute.xlu0 %2665 }
 0x16a   : > { %1975 = vrot.lane.b32.xlu0 %v1140_v57, %s4142_s8 }
 0x16b   : > { %1633 = vrot.lane.b32.xlu1 %v4521_v2, %s4135_s16  ;;  %v890_v2 = vld [vmem:[#allocation2 + $0x70] sm:$0xff] }
 0x16c   : > { %v5013_v15 = vpop.permute.xlu1 %2667  ;;  %v920_v31 = vpack.c.bf16 %v890_v2, %v889_v11  ;;  %v997_v11 = vld [vmem:[#allocation2 + $0x69] sm:$0xff]  ;;  %v998_v2 = vld [vmem:[#allocation2 + $0x71] sm:$0xff] }
 0x16d   : > { %v5015_v41 = vpop.permute.xlu0 %1608 }
 0x16e   : > { %6210 = vst [vmem:[#allocation43_spill] sm:$0xff] %v5015_v41  ;;  %1635 = vrot.lane.b32.xlu0 %v6211_v0, %s4135_s16  ;;  %v944_v0 = vld [vmem:[#allocation3 + $0x70] sm:$0xff] }
 0x16f   : > { %2027 = vrot.lane.b32.xlu1 %v1193_v38, %s4143_s13  ;;  %v1248_v38 = vpack.c.bf16 %v1216_v45, %v1215_v49  ;;  %v1028_v49 = vpack.c.bf16 %v998_v2, %v997_v11  ;;  %v1051_v45 = vld [vmem:[#allocation3 + $0x69] sm:$0xff]  ;;  %v1054_v11 = vld [vmem:[#allocation3 + $0x81] sm:$0xff] }
 0x170   : > { %v5020_v10 = vpop.permute.xlu1 %1610 }
 0x171   : > { %6212 = vst [vmem:[#allocation12_spill] sm:$0xff] %v5020_v10  ;;  %v5022_v16 = vpop.permute.xlu0 %2669  ;;  %v894_v10 = vld [vmem:[#allocation2 + $0x90] sm:$0xff] }
 0x172   : > { %2029 = vrot.lane.b32.xlu0 %v1194_v32, %s4143_s13  ;;  %v2696_v32 = vsel %vm317_vm1, %v1248_v38, %v4969_v4 }
 0x173   : > { %1687 = vrot.lane.b32.xlu1 %v919_v6, %s4136_s17  ;;  %v974_v6 = vpack.c.bf16 %v944_v0, %v943_v44  ;;  %v1109_v0 = vld [vmem:[#allocation2 + $0x6a] sm:$0xff] }
 0x174   : > { %v5026_v57 = vpop.permute.xlu1 %2671 }
 0x175   : > { %v5028_v3 = vpop.permute.xlu0 %1612 }
 0x176   : > { %6213 = vst [vmem:[#allocation44_spill] sm:$0xff] %v5028_v3  ;;  %1689 = vrot.lane.b32.xlu0 %v920_v31, %s4136_s17  ;;  %v1052_v31 = vld [vmem:[#allocation3 + $0x71] sm:$0xff]  ;;  %v1218_v3 = vld [vmem:[#allocation2 + $0x73] sm:$0xff] }
 0x177   : > { %2761 = vrot.lane.b32.xlu1 %v2693_v52, %s4144_s10  ;;  %v1082_v39 = vpack.c.bf16 %v1052_v31, %v1051_v45  ;;  %v999_v52 = vld [vmem:[#allocation2 + $0x79] sm:$0xff] }
 0x178   : > { %v5034_v22 = vpop.permute.xlu1 %1614 }
 0x179   : > { %6214 = vst [vmem:[#allocation45_spill] sm:$0xff] %v5034_v22  ;;  %v5038_v12 = vpop.permute.xlu0 %2673  ;;  %v892_v22 = vld [vmem:[#allocation2 + $0x80] sm:$0xff] }
 0x17a   : > { %2763 = vrot.lane.b32.xlu0 %v2696_v32, %s4144_s10  ;;  %v1110_v32 = vld [vmem:[#allocation2 + $0x72] sm:$0xff] }
 0x17b   : > { %1741 = vrot.lane.b32.xlu1 %v973_v19, %s4137_s18  ;;  %v1000_v19 = vld [vmem:[#allocation2 + $0x81] sm:$0xff]  ;;  %v1141_v45 = vpack.c.bf16 %v1110_v32, %v1109_v0  ;;  %v1195_v0 = vpack.c.bf16 %v1164_v18, %v1163_v63  ;;  %v1165_v32 = vld [vmem:[#allocation3 + $0x7a] sm:$0xff] }
 0x17c   : > { %v5042_v21 = vpop.permute.xlu1 %2675  ;;  %v1029_v44 = vpack.c.bf16 %v1000_v19, %v999_v52  ;;  %v1142_v52 = vpack.c.bf16 %v1112_v26, %v1111_v8  ;;  %v1217_v26 = vld [vmem:[#allocation2 + $0x6b] sm:$0xff]  ;;  %v6216_v8 = vld [vmem:[#allocation16_spill] sm:$0xff] }
 0x17d   : > { %v5044_v13 = vpop.permute.xlu0 %1625  ;;  %v1249_v18 = vpack.c.bf16 %v1218_v3, %v1217_v26  ;;  %v1219_v63 = vld [vmem:[#allocation2 + $0x7b] sm:$0xff] }
 0x17e   : > { %1795 = vrot.lane.b32.xlu0 %v4982_v62, %s4138_s19 }
 0x17f   : > { %1743 = vrot.lane.b32.xlu1 %v974_v6, %s4137_s18  ;;  %v1053_v6 = vld [vmem:[#allocation3 + $0x79] sm:$0xff] }
 0x180   : > { %v5049_v4 = vpop.permute.xlu1 %1627  ;;  %v1083_v31 = vpack.c.bf16 %v1054_v11, %v1053_v6  ;;  %v1166_v6 = vld [vmem:[#allocation3 + $0x82] sm:$0xff] }
 0x181   : > { %v5051_v42 = vpop.permute.xlu0 %1679  ;;  %v891_v11 = vld [vmem:[#allocation2 + $0x78] sm:$0xff]  ;;  %v1196_v1 = vpack.c.bf16 %v1166_v6, %v1165_v32  ;;  %v946_v32 = vld [vmem:[#allocation3 + $0x80] sm:$0xff] }
 0x182   : > { %1849 = vrot.lane.b32.xlu0 %v4989_v36, %s4139_s20  ;;  %v921_v58 = vpack.c.bf16 %v892_v22, %v891_v11  ;;  %v2699_v22 = vsel %vm317_vm1, %v1249_v18, %v4978_v28  ;;  %v947_v11 = vld [vmem:[#allocation3 + $0x88] sm:$0xff] }
 0x183   : > { %1797 = vrot.lane.b32.xlu1 %v1028_v49, %s4138_s19  ;;  %v1002_v18 = vld [vmem:[#allocation2 + $0x91] sm:$0xff] }
 0x184   : > { %v5056_v38 = vpop.permute.xlu1 %1681 }
 0x185   : > { %v5058_v62 = vpop.permute.xlu0 %1733 }
 0x186   : > { %1886 = vrot.lane.b32.xlu0 %v1028_v49, %s4140_s21 }
 0x187   : > { %1851 = vrot.lane.b32.xlu1 %v1082_v39, %s4139_s20 }
 0x188   : > { %v5064_v36 = vpop.permute.xlu1 %1735 }
 0x189   : > { %v5062_v2 = vpop.permute.xlu0 %1787 }
 0x18a   : > { %1923 = vrot.lane.b32.xlu0 %v1082_v39, %s4141_s22  ;;  %v6215_v39 = vld [vmem:[#allocation15_spill] sm:$0xff] }
 0x18b   : > { %1888 = vrot.lane.b32.xlu1 %v1029_v44, %s4140_s21 }
 0x18c   : > { %v5071_v19 = vpop.permute.xlu1 %1789 }
 0x18d   : > { %v5068_v49 = vpop.permute.xlu0 %1841 }
 0x18e   : > { %1977 = vrot.lane.b32.xlu0 %v1141_v45, %s4142_s8 }
 0x18f   : > { %1925 = vrot.lane.b32.xlu1 %v1083_v31, %s4141_s22 }
 0x190   : > { %v5079_v45 = vpop.permute.xlu1 %1843 }
 0x191   : > { %v5074_v35 = vpop.permute.xlu0 %1878 }
 0x192   : > { %1979 = vrot.lane.b32.xlu0 %v1142_v52, %s4142_s8  ;;  %v893_v52 = vld [vmem:[#allocation2 + $0x88] sm:$0xff] }
 0x193   : > { %1637 = vrot.lane.b32.xlu1 %v6215_v39, %s4135_s16  ;;  %v1220_v39 = vld [vmem:[#allocation2 + $0x83] sm:$0xff]  ;;  %v922_v41 = vpack.c.bf16 %v894_v10, %v893_v52 }
 0x194   : > { %v5087_v40 = vpop.permute.xlu1 %1880  ;;  %v1250_v6 = vpack.c.bf16 %v1220_v39, %v1219_v63  ;;  %v1001_v52 = vld [vmem:[#allocation2 + $0x89] sm:$0xff] }
 0x195   : > { %v5084_v5 = vpop.permute.xlu0 %1915  ;;  %v1030_v39 = vpack.c.bf16 %v1002_v18, %v1001_v52 }
 0x196   : > { %1639 = vrot.lane.b32.xlu0 %v6216_v8, %s4135_s16  ;;  %v945_v8 = vld [vmem:[#allocation3 + $0x78] sm:$0xff]  ;;  %v2702_v10 = vsel %vm317_vm1, %v1250_v6, %v4984_v37 }
 0x197   : > { %2031 = vrot.lane.b32.xlu1 %v1195_v0, %s4143_s13  ;;  %v975_v3 = vpack.c.bf16 %v946_v32, %v945_v8  ;;  %v550_v37 = vld [vmem:[#allocation2 + $0xd] sm:$0xff]  ;;  %v1055_v8 = vld [vmem:[#allocation3 + $0x89] sm:$0xff]  ;;  %v1056_v32 = vld [vmem:[#allocation3 + $0x91] sm:$0xff] }
 0x198   : > { %v5098_v26 = vpop.permute.xlu1 %2677 }
 0x199   : > { %v5092_v0 = vpop.permute.xlu0 %1917  ;;  %6217 = vst [vmem:[#allocation15_spill] sm:$0xff] %v5098_v26 }
 0x19a   : > { %2033 = vrot.lane.b32.xlu0 %v1196_v1, %s4143_s13  ;;  %v948_v1 = vld [vmem:[#allocation3 + $0x90] sm:$0xff] }
 0x19b   : > { %1691 = vrot.lane.b32.xlu1 %v921_v58, %s4136_s17  ;;  %v976_v58 = vpack.c.bf16 %v948_v1, %v947_v11  ;;  %v552_v11 = vld [vmem:[#allocation2 + $0x1d] sm:$0xff]  ;;  %v1084_v1 = vpack.c.bf16 %v1056_v32, %v1055_v8  ;;  %v1057_v32 = vld [vmem:[#allocation3 + $0x99] sm:$0xff] }
 0x19c   : > { %v5105_v63 = vpop.permute.xlu1 %1969 }
 0x19d   : > { %v5102_v28 = vpop.permute.xlu0 %2679 }
 0x19e   : > { %1693 = vrot.lane.b32.xlu0 %v922_v41, %s4136_s17  ;;  %6218 = vst [vmem:[#allocation16_spill] sm:$0xff] %v5102_v28  ;;  %v549_v41 = vld [vmem:[#allocation2 + $0x5] sm:$0xff] }
 0x19f   : > { %2765 = vrot.lane.b32.xlu1 %v2699_v22, %s4144_s10  ;;  %v585_v22 = vpack.c.bf16 %v550_v37, %v549_v41  ;;  %v1114_v41 = vld [vmem:[#allocation2 + $0x92] sm:$0xff] }
 0x1a0   : > { %v5112_v28 = vpop.permute.xlu1 %1629  ;;  %v6220_v37 = vld [vmem:[#allocation11_spill] sm:$0xff] }
 0x1a1   : > { %v5108_v6 = vpop.permute.xlu0 %1971 }
 0x1a2   : > { %2767 = vrot.lane.b32.xlu0 %v2702_v10, %s4144_s10  ;;  %v1004_v10 = vld [vmem:[#allocation2 + $0xa1] sm:$0xff] }
 0x1a3   : > { %1745 = vrot.lane.b32.xlu1 %v975_v3, %s4137_s18  ;;  %v551_v3 = vld [vmem:[#allocation2 + $0x15] sm:$0xff] }
 0x1a4   : > { %v586_v26 = vpack.c.bf16 %v552_v11, %v551_v3 }
 0x1a5   : > { %v5122_v8 = vpop.permute.xlu0 %1631 }
 0x1a6   : > { %1799 = vrot.lane.b32.xlu0 %v1029_v44, %s4138_s19  ;;  %v1003_v44 = vld [vmem:[#allocation2 + $0x99] sm:$0xff] }
 0x1a7   : > { %1747 = vrot.lane.b32.xlu1 %v976_v58, %s4137_s18  ;;  %v6219_v58 = vld [vmem:[#allocation4_spill] sm:$0xff]  ;;  %v5118_v18 = vpack.c.bf16 %v1004_v10, %v1003_v44  ;;  %v6223_v10 = vld [vmem:[#allocation13_spill] sm:$0xff] }
 0x1a8   : > { %v2061_v52 = vsel %vm317_vm1, %v585_v22, %v6219_v58 }
 0x1a9   : > { %v2115_v54 = vsel %vm2113_vm3, %v2061_v52, %v6220_v37  ;;  %v2024_v37 = vpop.permute.xlu1 %2023 }
 0x1aa   : > { %1853 = vrot.lane.b32.xlu0 %v1083_v31, %s4139_s20  ;;  %v1113_v31 = vld [vmem:[#allocation2 + $0x8a] sm:$0xff]  ;;  %v2152_v3 = vsel %vm2150_vm4, %v2115_v54, %v6221_v43  ;;  %v5137_v43 = vpack.c.bf16 %v1058_v51, %v1057_v32  ;;  %v1115_v54 = vld [vmem:[#allocation2 + $0x9a] sm:$0xff]  ;;  %v2026_v32 = vpop.permute.xlu0 %2025 }
 0x1ab   : > { %1801 = vrot.lane.b32.xlu1 %v1030_v39, %s4138_s19  ;;  %v2189_v11 = vsel %vm2187_vm5, %v2152_v3, %v4747_v9  ;;  %v1143_v44 = vpack.c.bf16 %v1114_v41, %v1113_v31  ;;  %v6224_v9 = vld [vmem:[#allocation28_spill] sm:$0xff] }
 0x1ac   : > { %v2226_v52 = vsel %vm2224_vm6, %v2189_v11, %v4840_v7 }
 0x1ae   : > { %1890 = vrot.lane.b32.xlu0 %v1030_v39, %s4140_s21  ;;  %v6222_v39 = vld [vmem:[#allocation6_spill] sm:$0xff] }
 0x1af   : > { %1855 = vrot.lane.b32.xlu1 %v1084_v1, %s4139_s20  ;;  %v2064_v22 = vsel %vm317_vm1, %v586_v26, %v6222_v39  ;;  %v1116_v26 = vld [vmem:[#allocation2 + $0xa2] sm:$0xff] }
 0x1b0   : > { %v2117_v58 = vsel %vm2113_vm3, %v2064_v22, %v6223_v10  ;;  %v1144_v39 = vpack.c.bf16 %v1116_v26, %v1115_v54  ;;  %v1168_v22 = vld [vmem:[#allocation3 + $0x92] sm:$0xff]  ;;  %v5183_v54 = vpop.permute.xlu0 %1685 }
 0x1b1   : > { %v2154_v3 = vsel %vm2150_vm4, %v2117_v58, %v6224_v9  ;;  %v1169_v58 = vld [vmem:[#allocation3 + $0x9a] sm:$0xff]  ;;  %v896_v26 = vld [vmem:[#allocation2 + $0xa0] sm:$0xff] }
 0x1b2   : > { %1927 = vrot.lane.b32.xlu0 %v1084_v1, %s4141_s22  ;;  %v2263_v1 = vsel %vm2261_vm9, %v2226_v52, %v4944_v48  ;;  %v2191_v31 = vsel %vm2187_vm5, %v2154_v3, %v4755_v60  ;;  %v1170_v52 = vld [vmem:[#allocation3 + $0xa2] sm:$0xff] }
 0x1b3   : > { %1892 = vrot.lane.b32.xlu1 %v5118_v18, %s4140_s21  ;;  %v2300_v7 = vsel %vm2298_vm10, %v2263_v1, %v5044_v13  ;;  %v2228_v51 = vsel %vm2224_vm6, %v2191_v31, %v4851_v46  ;;  %v1221_v1 = vld [vmem:[#allocation2 + $0x8b] sm:$0xff] }
 0x1b4   : > { %v2337_v41 = vsel %vm2335_vm11, %v2300_v7, %v5051_v42  ;;  %v2265_v48 = vsel %vm2261_vm9, %v2228_v51, %v4950_v47  ;;  %v1167_v42 = vld [vmem:[#allocation3 + $0x8a] sm:$0xff]  ;;  %v1198_v7 = vpack.c.bf16 %v1170_v52, %v1169_v58 }
 0x1b5   : > { %v2374_v60 = vsel %vm6169_vm12, %v2337_v41, %v5058_v62  ;;  %v2302_v46 = vsel %vm2298_vm10, %v2265_v48, %v5049_v4  ;;  %v5166_v62 = vpop.permute.xlu1 %1683  ;;  %v1197_v10 = vpack.c.bf16 %v1168_v22, %v1167_v42  ;;  %v1222_v51 = vld [vmem:[#allocation2 + $0x93] sm:$0xff]  ;;  %v1223_v42 = vld [vmem:[#allocation2 + $0x9b] sm:$0xff]  ;;  %v1224_v22 = vld [vmem:[#allocation2 + $0xa3] sm:$0xff] }
 0x1b6   : > { %1981 = vrot.lane.b32.xlu0 %v1143_v44, %s4142_s8  ;;  %v2411_v13 = vsel %vm2409_vm13, %v2374_v60, %v5062_v2  ;;  %v2339_v11 = vsel %vm2335_vm11, %v2302_v46, %v5056_v38  ;;  %v952_v58 = vld [vmem:[#allocation3 + $0xb0] sm:$0xff] }
 0x1b7   : > { %1929 = vrot.lane.b32.xlu1 %v5137_v43, %s4141_s22  ;;  %v2448_v47 = vsel %vm2446_vm14, %v2411_v13, %v5068_v49  ;;  %v2376_v44 = vsel %vm6169_vm12, %v2339_v11, %v5064_v36  ;;  %v6225_v49 = vld [vmem:[#allocation18_spill] sm:$0xff]  ;;  %vm2892_vm12 = vcmask 883712   ;;  %v1251_v13 = vpack.c.bf16 %v1222_v51, %v1221_v1  ;;  %v1060_v1 = vld [vmem:[#allocation3 + $0xb1] sm:$0xff] }
 0x1b8   : > { %v2485_v4 = vsel %vm2483_vm15, %v2448_v47, %v5074_v35  ;;  %v2413_v2 = vsel %vm2409_vm13, %v2376_v44, %v5071_v19  ;;  %v895_v19 = vld [vmem:[#allocation2 + $0x98] sm:$0xff]  ;;  %v949_v47 = vld [vmem:[#allocation3 + $0x98] sm:$0xff]  ;;  %v950_v44 = vld [vmem:[#allocation3 + $0xa0] sm:$0xff] }
 0x1b9   : > { %v2522_v38 = vsel %vm2520_vm0, %v2485_v4, %v5084_v5  ;;  %v2450_v36 = vsel %vm2446_vm14, %v2413_v2, %v5079_v45  ;;  %v6226_v45 = vld [vmem:[#allocation19_spill] sm:$0xff]  ;;  %v2705_v2 = vsel %vm317_vm1, %v1251_v13, %v4995_v61 }
 0x1ba   : > { %1983 = vrot.lane.b32.xlu0 %v1144_v39, %s4142_s8  ;;  %v2559_v35 = vsel %vm2557_vm2, %v2522_v38, %v5105_v63  ;;  %v2487_v5 = vsel %vm2483_vm15, %v2450_v36, %v5087_v40  ;;  %v923_v40 = vpack.c.bf16 %v896_v26, %v895_v19  ;;  %v898_v39 = vld [vmem:[#allocation2 + $0xb0] sm:$0xff]  ;;  %v977_v38 = vpack.c.bf16 %v950_v44, %v949_v47 }
 0x1bb   : > { %1641 = vrot.lane.b32.xlu1 %v6225_v49, %s4135_s16  ;;  %v2596_v9 = vsel %vm2594_vm7, %v2559_v35, %v2024_v37  ;;  %v2524_v31 = vsel %vm2520_vm0, %v2487_v5, %v5092_v0  ;;  %v897_v37 = vld [vmem:[#allocation2 + $0xa8] sm:$0xff]  ;;  %v1006_v26 = vld [vmem:[#allocation2 + $0xb1] sm:$0xff] }
 0x1bc   : > { %v2561_v41 = vsel %vm2557_vm2, %v2524_v31, %v5108_v6  ;;  %v924_v6 = vpack.c.bf16 %v898_v39, %v897_v37  ;;  %v1005_v19 = vld [vmem:[#allocation2 + $0xa9] sm:$0xff]  ;;  %v555_v37 = vld [vmem:[#allocation2 + $0x35] sm:$0xff] }
 0x1bd   : > { %v2758_v3 = vpop.permute.xlu1 %2757  ;;  %v2598_v48 = vsel %vm2594_vm7, %v2561_v41, %v2026_v32  ;;  %v1252_v32 = vpack.c.bf16 %v1224_v22, %v1223_v42  ;;  %v1008_v41 = vld [vmem:[#allocation2 + $0xc1] sm:$0xff]  ;;  %v1061_v42 = vld [vmem:[#allocation3 + $0xb9] sm:$0xff]  ;;  %v1062_v22 = vld [vmem:[#allocation3 + $0xc1] sm:$0xff] }
 0x1be   : > { %1643 = vrot.lane.b32.xlu0 %v6226_v45, %s4135_s16  ;;  %v2795_v63 = vsel %vm2793_vm8, %v2596_v9, %v2758_v3  ;;  %v1032_v9 = vpack.c.bf16 %v1006_v26, %v1005_v19  ;;  %v1059_v3 = vld [vmem:[#allocation3 + $0xa9] sm:$0xff]  ;;  %v553_v45 = vld [vmem:[#allocation2 + $0x25] sm:$0xff] }
 0x1bf   : > { %2035 = vrot.lane.b32.xlu1 %v1197_v10, %s4143_s13  ;;  %4034 = vmatprep.mubr.msk.bf16.mxu0 %vm2892_vm12, %v2795_v63  ;;  %v951_v10 = vld [vmem:[#allocation3 + $0xa8] sm:$0xff]  ;;  %v2708_v52 = vsel %vm317_vm1, %v1252_v32, %v5000_v24  ;;  %v1086_v63 = vpack.c.bf16 %v1060_v1, %v1059_v3  ;;  %v6227_v32 = vld [vmem:[#allocation5_spill] sm:$0xff] }
 0x1c0   : > { %v2760_v0 = vpop.permute.xlu0 %2759  ;;  %v978_v35 = vpack.c.bf16 %v952_v58, %v951_v10  ;;  %v1119_v10 = vld [vmem:[#allocation2 + $0xba] sm:$0xff]  ;;  %v1120_v58 = vld [vmem:[#allocation2 + $0xc2] sm:$0xff] }
 0x1c1   : > { %v2797_v60 = vsel %vm2793_vm8, %v2598_v48, %v2760_v0  ;;  %v5199_v46 = vpop.permute.xlu1 %1737  ;;  %v556_v48 = vld [vmem:[#allocation2 + $0x3d] sm:$0xff]  ;;  %v6229_v26 = vld [vmem:[#allocation29_spill] sm:$0xff] }
 0x1c2   : > { %2037 = vrot.lane.b32.xlu0 %v1198_v7, %s4143_s13  ;;  %4035 = vmatmul.mubr.msk.bf16.vlgmr.msra.gmra.mrb[0].mxu0 %vm2892_vm12, %v2797_v60  ;;  %v554_v7 = vld [vmem:[#allocation2 + $0x2d] sm:$0xff]  ;;  %v588_v47 = vpack.c.bf16 %v556_v48, %v555_v37  ;;  %v6230_v1 = vld [vmem:[#allocation7_spill] sm:$0xff] }
 0x1c3   : > { %1695 = vrot.lane.b32.xlu1 %v923_v40, %s4136_s17  ;;  %v587_v39 = vpack.c.bf16 %v554_v7, %v553_v45  ;;  %v1118_v60 = vld [vmem:[#allocation2 + $0xb2] sm:$0xff]  ;;  %v1146_v7 = vpack.c.bf16 %v1120_v58, %v1119_v10 }
 0x1c4   : > { %v5204_v11 = vpop.permute.xlu0 %1791  ;;  %v2070_v45 = vsel %vm317_vm1, %v588_v47, %v6230_v1  ;;  %v1174_v58 = vld [vmem:[#allocation3 + $0xc2] sm:$0xff] }
 0x1c5   : > { %v5206_v4 = vpop.permute.xlu1 %1739  ;;  %v1225_v1 = vld [vmem:[#allocation2 + $0xab] sm:$0xff] }
 0x1c6   : > { %1697 = vrot.lane.b32.xlu0 %v924_v6, %s4136_s17 }
 0x1c7   : > { %2769 = vrot.lane.b32.xlu1 %v2705_v2, %s4144_s10  ;;  %v2067_v2 = vsel %vm317_vm1, %v587_v39, %v6227_v32  ;;  %v6232_v39 = vld [vmem:[#allocation30_spill] sm:$0xff] }
 0x1c8   : > { %v5212_v49 = vpop.permute.xlu0 %1845 }
 0x1c9   : > { %v5216_v36 = vpop.permute.xlu1 %1793 }
 0x1ca   : > { %2771 = vrot.lane.b32.xlu0 %v2708_v52, %s4144_s10  ;;  %v6228_v52 = vld [vmem:[#allocation14_spill] sm:$0xff] }
 0x1cb   : > { %1749 = vrot.lane.b32.xlu1 %v977_v38, %s4137_s18  ;;  %v5249_v38 = vpack.c.bf16 %v1062_v22, %v1061_v42  ;;  %v1172_v42 = vld [vmem:[#allocation3 + $0xb2] sm:$0xff] }
 0x1cc   : > { %v5220_v61 = vpop.permute.xlu0 %1882 }
 0x1cd   : > { %v5222_v5 = vpop.permute.xlu1 %1847 }
 0x1ce   : > { %1803 = vrot.lane.b32.xlu0 %v5118_v18, %s4138_s19  ;;  %v1007_v18 = vld [vmem:[#allocation2 + $0xb9] sm:$0xff] }
 0x1cf   : > { %1751 = vrot.lane.b32.xlu1 %v978_v35, %s4137_s18  ;;  %v5240_v0 = vpack.c.bf16 %v1008_v41, %v1007_v18  ;;  %v2119_v35 = vsel %vm2113_vm3, %v2067_v2, %v6228_v52  ;;  %v6231_v18 = vld [vmem:[#allocation17_spill] sm:$0xff] }
 0x1d0   : > { %v5227_v24 = vpop.permute.xlu0 %1919  ;;  %v2121_v41 = vsel %vm2113_vm3, %v2070_v45, %v6231_v18  ;;  %vm6233_vm3 = vcmask 457728  }
 0x1d1   : > { %v5229_v31 = vpop.permute.xlu1 %1884  ;;  %v2158_v48 = vsel %vm2150_vm4, %v2121_v41, %v6232_v39  ;;  %v901_v41 = vld [vmem:[#allocation2 + $0xc8] sm:$0xff] }
 0x1d2   : > { %1857 = vrot.lane.b32.xlu0 %v5137_v43, %s4139_s20  ;;  %v1117_v43 = vld [vmem:[#allocation2 + $0xaa] sm:$0xff]  ;;  %v2195_v22 = vsel %vm2187_vm5, %v2158_v48, %v4762_v34  ;;  %v6234_v34 = vld [vmem:[#allocation20_spill] sm:$0xff] }
 0x1d3   : > { %1805 = vrot.lane.b32.xlu1 %v1032_v9, %s4138_s19  ;;  %v1145_v44 = vpack.c.bf16 %v1118_v60, %v1117_v43 }
 0x1d4   : > { %v5234_v51 = vpop.permute.xlu0 %1921 }
 0x1d5   : > { %v5236_v40 = vpop.permute.xlu1 %2681 }
 0x1d6   : > { %1894 = vrot.lane.b32.xlu0 %v1032_v9, %s4140_s21  ;;  %v2156_v9 = vsel %vm2150_vm4, %v2119_v35, %v6229_v26  ;;  %v899_v35 = vld [vmem:[#allocation2 + $0xb8] sm:$0xff]  ;;  %v900_v26 = vld [vmem:[#allocation2 + $0xc0] sm:$0xff]  ;;  %vm6235_vm4 = vmmov %vm6233_vm3 }
 0x1d7   : > { %1859 = vrot.lane.b32.xlu1 %v1086_v63, %s4139_s20  ;;  %v925_v18 = vpack.c.bf16 %v900_v26, %v899_v35  ;;  %v1009_v35 = vld [vmem:[#allocation2 + $0xc9] sm:$0xff]  ;;  %v1010_v26 = vld [vmem:[#allocation2 + $0xd1] sm:$0xff] }
 0x1d8   : > { %v5242_v13 = vpop.permute.xlu0 %2683 }
 0x1d9   : > { %v1974_v6 = vpop.permute.xlu1 %1973 }
 0x1da   : > { %1931 = vrot.lane.b32.xlu0 %v1086_v63, %s4141_s22  ;;  %v2193_v63 = vsel %vm2187_vm5, %v2156_v9, %v4757_v27  ;;  %v1171_v27 = vld [vmem:[#allocation3 + $0xaa] sm:$0xff]  ;;  %vm6237_vm5 = vmmov %vm6233_vm3 }
 0x1db   : > { %1896 = vrot.lane.b32.xlu1 %v5240_v0, %s4140_s21  ;;  %v2230_v37 = vsel %vm2224_vm6, %v2193_v63, %v4853_v29  ;;  %v1199_v10 = vpack.c.bf16 %v1172_v42, %v1171_v27  ;;  %v1228_v42 = vld [vmem:[#allocation2 + $0xc3] sm:$0xff] }
 0x1dc   : > { %v1976_v19 = vpop.permute.xlu0 %1975  ;;  %v2267_v43 = vsel %vm2261_vm9, %v2230_v37, %v4956_v20  ;;  %v902_v37 = vld [vmem:[#allocation2 + $0xd0] sm:$0xff] }
 0x1dd   : > { %v5255_v3 = vpop.permute.xlu1 %1633  ;;  %v2304_v47 = vsel %vm2298_vm10, %v2267_v43, %v5112_v28  ;;  %v1173_v28 = vld [vmem:[#allocation3 + $0xba] sm:$0xff] }
 0x1de   : > { %1985 = vrot.lane.b32.xlu0 %v1145_v44, %s4142_s8  ;;  %v2232_v44 = vsel %vm2224_vm6, %v2195_v22, %v4861_v53  ;;  %v2341_v32 = vsel %vm2335_vm11, %v2304_v47, %v5166_v62  ;;  %v1200_v63 = vpack.c.bf16 %v1174_v58, %v1173_v28  ;;  %v955_v28 = vld [vmem:[#allocation3 + $0xc8] sm:$0xff]  ;;  %v956_v58 = vld [vmem:[#allocation3 + $0xd0] sm:$0xff]  ;;  %vm6239_vm6 = vmmov %vm6233_vm3 }
 0x1df   : > { %1933 = vrot.lane.b32.xlu1 %v5249_v38, %s4141_s22  ;;  %v2269_v20 = vsel %vm2261_vm9, %v2232_v44, %v4961_v59  ;;  %v2378_v2 = vsel %vm6233_vm3, %v2341_v32, %v5199_v46  ;;  %v953_v44 = vld [vmem:[#allocation3 + $0xb8] sm:$0xff]  ;;  %v954_v32 = vld [vmem:[#allocation3 + $0xc0] sm:$0xff] }
 0x1e0   : > { %v5272_v60 = vpop.permute.xlu0 %1635  ;;  %v2306_v53 = vsel %vm2298_vm10, %v2269_v20, %v5122_v8  ;;  %v2415_v62 = vsel %vm2409_vm13, %v2378_v2, %v5204_v11  ;;  %v6236_v11 = vld [vmem:[#allocation21_spill] sm:$0xff] }
 0x1e1   : > { %v2028_v29 = vpop.permute.xlu1 %2027  ;;  %v2343_v59 = vsel %vm2335_vm11, %v2306_v53, %v5183_v54  ;;  %v2452_v46 = vsel %vm2446_vm14, %v2415_v62, %v5212_v49 }
 0x1e2   : > { %1987 = vrot.lane.b32.xlu0 %v1146_v7, %s4142_s8  ;;  %v2380_v45 = vsel %vm6235_vm4, %v2343_v59, %v5206_v4  ;;  %v2489_v8 = vsel %vm2483_vm15, %v2452_v46, %v5220_v61  ;;  %v1226_v7 = vld [vmem:[#allocation2 + $0xb3] sm:$0xff]  ;;  %v1034_v46 = vpack.c.bf16 %v1010_v26, %v1009_v35  ;;  %vm6243_vm4 = vmmov %vm6233_vm3 }
 0x1e3   : > { %1645 = vrot.lane.b32.xlu1 %v6234_v34, %s4135_s16  ;;  %v2417_v54 = vsel %vm2409_vm13, %v2380_v45, %v5216_v36  ;;  %v2526_v49 = vsel %vm2520_vm0, %v2489_v8, %v5227_v24  ;;  %v1253_v27 = vpack.c.bf16 %v1226_v7, %v1225_v1  ;;  %v1227_v24 = vld [vmem:[#allocation2 + $0xbb] sm:$0xff] }
 0x1e4   : > { %v2030_v52 = vpop.permute.xlu0 %2029  ;;  %v2454_v4 = vsel %vm2446_vm14, %v2417_v54, %v5222_v5  ;;  %v2563_v61 = vsel %vm2557_vm2, %v2526_v49, %v1974_v6  ;;  %v926_v5 = vpack.c.bf16 %v902_v37, %v901_v41  ;;  %v1254_v20 = vpack.c.bf16 %v1228_v42, %v1227_v24  ;;  %v1064_v45 = vld [vmem:[#allocation3 + $0xd1] sm:$0xff]  ;;  %v1011_v7 = vld [vmem:[#allocation2 + $0xd9] sm:$0xff] }
 0x1e5   : > { %v5297_v9 = vpop.permute.xlu1 %1687  ;;  %v2491_v48 = vsel %vm2483_vm15, %v2454_v4, %v5229_v31  ;;  %v2600_v36 = vsel %vm2594_vm7, %v2563_v61, %v2028_v29  ;;  %v2711_v34 = vsel %vm317_vm1, %v1253_v27, %v5008_v33  ;;  %v980_v33 = vpack.c.bf16 %v956_v58, %v955_v28  ;;  %v1012_v54 = vld [vmem:[#allocation2 + $0xe1] sm:$0xff]  ;;  %v1122_v41 = vld [vmem:[#allocation2 + $0xd2] sm:$0xff]  ;;  %v1065_v4 = vld [vmem:[#allocation3 + $0xd9] sm:$0xff] }
 0x1e6   : > { %1647 = vrot.lane.b32.xlu0 %v6236_v11, %s4135_s16  ;;  %v2528_v22 = vsel %vm2520_vm0, %v2491_v48, %v5234_v51  ;;  %v2714_v53 = vsel %vm317_vm1, %v1254_v20, %v5013_v15  ;;  %v1063_v15 = vld [vmem:[#allocation3 + $0xc9] sm:$0xff]  ;;  %v1066_v61 = vld [vmem:[#allocation3 + $0xe1] sm:$0xff]  ;;  %v1124_v27 = vld [vmem:[#allocation2 + $0xe2] sm:$0xff]  ;;  %v2273_v20 = vsel %vm2261_vm9, %v4874_v25, %v4976_v30 }
 0x1e7   : > { %2039 = vrot.lane.b32.xlu1 %v1199_v10, %s4143_s13  ;;  %v2565_v6 = vsel %vm2557_vm2, %v2528_v22, %v1976_v19  ;;  %v979_v19 = vpack.c.bf16 %v954_v32, %v953_v44  ;;  %v1088_v11 = vpack.c.bf16 %v1064_v45, %v1063_v15  ;;  %v903_v58 = vld [vmem:[#allocation2 + $0xd8] sm:$0xff]  ;;  %v905_v45 = vld [vmem:[#allocation2 + $0xe8] sm:$0xff] }
 0x1e8   : > { %v5313_v39 = vpop.permute.xlu0 %1689  ;;  %v2602_v31 = vsel %vm2594_vm7, %v2565_v6, %v2030_v52  ;;  %v1175_v6 = vld [vmem:[#allocation3 + $0xca] sm:$0xff] }
 0x1e9   : > { %v2762_v43 = vpop.permute.xlu1 %2761 }
 0x1ea   : > { %v2799_v47 = vsel %vm2793_vm8, %v2600_v36, %v2762_v43  ;;  %2041 = vrot.lane.b32.xlu0 %v1200_v63, %s4143_s13  ;;  %v5355_v36 = vpack.c.bf16 %v1066_v61, %v1065_v4  ;;  %v1123_v43 = vld [vmem:[#allocation2 + $0xda] sm:$0xff] }
 0x1eb   : > { %1699 = vrot.lane.b32.xlu1 %v925_v18, %s4136_s17  ;;  %4038 = vmatprep.mubr.msk.bf16.mxu0 %vm2892_vm12, %v2799_v47  ;;  %v1121_v18 = vld [vmem:[#allocation2 + $0xca] sm:$0xff]  ;;  %v1148_v22 = vpack.c.bf16 %v1124_v27, %v1123_v43  ;;  %v2271_v47 = vsel %vm2261_vm9, %v4868_v56, %v4971_v17  ;;  %v1231_v4 = vld [vmem:[#allocation2 + $0xdb] sm:$0xff] }
 0x1ec   : > { %v2764_v29 = vpop.permute.xlu0 %2763  ;;  %v6238_v56 = vld [vmem:[#allocation22_spill] sm:$0xff]  ;;  %v957_v27 = vld [vmem:[#allocation3 + $0xd8] sm:$0xff] }
 0x1ed   : > { %v2801_v2 = vsel %vm2793_vm8, %v2602_v31, %v2764_v29  ;;  %v1742_v51 = vpop.permute.xlu1 %1741  ;;  %v1176_v31 = vld [vmem:[#allocation3 + $0xd2] sm:$0xff]  ;;  %v2308_v29 = vsel %vm2298_vm10, %v2271_v47, %v5255_v3  ;;  %v2310_v3 = vsel %vm2298_vm10, %v2273_v20, %v5272_v60  ;;  %v6240_v60 = vld [vmem:[#allocation23_spill] sm:$0xff] }
 0x1ee   : > { %1701 = vrot.lane.b32.xlu0 %v926_v5, %s4136_s17  ;;  %4039 = vmatmul.mubr.msk.bf16.gmra.mrb[4].mxu0 %vm2892_vm12, %v2801_v2  ;;  %v2345_v32 = vsel %vm2335_vm11, %v2308_v29, %v5297_v9  ;;  %v1201_v17 = vpack.c.bf16 %v1176_v31, %v1175_v6 }
 0x1ef   : > { %2773 = vrot.lane.b32.xlu1 %v2711_v34, %s4144_s10  ;;  %v2382_v2 = vsel %vm6237_vm5, %v2345_v32, %v1742_v51  ;;  %v1177_v34 = vld [vmem:[#allocation3 + $0xda] sm:$0xff]  ;;  %v960_v32 = vld [vmem:[#allocation3 + $0xf0] sm:$0xff]  ;;  %vm6250_vm5 = vmmov %vm6233_vm3 }
 0x1f0   : > { %v1796_v10 = vpop.permute.xlu0 %1795  ;;  %v1229_v51 = vld [vmem:[#allocation2 + $0xcb] sm:$0xff] }
 0x1f1   : > { %v5334_v62 = vpop.permute.xlu1 %1743  ;;  %v2419_v28 = vsel %vm2409_vm13, %v2382_v2, %v1796_v10 }
 0x1f2   : > { %2775 = vrot.lane.b32.xlu0 %v2714_v53, %s4144_s10  ;;  %v904_v53 = vld [vmem:[#allocation2 + $0xe0] sm:$0xff] }
 0x1f3   : > { %1753 = vrot.lane.b32.xlu1 %v979_v19, %s4137_s18  ;;  %v1178_v19 = vld [vmem:[#allocation3 + $0xe2] sm:$0xff] }
 0x1f4   : > { %v1850_v52 = vpop.permute.xlu0 %1849  ;;  %v1202_v10 = vpack.c.bf16 %v1178_v19, %v1177_v34  ;;  %v1014_v34 = vld [vmem:[#allocation2 + $0xf1] sm:$0xff] }
 0x1f5   : > { %v5338_v59 = vpop.permute.xlu1 %1797  ;;  %v2456_v25 = vsel %vm2446_vm14, %v2419_v28, %v1850_v52  ;;  %v927_v52 = vpack.c.bf16 %v904_v53, %v903_v58  ;;  %v1068_v58 = vld [vmem:[#allocation3 + $0xf1] sm:$0xff] }
 0x1f6   : > { %1807 = vrot.lane.b32.xlu0 %v5240_v0, %s4138_s19  ;;  %v5350_v0 = vpack.c.bf16 %v1012_v54, %v1011_v7 }
 0x1f7   : > { %1755 = vrot.lane.b32.xlu1 %v980_v33, %s4137_s18  ;;  %v2347_v33 = vsel %vm2335_vm11, %v2310_v3, %v5313_v39 }
 0x1f8   : > { %v1887_v1 = vpop.permute.xlu0 %1886  ;;  %v2384_v35 = vsel %vm6239_vm6, %v2347_v33, %v5334_v62  ;;  %vm6252_vm6 = vmmov %vm6233_vm3 }
 0x1f9   : > { %v5343_v8 = vpop.permute.xlu1 %1851  ;;  %v2493_v26 = vsel %vm2483_vm15, %v2456_v25, %v1887_v1  ;;  %v2421_v15 = vsel %vm2409_vm13, %v2384_v35, %v5338_v59  ;;  %v1015_v25 = vld [vmem:[#allocation2 + $0xf9] sm:$0xff] }
 0x1fa   : > { %1861 = vrot.lane.b32.xlu0 %v5249_v38, %s4139_s20  ;;  %v1147_v38 = vpack.c.bf16 %v1122_v41, %v1121_v18  ;;  %v2458_v62 = vsel %vm2446_vm14, %v2421_v15, %v5343_v8 }
 0x1fb   : > { %1809 = vrot.lane.b32.xlu1 %v1034_v46, %s4138_s19 }
 0x1fc   : > { %v1924_v63 = vpop.permute.xlu0 %1923 }
 0x1fd   : > { %v1889_v49 = vpop.permute.xlu1 %1888  ;;  %v2530_v39 = vsel %vm2520_vm0, %v2493_v26, %v1924_v63  ;;  %v1232_v63 = vld [vmem:[#allocation2 + $0xe3] sm:$0xff] }
 0x1fe   : > { %1898 = vrot.lane.b32.xlu0 %v1034_v46, %s4140_s21  ;;  %v1230_v46 = vld [vmem:[#allocation2 + $0xd3] sm:$0xff]  ;;  %v2495_v54 = vsel %vm2483_vm15, %v2458_v62, %v1889_v49  ;;  %v1256_v47 = vpack.c.bf16 %v1232_v63, %v1231_v4  ;;  %v1069_v26 = vld [vmem:[#allocation3 + $0xf9] sm:$0xff] }
 0x1ff   : > { %1863 = vrot.lane.b32.xlu1 %v1088_v11, %s4139_s20  ;;  %v1255_v59 = vpack.c.bf16 %v1230_v46, %v1229_v51  ;;  %v1016_v51 = vld [vmem:[#allocation2 + $0x101] sm:$0xff] }
 0x200   : > { %v1978_v37 = vpop.permute.xlu0 %1977  ;;  %v2720_v20 = vsel %vm317_vm1, %v1256_v47, %v5026_v57 }
 0x201   : > { %v1926_v48 = vpop.permute.xlu1 %1925  ;;  %v2567_v1 = vsel %vm2557_vm2, %v2530_v39, %v1978_v37  ;;  %v2717_v31 = vsel %vm317_vm1, %v1255_v59, %v5022_v16  ;;  %v1125_v39 = vld [vmem:[#allocation2 + $0xea] sm:$0xff] }
 0x202   : > { %1935 = vrot.lane.b32.xlu0 %v1088_v11, %s4141_s22  ;;  %v906_v11 = vld [vmem:[#allocation2 + $0xf0] sm:$0xff]  ;;  %v2532_v61 = vsel %vm2520_vm0, %v2495_v54, %v1926_v48  ;;  %v1128_v54 = vld [vmem:[#allocation2 + $0x102] sm:$0xff] }
 0x203   : > { %1900 = vrot.lane.b32.xlu1 %v5350_v0, %s4140_s21  ;;  %v928_v43 = vpack.c.bf16 %v906_v11, %v905_v45  ;;  %v6241_v11 = vld [vmem:[#allocation8_spill] sm:$0xff] }
 0x204   : > { %v1980_v24 = vpop.permute.xlu0 %1979 }
 0x205   : > { %v5357_v42 = vpop.permute.xlu1 %1637  ;;  %v2569_v8 = vsel %vm2557_vm2, %v2532_v61, %v1980_v24  ;;  %v6242_v61 = vld [vmem:[#allocation9_spill] sm:$0xff] }
 0x206   : > { %1989 = vrot.lane.b32.xlu0 %v1147_v38, %s4142_s8 }
 0x207   : > { %1937 = vrot.lane.b32.xlu1 %v5355_v36, %s4141_s22 }
 0x208   : > { %v5365_v5 = vpop.permute.xlu0 %1639 }
 0x209   : > { %v2032_v44 = vpop.permute.xlu1 %2031 }
 0x20a   : > { %1991 = vrot.lane.b32.xlu0 %v1148_v22, %s4142_s8  ;;  %v2604_v18 = vsel %vm2594_vm7, %v2567_v1, %v2032_v44  ;;  %v958_v22 = vld [vmem:[#allocation3 + $0xe0] sm:$0xff]  ;;  %v959_v44 = vld [vmem:[#allocation3 + $0xe8] sm:$0xff] }
 0x20b   : > { %1649 = vrot.lane.b32.xlu1 %v6238_v56, %s4135_s16  ;;  %v981_v24 = vpack.c.bf16 %v958_v22, %v957_v27  ;;  %v982_v56 = vpack.c.bf16 %v960_v32, %v959_v44  ;;  %v1127_v1 = vld [vmem:[#allocation2 + $0xfa] sm:$0xff] }
 0x20c   : > { %v2034_v9 = vpop.permute.xlu0 %2033  ;;  %v907_v32 = vld [vmem:[#allocation2 + $0xf8] sm:$0xff] }
 0x20d   : > { %v5384_v30 = vpop.permute.xlu1 %1691  ;;  %v2606_v49 = vsel %vm2594_vm7, %v2569_v8, %v2034_v9  ;;  %v1067_v9 = vld [vmem:[#allocation3 + $0xe9] sm:$0xff] }
 0x20e   : > { %1651 = vrot.lane.b32.xlu0 %v6240_v60, %s4135_s16  ;;  %v1090_v53 = vpack.c.bf16 %v1068_v58, %v1067_v9  ;;  %v1070_v60 = vld [vmem:[#allocation3 + $0x101] sm:$0xff] }
 0x20f   : > { %2043 = vrot.lane.b32.xlu1 %v1201_v17, %s4143_s13  ;;  %v1013_v17 = vld [vmem:[#allocation2 + $0xe9] sm:$0xff]  ;;  %v1234_v9 = vld [vmem:[#allocation2 + $0xf3] sm:$0xff] }
 0x210   : > { %v5398_v7 = vpop.permute.xlu0 %1693  ;;  %v1036_v3 = vpack.c.bf16 %v1014_v34, %v1013_v17  ;;  %v1233_v17 = vld [vmem:[#allocation2 + $0xeb] sm:$0xff] }
 0x211   : > { %v2766_v41 = vpop.permute.xlu1 %2765 }
 0x212   : > { %v2803_v38 = vsel %vm2793_vm8, %v2604_v18, %v2766_v41  ;;  %2045 = vrot.lane.b32.xlu0 %v1202_v10, %s4143_s13  ;;  %v2275_v18 = vsel %vm2261_vm9, %v4881_v23, %v4986_v55 }
 0x213   : > { %1703 = vrot.lane.b32.xlu1 %v927_v52, %s4136_s17  ;;  %4042 = vmatprep.mubr.msk.bf16.mxu0 %vm2892_vm12, %v2803_v38  ;;  %v1126_v52 = vld [vmem:[#allocation2 + $0xf2] sm:$0xff]  ;;  %v2312_v59 = vsel %vm2298_vm10, %v2275_v18, %v5357_v42  ;;  %v1150_v38 = vpack.c.bf16 %v1128_v54, %v1127_v1 }
 0x214   : > { %v2768_v37 = vpop.permute.xlu0 %2767  ;;  %v1149_v62 = vpack.c.bf16 %v1126_v52, %v1125_v39  ;;  %v2349_v63 = vsel %vm2335_vm11, %v2312_v59, %v5384_v30  ;;  %v1180_v30 = vld [vmem:[#allocation3 + $0xf2] sm:$0xff] }
 0x215   : > { %v2805_v6 = vsel %vm2793_vm8, %v2606_v49, %v2768_v37  ;;  %v1746_v48 = vpop.permute.xlu1 %1745  ;;  %v1179_v49 = vld [vmem:[#allocation3 + $0xea] sm:$0xff]  ;;  %v961_v52 = vld [vmem:[#allocation3 + $0xf8] sm:$0xff] }
 0x216   : > { %1705 = vrot.lane.b32.xlu0 %v928_v43, %s4136_s17  ;;  %4043 = vmatmul.mubr.msk.bf16.gmra.mrb[8].mxu0 %vm2892_vm12, %v2805_v6  ;;  %v2277_v43 = vsel %vm2261_vm9, %v4891_v14, %v4993_v50  ;;  %v2386_v8 = vsel %vm6233_vm3, %v2349_v63, %v1746_v48  ;;  %v6244_v6 = vld [vmem:[#allocation24_spill] sm:$0xff]  ;;  %v1203_v48 = vpack.c.bf16 %v1180_v30, %v1179_v49 }
 0x217   : > { %2777 = vrot.lane.b32.xlu1 %v2717_v31, %s4144_s10  ;;  %v2314_v23 = vsel %vm2298_vm10, %v2277_v43, %v5365_v5  ;;  %v1181_v31 = vld [vmem:[#allocation3 + $0xfa] sm:$0xff]  ;;  %v964_v63 = vld [vmem:[#allocation3 + $0x110] sm:$0xff] }
 0x218   : > { %v1800_v29 = vpop.permute.xlu0 %1799  ;;  %v2351_v37 = vsel %vm2335_vm11, %v2314_v23, %v5398_v7  ;;  %v1182_v7 = vld [vmem:[#allocation3 + $0x102] sm:$0xff]  ;;  %v1017_v23 = vld [vmem:[#allocation2 + $0x109] sm:$0xff] }
 0x219   : > { %v1748_v2 = vpop.permute.xlu1 %1747  ;;  %v2423_v55 = vsel %vm2409_vm13, %v2386_v8, %v1800_v29  ;;  %v1071_v30 = vld [vmem:[#allocation3 + $0x109] sm:$0xff] }
 0x21a   : > { %2779 = vrot.lane.b32.xlu0 %v2720_v20, %s4144_s10  ;;  %v2388_v14 = vsel %vm6243_vm4, %v2351_v37, %v1748_v2  ;;  %v908_v20 = vld [vmem:[#allocation2 + $0x100] sm:$0xff]  ;;  %vm6260_vm4 = vmmov %vm6233_vm3 }
 0x21b   : > { %1757 = vrot.lane.b32.xlu1 %v981_v24, %s4137_s18  ;;  %v1072_v37 = vld [vmem:[#allocation3 + $0x111] sm:$0xff] }
 0x21c   : > { %v1854_v16 = vpop.permute.xlu0 %1853 }
 0x21d   : > { %v1802_v19 = vpop.permute.xlu1 %1801  ;;  %v2460_v27 = vsel %vm2446_vm14, %v2423_v55, %v1854_v16 }
 0x21e   : > { %1811 = vrot.lane.b32.xlu0 %v5350_v0, %s4138_s19  ;;  %v5427_v0 = vpack.c.bf16 %v1016_v51, %v1015_v25  ;;  %v2425_v5 = vsel %vm2409_vm13, %v2388_v14, %v1802_v19 }
 0x21f   : > { %1759 = vrot.lane.b32.xlu1 %v982_v56, %s4137_s18 }
 0x220   : > { %v1891_v28 = vpop.permute.xlu0 %1890 }
 0x221   : > { %v1856_v57 = vpop.permute.xlu1 %1855  ;;  %v2497_v50 = vsel %vm2483_vm15, %v2460_v27, %v1891_v28  ;;  %v1204_v28 = vpack.c.bf16 %v1182_v7, %v1181_v31  ;;  %v1092_v27 = vpack.c.bf16 %v1072_v37, %v1071_v30  ;;  %v1186_v30 = vld [vmem:[#allocation3 + $0x122] sm:$0xff] }
 0x222   : > { %1865 = vrot.lane.b32.xlu0 %v5355_v36, %s4139_s20  ;;  %v5430_v36 = vpack.c.bf16 %v1070_v60, %v1069_v26  ;;  %v2462_v24 = vsel %vm2446_vm14, %v2425_v5, %v1856_v57  ;;  %v929_v57 = vpack.c.bf16 %v908_v20, %v907_v32  ;;  %v1257_v60 = vpack.c.bf16 %v1234_v9, %v1233_v17  ;;  %v1020_v5 = vld [vmem:[#allocation2 + $0x121] sm:$0xff]  ;;  %v6247_v20 = vld [vmem:[#allocation31_spill] sm:$0xff]  ;;  %v6248_v9 = vld [vmem:[#allocation42_spill] sm:$0xff] }
 0x223   : > { %1813 = vrot.lane.b32.xlu1 %v1036_v3, %s4138_s19  ;;  %v6246_v32 = vld [vmem:[#allocation41_spill] sm:$0xff]  ;;  %v1130_v17 = vld [vmem:[#allocation2 + $0x112] sm:$0xff] }
 0x224   : > { %v1928_v33 = vpop.permute.xlu0 %1927  ;;  %v2723_v54 = vsel %vm317_vm1, %v1257_v60, %v5038_v12  ;;  %v1018_v12 = vld [vmem:[#allocation2 + $0x111] sm:$0xff] }
 0x225   : > { %v1893_v35 = vpop.permute.xlu1 %1892  ;;  %v2534_v47 = vsel %vm2520_vm0, %v2497_v50, %v1928_v33  ;;  %v910_v33 = vld [vmem:[#allocation2 + $0x110] sm:$0xff]  ;;  %v1019_v50 = vld [vmem:[#allocation2 + $0x119] sm:$0xff] }
 0x226   : > { %1902 = vrot.lane.b32.xlu0 %v1036_v3, %s4140_s21  ;;  %v2499_v2 = vsel %vm2483_vm15, %v2462_v24, %v1893_v35  ;;  %v6245_v3 = vld [vmem:[#allocation25_spill] sm:$0xff] }
 0x227   : > { %1867 = vrot.lane.b32.xlu1 %v1090_v53, %s4139_s20  ;;  %v873_v24 = vld [vmem:[#allocation2 + $0x127] sm:$0xff] }
 0x228   : > { %v1982_v10 = vpop.permute.xlu0 %1981 }
 0x229   : > { %v1930_v46 = vpop.permute.xlu1 %1929  ;;  %v2571_v29 = vsel %vm2557_vm2, %v2534_v47, %v1982_v10  ;;  %v1235_v10 = vld [vmem:[#allocation2 + $0xfb] sm:$0xff] }
 0x22a   : > { %1939 = vrot.lane.b32.xlu0 %v1090_v53, %s4141_s22  ;;  %v2536_v34 = vsel %vm2520_vm0, %v2499_v2, %v1930_v46  ;;  %v909_v53 = vld [vmem:[#allocation2 + $0x108] sm:$0xff]  ;;  %v2279_v2 = vsel %vm2261_vm9, %v6247_v20, %v6246_v32 }
 0x22b   : > { %1904 = vrot.lane.b32.xlu1 %v5427_v0, %s4140_s21  ;;  %v1236_v46 = vld [vmem:[#allocation2 + $0x103] sm:$0xff] }
 0x22c   : > { %v1984_v15 = vpop.permute.xlu0 %1983 }
 0x22d   : > { %v5434_v45 = vpop.permute.xlu1 %1641  ;;  %v2573_v58 = vsel %vm2557_vm2, %v2536_v34, %v1984_v15  ;;  %v930_v15 = vpack.c.bf16 %v910_v33, %v909_v53  ;;  %v6251_v33 = vld [vmem:[#allocation10_spill] sm:$0xff] }
 0x22e   : > { %1941 = vrot.lane.b32.xlu0 %v5430_v36, %s4141_s22  ;;  %v2316_v34 = vsel %vm2298_vm10, %v2279_v2, %v5434_v45  ;;  %v1131_v45 = vld [vmem:[#allocation2 + $0x11a] sm:$0xff] }
 0x22f   : > { %1616 = vrot.lane.b32.xlu1 %v6241_v11, %s4134_s15  ;;  %v962_v11 = vld [vmem:[#allocation3 + $0x100] sm:$0xff] }
 0x230   : > { %v5443_v41 = vpop.permute.xlu0 %1643  ;;  %v983_v18 = vpack.c.bf16 %v962_v11, %v961_v52 }
 0x231   : > { %v2036_v4 = vpop.permute.xlu1 %2035 }
 0x232   : > { %1618 = vrot.lane.b32.xlu0 %v6242_v61, %s4134_s15  ;;  %v2608_v56 = vsel %vm2594_vm7, %v2571_v29, %v2036_v4  ;;  %v963_v4 = vld [vmem:[#allocation3 + $0x108] sm:$0xff]  ;;  %v874_v29 = vld [vmem:[#allocation2 + $0x12f] sm:$0xff] }
 0x233   : > { %1993 = vrot.lane.b32.xlu1 %v1149_v62, %s4142_s8  ;;  %v1258_v62 = vpack.c.bf16 %v1236_v46, %v1235_v10  ;;  %v984_v43 = vpack.c.bf16 %v964_v63, %v963_v4  ;;  %v1184_v4 = vld [vmem:[#allocation3 + $0x112] sm:$0xff] }
 0x234   : > { %v2038_v42 = vpop.permute.xlu0 %2037 }
 0x235   : > { %v5462_v22 = vpop.permute.xlu1 %1695  ;;  %v2610_v25 = vsel %vm2594_vm7, %v2573_v58, %v2038_v42  ;;  %v2726_v61 = vsel %vm317_vm1, %v1258_v62, %v5042_v21  ;;  %v1038_v42 = vpack.c.bf16 %v1018_v12, %v1017_v23  ;;  %v6249_v58 = vld [vmem:[#allocation32_spill] sm:$0xff]  ;;  %v876_v62 = vld [vmem:[#allocation3 + $0x127] sm:$0xff] }
 0x236   : > { %1995 = vrot.lane.b32.xlu0 %v1150_v38, %s4142_s8 }
 0x237   : > { %1653 = vrot.lane.b32.xlu1 %v6244_v6, %s4135_s16  ;;  %v1073_v6 = vld [vmem:[#allocation3 + $0x119] sm:$0xff] }
 0x238   : > { %v5473_v44 = vpop.permute.xlu0 %1697 }
 0x239   : > { %v2770_v16 = vpop.permute.xlu1 %2769 }
 0x23a   : > { %v2807_v19 = vsel %vm2793_vm8, %v2608_v56, %v2770_v16  ;;  %1655 = vrot.lane.b32.xlu0 %v6245_v3, %s4135_s16  ;;  %v1129_v16 = vld [vmem:[#allocation2 + $0x10a] sm:$0xff]  ;;  %v2353_v3 = vsel %vm2335_vm11, %v2316_v34, %v5462_v22 }
 0x23b   : > { %2047 = vrot.lane.b32.xlu1 %v1203_v48, %s4143_s13  ;;  %4046 = vmatprep.mubr.msk.bf16.mxu0 %vm2892_vm12, %v2807_v19  ;;  %v1074_v48 = vld [vmem:[#allocation3 + $0x121] sm:$0xff] }
 0x23c   : > { %v2772_v51 = vpop.permute.xlu0 %2771 }
 0x23d   : > { %v2809_v35 = vsel %vm2793_vm8, %v2610_v25, %v2772_v51  ;;  %v5486_v26 = vpop.permute.xlu1 %1749  ;;  %v1151_v25 = vpack.c.bf16 %v1130_v17, %v1129_v16  ;;  %v1132_v51 = vld [vmem:[#allocation2 + $0x122] sm:$0xff] }
 0x23e   : > { %2049 = vrot.lane.b32.xlu0 %v1204_v28, %s4143_s13  ;;  %4047 = vmatmul.mubr.msk.bf16.gmra.mrb[12].mxu0 %vm2892_vm12, %v2809_v35  ;;  %v875_v28 = vpack.c.bf16 %v874_v29, %v873_v24  ;;  %v2390_v53 = vsel %vm6250_vm5, %v2353_v3, %v5486_v26  ;;  %v1152_v11 = vpack.c.bf16 %v1132_v51, %v1131_v45  ;;  %v913_v24 = vld [vmem:[#allocation2 + $0x128] sm:$0xff]  ;;  %v914_v29 = vld [vmem:[#allocation2 + $0x130] sm:$0xff]  ;;  %v1239_v16 = vld [vmem:[#allocation2 + $0x11b] sm:$0xff]  ;;  %vm3254_vm5 = vcmask 60416  }
 0x23f   : > { %1707 = vrot.lane.b32.xlu1 %v929_v57, %s4136_s17  ;;  %v2281_v57 = vsel %vm2261_vm9, %v6249_v58, %v6248_v9  ;;  %v1240_v17 = vld [vmem:[#allocation2 + $0x123] sm:$0xff]  ;;  %v932_v34 = vpack.c.bf16 %v914_v29, %v913_v24  ;;  %v967_v45 = vld [vmem:[#allocation3 + $0x128] sm:$0xff] }
 0x240   : > { %v5491_v39 = vpop.permute.xlu0 %1803  ;;  %v2318_v22 = vsel %vm2298_vm10, %v2281_v57, %v5443_v41  ;;  %v965_v3 = vld [vmem:[#allocation3 + $0x118] sm:$0xff]  ;;  %v1260_v9 = vpack.c.bf16 %v1240_v17, %v1239_v16  ;;  %v6254_v57 = vld [vmem:[#allocation15_spill] sm:$0xff]  ;;  %v968_v51 = vld [vmem:[#allocation3 + $0x130] sm:$0xff] }
 0x241   : > { %v5493_v1 = vpop.permute.xlu1 %1751  ;;  %v2427_v35 = vsel %vm2409_vm13, %v2390_v53, %v5491_v39  ;;  %v2355_v10 = vsel %vm2335_vm11, %v2318_v22, %v5473_v44  ;;  %v877_v44 = vld [vmem:[#allocation3 + $0x12f] sm:$0xff] }
 0x242   : > { %1709 = vrot.lane.b32.xlu0 %v930_v15, %s4136_s17  ;;  %v2392_v26 = vsel %vm6252_vm6, %v2355_v10, %v5493_v1  ;;  %v1183_v1 = vld [vmem:[#allocation3 + $0x10a] sm:$0xff]  ;;  %v878_v23 = vpack.c.bf16 %v877_v44, %v876_v62  ;;  %v986_v10 = vpack.c.bf16 %v968_v51, %v967_v45  ;;  %v1190_v45 = vld [vmem:[#allocation3 + $0x142] sm:$0xff]  ;;  %vm6265_vm6 = vmmov %vm6233_vm3 }
 0x243   : > { %2781 = vrot.lane.b32.xlu1 %v2723_v54, %s4144_s10  ;;  %v6255_v22 = vld [vmem:[#allocation16_spill] sm:$0xff] }
 0x244   : > { %v1858_v59 = vpop.permute.xlu0 %1857  ;;  %v1075_v62 = vld [vmem:[#allocation3 + $0x129] sm:$0xff]  ;;  %v1076_v44 = vld [vmem:[#allocation3 + $0x131] sm:$0xff] }
 0x245   : > { %v1806_v38 = vpop.permute.xlu1 %1805  ;;  %v2464_v46 = vsel %vm2446_vm14, %v2427_v35, %v1858_v59  ;;  %v2732_v35 = vsel %vm317_vm1, %v1260_v9, %v6255_v22  ;;  %v1135_v29 = vld [vmem:[#allocation2 + $0x13a] sm:$0xff] }
 0x246   : > { %2783 = vrot.lane.b32.xlu0 %v2726_v61, %s4144_s10  ;;  %v2429_v41 = vsel %vm2409_vm13, %v2392_v26, %v1806_v38  ;;  %v1021_v26 = vld [vmem:[#allocation2 + $0x129] sm:$0xff] }
 0x247   : > { %1761 = vrot.lane.b32.xlu1 %v983_v18, %s4137_s18 }
 0x248   : > { %v1895_v8 = vpop.permute.xlu0 %1894 }
 0x249   : > { %v1860_v55 = vpop.permute.xlu1 %1859  ;;  %v2501_v52 = vsel %vm2483_vm15, %v2464_v46, %v1895_v8 }
 0x24a   : > { %1815 = vrot.lane.b32.xlu0 %v5427_v0, %s4138_s19  ;;  %v5511_v0 = vpack.c.bf16 %v1020_v5, %v1019_v50  ;;  %v2466_v54 = vsel %vm2446_vm14, %v2429_v41, %v1860_v55  ;;  %v6253_v55 = vld [vmem:[#allocation26_spill] sm:$0xff] }
 0x24b   : > { %1763 = vrot.lane.b32.xlu1 %v984_v43, %s4137_s18 }
 0x24c   : > { %v1932_v49 = vpop.permute.xlu0 %1931 }
 0x24d   : > { %v1897_v21 = vpop.permute.xlu1 %1896  ;;  %v2538_v39 = vsel %vm2520_vm0, %v2501_v52, %v1932_v49  ;;  %v1185_v49 = vld [vmem:[#allocation3 + $0x11a] sm:$0xff] }
 0x24e   : > { %1869 = vrot.lane.b32.xlu0 %v5430_v36, %s4139_s20  ;;  %v5516_v36 = vpack.c.bf16 %v1074_v48, %v1073_v6  ;;  %v2503_v63 = vsel %vm2483_vm15, %v2466_v54, %v1897_v21  ;;  %v1206_v6 = vpack.c.bf16 %v1186_v30, %v1185_v49  ;;  %v1238_v48 = vld [vmem:[#allocation2 + $0x113] sm:$0xff] }
 0x24f   : > { %1817 = vrot.lane.b32.xlu1 %v1038_v42, %s4138_s19  ;;  %v1022_v52 = vld [vmem:[#allocation2 + $0x131] sm:$0xff] }
 0x250   : > { %v1986_v14 = vpop.permute.xlu0 %1985  ;;  %v1040_v41 = vpack.c.bf16 %v1022_v52, %v1021_v26 }
 0x251   : > { %v1934_v47 = vpop.permute.xlu1 %1933  ;;  %v2575_v18 = vsel %vm2557_vm2, %v2538_v39, %v1986_v14  ;;  %v912_v14 = vld [vmem:[#allocation2 + $0x120] sm:$0xff] }
 0x252   : > { %1906 = vrot.lane.b32.xlu0 %v1038_v42, %s4140_s21  ;;  %v2540_v38 = vsel %vm2520_vm0, %v2503_v63, %v1934_v47  ;;  %v1205_v42 = vpack.c.bf16 %v1184_v4, %v1183_v1  ;;  %v1237_v47 = vld [vmem:[#allocation2 + $0x10b] sm:$0xff]  ;;  %v1095_v4 = vld [vmem:[#allocation2 + $0x139] sm:$0xff]  ;;  %v1096_v63 = vld [vmem:[#allocation2 + $0x141] sm:$0xff] }
 0x253   : > { %1871 = vrot.lane.b32.xlu1 %v1092_v27, %s4139_s20  ;;  %v1259_v2 = vpack.c.bf16 %v1238_v48, %v1237_v47  ;;  %v1187_v48 = vld [vmem:[#allocation3 + $0x12a] sm:$0xff] }
 0x254   : > { %v1988_v31 = vpop.permute.xlu0 %1987 }
 0x255   : > { %v5513_v7 = vpop.permute.xlu1 %1645  ;;  %v2577_v12 = vsel %vm2557_vm2, %v2540_v38, %v1988_v31  ;;  %v2729_v53 = vsel %vm317_vm1, %v1259_v2, %v6254_v57  ;;  %v1134_v38 = vld [vmem:[#allocation2 + $0x132] sm:$0xff]  ;;  %v1136_v2 = vld [vmem:[#allocation2 + $0x142] sm:$0xff] }
 0x256   : > { %1943 = vrot.lane.b32.xlu0 %v1092_v27, %s4141_s22  ;;  %v911_v27 = vld [vmem:[#allocation2 + $0x118] sm:$0xff] }
 0x257   : > { %1908 = vrot.lane.b32.xlu1 %v5511_v0, %s4140_s21  ;;  %v931_v31 = vpack.c.bf16 %v912_v14, %v911_v27  ;;  %v6258_v27 = vld [vmem:[#allocation12_spill] sm:$0xff]  ;;  %v6259_v14 = vld [vmem:[#allocation34_spill] sm:$0xff] }
 0x258   : > { %v5523_v56 = vpop.permute.xlu0 %1647 }
 0x259   : > { %v2040_v19 = vpop.permute.xlu1 %2039 }
 0x25a   : > { %1945 = vrot.lane.b32.xlu0 %v5516_v36, %s4141_s22  ;;  %v2612_v61 = vsel %vm2594_vm7, %v2575_v18, %v2040_v19  ;;  %v1094_v18 = vpack.c.bf16 %v1076_v44, %v1075_v62 }
 0x25b   : > { %1620 = vrot.lane.b32.xlu1 %v6251_v33, %s4134_s15 }
 0x25c   : > { %v2042_v60 = vpop.permute.xlu0 %2041 }
 0x25d   : > { %v5545_v15 = vpop.permute.xlu1 %1699  ;;  %v2614_v37 = vsel %vm2594_vm7, %v2577_v12, %v2042_v60 }
 0x25e   : > { %1622 = vrot.lane.b32.xlu0 %v875_v28, %s4134_s15  ;;  %v966_v28 = vld [vmem:[#allocation3 + $0x120] sm:$0xff] }
 0x25f   : > { %1997 = vrot.lane.b32.xlu1 %v1151_v25, %s4142_s8  ;;  %v985_v33 = vpack.c.bf16 %v966_v28, %v965_v3  ;;  %v1242_v3 = vld [vmem:[#allocation2 + $0x133] sm:$0xff] }
 0x260   : > { %v5556_v59 = vpop.permute.xlu0 %1701 }
 0x261   : > { %v2774_v43 = vpop.permute.xlu1 %2773 }
 0x262   : > { %v2811_v8 = vsel %vm2793_vm8, %v2612_v61, %v2774_v43  ;;  %1999 = vrot.lane.b32.xlu0 %v1152_v11, %s4142_s8  ;;  %v1133_v43 = vld [vmem:[#allocation2 + $0x12a] sm:$0xff] }
 0x263   : > { %1657 = vrot.lane.b32.xlu1 %v6253_v55, %s4135_s16  ;;  %4050 = vmatprep.mubr.msk.bf16.mxu0 %vm2892_vm12, %v2811_v8  ;;  %v6256_v8 = vld [vmem:[#allocation43_spill] sm:$0xff]  ;;  %v1098_v55 = vld [vmem:[#allocation3 + $0x139] sm:$0xff] }
 0x264   : > { %v2776_v21 = vpop.permute.xlu0 %2775 }
 0x265   : > { %v2813_v50 = vsel %vm2793_vm8, %v2614_v37, %v2776_v21  ;;  %v5569_v5 = vpop.permute.xlu1 %1753  ;;  %v1153_v21 = vpack.c.bf16 %v1134_v38, %v1133_v43 }
 0x266   : > { %1659 = vrot.lane.b32.xlu0 %v878_v23, %s4135_s16  ;;  %4051 = vmatmul.mubr.msk.bf16.gmra.mrb[16].mxu0 %vm2892_vm12, %v2813_v50  ;;  %v6257_v23 = vld [vmem:[#allocation33_spill] sm:$0xff]  ;;  %v2285_v50 = vsel %vm2261_vm9, %v6259_v14, %v6258_v27  ;;  %s315_s16 = scalar_lea.vmem %s6151_s7, %s6274_s25 }
 0x267   : > { %2051 = vrot.lane.b32.xlu1 %v1205_v42, %s4143_s13  ;;  %v2283_v12 = vsel %vm2261_vm9, %v6257_v23, %v6256_v8  ;;  %v1099_v42 = vld [vmem:[#allocation3 + $0x141] sm:$0xff] }
 0x268   : > { %v5574_v32 = vpop.permute.xlu0 %1807  ;;  %v2320_v49 = vsel %vm2298_vm10, %v2283_v12, %v5513_v7  ;;  %v2322_v7 = vsel %vm2298_vm10, %v2285_v50, %v5523_v56  ;;  %v3329_v50 = vld [vmem:[%s6146_s2 + $0x10] sm:$0xff] }
 0x269   : > { %v5576_v20 = vpop.permute.xlu1 %1755  ;;  %v2357_v37 = vsel %vm2335_vm11, %v2320_v49, %v5545_v15  ;;  %v2359_v16 = vsel %vm2335_vm11, %v2322_v7, %v5556_v59  ;;  %v1154_v59 = vpack.c.bf16 %v1136_v2, %v1135_v29  ;;  %v3330_v7 = vld [vmem:[%s6146_s2 + $0x18] sm:$0xff] }
 0x26a   : > { %2053 = vrot.lane.b32.xlu0 %v1206_v6, %s4143_s13  ;;  %v2394_v47 = vsel %vm6233_vm3, %v2357_v37, %v5569_v5  ;;  %v1100_v6 = vpack.c.bf16 %v1099_v42, %v1098_v55  ;;  %v2396_v28 = vsel %vm6260_vm4, %v2359_v16, %v5576_v20  ;;  %v1189_v20 = vld [vmem:[#allocation3 + $0x13a] sm:$0xff]  ;;  %vm6268_vm4 = vmmov %vm6233_vm3 }
 0x26b   : > { %1711 = vrot.lane.b32.xlu1 %v931_v31, %s4136_s17  ;;  %v1188_v31 = vld [vmem:[#allocation3 + $0x132] sm:$0xff]  ;;  %v2431_v15 = vsel %vm2409_vm13, %v2394_v47, %v5574_v32  ;;  %v1208_v52 = vpack.c.bf16 %v1190_v45, %v1189_v20 }
 0x26c   : > { %v1862_v19 = vpop.permute.xlu0 %1861  ;;  %v1207_v32 = vpack.c.bf16 %v1188_v31, %v1187_v48 }
 0x26d   : > { %v5580_v58 = vpop.permute.xlu1 %1809  ;;  %v2468_v17 = vsel %vm2446_vm14, %v2431_v15, %v1862_v19  ;;  %v3327_v15 = vld [vmem:[%s6146_s2] sm:$0xff] }
 0x26e   : > { %1713 = vrot.lane.b32.xlu0 %v932_v34, %s4136_s17  ;;  %v1241_v34 = vld [vmem:[#allocation2 + $0x12b] sm:$0xff]  ;;  %v2433_v9 = vsel %vm2409_vm13, %v2396_v28, %v5580_v58 }
 0x26f   : > { %2785 = vrot.lane.b32.xlu1 %v2729_v53, %s4144_s10 }
 0x270   : > { %v1899_v25 = vpop.permute.xlu0 %1898 }
 0x271   : > { %v1864_v60 = vpop.permute.xlu1 %1863  ;;  %v2505_v56 = vsel %vm2483_vm15, %v2468_v17, %v1899_v25  ;;  %v1261_v25 = vpack.c.bf16 %v1242_v3, %v1241_v34 }
 0x272   : > { %2787 = vrot.lane.b32.xlu0 %v2732_v35, %s4144_s10  ;;  %v2470_v19 = vsel %vm2446_vm14, %v2433_v9, %v1864_v60  ;;  %v1244_v60 = vld [vmem:[#allocation2 + $0x143] sm:$0xff] }
 0x273   : > { %1765 = vrot.lane.b32.xlu1 %v985_v33, %s4137_s18 }
 0x274   : > { %v1936_v46 = vpop.permute.xlu0 %1935 }
 0x275   : > { %v1901_v11 = vpop.permute.xlu1 %1900  ;;  %v2542_v57 = vsel %vm2520_vm0, %v2505_v56, %v1936_v46  ;;  %v1243_v46 = vld [vmem:[#allocation2 + $0x13b] sm:$0xff] }
 0x276   : > { %1819 = vrot.lane.b32.xlu0 %v5511_v0, %s4138_s19  ;;  %v1097_v0 = vpack.c.bf16 %v1096_v63, %v1095_v4  ;;  %v2507_v51 = vsel %vm2483_vm15, %v2470_v19, %v1901_v11 }
 0x277   : > { %1767 = vrot.lane.b32.xlu1 %v986_v10, %s4137_s18  ;;  %s5675_s18 = scalar_lea.vmem %s6149_s5, %s4216_s26 }
 0x278   : > { %v1990_v39 = vpop.permute.xlu0 %1989 }
 0x279   : > { %v1938_v54 = vpop.permute.xlu1 %1937  ;;  %v2579_v53 = vsel %vm2557_vm2, %v2542_v57, %v1990_v39  ;;  %v2735_v39 = vsel %vm317_vm1, %v1261_v25, %v5236_v40  ;;  %v5664_v40 = vld [vmem:[%s6148_s4] ss:$0 sm:$0xff] }
 0x27a   : > { %1873 = vrot.lane.b32.xlu0 %v5516_v36, %s4139_s20  ;;  %v2544_v58 = vsel %vm2520_vm0, %v2507_v51, %v1938_v54  ;;  %v1262_v54 = vpack.c.bf16 %v1244_v60, %v1243_v46 }
 0x27b   : > { %1821 = vrot.lane.b32.xlu1 %v1040_v41, %s4138_s19 }
 0x27c   : > { %v1992_v1 = vpop.permute.xlu0 %1991  ;;  %v2738_v4 = vsel %vm317_vm1, %v1262_v54, %v5242_v13 }
 0x27d   : > { %v5596_v61 = vpop.permute.xlu1 %1649  ;;  %v2581_v26 = vsel %vm2557_vm2, %v2544_v58, %v1992_v1 }
 0x27e   : > { %1910 = vrot.lane.b32.xlu0 %v1040_v41, %s4140_s21 }
 0x27f   : > { %1875 = vrot.lane.b32.xlu1 %v1094_v18, %s4139_s20 }
 0x280   : > { %v5603_v36 = vpop.permute.xlu0 %1651 }
 0x281   : > { %v2044_v30 = vpop.permute.xlu1 %2043 }
 0x282   : > { %1947 = vrot.lane.b32.xlu0 %v1094_v18, %s4141_s22  ;;  %v2616_v22 = vsel %vm2594_vm7, %v2579_v53, %v2044_v30 }
 0x283   : > { %1912 = vrot.lane.b32.xlu1 %v1097_v0, %s4140_s21 }
 0x284   : > { %v2046_v24 = vpop.permute.xlu0 %2045 }
 0x285   : > { %v5623_v5 = vpop.permute.xlu1 %1703  ;;  %v2618_v11 = vsel %vm2594_vm7, %v2581_v26, %v2046_v24  ;;  %v3328_v24 = vld [vmem:[%s6146_s2 + $0x8] sm:$0xff] }
 0x286   : > { %2001 = vrot.lane.b32.xlu0 %v1153_v21, %s4142_s8 }
 0x287   : > { %1949 = vrot.lane.b32.xlu1 %v1100_v6, %s4141_s22 }
 0x288   : > { %v5635_v33 = vpop.permute.xlu0 %1705 }
 0x289   : > { %v2778_v35 = vpop.permute.xlu1 %2777 }
 0x28a   : > { %2055 = vrot.lane.b32.xlu0 %v1207_v32, %s4143_s13  ;;  %v2815_v10 = vsel %vm2793_vm8, %v2616_v22, %v2778_v35 }
 0x28b   : > { %2003 = vrot.lane.b32.xlu1 %v1154_v59, %s4142_s8  ;;  %4054 = vmatprep.mubr.msk.bf16.mxu1 %vm2892_vm12, %v2815_v10 }
 0x28c   : > { %v2780_v41 = vpop.permute.xlu0 %2779 }
 0x28d   : > { %v2817_v62 = vsel %vm2793_vm8, %v2618_v11, %v2780_v41  ;;  %v5649_v44 = vpop.permute.xlu1 %1757 }
 0x28e   : > { %2789 = vrot.lane.b32.xlu0 %v2735_v39, %s4144_s10  ;;  %4055 = vmatmul.mubr.msk.bf16.vlgmr.msra.gmra.mrb[0].mxu1 %vm2892_vm12, %v2817_v62 }
 0x28f   : > { %2057 = vrot.lane.b32.xlu1 %v1208_v52, %s4143_s13 }
 0x290   : > { %v5654_v18 = vpop.permute.xlu0 %1811 }
 0x291   : > { %v5656_v1 = vpop.permute.xlu1 %1759 }
 0x293   : > { %2791 = vrot.lane.b32.xlu1 %v2738_v4, %s4144_s10  ;;  %s312_s10 = scalar_lea.vmem %s6150_s6, %s6274_s25 }
 0x294   : > { %v5666_v63 = vpop.permute.xlu0 %1865 }
 0x295   : > { %v5668_v0 = vpop.permute.xlu1 %1813  ;;  %v4036_v43 = vpop.f32.mrb[0].mxu0 }
 0x296   : > { %v2976_v38 = vadd.f32 %v4036_v43, %v5664_v40  ;;  %v2967_v8 = vpop.f32.mrb[1].mxu0  ;;  %v6261_v43 = vld [vmem:[#allocation44_spill] sm:$0xff] }
 0x297   : > { %v2968_v13 = vadd.f32 %v5664_v40, %v2967_v8  ;;  %v4037_v23 = vpop.f32.mrb[2].mxu0 }
 0x298   : > { %v3783_v12 = vpack.c.bf16 %v2976_v38, %v2976_v38  ;;  %v2979_v55 = vadd.f32 %v4037_v23, %v5664_v40  ;;  %v5679_v42 = vpop.permute.xlu0 %1902  ;;  %v2970_v49 = vpop.f32.mrb[3].mxu0 }
 0x299   : > { %v3781_v30 = vpack.c.bf16 %v2968_v13, %v2968_v13  ;;  %v5681_v37 = vpop.permute.xlu1 %1867  ;;  %v2971_v21 = vadd.f32 %v5664_v40, %v2970_v49  ;;  %v6263_v49 = vld [vmem:[#allocation45_spill] sm:$0xff] }
 0x29a   : > { %3257 = vst.msk [vmem:[%s5675_s18 + $0x8] sm:$0xf] %vm3254_vm5, %v3783_v12  ;;  %v3111_v27 = vpack.c.bf16 %v2979_v55, %v2976_v38  ;;  %v3784_v14 = vpack.c.bf16 %v2979_v55, %v2979_v55  ;;  %v6262_v38 = vld [vmem:[#allocation35_spill] sm:$0xff] }
 0x29b   : > { %3255 = vst.msk [vmem:[%s5675_s18] sm:$0xf] %vm3254_vm5, %v3781_v30  ;;  %v3110_v47 = vpack.c.bf16 %v2971_v21, %v2968_v13  ;;  %v3782_v6 = vpack.c.bf16 %v2971_v21, %v2971_v21  ;;  %v2287_v8 = vsel %vm2261_vm9, %v6262_v38, %v6261_v43  ;;  %v6264_v30 = vld [vmem:[#allocation36_spill] sm:$0xff] }
 0x29c   : > { %3258 = vst.msk [vmem:[%s5675_s18 + $0xc] sm:$0xf] %vm3254_vm5, %v3784_v14  ;;  %v3293_v48 = vunpack.c.l.bf16 %v3111_v27  ;;  %v3294_v31 = vunpack.c.h.bf16 %v3111_v27  ;;  %v1940_v29 = vpop.permute.xlu0 %1939  ;;  %v2324_v23 = vsel %vm2298_vm10, %v2287_v8, %v5596_v61  ;;  %v2289_v21 = vsel %vm2261_vm9, %v6264_v30, %v6263_v49 }
 0x29d   : > { %3256 = vst.msk [vmem:[%s5675_s18 + $0x4] sm:$0xf] %vm3254_vm5, %v3782_v6  ;;  %v3291_v2 = vunpack.c.l.bf16 %v3110_v47  ;;  %v3292_v16 = vunpack.c.h.bf16 %v3110_v47  ;;  %v1905_v17 = vpop.permute.xlu1 %1904  ;;  %v2361_v55 = vsel %vm2335_vm11, %v2324_v23, %v5623_v5  ;;  %v2326_v14 = vsel %vm2298_vm10, %v2289_v21, %v5603_v36 }
 0x29e   : > { %v3365_v34 = vmul.f32 %v3329_v50, %v3293_v48  ;;  %v3366_v3 = vmul.f32 %v3330_v7, %v3294_v31  ;;  %v2398_v27 = vsel %vm6265_vm6, %v2361_v55, %v5649_v44  ;;  %v2363_v61 = vsel %vm2335_vm11, %v2326_v14, %v5635_v33  ;;  %v3334_v55 = vld [vmem:[%s6146_s2 + $0x38] sm:$0xff]  ;;  %vm6269_vm6 = vmmov %vm6233_vm3 }
 0x29f   : > { %v3363_v28 = vmul.f32 %v3327_v15, %v3291_v2  ;;  %v3364_v56 = vmul.f32 %v3328_v24, %v3292_v16  ;;  %v2435_v50 = vsel %vm2409_vm13, %v2398_v27, %v5654_v18  ;;  %v2400_v48 = vsel %vm6233_vm3, %v2363_v61, %v5656_v1 }
 0x2a0   : > { %v3480_v32 = vmul.f32 %v3365_v34, %v3365_v34  ;;  %v1942_v9 = vpop.permute.xlu0 %1941  ;;  %v3402_v25 = vsel %vm317_vm1, %v3365_v34, 0.0  ;;  %v3481_v51 = vmul.f32 %v3366_v3, %v3366_v3  ;;  %v3404_v60 = vsel %vm317_vm1, %v3366_v3, 0.0 }
 0x2a1   : > { %v3399_v57 = vsel %vm317_vm1, %v3363_v28, 0.0  ;;  %v3400_v59 = vsel %vm317_vm1, %v3364_v56, 0.0  ;;  %v3478_v19 = vmul.f32 %v3363_v28, %v3363_v28  ;;  %v3479_v53 = vmul.f32 %v3364_v56, %v3364_v56  ;;  %v5706_v20 = vpop.permute.xlu1 %1616 }
 0x2a2   : > { %v3401_v45 = vadd.f32 %v3400_v59, %v3399_v57  ;;  %v3517_v26 = vsel %vm317_vm1, %v3480_v32, 0.0  ;;  %v3519_v39 = vsel %vm317_vm1, %v3481_v51, 0.0  ;;  %v2472_v5 = vsel %vm2446_vm14, %v2435_v50, %v5666_v63 }
 0x2a3   : > { %v3514_v22 = vsel %vm317_vm1, %v3478_v19, 0.0  ;;  %v3515_v35 = vsel %vm317_vm1, %v3479_v53, 0.0  ;;  %v2509_v44 = vsel %vm2483_vm15, %v2472_v5, %v5679_v42  ;;  %v2437_v36 = vsel %vm2409_vm13, %v2400_v48, %v5668_v0 }
 0x2a4   : > { %v3403_v58 = vadd.f32 %v3402_v25, %v3401_v45  ;;  %v3516_v10 = vadd.f32 %v3515_v35, %v3514_v22  ;;  %v5711_v46 = vpop.permute.xlu0 %1618  ;;  %v2546_v18 = vsel %vm2520_vm0, %v2509_v44, %v1940_v29  ;;  %v2474_v31 = vsel %vm2446_vm14, %v2437_v36, %v5681_v37 }
 0x2a5   : > { %v1994_v52 = vpop.permute.xlu1 %1993  ;;  %v2511_v63 = vsel %vm2483_vm15, %v2474_v31, %v1905_v17 }
 0x2a6   : > { %v3518_v11 = vadd.f32 %v3517_v26, %v3516_v10  ;;  %v5715_v41 = vadd.f32 %v3404_v60, %v3403_v58  ;;  %v2583_v33 = vsel %vm2557_vm2, %v2546_v18, %v1994_v52  ;;  %v2548_v24 = vsel %vm2520_vm0, %v2511_v63, %v1942_v9 }
 0x2a8   : > { %v1996_v62 = vpop.permute.xlu0 %1995  ;;  %v5718_v54 = vadd.f32 %v3519_v39, %v3518_v11  ;;  %v3333_v11 = vld [vmem:[%s6146_s2 + $0x30] sm:$0xff]  ;;  %v3331_v39 = vld [vmem:[%s6146_s2 + $0x20] sm:$0xff] }
 0x2a9   : > { %v5720_v4 = vpop.permute.xlu1 %1653  ;;  %v2585_v0 = vsel %vm2557_vm2, %v2548_v24, %v1996_v62  ;;  %v3332_v62 = vld [vmem:[%s6146_s2 + $0x28] sm:$0xff] }
 0x2ac   : > { %v5725_v13 = vpop.permute.xlu0 %1655 }
 0x2ad   : > { %v2048_v12 = vpop.permute.xlu1 %2047 }
 0x2ae   : > { %v2620_v15 = vsel %vm2594_vm7, %v2583_v33, %v2048_v12 }
 0x2b0   : > { %v2050_v47 = vpop.permute.xlu0 %2049 }
 0x2b1   : > { %v5744_v6 = vpop.permute.xlu1 %1707  ;;  %v2622_v29 = vsel %vm2594_vm7, %v2585_v0, %v2050_v47 }
 0x2b4   : > { %v5756_v7 = vpop.permute.xlu0 %1709 }
 0x2b5   : > { %v2782_v1 = vpop.permute.xlu1 %2781 }
 0x2b6   : > { %v2819_v42 = vsel %vm2793_vm8, %v2620_v15, %v2782_v1 }
 0x2b7   : > { %4058 = vmatprep.mubr.msk.bf16.mxu1 %vm2892_vm12, %v2819_v42 }
 0x2b8   : > { %v2784_v37 = vpop.permute.xlu0 %2783 }
 0x2b9   : > { %v2821_v2 = vsel %vm2793_vm8, %v2622_v29, %v2784_v37  ;;  %v5766_v16 = vpop.permute.xlu1 %1761 }
 0x2ba   : > { %4059 = vmatmul.mubr.msk.bf16.gmra.mrb[4].mxu1 %vm2892_vm12, %v2821_v2 }
 0x2bc   : > { %v5769_v17 = vpop.permute.xlu0 %1815 }
 0x2bd   : > { %v5771_v34 = vpop.permute.xlu1 %1763 }
 0x2c0   : > { %v5773_v3 = vpop.permute.xlu0 %1869 }
 0x2c1   : > { %v5775_v28 = vpop.permute.xlu1 %1817  ;;  %v4040_v56 = vpop.f32.mrb[4].mxu0 }
 0x2c2   : > { %v2992_v32 = vadd.f32 %v4040_v56, %v5664_v40  ;;  %v2983_v9 = vpop.f32.mrb[5].mxu0 }
 0x2c3   : > { %v2984_v57 = vadd.f32 %v5664_v40, %v2983_v9  ;;  %v4041_v59 = vpop.f32.mrb[6].mxu0 }
 0x2c4   : > { %v3787_v19 = vpack.c.bf16 %v2992_v32, %v2992_v32  ;;  %v2995_v53 = vadd.f32 %v4041_v59, %v5664_v40  ;;  %v5780_v45 = vpop.permute.xlu0 %1906  ;;  %v2986_v25 = vpop.f32.mrb[7].mxu0  ;;  %v6266_v59 = vld [vmem:[#allocation37_spill] sm:$0xff] }
 0x2c5   : > { %v3785_v51 = vpack.c.bf16 %v2984_v57, %v2984_v57  ;;  %v5782_v22 = vpop.permute.xlu1 %1871  ;;  %v2987_v35 = vadd.f32 %v5664_v40, %v2986_v25 }
 0x2c6   : > { %3261 = vst.msk [vmem:[%s5675_s18 + $0x18] sm:$0xf] %vm3254_vm5, %v3787_v19  ;;  %v3113_v58 = vpack.c.bf16 %v2995_v53, %v2992_v32  ;;  %v3788_v10 = vpack.c.bf16 %v2995_v53, %v2995_v53  ;;  %v2291_v19 = vsel %vm2261_vm9, %v6266_v59, %v5706_v20 }
 0x2c7   : > { %3259 = vst.msk [vmem:[%s5675_s18 + $0x10] sm:$0xf] %vm3254_vm5, %v3785_v51  ;;  %v3112_v60 = vpack.c.bf16 %v2987_v35, %v2984_v57  ;;  %v3786_v26 = vpack.c.bf16 %v2987_v35, %v2987_v35  ;;  %v2328_v25 = vsel %vm2298_vm10, %v2291_v19, %v5720_v4  ;;  %v3338_v19 = vld [vmem:[%s6146_s2 + $0x58] sm:$0xff] }
 0x2c8   : > { %3262 = vst.msk [vmem:[%s5675_s18 + $0x1c] sm:$0xf] %vm3254_vm5, %v3788_v10  ;;  %v3297_v52 = vunpack.c.l.bf16 %v3113_v58  ;;  %v1944_v43 = vpop.permute.xlu0 %1943  ;;  %v3298_v38 = vunpack.c.h.bf16 %v3113_v58  ;;  %v2365_v35 = vsel %vm2335_vm11, %v2328_v25, %v5744_v6  ;;  %v6267_v58 = vld [vmem:[#allocation38_spill] sm:$0xff] }
 0x2c9   : > { %3260 = vst.msk [vmem:[%s5675_s18 + $0x14] sm:$0xf] %vm3254_vm5, %v3786_v26  ;;  %v3295_v8 = vunpack.c.l.bf16 %v3112_v60  ;;  %v3296_v23 = vunpack.c.h.bf16 %v3112_v60  ;;  %v1909_v12 = vpop.permute.xlu1 %1908  ;;  %v2293_v10 = vsel %vm2261_vm9, %v6267_v58, %v5711_v46  ;;  %v2402_v60 = vsel %vm6268_vm4, %v2365_v35, %v5766_v16 }
 0x2ca   : > { %v3369_v49 = vmul.f32 %v3333_v11, %v3297_v52  ;;  %v3370_v14 = vmul.f32 %v3334_v55, %v3298_v38  ;;  %v2330_v26 = vsel %vm2298_vm10, %v2293_v10, %v5725_v13  ;;  %v2439_v20 = vsel %vm2409_vm13, %v2402_v60, %v5769_v17 }
 0x2cb   : > { %v3367_v30 = vmul.f32 %v3331_v39, %v3295_v8  ;;  %v3368_v21 = vmul.f32 %v3332_v62, %v3296_v23  ;;  %v2367_v4 = vsel %vm2335_vm11, %v2330_v26, %v5756_v7  ;;  %v2476_v6 = vsel %vm2446_vm14, %v2439_v20, %v5773_v3 }
 0x2cc   : > { %v1946_v27 = vpop.permute.xlu0 %1945  ;;  %v3484_v44 = vmul.f32 %v3369_v49, %v3369_v49  ;;  %v3410_v15 = vsel %vm317_vm1, %v3369_v49, 0.0  ;;  %v3485_v1 = vmul.f32 %v3370_v14, %v3370_v14  ;;  %v2404_v46 = vsel %vm6269_vm6, %v2367_v4, %v5771_v34 }
 0x2cd   : > { %v3406_v50 = vsel %vm317_vm1, %v3367_v30, 0.0  ;;  %v3482_v47 = vmul.f32 %v3367_v30, %v3367_v30  ;;  %v3483_v61 = vmul.f32 %v3368_v21, %v3368_v21  ;;  %v5806_v5 = vpop.permute.xlu1 %1620  ;;  %v3408_v36 = vsel %vm317_vm1, %v3368_v21, 0.0 }
 0x2ce   : > { %v3407_v48 = vadd.f32 %v3406_v50, %v5715_v41  ;;  %v3412_v41 = vsel %vm317_vm1, %v3370_v14, 0.0  ;;  %v3525_v37 = vsel %vm317_vm1, %v3484_v44, 0.0  ;;  %v2513_v16 = vsel %vm2483_vm15, %v2476_v6, %v5780_v45  ;;  %v6270_v6 = vld [vmem:[#allocation39_spill] sm:$0xff] }
 0x2cf   : > { %v3521_v18 = vsel %vm317_vm1, %v3482_v47, 0.0  ;;  %v3523_v24 = vsel %vm317_vm1, %v3483_v61, 0.0  ;;  %v2441_v13 = vsel %vm2409_vm13, %v2404_v46, %v5775_v28  ;;  %v2550_v17 = vsel %vm2520_vm0, %v2513_v16, %v1944_v43 }
 0x2d0   : > { %v3409_v31 = vadd.f32 %v3408_v36, %v3407_v48  ;;  %v3522_v33 = vadd.f32 %v3521_v18, %v5718_v54  ;;  %v5812_v63 = vpop.permute.xlu0 %1622  ;;  %v3527_v54 = vsel %vm317_vm1, %v3485_v1, 0.0  ;;  %v2478_v39 = vsel %vm2446_vm14, %v2441_v13, %v5782_v22 }
 0x2d1   : > { %v1998_v42 = vpop.permute.xlu1 %1997  ;;  %v2515_v3 = vsel %vm2483_vm15, %v2478_v39, %v1909_v12  ;;  %v2295_v46 = vsel %vm2261_vm9, %v6270_v6, %v5806_v5  ;;  %v3339_v6 = vld [vmem:[%s6146_s2 + $0x60] sm:$0xff] }
 0x2d2   : > { %v3411_v0 = vadd.f32 %v3410_v15, %v3409_v31  ;;  %v3524_v29 = vadd.f32 %v3523_v24, %v3522_v33  ;;  %v2587_v7 = vsel %vm2557_vm2, %v2550_v17, %v1998_v42  ;;  %v2552_v8 = vsel %vm2520_vm0, %v2515_v3, %v1946_v27 }
 0x2d4   : > { %v3526_v2 = vadd.f32 %v3525_v37, %v3524_v29  ;;  %v2000_v56 = vpop.permute.xlu0 %1999  ;;  %v5818_v32 = vadd.f32 %v3412_v41, %v3411_v0  ;;  %v3337_v0 = vld [vmem:[%s6146_s2 + $0x50] sm:$0xff]  ;;  %v3335_v29 = vld [vmem:[%s6146_s2 + $0x40] sm:$0xff]  ;;  %v3336_v41 = vld [vmem:[%s6146_s2 + $0x48] sm:$0xff] }
 0x2d5   : > { %v5821_v9 = vpop.permute.xlu1 %1657  ;;  %v2589_v28 = vsel %vm2557_vm2, %v2552_v8, %v2000_v56 }
 0x2d6   : > { %v5823_v57 = vadd.f32 %v3527_v54, %v3526_v2  ;;  %v2332_v39 = vsel %vm2298_vm10, %v2295_v46, %v5821_v9  ;;  %v3340_v46 = vld [vmem:[%s6146_s2 + $0x68] sm:$0xff] }
 0x2d8   : > { %v5828_v53 = vpop.permute.xlu0 %1659 }
 0x2d9   : > { %v2052_v51 = vpop.permute.xlu1 %2051 }
 0x2da   : > { %v2624_v38 = vsel %vm2594_vm7, %v2587_v7, %v2052_v51 }
 0x2dc   : > { %v2054_v52 = vpop.permute.xlu0 %2053 }
 0x2dd   : > { %v5847_v11 = vpop.permute.xlu1 %1711  ;;  %v2626_v43 = vsel %vm2594_vm7, %v2589_v28, %v2054_v52 }
 0x2e0   : > { %v5859_v62 = vpop.permute.xlu0 %1713 }
 0x2e1   : > { %v2786_v34 = vpop.permute.xlu1 %2785 }
 0x2e2   : > { %v2823_v45 = vsel %vm2793_vm8, %v2624_v38, %v2786_v34  ;;  %v2369_v34 = vsel %vm2335_vm11, %v2332_v39, %v5847_v11  ;;  %v3342_v39 = vld [vmem:[%s6146_s2 + $0x78] sm:$0xff] }
 0x2e3   : > { %4062 = vmatprep.mubr.msk.bf16.mxu1 %vm2892_vm12, %v2823_v45 }
 0x2e4   : > { %v2788_v22 = vpop.permute.xlu0 %2787 }
 0x2e5   : > { %v2825_v23 = vsel %vm2793_vm8, %v2626_v43, %v2788_v22  ;;  %v1766_v55 = vpop.permute.xlu1 %1765 }
 0x2e6   : > { %4063 = vmatmul.mubr.msk.bf16.gmra.mrb[8].mxu1 %vm2892_vm12, %v2825_v23  ;;  %v2406_v28 = vsel %vm6233_vm3, %v2369_v34, %v1766_v55 }
 0x2e8   : > { %v1820_v12 = vpop.permute.xlu0 %1819 }
 0x2e9   : > { %v5870_v49 = vpop.permute.xlu1 %1767  ;;  %v4044_v30 = vpop.f32.mrb[8].mxu0  ;;  %v2443_v23 = vsel %vm2409_vm13, %v2406_v28, %v1820_v12 }
 0x2ea   : > { %v3008_v21 = vadd.f32 %v4044_v30, %v5664_v40  ;;  %v2999_v27 = vpop.f32.mrb[9].mxu0  ;;  %v6271_v30 = vld [vmem:[#allocation40_spill] sm:$0xff] }
 0x2eb   : > { %v3000_v14 = vadd.f32 %v5664_v40, %v2999_v27  ;;  %v4045_v50 = vpop.f32.mrb[10].mxu0  ;;  %v2297_v11 = vsel %vm2261_vm9, %v6271_v30, %v5812_v63  ;;  %vm6272_vm9 = vmmov %vm6233_vm3 }
 0x2ec   : > { %v3791_v47 = vpack.c.bf16 %v3008_v21, %v3008_v21  ;;  %v3011_v61 = vadd.f32 %v4045_v50, %v5664_v40  ;;  %v1874_v48 = vpop.permute.xlu0 %1873  ;;  %v3002_v44 = vpop.f32.mrb[11].mxu0  ;;  %v2334_v55 = vsel %vm2298_vm10, %v2297_v11, %v5828_v53  ;;  %vm3476_vm10 = vcmask 57344  }
 0x2ed   : > { %v3789_v36 = vpack.c.bf16 %v3000_v14, %v3000_v14  ;;  %v5875_v18 = vpop.permute.xlu1 %1821  ;;  %v3003_v31 = vadd.f32 %v5664_v40, %v3002_v44  ;;  %v2371_v44 = vsel %vm2335_vm11, %v2334_v55, %v5859_v62 }
 0x2ee   : > { %3265 = vst.msk [vmem:[%s5675_s18 + $0x28] sm:$0xf] %vm3254_vm5, %v3791_v47  ;;  %v3115_v33 = vpack.c.bf16 %v3011_v61, %v3008_v21  ;;  %v3792_v15 = vpack.c.bf16 %v3011_v61, %v3011_v61  ;;  %v2480_v21 = vsel %vm2446_vm14, %v2443_v23, %v1874_v48  ;;  %v2408_v63 = vsel %vm6272_vm9, %v2371_v44, %v5870_v49 }
 0x2ef   : > { %3263 = vst.msk [vmem:[%s5675_s18 + $0x20] sm:$0xf] %vm3254_vm5, %v3789_v36  ;;  %v3114_v1 = vpack.c.bf16 %v3003_v31, %v3000_v14  ;;  %v3790_v24 = vpack.c.bf16 %v3003_v31, %v3003_v31 }
 0x2f0   : > { %3266 = vst.msk [vmem:[%s5675_s18 + $0x2c] sm:$0xf] %vm3254_vm5, %v3792_v15  ;;  %v3301_v42 = vunpack.c.l.bf16 %v3115_v33  ;;  %v1911_v37 = vpop.permute.xlu0 %1910  ;;  %v3302_v2 = vunpack.c.h.bf16 %v3115_v33  ;;  %v2445_v33 = vsel %vm2409_vm13, %v2408_v63, %v5875_v18 }
 0x2f1   : > { %3264 = vst.msk [vmem:[%s5675_s18 + $0x24] sm:$0xf] %vm3254_vm5, %v3790_v24  ;;  %v3299_v56 = vunpack.c.l.bf16 %v3114_v1  ;;  %v3300_v54 = vunpack.c.h.bf16 %v3114_v1  ;;  %v1876_v59 = vpop.permute.xlu1 %1875  ;;  %v2517_v12 = vsel %vm2483_vm15, %v2480_v21, %v1911_v37 }
 0x2f2   : > { %v3373_v25 = vmul.f32 %v3337_v0, %v3301_v42  ;;  %v3374_v10 = vmul.f32 %v3338_v19, %v3302_v2  ;;  %v2482_v1 = vsel %vm2446_vm14, %v2445_v33, %v1876_v59 }
 0x2f3   : > { %v3371_v51 = vmul.f32 %v3335_v29, %v3299_v56  ;;  %v3372_v35 = vmul.f32 %v3336_v41, %v3300_v54 }
 0x2f4   : > { %v1948_v58 = vpop.permute.xlu0 %1947  ;;  %v3488_v16 = vmul.f32 %v3373_v25, %v3373_v25  ;;  %v3489_v8 = vmul.f32 %v3374_v10, %v3374_v10  ;;  %v3420_v9 = vsel %vm317_vm1, %v3374_v10, 0.0 }
 0x2f5   : > { %v3414_v60 = vsel %vm317_vm1, %v3371_v51, 0.0  ;;  %v3486_v26 = vmul.f32 %v3371_v51, %v3371_v51  ;;  %v3487_v20 = vmul.f32 %v3372_v35, %v3372_v35  ;;  %v1913_v52 = vpop.permute.xlu1 %1912  ;;  %v3416_v13 = vsel %vm317_vm1, %v3372_v35, 0.0 }
 0x2f6   : > { %v3415_v4 = vadd.f32 %v3414_v60, %v5818_v32  ;;  %v3418_v32 = vsel %vm317_vm1, %v3373_v25, 0.0  ;;  %v3535_v47 = vsel %vm317_vm1, %v3489_v8, 0.0  ;;  %v2554_v36 = vsel %vm2520_vm0, %v2517_v12, %v1948_v58 }
 0x2f7   : > { %v3529_v17 = vsel %vm317_vm1, %v3486_v26, 0.0  ;;  %v3531_v5 = vsel %vm317_vm1, %v3487_v20, 0.0  ;;  %v2519_v62 = vsel %vm2483_vm15, %v2482_v1, %v1913_v52 }
 0x2f8   : > { %v3417_v7 = vadd.f32 %v3416_v13, %v3415_v4  ;;  %v3530_v3 = vadd.f32 %v3529_v17, %v5823_v57  ;;  %v2002_v38 = vpop.permute.xlu0 %2001  ;;  %v3533_v57 = vsel %vm317_vm1, %v3488_v16, 0.0  ;;  %v3341_v4 = vld [vmem:[%s6146_s2 + $0x70] sm:$0xff] }
 0x2f9   : > { %v1950_v45 = vpop.permute.xlu1 %1949  ;;  %v2591_v48 = vsel %vm2557_vm2, %v2554_v36, %v2002_v38 }
 0x2fa   : > { %v3419_v43 = vadd.f32 %v3418_v32, %v3417_v7  ;;  %v3532_v22 = vadd.f32 %v3531_v5, %v3530_v3  ;;  %v2556_v0 = vsel %vm2520_vm0, %v2519_v62, %v1950_v45 }
 0x2fc   : > { %v3534_v27 = vadd.f32 %v3533_v57, %v3532_v22  ;;  %v2056_v14 = vpop.permute.xlu0 %2055  ;;  %v3421_v50 = vadd.f32 %v3420_v9, %v3419_v43 }
 0x2fd   : > { %v2004_v61 = vpop.permute.xlu1 %2003  ;;  %v2628_v53 = vsel %vm2594_vm7, %v2591_v48, %v2056_v14 }
 0x2fe   : > { %v3536_v31 = vadd.f32 %v3535_v47, %v3534_v27  ;;  %v2593_v49 = vsel %vm2557_vm2, %v2556_v0, %v2004_v61 }
 0x300   : > { %v2790_v15 = vpop.permute.xlu0 %2789 }
 0x301   : > { %v2827_v24 = vsel %vm2793_vm8, %v2628_v53, %v2790_v15  ;;  %v2058_v42 = vpop.permute.xlu1 %2057 }
 0x302   : > { %4066 = vmatprep.mubr.msk.bf16.mxu1 %vm2892_vm12, %v2827_v24  ;;  %v2630_v29 = vsel %vm2594_vm7, %v2593_v49, %v2058_v42 }
 0x305   : > { %v2792_v18 = vpop.permute.xlu1 %2791 }
 0x306   : > { %v2829_v41 = vsel %vm2793_vm8, %v2630_v29, %v2792_v18  ;;  %v3345_v18 = vld [vmem:[%s6146_s2 + $0x90] sm:$0xff] }
 0x307   : > { %4067 = vmatmul.mubr.msk.bf16.gmra.mrb[12].mxu1 %vm2892_vm12, %v2829_v41  ;;  %v3343_v41 = vld [vmem:[%s6146_s2 + $0x80] sm:$0xff] }
 0x311   : > { %v4048_v37 = vpop.f32.mrb[12].mxu0 }
 0x312   : > { %v3024_v2 = vadd.f32 %v4048_v37, %v5664_v40  ;;  %v3015_v56 = vpop.f32.mrb[13].mxu0  ;;  %v3344_v37 = vld [vmem:[%s6146_s2 + $0x88] sm:$0xff] }
 0x313   : > { %v3016_v54 = vadd.f32 %v5664_v40, %v3015_v56  ;;  %v4049_v59 = vpop.f32.mrb[14].mxu0 }
 0x314   : > { %v3795_v19 = vpack.c.bf16 %v3024_v2, %v3024_v2  ;;  %v3027_v25 = vadd.f32 %v4049_v59, %v5664_v40  ;;  %v3018_v51 = vpop.f32.mrb[15].mxu0  ;;  %v3346_v59 = vld [vmem:[%s6146_s2 + $0x98] sm:$0xff] }
 0x315   : > { %v3793_v35 = vpack.c.bf16 %v3016_v54, %v3016_v54  ;;  %v3019_v58 = vadd.f32 %v5664_v40, %v3018_v51 }
 0x316   : > { %3269 = vst.msk [vmem:[%s5675_s18 + $0x38] sm:$0xf] %vm3254_vm5, %v3795_v19  ;;  %v3117_v10 = vpack.c.bf16 %v3027_v25, %v3024_v2  ;;  %v3796_v60 = vpack.c.bf16 %v3027_v25, %v3027_v25 }
 0x317   : > { %3267 = vst.msk [vmem:[%s5675_s18 + $0x30] sm:$0xf] %vm3254_vm5, %v3793_v35  ;;  %v3116_v26 = vpack.c.bf16 %v3019_v58, %v3016_v54  ;;  %v3794_v20 = vpack.c.bf16 %v3019_v58, %v3019_v58 }
 0x318   : > { %3270 = vst.msk [vmem:[%s5675_s18 + $0x3c] sm:$0xf] %vm3254_vm5, %v3796_v60  ;;  %v3305_v52 = vunpack.c.l.bf16 %v3117_v10  ;;  %v3306_v16 = vunpack.c.h.bf16 %v3117_v10 }
 0x319   : > { %3268 = vst.msk [vmem:[%s5675_s18 + $0x34] sm:$0xf] %vm3254_vm5, %v3794_v20  ;;  %v3303_v13 = vunpack.c.l.bf16 %v3116_v26  ;;  %v3304_v17 = vunpack.c.h.bf16 %v3116_v26 }
 0x31a   : > { %v3377_v7 = vmul.f32 %v3341_v4, %v3305_v52  ;;  %v3378_v34 = vmul.f32 %v3342_v39, %v3306_v16 }
 0x31b   : > { %v3375_v3 = vmul.f32 %v3339_v6, %v3303_v13  ;;  %v3376_v38 = vmul.f32 %v3340_v46, %v3304_v17 }
 0x31c   : > { %v3492_v28 = vmul.f32 %v3377_v7, %v3377_v7  ;;  %v3426_v57 = vsel %vm317_vm1, %v3377_v7, 0.0  ;;  %v3493_v30 = vmul.f32 %v3378_v34, %v3378_v34  ;;  %v3428_v14 = vsel %vm317_vm1, %v3378_v34, 0.0 }
 0x31d   : > { %v3422_v32 = vsel %vm317_vm1, %v3375_v3, 0.0  ;;  %v3490_v8 = vmul.f32 %v3375_v3, %v3375_v3  ;;  %v3491_v5 = vmul.f32 %v3376_v38, %v3376_v38  ;;  %v3424_v43 = vsel %vm317_vm1, %v3376_v38, 0.0 }
 0x31e   : > { %v3423_v45 = vadd.f32 %v3422_v32, %v3421_v50  ;;  %v3541_v55 = vsel %vm317_vm1, %v3492_v28, 0.0  ;;  %v3543_v12 = vsel %vm317_vm1, %v3493_v30, 0.0 }
 0x31f   : > { %v3537_v22 = vsel %vm317_vm1, %v3490_v8, 0.0  ;;  %v3539_v11 = vsel %vm317_vm1, %v3491_v5, 0.0 }
 0x320   : > { %v3425_v23 = vadd.f32 %v3424_v43, %v3423_v45  ;;  %v3538_v9 = vadd.f32 %v3537_v22, %v3536_v31 }
 0x322   : > { %v3427_v21 = vadd.f32 %v3426_v57, %v3425_v23  ;;  %v3540_v27 = vadd.f32 %v3539_v11, %v3538_v9 }
 0x324   : > { %v3542_v50 = vadd.f32 %v3541_v55, %v3540_v27  ;;  %v3429_v47 = vadd.f32 %v3428_v14, %v3427_v21 }
 0x326   : > { %v3544_v61 = vadd.f32 %v3543_v12, %v3542_v50  ;;  %v3349_v12 = vld [vmem:[%s6146_s2 + $0xb0] sm:$0xff] }
 0x339   : > { %v4052_v44 = vpop.f32.mrb[16].mxu0 }
 0x33a   : > { %v3040_v36 = vadd.f32 %v4052_v44, %v5664_v40  ;;  %v3031_v31 = vpop.f32.mrb[17].mxu0  ;;  %v3348_v44 = vld [vmem:[%s6146_s2 + $0xa8] sm:$0xff] }
 0x33b   : > { %v3032_v63 = vadd.f32 %v5664_v40, %v3031_v31  ;;  %v4053_v48 = vpop.f32.mrb[18].mxu0 }
 0x33c   : > { %v3799_v33 = vpack.c.bf16 %v3040_v36, %v3040_v36  ;;  %v3043_v53 = vadd.f32 %v4053_v48, %v5664_v40  ;;  %v3034_v15 = vpop.f32.mrb[19].mxu0  ;;  %v3350_v48 = vld [vmem:[%s6146_s2 + $0xb8] sm:$0xff] }
 0x33d   : > { %v3797_v1 = vpack.c.bf16 %v3032_v63, %v3032_v63  ;;  %v3035_v24 = vadd.f32 %v5664_v40, %v3034_v15 }
 0x33e   : > { %3273 = vst.msk [vmem:[%s5675_s18 + $0x48] sm:$0xf] %vm3254_vm5, %v3799_v33  ;;  %v3119_v42 = vpack.c.bf16 %v3043_v53, %v3040_v36  ;;  %v3800_v62 = vpack.c.bf16 %v3043_v53, %v3043_v53 }
 0x33f   : > { %3271 = vst.msk [vmem:[%s5675_s18 + $0x40] sm:$0xf] %vm3254_vm5, %v3797_v1  ;;  %v3118_v0 = vpack.c.bf16 %v3035_v24, %v3032_v63  ;;  %v3798_v49 = vpack.c.bf16 %v3035_v24, %v3035_v24 }
 0x340   : > { %3274 = vst.msk [vmem:[%s5675_s18 + $0x4c] sm:$0xf] %vm3254_vm5, %v3800_v62  ;;  %v3309_v29 = vunpack.c.l.bf16 %v3119_v42  ;;  %v3310_v2 = vunpack.c.h.bf16 %v3119_v42 }
 0x341   : > { %3272 = vst.msk [vmem:[%s5675_s18 + $0x44] sm:$0xf] %vm3254_vm5, %v3798_v49  ;;  %v3307_v56 = vunpack.c.l.bf16 %v3118_v0  ;;  %v3308_v54 = vunpack.c.h.bf16 %v3118_v0 }
 0x342   : > { %v3381_v19 = vmul.f32 %v3345_v18, %v3309_v29  ;;  %v3382_v35 = vmul.f32 %v3346_v59, %v3310_v2 }
 0x343   : > { %v3379_v25 = vmul.f32 %v3343_v41, %v3307_v56  ;;  %v3380_v51 = vmul.f32 %v3344_v37, %v3308_v54 }
 0x344   : > { %v3496_v20 = vmul.f32 %v3381_v19, %v3381_v19  ;;  %v3434_v16 = vsel %vm317_vm1, %v3381_v19, 0.0  ;;  %v3497_v13 = vmul.f32 %v3382_v35, %v3382_v35  ;;  %v3436_v3 = vsel %vm317_vm1, %v3382_v35, 0.0 }
 0x345   : > { %v3430_v58 = vsel %vm317_vm1, %v3379_v25, 0.0  ;;  %v3494_v10 = vmul.f32 %v3379_v25, %v3379_v25  ;;  %v3495_v60 = vmul.f32 %v3380_v51, %v3380_v51  ;;  %v3432_v52 = vsel %vm317_vm1, %v3380_v51, 0.0 }
 0x346   : > { %v3431_v26 = vadd.f32 %v3430_v58, %v3429_v47  ;;  %v3549_v38 = vsel %vm317_vm1, %v3496_v20, 0.0  ;;  %v3551_v8 = vsel %vm317_vm1, %v3497_v13, 0.0 }
 0x347   : > { %v3545_v4 = vsel %vm317_vm1, %v3494_v10, 0.0  ;;  %v3547_v17 = vsel %vm317_vm1, %v3495_v60, 0.0 }
 0x348   : > { %v3433_v6 = vadd.f32 %v3432_v52, %v3431_v26  ;;  %v3546_v46 = vadd.f32 %v3545_v4, %v3544_v61  ;;  %v3347_v61 = vld [vmem:[%s6146_s2 + $0xa0] sm:$0xff] }
 0x34a   : > { %v3435_v39 = vadd.f32 %v3434_v16, %v3433_v6  ;;  %v3548_v7 = vadd.f32 %v3547_v17, %v3546_v46 }
 0x34c   : > { %v3550_v34 = vadd.f32 %v3549_v38, %v3548_v7  ;;  %v3437_v32 = vadd.f32 %v3436_v3, %v3435_v39 }
 0x34e   : > { %v3552_v5 = vadd.f32 %v3551_v8, %v3550_v34  ;;  %v3353_v8 = vld [vmem:[%s6146_s2 + $0xd0] sm:$0xff] }
 0x361   : > { %v4056_v45 = vpop.f32.mrb[0].mxu1 }
 0x362   : > { %v3056_v28 = vadd.f32 %v4056_v45, %v5664_v40  ;;  %v3047_v43 = vpop.f32.mrb[1].mxu1  ;;  %v3352_v45 = vld [vmem:[%s6146_s2 + $0xc8] sm:$0xff] }
 0x363   : > { %v3048_v22 = vadd.f32 %v5664_v40, %v3047_v43  ;;  %v4057_v23 = vpop.f32.mrb[2].mxu1 }
 0x364   : > { %v3803_v9 = vpack.c.bf16 %v3056_v28, %v3056_v28  ;;  %v3059_v57 = vadd.f32 %v4057_v23, %v5664_v40  ;;  %v3050_v30 = vpop.f32.mrb[3].mxu1  ;;  %v3354_v23 = vld [vmem:[%s6146_s2 + $0xd8] sm:$0xff] }
 0x365   : > { %v3801_v11 = vpack.c.bf16 %v3048_v22, %v3048_v22  ;;  %v3051_v21 = vadd.f32 %v5664_v40, %v3050_v30 }
 0x366   : > { %3277 = vst.msk [vmem:[%s5675_s18 + $0x58] sm:$0xf] %vm3254_vm5, %v3803_v9  ;;  %v3121_v27 = vpack.c.bf16 %v3059_v57, %v3056_v28  ;;  %v3804_v14 = vpack.c.bf16 %v3059_v57, %v3059_v57 }
 0x367   : > { %3275 = vst.msk [vmem:[%s5675_s18 + $0x50] sm:$0xf] %vm3254_vm5, %v3801_v11  ;;  %v3120_v55 = vpack.c.bf16 %v3051_v21, %v3048_v22  ;;  %v3802_v50 = vpack.c.bf16 %v3051_v21, %v3051_v21 }
 0x368   : > { %3278 = vst.msk [vmem:[%s5675_s18 + $0x5c] sm:$0xf] %vm3254_vm5, %v3804_v14  ;;  %v3313_v47 = vunpack.c.l.bf16 %v3121_v27  ;;  %v3314_v36 = vunpack.c.h.bf16 %v3121_v27 }
 0x369   : > { %3276 = vst.msk [vmem:[%s5675_s18 + $0x54] sm:$0xf] %vm3254_vm5, %v3802_v50  ;;  %v3311_v31 = vunpack.c.l.bf16 %v3120_v55  ;;  %v3312_v63 = vunpack.c.h.bf16 %v3120_v55 }
 0x36a   : > { %v3385_v33 = vmul.f32 %v3349_v12, %v3313_v47  ;;  %v3386_v1 = vmul.f32 %v3350_v48, %v3314_v36 }
 0x36b   : > { %v3383_v53 = vmul.f32 %v3347_v61, %v3311_v31  ;;  %v3384_v15 = vmul.f32 %v3348_v44, %v3312_v63 }
 0x36c   : > { %v3500_v49 = vmul.f32 %v3385_v33, %v3385_v33  ;;  %v3442_v2 = vsel %vm317_vm1, %v3385_v33, 0.0  ;;  %v3501_v56 = vmul.f32 %v3386_v1, %v3386_v1  ;;  %v3444_v25 = vsel %vm317_vm1, %v3386_v1, 0.0 }
 0x36d   : > { %v3438_v24 = vsel %vm317_vm1, %v3383_v53, 0.0  ;;  %v3498_v42 = vmul.f32 %v3383_v53, %v3383_v53  ;;  %v3499_v62 = vmul.f32 %v3384_v15, %v3384_v15  ;;  %v3440_v29 = vsel %vm317_vm1, %v3384_v15, 0.0 }
 0x36e   : > { %v3439_v0 = vadd.f32 %v3438_v24, %v3437_v32  ;;  %v3557_v51 = vsel %vm317_vm1, %v3500_v49, 0.0  ;;  %v3559_v10 = vsel %vm317_vm1, %v3501_v56, 0.0 }
 0x36f   : > { %v3553_v18 = vsel %vm317_vm1, %v3498_v42, 0.0  ;;  %v3555_v54 = vsel %vm317_vm1, %v3499_v62, 0.0 }
 0x370   : > { %v3441_v41 = vadd.f32 %v3440_v29, %v3439_v0  ;;  %v3554_v37 = vadd.f32 %v3553_v18, %v3552_v5  ;;  %v3351_v5 = vld [vmem:[%s6146_s2 + $0xc0] sm:$0xff] }
 0x372   : > { %v3443_v59 = vadd.f32 %v3442_v2, %v3441_v41  ;;  %v3556_v19 = vadd.f32 %v3555_v54, %v3554_v37 }
 0x374   : > { %v3558_v35 = vadd.f32 %v3557_v51, %v3556_v19  ;;  %v3445_v58 = vadd.f32 %v3444_v25, %v3443_v59 }
 0x376   : > { %v3560_v60 = vadd.f32 %v3559_v10, %v3558_v35  ;;  %v3357_v10 = vld [vmem:[%s6146_s2 + $0xf0] sm:$0xff] }
 0x38d   : > { %v4060_v26 = vpop.f32.mrb[4].mxu1 }
 0x38e   : > { %v3072_v20 = vadd.f32 %v4060_v26, %v5664_v40  ;;  %v3063_v52 = vpop.f32.mrb[5].mxu1 }
 0x38f   : > { %v3064_v4 = vadd.f32 %v5664_v40, %v3063_v52  ;;  %v4061_v6 = vpop.f32.mrb[6].mxu1 }
 0x390   : > { %v3807_v46 = vpack.c.bf16 %v3072_v20, %v3072_v20  ;;  %v3075_v16 = vadd.f32 %v4061_v6, %v5664_v40  ;;  %v3066_v13 = vpop.f32.mrb[7].mxu1 }
 0x391   : > { %v3805_v17 = vpack.c.bf16 %v3064_v4, %v3064_v4  ;;  %v3067_v39 = vadd.f32 %v5664_v40, %v3066_v13 }
 0x392   : > { %3281 = vst.msk [vmem:[%s5675_s18 + $0x68] sm:$0xf] %vm3254_vm5, %v3807_v46  ;;  %v3123_v7 = vpack.c.bf16 %v3075_v16, %v3072_v20  ;;  %v3808_v3 = vpack.c.bf16 %v3075_v16, %v3075_v16 }
 0x393   : > { %3279 = vst.msk [vmem:[%s5675_s18 + $0x60] sm:$0xf] %vm3254_vm5, %v3805_v17  ;;  %v3122_v38 = vpack.c.bf16 %v3067_v39, %v3064_v4  ;;  %v3806_v34 = vpack.c.bf16 %v3067_v39, %v3067_v39  ;;  %v3358_v4 = vld [vmem:[%s6146_s2 + $0xf8] sm:$0xff] }
 0x394   : > { %3282 = vst.msk [vmem:[%s5675_s18 + $0x6c] sm:$0xf] %vm3254_vm5, %v3808_v3  ;;  %v3317_v32 = vunpack.c.l.bf16 %v3123_v7  ;;  %v3318_v28 = vunpack.c.h.bf16 %v3123_v7 }
 0x395   : > { %3280 = vst.msk [vmem:[%s5675_s18 + $0x64] sm:$0xf] %vm3254_vm5, %v3806_v34  ;;  %v3315_v43 = vunpack.c.l.bf16 %v3122_v38  ;;  %v3316_v22 = vunpack.c.h.bf16 %v3122_v38 }
 0x396   : > { %v3389_v9 = vmul.f32 %v3353_v8, %v3317_v32  ;;  %v3390_v11 = vmul.f32 %v3354_v23, %v3318_v28 }
 0x397   : > { %v3387_v57 = vmul.f32 %v3351_v5, %v3315_v43  ;;  %v3388_v30 = vmul.f32 %v3352_v45, %v3316_v22 }
 0x398   : > { %v3504_v50 = vmul.f32 %v3389_v9, %v3389_v9  ;;  %v3450_v36 = vsel %vm317_vm1, %v3389_v9, 0.0  ;;  %v3505_v31 = vmul.f32 %v3390_v11, %v3390_v11  ;;  %v3452_v53 = vsel %vm317_vm1, %v3390_v11, 0.0 }
 0x399   : > { %v3446_v21 = vsel %vm317_vm1, %v3387_v57, 0.0  ;;  %v3502_v27 = vmul.f32 %v3387_v57, %v3387_v57  ;;  %v3503_v14 = vmul.f32 %v3388_v30, %v3388_v30  ;;  %v3448_v47 = vsel %vm317_vm1, %v3388_v30, 0.0 }
 0x39a   : > { %v3447_v55 = vadd.f32 %v3446_v21, %v3445_v58  ;;  %v3565_v15 = vsel %vm317_vm1, %v3504_v50, 0.0  ;;  %v3567_v42 = vsel %vm317_vm1, %v3505_v31, 0.0 }
 0x39b   : > { %v3561_v12 = vsel %vm317_vm1, %v3502_v27, 0.0  ;;  %v3563_v63 = vsel %vm317_vm1, %v3503_v14, 0.0 }
 0x39c   : > { %v3449_v61 = vadd.f32 %v3448_v47, %v3447_v55  ;;  %v3562_v44 = vadd.f32 %v3561_v12, %v3560_v60  ;;  %v3355_v60 = vld [vmem:[%s6146_s2 + $0xe0] sm:$0xff] }
 0x39d   : > { %v4119_v55 = vld [vmem:[%s6148_s4] ss:$0 sm:$0xff] }
 0x39e   : > { %v3451_v48 = vadd.f32 %v3450_v36, %v3449_v61  ;;  %v3564_v33 = vadd.f32 %v3563_v63, %v3562_v44 }
 0x3a0   : > { %v3566_v1 = vadd.f32 %v3565_v15, %v3564_v33  ;;  %v3453_v24 = vadd.f32 %v3452_v53, %v3451_v48 }
 0x3a2   : > { %v3568_v62 = vadd.f32 %v3567_v42, %v3566_v1  ;;  %v3361_v42 = vld [vmem:[%s6146_s2 + $0x110] sm:$0xff] }
 0x3b9   : > { %v4064_v0 = vpop.f32.mrb[8].mxu1 }
 0x3ba   : > { %v3088_v49 = vadd.f32 %v4064_v0, %v5664_v40  ;;  %v3079_v29 = vpop.f32.mrb[9].mxu1  ;;  %v3360_v0 = vld [vmem:[%s6146_s2 + $0x108] sm:$0xff] }
 0x3bb   : > { %v3080_v18 = vadd.f32 %v5664_v40, %v3079_v29  ;;  %v4065_v41 = vpop.f32.mrb[10].mxu1 }
 0x3bc   : > { %v3811_v37 = vpack.c.bf16 %v3088_v49, %v3088_v49  ;;  %v3091_v2 = vadd.f32 %v4065_v41, %v5664_v40  ;;  %v3082_v56 = vpop.f32.mrb[11].mxu1  ;;  %v3362_v41 = vld [vmem:[%s6146_s2 + $0x118] sm:$0xff] }
 0x3bd   : > { %v3809_v54 = vpack.c.bf16 %v3080_v18, %v3080_v18  ;;  %v3083_v59 = vadd.f32 %v5664_v40, %v3082_v56  ;;  %v3356_v40 = vld [vmem:[%s6146_s2 + $0xe8] sm:$0xff] }
 0x3be   : > { %3285 = vst.msk [vmem:[%s5675_s18 + $0x78] sm:$0xf] %vm3254_vm5, %v3811_v37  ;;  %v3125_v19 = vpack.c.bf16 %v3091_v2, %v3088_v49  ;;  %v3812_v25 = vpack.c.bf16 %v3091_v2, %v3091_v2 }
 0x3bf   : > { %3283 = vst.msk [vmem:[%s5675_s18 + $0x70] sm:$0xf] %vm3254_vm5, %v3809_v54  ;;  %v3124_v51 = vpack.c.bf16 %v3083_v59, %v3080_v18  ;;  %v3810_v35 = vpack.c.bf16 %v3083_v59, %v3083_v59 }
 0x3c0   : > { %3286 = vst.msk [vmem:[%s5675_s18 + $0x7c] sm:$0xf] %vm3254_vm5, %v3812_v25  ;;  %v3321_v58 = vunpack.c.l.bf16 %v3125_v19  ;;  %v3322_v26 = vunpack.c.h.bf16 %v3125_v19 }
 0x3c1   : > { %3284 = vst.msk [vmem:[%s5675_s18 + $0x74] sm:$0xf] %vm3254_vm5, %v3810_v35  ;;  %v3319_v20 = vunpack.c.l.bf16 %v3124_v51  ;;  %v3320_v52 = vunpack.c.h.bf16 %v3124_v51 }
 0x3c2   : > { %v3393_v6 = vmul.f32 %v3357_v10, %v3321_v58  ;;  %v3394_v13 = vmul.f32 %v3358_v4, %v3322_v26 }
 0x3c3   : > { %v3391_v46 = vmul.f32 %v3355_v60, %v3319_v20  ;;  %v3392_v16 = vmul.f32 %v3356_v40, %v3320_v52 }
 0x3c4   : > { %v3508_v38 = vmul.f32 %v3393_v6, %v3393_v6  ;;  %v3458_v45 = vsel %vm317_vm1, %v3393_v6, 0.0  ;;  %v3509_v28 = vmul.f32 %v3394_v13, %v3394_v13  ;;  %v3460_v9 = vsel %vm317_vm1, %v3394_v13, 0.0 }
 0x3c5   : > { %v3454_v17 = vsel %vm317_vm1, %v3391_v46, 0.0  ;;  %v3506_v39 = vmul.f32 %v3391_v46, %v3391_v46  ;;  %v3507_v7 = vmul.f32 %v3392_v16, %v3392_v16  ;;  %v3456_v34 = vsel %vm317_vm1, %v3392_v16, 0.0 }
 0x3c6   : > { %v3455_v3 = vadd.f32 %v3454_v17, %v3453_v24  ;;  %v3573_v57 = vsel %vm317_vm1, %v3508_v38, 0.0  ;;  %v3575_v21 = vsel %vm317_vm1, %v3509_v28, 0.0 }
 0x3c7   : > { %v3569_v32 = vsel %vm317_vm1, %v3506_v39, 0.0  ;;  %v3571_v43 = vsel %vm317_vm1, %v3507_v7, 0.0 }
 0x3c8   : > { %v3457_v8 = vadd.f32 %v3456_v34, %v3455_v3  ;;  %v3570_v5 = vadd.f32 %v3569_v32, %v3568_v62  ;;  %v3359_v62 = vld [vmem:[%s6146_s2 + $0x100] sm:$0xff] }
 0x3ca   : > { %v3459_v22 = vadd.f32 %v3458_v45, %v3457_v8  ;;  %v3572_v23 = vadd.f32 %v3571_v43, %v3570_v5 }
 0x3cc   : > { %v3574_v30 = vadd.f32 %v3573_v57, %v3572_v23  ;;  %v3461_v11 = vadd.f32 %v3460_v9, %v3459_v22 }
 0x3ce   : > { %v3576_v27 = vadd.f32 %v3575_v21, %v3574_v30 }
 0x3da   : > { %v4068_v14 = vpop.f32.mrb[12].mxu1 }
 0x3db   : > { %v3104_v50 = vadd.f32 %v4119_v55, %v4068_v14  ;;  %v3095_v47 = vpop.f32.mrb[13].mxu1 }
 0x3dc   : > { %v3096_v12 = vadd.f32 %v4119_v55, %v3095_v47  ;;  %v4069_v61 = vpop.f32.mrb[14].mxu1 }
 0x3dd   : > { %v3815_v44 = vpack.c.bf16 %v3104_v50, %v3104_v50  ;;  %v3107_v36 = vadd.f32 %v4119_v55, %v4069_v61  ;;  %v3098_v31 = vpop.f32.mrb[15].mxu1 }
 0x3de   : > { %v3813_v63 = vpack.c.bf16 %v3096_v12, %v3096_v12  ;;  %v3099_v48 = vadd.f32 %v4119_v55, %v3098_v31 }
 0x3df   : > { %3289 = vst.msk [vmem:[%s5675_s18 + $0x88] sm:$0xf] %vm3254_vm5, %v3815_v44  ;;  %v3127_v33 = vpack.c.bf16 %v3107_v36, %v3104_v50  ;;  %v3816_v53 = vpack.c.bf16 %v3107_v36, %v3107_v36 }
 0x3e0   : > { %3287 = vst.msk [vmem:[%s5675_s18 + $0x80] sm:$0xf] %vm3254_vm5, %v3813_v63  ;;  %v3126_v15 = vpack.c.bf16 %v3099_v48, %v3096_v12  ;;  %v3814_v1 = vpack.c.bf16 %v3099_v48, %v3099_v48 }
 0x3e1   : > { %3290 = vst.msk [vmem:[%s5675_s18 + $0x8c] sm:$0xf] %vm3254_vm5, %v3816_v53  ;;  %v3325_v24 = vunpack.c.l.bf16 %v3127_v33  ;;  %v3326_v49 = vunpack.c.h.bf16 %v3127_v33 }
 0x3e2   : > { %3288 = vst.msk [vmem:[%s5675_s18 + $0x84] sm:$0xf] %vm3254_vm5, %v3814_v1  ;;  %v3323_v29 = vunpack.c.l.bf16 %v3126_v15  ;;  %v3324_v18 = vunpack.c.h.bf16 %v3126_v15 }
 0x3e3   : > { %v3397_v37 = vmul.f32 %v3361_v42, %v3325_v24  ;;  %v3398_v54 = vmul.f32 %v3362_v41, %v3326_v49 }
 0x3e4   : > { %v3395_v2 = vmul.f32 %v3359_v62, %v3323_v29  ;;  %v3396_v56 = vmul.f32 %v3360_v0, %v3324_v18 }
 0x3e5   : > { %v3512_v35 = vmul.f32 %v3397_v37, %v3397_v37  ;;  %v3466_v26 = vsel %vm317_vm1, %v3397_v37, 0.0  ;;  %v3513_v20 = vmul.f32 %v3398_v54, %v3398_v54  ;;  %v3468_v46 = vsel %vm317_vm1, %v3398_v54, 0.0 }
 0x3e6   : > { %v3462_v59 = vsel %vm317_vm1, %v3395_v2, 0.0  ;;  %v3510_v19 = vmul.f32 %v3395_v2, %v3395_v2  ;;  %v3511_v25 = vmul.f32 %v3396_v56, %v3396_v56  ;;  %v3464_v58 = vsel %vm317_vm1, %v3396_v56, 0.0 }
 0x3e7   : > { %v3463_v51 = vadd.f32 %v3462_v59, %v3461_v11  ;;  %v3581_v16 = vsel %vm317_vm1, %v3512_v35, 0.0  ;;  %v3583_v39 = vsel %vm317_vm1, %v3513_v20, 0.0 }
 0x3e8   : > { %v3577_v10 = vsel %vm317_vm1, %v3510_v19, 0.0  ;;  %v3579_v52 = vsel %vm317_vm1, %v3511_v25, 0.0 }
 0x3e9   : > { %v3465_v60 = vadd.f32 %v3464_v58, %v3463_v51  ;;  %v3578_v40 = vadd.f32 %v3577_v10, %v3576_v27 }
 0x3eb   : > { %v3467_v4 = vadd.f32 %v3466_v26, %v3465_v60  ;;  %v3580_v6 = vadd.f32 %v3579_v52, %v3578_v40 }
 0x3ed   : > { %v3469_v13 = vadd.f32 %v3468_v46, %v3467_v4  ;;  %v3582_v17 = vadd.f32 %v3581_v16, %v3580_v6 }
 0x3ef   : > { %v3470_v7 = vrot.slane %v3469_v13, 4  ;;  %v3584_v3 = vadd.f32 %v3583_v39, %v3582_v17 }
 0x3f1   : > { %v3471_v38 = vadd.f32 %v3470_v7, %v3469_v13  ;;  %v3585_v34 = vrot.slane %v3584_v3, 4 }
 0x3f3   : > { %v3472_v32 = vrot.slane %v3471_v38, 2  ;;  %v3586_v8 = vadd.f32 %v3585_v34, %v3584_v3 }
 0x3f5   : > { %v3473_v5 = vadd.f32 %v3472_v32, %v3471_v38  ;;  %v3587_v45 = vrot.slane %v3586_v8, 2 }
 0x3f7   : > { %v3474_v28 = vrot.slane %v3473_v5, 1  ;;  %v3588_v43 = vadd.f32 %v3587_v45, %v3586_v8 }
 0x3f9   : > { %v3475_v22 = vadd.f32 %v3474_v28, %v3473_v5  ;;  %v3589_v23 = vrot.slane %v3588_v43, 1 }
 0x3fb   : > { %3477 = vst.msk [vmem:[%s312_s10] sm:$0x1] %vm3476_vm10, %v3475_v22  ;;  %v3590_v9 = vadd.f32 %v3589_v23, %v3588_v43 }
 0x3fd   : > { %3591 = vst.msk [vmem:[%s315_s16] sm:$0x1] %vm3476_vm10, %v3590_v9 }
 0x3fe PF: > { %s18_s24 = sadd.s32 1, %s4126_s24  }
 0x3ff   : > { %p15_p4 = scmp.ge.s32.totalorder %s18_s24, 4  }
 0x401   :  { %17 = sbr.rel (!%p15_p4) target bundleno = 1 (0x1), region = 97 }

</bundles_post_ra>
